<compile_context>
chip_gen: v6e
topology: v6e:2x2x1
jax: 0.10.0
libtpu: 0.0.40
codegen_flags: <defaults>
</compile_context>

<pallas_src>
import functools

import numpy as np
import jax
import jax.numpy as jnp
from jax.experimental import pallas as pl
from jax.experimental.pallas import tpu as pltpu


# ----------------------------------------------------------------------------- kernel
def seq2seq_kernel(tok_ref, emb_ref,
                   enc_wx_ref, enc_wh_ref, enc_b_ref,
                   embwe_ref, attn_b_ref,
                   comb_wh_ref, comb_b_ref,
                   dec_wx_ref, dec_b_ref,
                   wstate_ref, lin_b_ref,
                   out_ref,
                   gx_scr, encp_scr,
                   *, Bp, L, Hp, Vp, Lp, pad_idx, init_idx):
    f32 = jnp.float32
    bf16 = jnp.bfloat16
    H4 = 4 * Hp

    # small tensors only; big weights are read at their jnp.dot call sites
    tok = tok_ref[...]                                   # (L*Bp, 1) int32, time-major
    nonpad = tok != pad_idx                              # all L per-step masks at once
    enc_b = enc_b_ref[...]                               # (1, 4Hp) f32
    attn_b = attn_b_ref[...]                             # (1, Lp) f32 (padded lanes = -1e30)
    comb_b = comb_b_ref[...]                             # (1, Hp) f32
    dec_b = dec_b_ref[...]                               # (1, 4Hp) f32
    lin_b = lin_b_ref[...]                               # (1, Vp) f32 (padded lanes = -1e30)

    # ---- whole-sequence embedding + hoisted encoder input projection -> VMEM scratch ----
    iota_lbv = jax.lax.broadcasted_iota(jnp.int32, (L * Bp, Vp), 1)
    onehot_all = (iota_lbv == tok).astype(bf16)                                # (L*Bp, Vp)
    emb_all = jnp.dot(onehot_all, emb_ref[...], preferred_element_type=f32)    # exact bf16 rows
    gx_scr[...] = jnp.dot(emb_all.astype(bf16), enc_wx_ref[...],
                          preferred_element_type=f32)                          # (L*Bp, 4Hp)

    def gates(g):
        i_g = jax.nn.sigmoid(g[:, 0 * Hp:1 * Hp])
        f_g = jax.nn.sigmoid(g[:, 1 * Hp:2 * Hp])
        g_g = jnp.tanh(g[:, 2 * Hp:3 * Hp])
        o_g = jax.nn.sigmoid(g[:, 3 * Hp:4 * Hp])
        return i_g, f_g, g_g, o_g

    # ---- encoder LSTM (unidirectional, batch_first), padded steps masked ----------------
    h = jnp.zeros((Bp, Hp), f32)
    c = jnp.zeros((Bp, Hp), f32)
    for t in range(L):                                   # L is small (8); keep unrolled
        g = (gx_scr[t * Bp:(t + 1) * Bp, :]
             + jnp.dot(h.astype(bf16), enc_wh_ref[...], preferred_element_type=f32)
             + enc_b)
        i_g, f_g, g_g, o_g = gates(g)
        c_new = f_g * c + i_g * g_g
        h_new = o_g * jnp.tanh(c_new)
        # right-padded inputs: token != pad  <=>  t < length (pack_padded_sequence semantics)
        m = nonpad[t * Bp:(t + 1) * Bp, :]               # (Bp, 1) bool
        h = jnp.where(m, h_new, h)
        c = jnp.where(m, c_new, c)
        encp_scr[t * Bp:(t + 1) * Bp, :] = jnp.where(m, h_new, 0.0)   # encoder output (zeroed pads)

    # hoisted attn_combine projection of the encoder outputs: one M=L*Bp matmul instead of
    # one tiny M=Bp matmul per decoder step.  encp_scr now holds enc_out @ comb_wh.
    encp_scr[...] = jnp.dot(encp_scr[...].astype(bf16), comb_wh_ref[...],
                            preferred_element_type=f32)                       # (L*Bp, Hp)

    # ---- attention decoder ----------------------------------------------------------------
    iota_bv = jax.lax.broadcasted_iota(jnp.int32, (Bp, Vp), 1)
    dh = h                                               # decoder hidden <- encoder final hidden (z1)
    dc = jnp.zeros((Bp, Hp), f32)                        # decoder cell state starts at zeros

    # prologue: only the dec_whh columns are needed (logits are discarded and the attn_whh
    # contribution is identically zero because dc0 = 0).
    gh_dec = jnp.dot(dh.astype(bf16), wstate_ref[0:Hp, 0:H4],
                     preferred_element_type=f32)                               # (Bp, 4Hp)
    attn_dc = jnp.zeros((Bp, Lp), f32)
    x_onehot = (iota_bv == init_idx).astype(bf16)        # <s> token one-hot

    for t in range(L):
        # decoder-token embedding pre-fused with [attn_we | comb_we] (one matmul)
        ep = jnp.dot(x_onehot, embwe_ref[...], preferred_element_type=f32)     # (Bp, Lp+Hp)

        # attn(cat(embedded, decoder_cell_state)); padded lanes carry -1e30 bias -> softmax 0
        a_logits = ep[:, 0:Lp] + attn_dc + attn_b                              # (Bp, Lp)
        a_logits = a_logits - jnp.max(a_logits, axis=-1, keepdims=True)
        a = jnp.exp(a_logits)
        a = a * pl.reciprocal(jnp.sum(a, axis=-1, keepdims=True), approx=True)

        # attn_combine(cat(embedded, attn_applied)) with comb_wh hoisted: VPU weighted sum
        # of the pre-projected encoder outputs.
        comb = ep[:, Lp:Lp + Hp] + comb_b
        for l in range(L):
            comb = comb + a[:, l:l + 1] * encp_scr[l * Bp:(l + 1) * Bp, :]     # (Bp, Hp)

        # decoder LSTMCell
        g = (jnp.dot(comb.astype(bf16), dec_wx_ref[...], preferred_element_type=f32)
             + gh_dec + dec_b)
        i_g, f_g, g_g, o_g = gates(g)
        dc = f_g * dc + i_g * g_g
        dh = o_g * jnp.tanh(dc)

        # fused: logits for this step + dec_whh / attn_whh projections for the next step
        sp = jnp.dot(jnp.concatenate([dh, dc], axis=1).astype(bf16), wstate_ref[...],
                     preferred_element_type=f32)                               # (Bp, 4Hp+Vp+Lp)
        gh_dec = sp[:, 0:H4]
        logits = sp[:, H4:H4 + Vp] + lin_b                                     # (Bp, Vp)
        attn_dc = sp[:, H4 + Vp:H4 + Vp + Lp]

        out_ref[t] = logits                              # lane-dense (Bp, 128*k) store

        # greedy next token (deterministic stand-in for multinomial sampling)
        mx = jnp.max(logits, axis=-1, keepdims=True)
        x_idx = jnp.min(jnp.where(logits >= mx, iota_bv, Vp), axis=-1, keepdims=True)
        x_onehot = (iota_bv == x_idx).astype(bf16)


# ----------------------------------------------------------------------------- wrapper
def seq2seq_forward_pallas(params, tokens, *, hidden_size, max_len, pad_idx, init_idx):
    f32 = jnp.float32
    bf16 = jnp.bfloat16
    B, L = tokens.shape
    assert L == max_len
    V, E = params["emb"].shape
    H = hidden_size

    Bp = ((B + 7) // 8) * 8            # sublane-pad batch
    Hp = ((H + 127) // 128) * 128      # lane-pad hidden
    Vp = ((V + 127) // 128) * 128      # lane-pad vocab (lane-dense logits stores)
    Lp = ((L + 127) // 128) * 128      # lane-pad attention length
    NEG = -1e30

    # time-major, batch-padded tokens (padded rows are all-PAD -> zero-length sequences)
    tok_pad = jnp.full((Bp, L), pad_idx, jnp.int32).at[:B, :].set(tokens.astype(jnp.int32))
    tok_tm = jnp.transpose(tok_pad).reshape(L * Bp, 1)

    def pad_gates(w_t, k_pad):
        # w_t: (K, 4H), PyTorch gate order [i|f|g|o] -> (k_pad, 4*Hp), each gate lane-padded
        K = w_t.shape[0]
        out = jnp.zeros((k_pad, 4 * Hp), f32)
        for k in range(4):
            out = out.at[:K, k * Hp:k * Hp + H].set(w_t[:, k * H:(k + 1) * H])
        return out

    def pad_gate_bias(b):
        out = jnp.zeros((1, 4 * Hp), f32)
        for k in range(4):
            out = out.at[0, k * Hp:k * Hp + H].set(b[k * H:(k + 1) * H])
        return out

    emb_p = jnp.zeros((Vp, E), f32).at[:V, :].set(params["emb"]).astype(bf16)

    enc_wx = pad_gates(params["enc_w_ih"].T, E).astype(bf16)          # (E, 4Hp)
    enc_wh = pad_gates(params["enc_w_hh"].T, Hp).astype(bf16)         # (Hp, 4Hp)
    enc_b = pad_gate_bias(params["enc_b_ih"] + params["enc_b_hh"])    # (1, 4Hp)

    # pre-fused decoder embedding lookup: emb_we = emb @ [attn_we | comb_we]
    w_e = jnp.zeros((E, Lp + Hp), f32)
    w_e = w_e.at[:, :L].set(params["attn_w"][:, :E].T)
    w_e = w_e.at[:, Lp:Lp + H].set(params["comb_w"][:, :E].T)
    emb_we = jnp.dot(emb_p, w_e.astype(bf16),
                     preferred_element_type=f32).astype(bf16)         # (Vp, Lp+Hp)
    attn_b = jnp.full((1, Lp), NEG, f32).at[0, :L].set(params["attn_b"])

    comb_wh = jnp.zeros((Hp, Hp), f32).at[:H, :H].set(params["comb_w"][:, E:].T).astype(bf16)
    comb_b = jnp.zeros((1, Hp), f32).at[0, :H].set(params["comb_b"])

    dec_wx = pad_gates(params["dec_w_ih"].T, Hp).astype(bf16)         # (Hp, 4Hp)
    dec_b = pad_gate_bias(params["dec_b_ih"] + params["dec_b_hh"])    # (1, 4Hp)

    # fused state projection: [dh | dc] @ [dec_whh | lin_w | attn_whh]
    w_state = jnp.zeros((2 * Hp, 4 * Hp + Vp + Lp), f32)
    dec_wh_t = params["dec_w_hh"].T                                   # (H, 4H)
    for k in range(4):
        w_state = w_state.at[:H, k * Hp:k * Hp + H].set(dec_wh_t[:, k * H:(k + 1) * H])
    w_state = w_state.at[:H, 4 * Hp:4 * Hp + V].set(params["lin_w"].T)
    w_state = w_state.at[Hp:Hp + H, 4 * Hp + Vp:4 * Hp + Vp + L].set(params["attn_w"][:, E:].T)
    w_state = w_state.astype(bf16)
    lin_b = jnp.full((1, Vp), NEG, f32).at[0, :V].set(params["lin_b"])

    kernel = functools.partial(seq2seq_kernel, Bp=Bp, L=L, Hp=Hp, Vp=Vp, Lp=Lp,
                               pad_idx=pad_idx, init_idx=init_idx)

    vmem = pl.BlockSpec(memory_space=pltpu.MemorySpace.VMEM)
    out = pl.pallas_call(
        kernel,
        out_shape=jax.ShapeDtypeStruct((L, Bp, Vp), jnp.float32),
        in_specs=[vmem] * 13,
        out_specs=vmem,
        scratch_shapes=[
            pltpu.VMEM((L * Bp, 4 * Hp), jnp.float32),   # encoder input projections (gx)
            pltpu.VMEM((L * Bp, Hp), jnp.float32),       # encoder outputs, then enc_out @ comb_wh
        ],
        compiler_params=pltpu.CompilerParams(vmem_limit_bytes=32 * 1024 * 1024),
    )(tok_tm, emb_p,
      enc_wx, enc_wh, enc_b,
      emb_we, attn_b,
      comb_wh, comb_b,
      dec_wx, dec_b,
      w_state, lin_b)

    return jnp.transpose(out[:, :B, :V], (1, 0, 2))       # (B, max_len, vocab)


# ----------------------------------------------------------------------------- reference
def seq2seq_forward_reference(p, tokens, *, hidden_size, max_len, pad_idx, init_idx):
    # Pure-JAX reference with the same precision/fusion policy as the kernel:
    # bf16 matmul operands with f32 accumulation, f32 elementwise math, pre-fused
    # emb@[attn_we|comb_we] (one extra bf16 rounding), comb_wh applied to the encoder
    # outputs before the attention-weighted sum, greedy argmax feedback.
    B, L = tokens.shape
    H = hidden_size
    V, E = p["emb"].shape
    f32 = jnp.float32
    bf16 = jnp.bfloat16

    def mm(a, b):
        return jnp.dot(a.astype(bf16), b.astype(bf16), preferred_element_type=f32)

    emb_seq = p["emb"][tokens]                              # (B, L, E)
    lengths = jnp.sum(tokens != pad_idx, axis=1)            # (B,)

    def cell(x, h, c, w_ih, w_hh, b):
        g = mm(x, w_ih.T) + mm(h, w_hh.T) + b
        i, f, gg, o = jnp.split(g, 4, axis=-1)
        c2 = jax.nn.sigmoid(f) * c + jax.nn.sigmoid(i) * jnp.tanh(gg)
        h2 = jax.nn.sigmoid(o) * jnp.tanh(c2)
        return h2, c2

    enc_b = p["enc_b_ih"] + p["enc_b_hh"]
    h = jnp.zeros((B, H), f32)
    c = jnp.zeros((B, H), f32)
    enc_proj = []                                           # enc_out_t @ comb_wh (hoisted)
    for t in range(L):
        h2, c2 = cell(emb_seq[:, t], h, c, p["enc_w_ih"], p["enc_w_hh"], enc_b)
        m = (lengths > t)[:, None]
        h = jnp.where(m, h2, h)
        c = jnp.where(m, c2, c)
        enc_out_t = jnp.where(m, h2, 0.0)
        enc_proj.append(mm(enc_out_t, p["comb_w"][:, E:].T))

    # pre-fused decoder-token embedding (mirrors the kernel's extra bf16 rounding)
    emb_we = jnp.concatenate(
        [mm(p["emb"], p["attn_w"][:, :E].T),                # (V, L)
         mm(p["emb"], p["comb_w"][:, :E].T)], axis=1).astype(bf16).astype(f32)

    dh, dc = h, jnp.zeros((B, H), f32)
    x_i = jnp.full((B,), init_idx, jnp.int32)
    dec_b = p["dec_b_ih"] + p["dec_b_hh"]
    outs = []
    for t in range(L):
        ep = emb_we[x_i]                                    # (B, L+H)
        a = jax.nn.softmax(ep[:, :L] + mm(dc, p["attn_w"][:, E:].T) + p["attn_b"], axis=1)
        comb = ep[:, L:] + p["comb_b"]
        for l in range(L):
            comb = comb + a[:, l:l + 1] * enc_proj[l]       # (B, H)
        dh, dc = cell(comb, dh, dc, p["dec_w_ih"], p["dec_w_hh"], dec_b)
        logits = mm(dh, p["lin_w"].T) + p["lin_b"]
        outs.append(logits)
        x_i = jnp.argmax(logits, axis=-1).astype(jnp.int32)
    return jnp.stack(outs, axis=1)                          # (B, L, V)


# ----------------------------------------------------------------------------- params
def init_params(key, V, E, H, L):
    ks = jax.random.split(key, 15)

    def u(k, shape, fan):
        s = 1.0 / np.sqrt(fan)
        return jax.random.uniform(k, shape, jnp.float32, -s, s)

    return dict(
        emb=jax.random.normal(ks[0], (V, E), jnp.float32),
        enc_w_ih=u(ks[1], (4 * H, E), H), enc_w_hh=u(ks[2], (4 * H, H), H),
        enc_b_ih=u(ks[3], (4 * H,), H), enc_b_hh=u(ks[4], (4 * H,), H),
        attn_w=u(ks[5], (L, H + E), H + E), attn_b=u(ks[6], (L,), H + E),
        comb_w=u(ks[7], (H, H + E), H + E), comb_b=u(ks[8], (H,), H + E),
        dec_w_ih=u(ks[9], (4 * H, H), H), dec_w_hh=u(ks[10], (4 * H, H), H),
        dec_b_ih=u(ks[11], (4 * H,), H), dec_b_hh=u(ks[12], (4 * H,), H),
        lin_w=u(ks[13], (V, H), H), lin_b=u(ks[14], (V,), H),
    )


if __name__ == "__main__":
    B, L, E, H, V = 2, 8, 16, 32, 32
    PAD_IDX, INIT_IDX = 0, 1

    key = jax.random.PRNGKey(0)
    k_tok, k_par = jax.random.split(key)

    tokens = jax.random.randint(k_tok, (B, L), 2, V).astype(jnp.int32)
    tokens = tokens.at[1, 5:].set(PAD_IDX)                  # second sentence is shorter

    params = init_params(k_par, V, E, H, L)

    out = seq2seq_forward_pallas(params, tokens, hidden_size=H, max_len=L,
                                 pad_idx=PAD_IDX, init_idx=INIT_IDX)
    out = jax.block_until_ready(out)

    ref = seq2seq_forward_reference(params, tokens, hidden_size=H, max_len=L,
                                    pad_idx=PAD_IDX, init_idx=INIT_IDX)
    ref = jax.block_until_ready(ref)

    assert out.shape == (B, L, V), out.shape
    assert bool(jnp.all(jnp.isfinite(out)))
    np.testing.assert_allclose(np.asarray(out), np.asarray(ref), rtol=2e-3, atol=2e-3)

    print("KERNEL_OK")
</pallas_src>

<mosaic_0001>
module attributes {stable_mosaic.version = 11 : i64} {
  func.func @seq2seq_kernel(%arg0: memref<64x1xi32, #tpu.memory_space<vmem>>, %arg1: memref<128x16xbf16, #tpu.memory_space<vmem>>, %arg2: memref<16x512xbf16, #tpu.memory_space<vmem>>, %arg3: memref<128x512xbf16, #tpu.memory_space<vmem>>, %arg4: memref<1x512xf32, #tpu.memory_space<vmem>>, %arg5: memref<128x256xbf16, #tpu.memory_space<vmem>>, %arg6: memref<1x128xf32, #tpu.memory_space<vmem>>, %arg7: memref<128x128xbf16, #tpu.memory_space<vmem>>, %arg8: memref<1x128xf32, #tpu.memory_space<vmem>>, %arg9: memref<128x512xbf16, #tpu.memory_space<vmem>>, %arg10: memref<1x512xf32, #tpu.memory_space<vmem>>, %arg11: memref<256x768xbf16, #tpu.memory_space<vmem>>, %arg12: memref<1x128xf32, #tpu.memory_space<vmem>>, %arg13: memref<8x8x128xf32, #tpu.memory_space<vmem>>, %arg14: memref<64x512xf32, #tpu.memory_space<vmem>>, %arg15: memref<64x128xf32, #tpu.memory_space<vmem>>) attributes {dimension_semantics = [], scalar_prefetch = 0 : i64, scratch_operands = 2 : i64, tpu.core_type = #tpu.core_type<tc>} {
    %c0 = arith.constant 0 : index
    %c0_0 = arith.constant 0 : index
    %0 = vector.load %arg0[%c0, %c0_0] : memref<64x1xi32, #tpu.memory_space<vmem>>, vector<64x1xi32>
    %c0_i32 = arith.constant 0 : i32
    %1 = vector.broadcast %c0_i32 : i32 to vector<64x1xi32>
    %2 = arith.cmpi ne, %0, %1 : vector<64x1xi32>
    %c0_1 = arith.constant 0 : index
    %c0_2 = arith.constant 0 : index
    %3 = vector.load %arg4[%c0_1, %c0_2] : memref<1x512xf32, #tpu.memory_space<vmem>>, vector<1x512xf32>
    %c0_3 = arith.constant 0 : index
    %c0_4 = arith.constant 0 : index
    %4 = vector.load %arg6[%c0_3, %c0_4] : memref<1x128xf32, #tpu.memory_space<vmem>>, vector<1x128xf32>
    %c0_5 = arith.constant 0 : index
    %c0_6 = arith.constant 0 : index
    %5 = vector.load %arg8[%c0_5, %c0_6] : memref<1x128xf32, #tpu.memory_space<vmem>>, vector<1x128xf32>
    %c0_7 = arith.constant 0 : index
    %c0_8 = arith.constant 0 : index
    %6 = vector.load %arg10[%c0_7, %c0_8] : memref<1x512xf32, #tpu.memory_space<vmem>>, vector<1x512xf32>
    %c0_9 = arith.constant 0 : index
    %c0_10 = arith.constant 0 : index
    %7 = vector.load %arg12[%c0_9, %c0_10] : memref<1x128xf32, #tpu.memory_space<vmem>>, vector<1x128xf32>
    %8 = tpu.iota {dimensions = array<i32: 1>} : vector<64x128xi32>
    %9 = vector.broadcast %0 : vector<64x1xi32> to vector<64x128xi32>
    %10 = arith.cmpi eq, %8, %9 : vector<64x128xi32>
    %11 = arith.extui %10 : vector<64x128xi1> to vector<64x128xi32>
    %12 = arith.sitofp %11 : vector<64x128xi32> to vector<64x128xf32>
    %13 = arith.truncf %12 : vector<64x128xf32> to vector<64x128xbf16>
    %c0_11 = arith.constant 0 : index
    %c0_12 = arith.constant 0 : index
    %14 = vector.load %arg1[%c0_11, %c0_12] : memref<128x16xbf16, #tpu.memory_space<vmem>>, vector<128x16xbf16>
    %cst = arith.constant dense<0.000000e+00> : vector<64x16xf32>
    %15 = tpu.matmul %13, %14, %cst {dimension_numbers = #tpu.dot_dimension_numbers<[1], [0], [0], [1], [0, 0, 1, 1], [], []>} : vector<64x128xbf16>, vector<128x16xbf16>, vector<64x16xf32> -> vector<64x16xf32>
    %16 = arith.truncf %15 : vector<64x16xf32> to vector<64x16xbf16>
    %c0_13 = arith.constant 0 : index
    %c0_14 = arith.constant 0 : index
    %17 = vector.load %arg2[%c0_13, %c0_14] : memref<16x512xbf16, #tpu.memory_space<vmem>>, vector<16x512xbf16>
    %cst_15 = arith.constant dense<0.000000e+00> : vector<64x512xf32>
    %18 = tpu.matmul %16, %17, %cst_15 {dimension_numbers = #tpu.dot_dimension_numbers<[1], [0], [0], [1], [0, 0, 1, 1], [], []>} : vector<64x16xbf16>, vector<16x512xbf16>, vector<64x512xf32> -> vector<64x512xf32>
    %c0_16 = arith.constant 0 : index
    %c0_17 = arith.constant 0 : index
    %19 = vector.load %arg14[%c0_16, %c0_17] : memref<64x512xf32, #tpu.memory_space<vmem>>, vector<64x512xf32>
    tpu.vector_store %arg14[%c0_16, %c0_17], %18 {strides = array<i32>} : memref<64x512xf32, #tpu.memory_space<vmem>>, vector<64x512xf32>,
    %cst_18 = arith.constant 0.000000e+00 : f32
    %20 = vector.broadcast %cst_18 : f32 to vector<8x128xf32>
    %cst_19 = arith.constant 0.000000e+00 : f32
    %21 = vector.broadcast %cst_19 : f32 to vector<8x128xf32>
    %c0_20 = arith.constant 0 : index
    %c0_21 = arith.constant 0 : index
    %22 = vector.load %arg14[%c0_20, %c0_21] : memref<64x512xf32, #tpu.memory_space<vmem>>, vector<8x512xf32>
    %23 = arith.truncf %20 : vector<8x128xf32> to vector<8x128xbf16>
    %c0_22 = arith.constant 0 : index
    %c0_23 = arith.constant 0 : index
    %24 = vector.load %arg3[%c0_22, %c0_23] : memref<128x512xbf16, #tpu.memory_space<vmem>>, vector<128x512xbf16>
    %cst_24 = arith.constant dense<0.000000e+00> : vector<8x512xf32>
    %25 = tpu.matmul %23, %24, %cst_24 {dimension_numbers = #tpu.dot_dimension_numbers<[1], [0], [0], [1], [0, 0, 1, 1], [], []>} : vector<8x128xbf16>, vector<128x512xbf16>, vector<8x512xf32> -> vector<8x512xf32>
    %26 = arith.addf %22, %25 : vector<8x512xf32>
    %27 = vector.broadcast %3 : vector<1x512xf32> to vector<8x512xf32>
    %28 = arith.addf %26, %27 : vector<8x512xf32>
    %29 = vector.extract_strided_slice %28 {offsets = [0, 0], sizes = [8, 128], strides = [1, 1]} : vector<8x512xf32> to vector<8x128xf32>
    %30 = arith.negf %29 : vector<8x128xf32>
    %31 = math.exp %30 : vector<8x128xf32>
    %cst_25 = arith.constant 1.000000e+00 : f32
    %32 = vector.broadcast %cst_25 : f32 to vector<8x128xf32>
    %33 = arith.addf %32, %31 : vector<8x128xf32>
    %34 = arith.divf %32, %33 : vector<8x128xf32>
    %35 = vector.extract_strided_slice %28 {offsets = [0, 128], sizes = [8, 128], strides = [1, 1]} : vector<8x512xf32> to vector<8x128xf32>
    %36 = arith.negf %35 : vector<8x128xf32>
    %37 = math.exp %36 : vector<8x128xf32>
    %cst_26 = arith.constant 1.000000e+00 : f32
    %38 = vector.broadcast %cst_26 : f32 to vector<8x128xf32>
    %39 = arith.addf %38, %37 : vector<8x128xf32>
    %40 = arith.divf %38, %39 : vector<8x128xf32>
    %41 = vector.extract_strided_slice %28 {offsets = [0, 256], sizes = [8, 128], strides = [1, 1]} : vector<8x512xf32> to vector<8x128xf32>
    %42 = math.tanh %41 : vector<8x128xf32>
    %43 = vector.extract_strided_slice %28 {offsets = [0, 384], sizes = [8, 128], strides = [1, 1]} : vector<8x512xf32> to vector<8x128xf32>
    %44 = arith.negf %43 : vector<8x128xf32>
    %45 = math.exp %44 : vector<8x128xf32>
    %cst_27 = arith.constant 1.000000e+00 : f32
    %46 = vector.broadcast %cst_27 : f32 to vector<8x128xf32>
    %47 = arith.addf %46, %45 : vector<8x128xf32>
    %48 = arith.divf %46, %47 : vector<8x128xf32>
    %49 = arith.mulf %40, %21 : vector<8x128xf32>
    %50 = arith.mulf %34, %42 : vector<8x128xf32>
    %51 = arith.addf %49, %50 : vector<8x128xf32>
    %52 = math.tanh %51 : vector<8x128xf32>
    %53 = arith.mulf %48, %52 : vector<8x128xf32>
    %54 = vector.extract_strided_slice %2 {offsets = [0, 0], sizes = [8, 1], strides = [1, 1]} : vector<64x1xi1> to vector<8x1xi1>
    %55 = vector.shape_cast %54 : vector<8x1xi1> to vector<8x1xi1>
    %56 = vector.broadcast %55 : vector<8x1xi1> to vector<8x128xi1>
    %57 = arith.select %56, %53, %20 : vector<8x128xi1>, vector<8x128xf32>
    %58 = vector.shape_cast %54 : vector<8x1xi1> to vector<8x1xi1>
    %59 = vector.broadcast %58 : vector<8x1xi1> to vector<8x128xi1>
    %60 = arith.select %59, %51, %21 : vector<8x128xi1>, vector<8x128xf32>
    %cst_28 = arith.constant 0.000000e+00 : f32
    %61 = vector.shape_cast %54 : vector<8x1xi1> to vector<8x1xi1>
    %62 = vector.broadcast %61 : vector<8x1xi1> to vector<8x128xi1>
    %63 = vector.broadcast %cst_28 : f32 to vector<8x128xf32>
    %64 = arith.select %62, %53, %63 : vector<8x128xi1>, vector<8x128xf32>
    %c0_29 = arith.constant 0 : index
    %c0_30 = arith.constant 0 : index
    %65 = vector.load %arg15[%c0_29, %c0_30] : memref<64x128xf32, #tpu.memory_space<vmem>>, vector<8x128xf32>
    tpu.vector_store %arg15[%c0_29, %c0_30], %64 {strides = array<i32>} : memref<64x128xf32, #tpu.memory_space<vmem>>, vector<8x128xf32>,
    %c8 = arith.constant 8 : index
    %c0_31 = arith.constant 0 : index
    %66 = vector.load %arg14[%c8, %c0_31] : memref<64x512xf32, #tpu.memory_space<vmem>>, vector<8x512xf32>
    %67 = arith.truncf %57 : vector<8x128xf32> to vector<8x128xbf16>
    %c0_32 = arith.constant 0 : index
    %c0_33 = arith.constant 0 : index
    %68 = vector.load %arg3[%c0_32, %c0_33] : memref<128x512xbf16, #tpu.memory_space<vmem>>, vector<128x512xbf16>
    %cst_34 = arith.constant dense<0.000000e+00> : vector<8x512xf32>
    %69 = tpu.matmul %67, %68, %cst_34 {dimension_numbers = #tpu.dot_dimension_numbers<[1], [0], [0], [1], [0, 0, 1, 1], [], []>} : vector<8x128xbf16>, vector<128x512xbf16>, vector<8x512xf32> -> vector<8x512xf32>
    %70 = arith.addf %66, %69 : vector<8x512xf32>
    %71 = vector.broadcast %3 : vector<1x512xf32> to vector<8x512xf32>
    %72 = arith.addf %70, %71 : vector<8x512xf32>
    %73 = vector.extract_strided_slice %72 {offsets = [0, 0], sizes = [8, 128], strides = [1, 1]} : vector<8x512xf32> to vector<8x128xf32>
    %74 = arith.negf %73 : vector<8x128xf32>
    %75 = math.exp %74 : vector<8x128xf32>
    %cst_35 = arith.constant 1.000000e+00 : f32
    %76 = vector.broadcast %cst_35 : f32 to vector<8x128xf32>
    %77 = arith.addf %76, %75 : vector<8x128xf32>
    %78 = arith.divf %76, %77 : vector<8x128xf32>
    %79 = vector.extract_strided_slice %72 {offsets = [0, 128], sizes = [8, 128], strides = [1, 1]} : vector<8x512xf32> to vector<8x128xf32>
    %80 = arith.negf %79 : vector<8x128xf32>
    %81 = math.exp %80 : vector<8x128xf32>
    %cst_36 = arith.constant 1.000000e+00 : f32
    %82 = vector.broadcast %cst_36 : f32 to vector<8x128xf32>
    %83 = arith.addf %82, %81 : vector<8x128xf32>
    %84 = arith.divf %82, %83 : vector<8x128xf32>
    %85 = vector.extract_strided_slice %72 {offsets = [0, 256], sizes = [8, 128], strides = [1, 1]} : vector<8x512xf32> to vector<8x128xf32>
    %86 = math.tanh %85 : vector<8x128xf32>
    %87 = vector.extract_strided_slice %72 {offsets = [0, 384], sizes = [8, 128], strides = [1, 1]} : vector<8x512xf32> to vector<8x128xf32>
    %88 = arith.negf %87 : vector<8x128xf32>
    %89 = math.exp %88 : vector<8x128xf32>
    %cst_37 = arith.constant 1.000000e+00 : f32
    %90 = vector.broadcast %cst_37 : f32 to vector<8x128xf32>
    %91 = arith.addf %90, %89 : vector<8x128xf32>
    %92 = arith.divf %90, %91 : vector<8x128xf32>
    %93 = arith.mulf %84, %60 : vector<8x128xf32>
    %94 = arith.mulf %78, %86 : vector<8x128xf32>
    %95 = arith.addf %93, %94 : vector<8x128xf32>
    %96 = math.tanh %95 : vector<8x128xf32>
    %97 = arith.mulf %92, %96 : vector<8x128xf32>
    %98 = vector.extract_strided_slice %2 {offsets = [8, 0], sizes = [8, 1], strides = [1, 1]} : vector<64x1xi1> to vector<8x1xi1>
    %99 = vector.shape_cast %98 : vector<8x1xi1> to vector<8x1xi1>
    %100 = vector.broadcast %99 : vector<8x1xi1> to vector<8x128xi1>
    %101 = arith.select %100, %97, %57 : vector<8x128xi1>, vector<8x128xf32>
    %102 = vector.shape_cast %98 : vector<8x1xi1> to vector<8x1xi1>
    %103 = vector.broadcast %102 : vector<8x1xi1> to vector<8x128xi1>
    %104 = arith.select %103, %95, %60 : vector<8x128xi1>, vector<8x128xf32>
    %cst_38 = arith.constant 0.000000e+00 : f32
    %105 = vector.shape_cast %98 : vector<8x1xi1> to vector<8x1xi1>
    %106 = vector.broadcast %105 : vector<8x1xi1> to vector<8x128xi1>
    %107 = vector.broadcast %cst_38 : f32 to vector<8x128xf32>
    %108 = arith.select %106, %97, %107 : vector<8x128xi1>, vector<8x128xf32>
    %c8_39 = arith.constant 8 : index
    %c0_40 = arith.constant 0 : index
    %109 = vector.load %arg15[%c8_39, %c0_40] : memref<64x128xf32, #tpu.memory_space<vmem>>, vector<8x128xf32>
    tpu.vector_store %arg15[%c8_39, %c0_40], %108 {strides = array<i32>} : memref<64x128xf32, #tpu.memory_space<vmem>>, vector<8x128xf32>,
    %c16 = arith.constant 16 : index
    %c0_41 = arith.constant 0 : index
    %110 = vector.load %arg14[%c16, %c0_41] : memref<64x512xf32, #tpu.memory_space<vmem>>, vector<8x512xf32>
    %111 = arith.truncf %101 : vector<8x128xf32> to vector<8x128xbf16>
    %c0_42 = arith.constant 0 : index
    %c0_43 = arith.constant 0 : index
    %112 = vector.load %arg3[%c0_42, %c0_43] : memref<128x512xbf16, #tpu.memory_space<vmem>>, vector<128x512xbf16>
    %cst_44 = arith.constant dense<0.000000e+00> : vector<8x512xf32>
    %113 = tpu.matmul %111, %112, %cst_44 {dimension_numbers = #tpu.dot_dimension_numbers<[1], [0], [0], [1], [0, 0, 1, 1], [], []>} : vector<8x128xbf16>, vector<128x512xbf16>, vector<8x512xf32> -> vector<8x512xf32>
    %114 = arith.addf %110, %113 : vector<8x512xf32>
    %115 = vector.broadcast %3 : vector<1x512xf32> to vector<8x512xf32>
    %116 = arith.addf %114, %115 : vector<8x512xf32>
    %117 = vector.extract_strided_slice %116 {offsets = [0, 0], sizes = [8, 128], strides = [1, 1]} : vector<8x512xf32> to vector<8x128xf32>
    %118 = arith.negf %117 : vector<8x128xf32>
    %119 = math.exp %118 : vector<8x128xf32>
    %cst_45 = arith.constant 1.000000e+00 : f32
    %120 = vector.broadcast %cst_45 : f32 to vector<8x128xf32>
    %121 = arith.addf %120, %119 : vector<8x128xf32>
    %122 = arith.divf %120, %121 : vector<8x128xf32>
    %123 = vector.extract_strided_slice %116 {offsets = [0, 128], sizes = [8, 128], strides = [1, 1]} : vector<8x512xf32> to vector<8x128xf32>
    %124 = arith.negf %123 : vector<8x128xf32>
    %125 = math.exp %124 : vector<8x128xf32>
    %cst_46 = arith.constant 1.000000e+00 : f32
    %126 = vector.broadcast %cst_46 : f32 to vector<8x128xf32>
    %127 = arith.addf %126, %125 : vector<8x128xf32>
    %128 = arith.divf %126, %127 : vector<8x128xf32>
    %129 = vector.extract_strided_slice %116 {offsets = [0, 256], sizes = [8, 128], strides = [1, 1]} : vector<8x512xf32> to vector<8x128xf32>
    %130 = math.tanh %129 : vector<8x128xf32>
    %131 = vector.extract_strided_slice %116 {offsets = [0, 384], sizes = [8, 128], strides = [1, 1]} : vector<8x512xf32> to vector<8x128xf32>
    %132 = arith.negf %131 : vector<8x128xf32>
    %133 = math.exp %132 : vector<8x128xf32>
    %cst_47 = arith.constant 1.000000e+00 : f32
    %134 = vector.broadcast %cst_47 : f32 to vector<8x128xf32>
    %135 = arith.addf %134, %133 : vector<8x128xf32>
    %136 = arith.divf %134, %135 : vector<8x128xf32>
    %137 = arith.mulf %128, %104 : vector<8x128xf32>
    %138 = arith.mulf %122, %130 : vector<8x128xf32>
    %139 = arith.addf %137, %138 : vector<8x128xf32>
    %140 = math.tanh %139 : vector<8x128xf32>
    %141 = arith.mulf %136, %140 : vector<8x128xf32>
    %142 = vector.extract_strided_slice %2 {offsets = [16, 0], sizes = [8, 1], strides = [1, 1]} : vector<64x1xi1> to vector<8x1xi1>
    %143 = vector.shape_cast %142 : vector<8x1xi1> to vector<8x1xi1>
    %144 = vector.broadcast %143 : vector<8x1xi1> to vector<8x128xi1>
    %145 = arith.select %144, %141, %101 : vector<8x128xi1>, vector<8x128xf32>
    %146 = vector.shape_cast %142 : vector<8x1xi1> to vector<8x1xi1>
    %147 = vector.broadcast %146 : vector<8x1xi1> to vector<8x128xi1>
    %148 = arith.select %147, %139, %104 : vector<8x128xi1>, vector<8x128xf32>
    %cst_48 = arith.constant 0.000000e+00 : f32
    %149 = vector.shape_cast %142 : vector<8x1xi1> to vector<8x1xi1>
    %150 = vector.broadcast %149 : vector<8x1xi1> to vector<8x128xi1>
    %151 = vector.broadcast %cst_48 : f32 to vector<8x128xf32>
    %152 = arith.select %150, %141, %151 : vector<8x128xi1>, vector<8x128xf32>
    %c16_49 = arith.constant 16 : index
    %c0_50 = arith.constant 0 : index
    %153 = vector.load %arg15[%c16_49, %c0_50] : memref<64x128xf32, #tpu.memory_space<vmem>>, vector<8x128xf32>
    tpu.vector_store %arg15[%c16_49, %c0_50], %152 {strides = array<i32>} : memref<64x128xf32, #tpu.memory_space<vmem>>, vector<8x128xf32>,
    %c24 = arith.constant 24 : index
    %c0_51 = arith.constant 0 : index
    %154 = vector.load %arg14[%c24, %c0_51] : memref<64x512xf32, #tpu.memory_space<vmem>>, vector<8x512xf32>
    %155 = arith.truncf %145 : vector<8x128xf32> to vector<8x128xbf16>
    %c0_52 = arith.constant 0 : index
    %c0_53 = arith.constant 0 : index
    %156 = vector.load %arg3[%c0_52, %c0_53] : memref<128x512xbf16, #tpu.memory_space<vmem>>, vector<128x512xbf16>
    %cst_54 = arith.constant dense<0.000000e+00> : vector<8x512xf32>
    %157 = tpu.matmul %155, %156, %cst_54 {dimension_numbers = #tpu.dot_dimension_numbers<[1], [0], [0], [1], [0, 0, 1, 1], [], []>} : vector<8x128xbf16>, vector<128x512xbf16>, vector<8x512xf32> -> vector<8x512xf32>
    %158 = arith.addf %154, %157 : vector<8x512xf32>
    %159 = vector.broadcast %3 : vector<1x512xf32> to vector<8x512xf32>
    %160 = arith.addf %158, %159 : vector<8x512xf32>
    %161 = vector.extract_strided_slice %160 {offsets = [0, 0], sizes = [8, 128], strides = [1, 1]} : vector<8x512xf32> to vector<8x128xf32>
    %162 = arith.negf %161 : vector<8x128xf32>
    %163 = math.exp %162 : vector<8x128xf32>
    %cst_55 = arith.constant 1.000000e+00 : f32
    %164 = vector.broadcast %cst_55 : f32 to vector<8x128xf32>
    %165 = arith.addf %164, %163 : vector<8x128xf32>
    %166 = arith.divf %164, %165 : vector<8x128xf32>
    %167 = vector.extract_strided_slice %160 {offsets = [0, 128], sizes = [8, 128], strides = [1, 1]} : vector<8x512xf32> to vector<8x128xf32>
    %168 = arith.negf %167 : vector<8x128xf32>
    %169 = math.exp %168 : vector<8x128xf32>
    %cst_56 = arith.constant 1.000000e+00 : f32
    %170 = vector.broadcast %cst_56 : f32 to vector<8x128xf32>
    %171 = arith.addf %170, %169 : vector<8x128xf32>
    %172 = arith.divf %170, %171 : vector<8x128xf32>
    %173 = vector.extract_strided_slice %160 {offsets = [0, 256], sizes = [8, 128], strides = [1, 1]} : vector<8x512xf32> to vector<8x128xf32>
    %174 = math.tanh %173 : vector<8x128xf32>
    %175 = vector.extract_strided_slice %160 {offsets = [0, 384], sizes = [8, 128], strides = [1, 1]} : vector<8x512xf32> to vector<8x128xf32>
    %176 = arith.negf %175 : vector<8x128xf32>
    %177 = math.exp %176 : vector<8x128xf32>
    %cst_57 = arith.constant 1.000000e+00 : f32
    %178 = vector.broadcast %cst_57 : f32 to vector<8x128xf32>
    %179 = arith.addf %178, %177 : vector<8x128xf32>
    %180 = arith.divf %178, %179 : vector<8x128xf32>
    %181 = arith.mulf %172, %148 : vector<8x128xf32>
    %182 = arith.mulf %166, %174 : vector<8x128xf32>
    %183 = arith.addf %181, %182 : vector<8x128xf32>
    %184 = math.tanh %183 : vector<8x128xf32>
    %185 = arith.mulf %180, %184 : vector<8x128xf32>
    %186 = vector.extract_strided_slice %2 {offsets = [24, 0], sizes = [8, 1], strides = [1, 1]} : vector<64x1xi1> to vector<8x1xi1>
    %187 = vector.shape_cast %186 : vector<8x1xi1> to vector<8x1xi1>
    %188 = vector.broadcast %187 : vector<8x1xi1> to vector<8x128xi1>
    %189 = arith.select %188, %185, %145 : vector<8x128xi1>, vector<8x128xf32>
    %190 = vector.shape_cast %186 : vector<8x1xi1> to vector<8x1xi1>
    %191 = vector.broadcast %190 : vector<8x1xi1> to vector<8x128xi1>
    %192 = arith.select %191, %183, %148 : vector<8x128xi1>, vector<8x128xf32>
    %cst_58 = arith.constant 0.000000e+00 : f32
    %193 = vector.shape_cast %186 : vector<8x1xi1> to vector<8x1xi1>
    %194 = vector.broadcast %193 : vector<8x1xi1> to vector<8x128xi1>
    %195 = vector.broadcast %cst_58 : f32 to vector<8x128xf32>
    %196 = arith.select %194, %185, %195 : vector<8x128xi1>, vector<8x128xf32>
    %c24_59 = arith.constant 24 : index
    %c0_60 = arith.constant 0 : index
    %197 = vector.load %arg15[%c24_59, %c0_60] : memref<64x128xf32, #tpu.memory_space<vmem>>, vector<8x128xf32>
    tpu.vector_store %arg15[%c24_59, %c0_60], %196 {strides = array<i32>} : memref<64x128xf32, #tpu.memory_space<vmem>>, vector<8x128xf32>,
    %c32 = arith.constant 32 : index
    %c0_61 = arith.constant 0 : index
    %198 = vector.load %arg14[%c32, %c0_61] : memref<64x512xf32, #tpu.memory_space<vmem>>, vector<8x512xf32>
    %199 = arith.truncf %189 : vector<8x128xf32> to vector<8x128xbf16>
    %c0_62 = arith.constant 0 : index
    %c0_63 = arith.constant 0 : index
    %200 = vector.load %arg3[%c0_62, %c0_63] : memref<128x512xbf16, #tpu.memory_space<vmem>>, vector<128x512xbf16>
    %cst_64 = arith.constant dense<0.000000e+00> : vector<8x512xf32>
    %201 = tpu.matmul %199, %200, %cst_64 {dimension_numbers = #tpu.dot_dimension_numbers<[1], [0], [0], [1], [0, 0, 1, 1], [], []>} : vector<8x128xbf16>, vector<128x512xbf16>, vector<8x512xf32> -> vector<8x512xf32>
    %202 = arith.addf %198, %201 : vector<8x512xf32>
    %203 = vector.broadcast %3 : vector<1x512xf32> to vector<8x512xf32>
    %204 = arith.addf %202, %203 : vector<8x512xf32>
    %205 = vector.extract_strided_slice %204 {offsets = [0, 0], sizes = [8, 128], strides = [1, 1]} : vector<8x512xf32> to vector<8x128xf32>
    %206 = arith.negf %205 : vector<8x128xf32>
    %207 = math.exp %206 : vector<8x128xf32>
    %cst_65 = arith.constant 1.000000e+00 : f32
    %208 = vector.broadcast %cst_65 : f32 to vector<8x128xf32>
    %209 = arith.addf %208, %207 : vector<8x128xf32>
    %210 = arith.divf %208, %209 : vector<8x128xf32>
    %211 = vector.extract_strided_slice %204 {offsets = [0, 128], sizes = [8, 128], strides = [1, 1]} : vector<8x512xf32> to vector<8x128xf32>
    %212 = arith.negf %211 : vector<8x128xf32>
    %213 = math.exp %212 : vector<8x128xf32>
    %cst_66 = arith.constant 1.000000e+00 : f32
    %214 = vector.broadcast %cst_66 : f32 to vector<8x128xf32>
    %215 = arith.addf %214, %213 : vector<8x128xf32>
    %216 = arith.divf %214, %215 : vector<8x128xf32>
    %217 = vector.extract_strided_slice %204 {offsets = [0, 256], sizes = [8, 128], strides = [1, 1]} : vector<8x512xf32> to vector<8x128xf32>
    %218 = math.tanh %217 : vector<8x128xf32>
    %219 = vector.extract_strided_slice %204 {offsets = [0, 384], sizes = [8, 128], strides = [1, 1]} : vector<8x512xf32> to vector<8x128xf32>
    %220 = arith.negf %219 : vector<8x128xf32>
    %221 = math.exp %220 : vector<8x128xf32>
    %cst_67 = arith.constant 1.000000e+00 : f32
    %222 = vector.broadcast %cst_67 : f32 to vector<8x128xf32>
    %223 = arith.addf %222, %221 : vector<8x128xf32>
    %224 = arith.divf %222, %223 : vector<8x128xf32>
    %225 = arith.mulf %216, %192 : vector<8x128xf32>
    %226 = arith.mulf %210, %218 : vector<8x128xf32>
    %227 = arith.addf %225, %226 : vector<8x128xf32>
    %228 = math.tanh %227 : vector<8x128xf32>
    %229 = arith.mulf %224, %228 : vector<8x128xf32>
    %230 = vector.extract_strided_slice %2 {offsets = [32, 0], sizes = [8, 1], strides = [1, 1]} : vector<64x1xi1> to vector<8x1xi1>
    %231 = vector.shape_cast %230 : vector<8x1xi1> to vector<8x1xi1>
    %232 = vector.broadcast %231 : vector<8x1xi1> to vector<8x128xi1>
    %233 = arith.select %232, %229, %189 : vector<8x128xi1>, vector<8x128xf32>
    %234 = vector.shape_cast %230 : vector<8x1xi1> to vector<8x1xi1>
    %235 = vector.broadcast %234 : vector<8x1xi1> to vector<8x128xi1>
    %236 = arith.select %235, %227, %192 : vector<8x128xi1>, vector<8x128xf32>
    %cst_68 = arith.constant 0.000000e+00 : f32
    %237 = vector.shape_cast %230 : vector<8x1xi1> to vector<8x1xi1>
    %238 = vector.broadcast %237 : vector<8x1xi1> to vector<8x128xi1>
    %239 = vector.broadcast %cst_68 : f32 to vector<8x128xf32>
    %240 = arith.select %238, %229, %239 : vector<8x128xi1>, vector<8x128xf32>
    %c32_69 = arith.constant 32 : index
    %c0_70 = arith.constant 0 : index
    %241 = vector.load %arg15[%c32_69, %c0_70] : memref<64x128xf32, #tpu.memory_space<vmem>>, vector<8x128xf32>
    tpu.vector_store %arg15[%c32_69, %c0_70], %240 {strides = array<i32>} : memref<64x128xf32, #tpu.memory_space<vmem>>, vector<8x128xf32>,
    %c40 = arith.constant 40 : index
    %c0_71 = arith.constant 0 : index
    %242 = vector.load %arg14[%c40, %c0_71] : memref<64x512xf32, #tpu.memory_space<vmem>>, vector<8x512xf32>
    %243 = arith.truncf %233 : vector<8x128xf32> to vector<8x128xbf16>
    %c0_72 = arith.constant 0 : index
    %c0_73 = arith.constant 0 : index
    %244 = vector.load %arg3[%c0_72, %c0_73] : memref<128x512xbf16, #tpu.memory_space<vmem>>, vector<128x512xbf16>
    %cst_74 = arith.constant dense<0.000000e+00> : vector<8x512xf32>
    %245 = tpu.matmul %243, %244, %cst_74 {dimension_numbers = #tpu.dot_dimension_numbers<[1], [0], [0], [1], [0, 0, 1, 1], [], []>} : vector<8x128xbf16>, vector<128x512xbf16>, vector<8x512xf32> -> vector<8x512xf32>
    %246 = arith.addf %242, %245 : vector<8x512xf32>
    %247 = vector.broadcast %3 : vector<1x512xf32> to vector<8x512xf32>
    %248 = arith.addf %246, %247 : vector<8x512xf32>
    %249 = vector.extract_strided_slice %248 {offsets = [0, 0], sizes = [8, 128], strides = [1, 1]} : vector<8x512xf32> to vector<8x128xf32>
    %250 = arith.negf %249 : vector<8x128xf32>
    %251 = math.exp %250 : vector<8x128xf32>
    %cst_75 = arith.constant 1.000000e+00 : f32
    %252 = vector.broadcast %cst_75 : f32 to vector<8x128xf32>
    %253 = arith.addf %252, %251 : vector<8x128xf32>
    %254 = arith.divf %252, %253 : vector<8x128xf32>
    %255 = vector.extract_strided_slice %248 {offsets = [0, 128], sizes = [8, 128], strides = [1, 1]} : vector<8x512xf32> to vector<8x128xf32>
    %256 = arith.negf %255 : vector<8x128xf32>
    %257 = math.exp %256 : vector<8x128xf32>
    %cst_76 = arith.constant 1.000000e+00 : f32
    %258 = vector.broadcast %cst_76 : f32 to vector<8x128xf32>
    %259 = arith.addf %258, %257 : vector<8x128xf32>
    %260 = arith.divf %258, %259 : vector<8x128xf32>
    %261 = vector.extract_strided_slice %248 {offsets = [0, 256], sizes = [8, 128], strides = [1, 1]} : vector<8x512xf32> to vector<8x128xf32>
    %262 = math.tanh %261 : vector<8x128xf32>
    %263 = vector.extract_strided_slice %248 {offsets = [0, 384], sizes = [8, 128], strides = [1, 1]} : vector<8x512xf32> to vector<8x128xf32>
    %264 = arith.negf %263 : vector<8x128xf32>
    %265 = math.exp %264 : vector<8x128xf32>
    %cst_77 = arith.constant 1.000000e+00 : f32
    %266 = vector.broadcast %cst_77 : f32 to vector<8x128xf32>
    %267 = arith.addf %266, %265 : vector<8x128xf32>
    %268 = arith.divf %266, %267 : vector<8x128xf32>
    %269 = arith.mulf %260, %236 : vector<8x128xf32>
    %270 = arith.mulf %254, %262 : vector<8x128xf32>
    %271 = arith.addf %269, %270 : vector<8x128xf32>
    %272 = math.tanh %271 : vector<8x128xf32>
    %273 = arith.mulf %268, %272 : vector<8x128xf32>
    %274 = vector.extract_strided_slice %2 {offsets = [40, 0], sizes = [8, 1], strides = [1, 1]} : vector<64x1xi1> to vector<8x1xi1>
    %275 = vector.shape_cast %274 : vector<8x1xi1> to vector<8x1xi1>
    %276 = vector.broadcast %275 : vector<8x1xi1> to vector<8x128xi1>
    %277 = arith.select %276, %273, %233 : vector<8x128xi1>, vector<8x128xf32>
    %278 = vector.shape_cast %274 : vector<8x1xi1> to vector<8x1xi1>
    %279 = vector.broadcast %278 : vector<8x1xi1> to vector<8x128xi1>
    %280 = arith.select %279, %271, %236 : vector<8x128xi1>, vector<8x128xf32>
    %cst_78 = arith.constant 0.000000e+00 : f32
    %281 = vector.shape_cast %274 : vector<8x1xi1> to vector<8x1xi1>
    %282 = vector.broadcast %281 : vector<8x1xi1> to vector<8x128xi1>
    %283 = vector.broadcast %cst_78 : f32 to vector<8x128xf32>
    %284 = arith.select %282, %273, %283 : vector<8x128xi1>, vector<8x128xf32>
    %c40_79 = arith.constant 40 : index
    %c0_80 = arith.constant 0 : index
    %285 = vector.load %arg15[%c40_79, %c0_80] : memref<64x128xf32, #tpu.memory_space<vmem>>, vector<8x128xf32>
    tpu.vector_store %arg15[%c40_79, %c0_80], %284 {strides = array<i32>} : memref<64x128xf32, #tpu.memory_space<vmem>>, vector<8x128xf32>,
    %c48 = arith.constant 48 : index
    %c0_81 = arith.constant 0 : index
    %286 = vector.load %arg14[%c48, %c0_81] : memref<64x512xf32, #tpu.memory_space<vmem>>, vector<8x512xf32>
    %287 = arith.truncf %277 : vector<8x128xf32> to vector<8x128xbf16>
    %c0_82 = arith.constant 0 : index
    %c0_83 = arith.constant 0 : index
    %288 = vector.load %arg3[%c0_82, %c0_83] : memref<128x512xbf16, #tpu.memory_space<vmem>>, vector<128x512xbf16>
    %cst_84 = arith.constant dense<0.000000e+00> : vector<8x512xf32>
    %289 = tpu.matmul %287, %288, %cst_84 {dimension_numbers = #tpu.dot_dimension_numbers<[1], [0], [0], [1], [0, 0, 1, 1], [], []>} : vector<8x128xbf16>, vector<128x512xbf16>, vector<8x512xf32> -> vector<8x512xf32>
    %290 = arith.addf %286, %289 : vector<8x512xf32>
    %291 = vector.broadcast %3 : vector<1x512xf32> to vector<8x512xf32>
    %292 = arith.addf %290, %291 : vector<8x512xf32>
    %293 = vector.extract_strided_slice %292 {offsets = [0, 0], sizes = [8, 128], strides = [1, 1]} : vector<8x512xf32> to vector<8x128xf32>
    %294 = arith.negf %293 : vector<8x128xf32>
    %295 = math.exp %294 : vector<8x128xf32>
    %cst_85 = arith.constant 1.000000e+00 : f32
    %296 = vector.broadcast %cst_85 : f32 to vector<8x128xf32>
    %297 = arith.addf %296, %295 : vector<8x128xf32>
    %298 = arith.divf %296, %297 : vector<8x128xf32>
    %299 = vector.extract_strided_slice %292 {offsets = [0, 128], sizes = [8, 128], strides = [1, 1]} : vector<8x512xf32> to vector<8x128xf32>
    %300 = arith.negf %299 : vector<8x128xf32>
    %301 = math.exp %300 : vector<8x128xf32>
    %cst_86 = arith.constant 1.000000e+00 : f32
    %302 = vector.broadcast %cst_86 : f32 to vector<8x128xf32>
    %303 = arith.addf %302, %301 : vector<8x128xf32>
    %304 = arith.divf %302, %303 : vector<8x128xf32>
    %305 = vector.extract_strided_slice %292 {offsets = [0, 256], sizes = [8, 128], strides = [1, 1]} : vector<8x512xf32> to vector<8x128xf32>
    %306 = math.tanh %305 : vector<8x128xf32>
    %307 = vector.extract_strided_slice %292 {offsets = [0, 384], sizes = [8, 128], strides = [1, 1]} : vector<8x512xf32> to vector<8x128xf32>
    %308 = arith.negf %307 : vector<8x128xf32>
    %309 = math.exp %308 : vector<8x128xf32>
    %cst_87 = arith.constant 1.000000e+00 : f32
    %310 = vector.broadcast %cst_87 : f32 to vector<8x128xf32>
    %311 = arith.addf %310, %309 : vector<8x128xf32>
    %312 = arith.divf %310, %311 : vector<8x128xf32>
    %313 = arith.mulf %304, %280 : vector<8x128xf32>
    %314 = arith.mulf %298, %306 : vector<8x128xf32>
    %315 = arith.addf %313, %314 : vector<8x128xf32>
    %316 = math.tanh %315 : vector<8x128xf32>
    %317 = arith.mulf %312, %316 : vector<8x128xf32>
    %318 = vector.extract_strided_slice %2 {offsets = [48, 0], sizes = [8, 1], strides = [1, 1]} : vector<64x1xi1> to vector<8x1xi1>
    %319 = vector.shape_cast %318 : vector<8x1xi1> to vector<8x1xi1>
    %320 = vector.broadcast %319 : vector<8x1xi1> to vector<8x128xi1>
    %321 = arith.select %320, %317, %277 : vector<8x128xi1>, vector<8x128xf32>
    %322 = vector.shape_cast %318 : vector<8x1xi1> to vector<8x1xi1>
    %323 = vector.broadcast %322 : vector<8x1xi1> to vector<8x128xi1>
    %324 = arith.select %323, %315, %280 : vector<8x128xi1>, vector<8x128xf32>
    %cst_88 = arith.constant 0.000000e+00 : f32
    %325 = vector.shape_cast %318 : vector<8x1xi1> to vector<8x1xi1>
    %326 = vector.broadcast %325 : vector<8x1xi1> to vector<8x128xi1>
    %327 = vector.broadcast %cst_88 : f32 to vector<8x128xf32>
    %328 = arith.select %326, %317, %327 : vector<8x128xi1>, vector<8x128xf32>
    %c48_89 = arith.constant 48 : index
    %c0_90 = arith.constant 0 : index
    %329 = vector.load %arg15[%c48_89, %c0_90] : memref<64x128xf32, #tpu.memory_space<vmem>>, vector<8x128xf32>
    tpu.vector_store %arg15[%c48_89, %c0_90], %328 {strides = array<i32>} : memref<64x128xf32, #tpu.memory_space<vmem>>, vector<8x128xf32>,
    %c56 = arith.constant 56 : index
    %c0_91 = arith.constant 0 : index
    %330 = vector.load %arg14[%c56, %c0_91] : memref<64x512xf32, #tpu.memory_space<vmem>>, vector<8x512xf32>
    %331 = arith.truncf %321 : vector<8x128xf32> to vector<8x128xbf16>
    %c0_92 = arith.constant 0 : index
    %c0_93 = arith.constant 0 : index
    %332 = vector.load %arg3[%c0_92, %c0_93] : memref<128x512xbf16, #tpu.memory_space<vmem>>, vector<128x512xbf16>
    %cst_94 = arith.constant dense<0.000000e+00> : vector<8x512xf32>
    %333 = tpu.matmul %331, %332, %cst_94 {dimension_numbers = #tpu.dot_dimension_numbers<[1], [0], [0], [1], [0, 0, 1, 1], [], []>} : vector<8x128xbf16>, vector<128x512xbf16>, vector<8x512xf32> -> vector<8x512xf32>
    %334 = arith.addf %330, %333 : vector<8x512xf32>
    %335 = vector.broadcast %3 : vector<1x512xf32> to vector<8x512xf32>
    %336 = arith.addf %334, %335 : vector<8x512xf32>
    %337 = vector.extract_strided_slice %336 {offsets = [0, 0], sizes = [8, 128], strides = [1, 1]} : vector<8x512xf32> to vector<8x128xf32>
    %338 = arith.negf %337 : vector<8x128xf32>
    %339 = math.exp %338 : vector<8x128xf32>
    %cst_95 = arith.constant 1.000000e+00 : f32
    %340 = vector.broadcast %cst_95 : f32 to vector<8x128xf32>
    %341 = arith.addf %340, %339 : vector<8x128xf32>
    %342 = arith.divf %340, %341 : vector<8x128xf32>
    %343 = vector.extract_strided_slice %336 {offsets = [0, 128], sizes = [8, 128], strides = [1, 1]} : vector<8x512xf32> to vector<8x128xf32>
    %344 = arith.negf %343 : vector<8x128xf32>
    %345 = math.exp %344 : vector<8x128xf32>
    %cst_96 = arith.constant 1.000000e+00 : f32
    %346 = vector.broadcast %cst_96 : f32 to vector<8x128xf32>
    %347 = arith.addf %346, %345 : vector<8x128xf32>
    %348 = arith.divf %346, %347 : vector<8x128xf32>
    %349 = vector.extract_strided_slice %336 {offsets = [0, 256], sizes = [8, 128], strides = [1, 1]} : vector<8x512xf32> to vector<8x128xf32>
    %350 = math.tanh %349 : vector<8x128xf32>
    %351 = vector.extract_strided_slice %336 {offsets = [0, 384], sizes = [8, 128], strides = [1, 1]} : vector<8x512xf32> to vector<8x128xf32>
    %352 = arith.negf %351 : vector<8x128xf32>
    %353 = math.exp %352 : vector<8x128xf32>
    %cst_97 = arith.constant 1.000000e+00 : f32
    %354 = vector.broadcast %cst_97 : f32 to vector<8x128xf32>
    %355 = arith.addf %354, %353 : vector<8x128xf32>
    %356 = arith.divf %354, %355 : vector<8x128xf32>
    %357 = arith.mulf %348, %324 : vector<8x128xf32>
    %358 = arith.mulf %342, %350 : vector<8x128xf32>
    %359 = arith.addf %357, %358 : vector<8x128xf32>
    %360 = math.tanh %359 : vector<8x128xf32>
    %361 = arith.mulf %356, %360 : vector<8x128xf32>
    %362 = vector.extract_strided_slice %2 {offsets = [56, 0], sizes = [8, 1], strides = [1, 1]} : vector<64x1xi1> to vector<8x1xi1>
    %363 = vector.shape_cast %362 : vector<8x1xi1> to vector<8x1xi1>
    %364 = vector.broadcast %363 : vector<8x1xi1> to vector<8x128xi1>
    %365 = arith.select %364, %361, %321 : vector<8x128xi1>, vector<8x128xf32>
    %cst_98 = arith.constant 0.000000e+00 : f32
    %366 = vector.shape_cast %362 : vector<8x1xi1> to vector<8x1xi1>
    %367 = vector.broadcast %366 : vector<8x1xi1> to vector<8x128xi1>
    %368 = vector.broadcast %cst_98 : f32 to vector<8x128xf32>
    %369 = arith.select %367, %361, %368 : vector<8x128xi1>, vector<8x128xf32>
    %c56_99 = arith.constant 56 : index
    %c0_100 = arith.constant 0 : index
    %370 = vector.load %arg15[%c56_99, %c0_100] : memref<64x128xf32, #tpu.memory_space<vmem>>, vector<8x128xf32>
    tpu.vector_store %arg15[%c56_99, %c0_100], %369 {strides = array<i32>} : memref<64x128xf32, #tpu.memory_space<vmem>>, vector<8x128xf32>,
    %c0_101 = arith.constant 0 : index
    %c0_102 = arith.constant 0 : index
    %371 = vector.load %arg15[%c0_101, %c0_102] : memref<64x128xf32, #tpu.memory_space<vmem>>, vector<64x128xf32>
    %372 = arith.truncf %371 : vector<64x128xf32> to vector<64x128xbf16>
    %c0_103 = arith.constant 0 : index
    %c0_104 = arith.constant 0 : index
    %373 = vector.load %arg7[%c0_103, %c0_104] : memref<128x128xbf16, #tpu.memory_space<vmem>>, vector<128x128xbf16>
    %cst_105 = arith.constant dense<0.000000e+00> : vector<64x128xf32>
    %374 = tpu.matmul %372, %373, %cst_105 {dimension_numbers = #tpu.dot_dimension_numbers<[1], [0], [0], [1], [0, 0, 1, 1], [], []>} : vector<64x128xbf16>, vector<128x128xbf16>, vector<64x128xf32> -> vector<64x128xf32>
    %c0_106 = arith.constant 0 : index
    %c0_107 = arith.constant 0 : index
    %375 = vector.load %arg15[%c0_106, %c0_107] : memref<64x128xf32, #tpu.memory_space<vmem>>, vector<64x128xf32>
    tpu.vector_store %arg15[%c0_106, %c0_107], %374 {strides = array<i32>} : memref<64x128xf32, #tpu.memory_space<vmem>>, vector<64x128xf32>,
    %376 = tpu.iota {dimensions = array<i32: 1>} : vector<8x128xi32>
    %cst_108 = arith.constant 0.000000e+00 : f32
    %377 = vector.broadcast %cst_108 : f32 to vector<8x128xf32>
    %378 = arith.truncf %365 : vector<8x128xf32> to vector<8x128xbf16>
    %c0_109 = arith.constant 0 : index
    %c0_110 = arith.constant 0 : index
    %379 = vector.load %arg11[%c0_109, %c0_110] : memref<256x768xbf16, #tpu.memory_space<vmem>>, vector<128x512xbf16>
    %cst_111 = arith.constant dense<0.000000e+00> : vector<8x512xf32>
    %380 = tpu.matmul %378, %379, %cst_111 {dimension_numbers = #tpu.dot_dimension_numbers<[1], [0], [0], [1], [0, 0, 1, 1], [], []>} : vector<8x128xbf16>, vector<128x512xbf16>, vector<8x512xf32> -> vector<8x512xf32>
    %cst_112 = arith.constant 0.000000e+00 : f32
    %381 = vector.broadcast %cst_112 : f32 to vector<8x128xf32>
    %c1_i32 = arith.constant 1 : i32
    %382 = vector.broadcast %c1_i32 : i32 to vector<8x128xi32>
    %383 = arith.cmpi eq, %376, %382 : vector<8x128xi32>
    %384 = arith.extui %383 : vector<8x128xi1> to vector<8x128xi32>
    %385 = arith.sitofp %384 : vector<8x128xi32> to vector<8x128xf32>
    %386 = arith.truncf %385 : vector<8x128xf32> to vector<8x128xbf16>
    %c0_113 = arith.constant 0 : index
    %c0_114 = arith.constant 0 : index
    %387 = vector.load %arg5[%c0_113, %c0_114] : memref<128x256xbf16, #tpu.memory_space<vmem>>, vector<128x256xbf16>
    %cst_115 = arith.constant dense<0.000000e+00> : vector<8x256xf32>
    %388 = tpu.matmul %386, %387, %cst_115 {dimension_numbers = #tpu.dot_dimension_numbers<[1], [0], [0], [1], [0, 0, 1, 1], [], []>} : vector<8x128xbf16>, vector<128x256xbf16>, vector<8x256xf32> -> vector<8x256xf32>
    %389 = vector.extract_strided_slice %388 {offsets = [0, 0], sizes = [8, 128], strides = [1, 1]} : vector<8x256xf32> to vector<8x128xf32>
    %390 = arith.addf %389, %381 : vector<8x128xf32>
    %391 = vector.broadcast %4 : vector<1x128xf32> to vector<8x128xf32>
    %392 = arith.addf %390, %391 : vector<8x128xf32>
    %cst_116 = arith.constant dense<0xFF800000> : vector<8xf32>
    %393 = vector.multi_reduction <maximumf>, %392, %cst_116 [1] : vector<8x128xf32> to vector<8xf32>
    %394 = vector.shape_cast %393 : vector<8xf32> to vector<8x1xf32>
    %395 = vector.broadcast %394 : vector<8x1xf32> to vector<8x128xf32>
    %396 = arith.subf %392, %395 : vector<8x128xf32>
    %397 = math.exp %396 : vector<8x128xf32>
    %cst_117 = arith.constant dense<0.000000e+00> : vector<8xf32>
    %398 = vector.multi_reduction <add>, %397, %cst_117 [1] : vector<8x128xf32> to vector<8xf32>
    %399 = vector.shape_cast %398 : vector<8xf32> to vector<8x1xf32>
    %400 = tpu.reciprocal %399 {approx = true} : vector<8x1xf32> -> vector<8x1xf32>
    %401 = vector.broadcast %400 : vector<8x1xf32> to vector<8x128xf32>
    %402 = arith.mulf %397, %401 : vector<8x128xf32>
    %403 = vector.extract_strided_slice %388 {offsets = [0, 128], sizes = [8, 128], strides = [1, 1]} : vector<8x256xf32> to vector<8x128xf32>
    %404 = vector.broadcast %5 : vector<1x128xf32> to vector<8x128xf32>
    %405 = arith.addf %403, %404 : vector<8x128xf32>
    %406 = vector.extract_strided_slice %402 {offsets = [0, 0], sizes = [8, 1], strides = [1, 1]} : vector<8x128xf32> to vector<8x1xf32>
    %c0_118 = arith.constant 0 : index
    %c0_119 = arith.constant 0 : index
    %407 = vector.load %arg15[%c0_118, %c0_119] : memref<64x128xf32, #tpu.memory_space<vmem>>, vector<8x128xf32>
    %408 = vector.broadcast %406 : vector<8x1xf32> to vector<8x128xf32>
    %409 = arith.mulf %408, %407 : vector<8x128xf32>
    %410 = arith.addf %405, %409 : vector<8x128xf32>
    %411 = vector.extract_strided_slice %402 {offsets = [0, 1], sizes = [8, 1], strides = [1, 1]} : vector<8x128xf32> to vector<8x1xf32>
    %c8_120 = arith.constant 8 : index
    %c0_121 = arith.constant 0 : index
    %412 = vector.load %arg15[%c8_120, %c0_121] : memref<64x128xf32, #tpu.memory_space<vmem>>, vector<8x128xf32>
    %413 = vector.broadcast %411 : vector<8x1xf32> to vector<8x128xf32>
    %414 = arith.mulf %413, %412 : vector<8x128xf32>
    %415 = arith.addf %410, %414 : vector<8x128xf32>
    %416 = vector.extract_strided_slice %402 {offsets = [0, 2], sizes = [8, 1], strides = [1, 1]} : vector<8x128xf32> to vector<8x1xf32>
    %c16_122 = arith.constant 16 : index
    %c0_123 = arith.constant 0 : index
    %417 = vector.load %arg15[%c16_122, %c0_123] : memref<64x128xf32, #tpu.memory_space<vmem>>, vector<8x128xf32>
    %418 = vector.broadcast %416 : vector<8x1xf32> to vector<8x128xf32>
    %419 = arith.mulf %418, %417 : vector<8x128xf32>
    %420 = arith.addf %415, %419 : vector<8x128xf32>
    %421 = vector.extract_strided_slice %402 {offsets = [0, 3], sizes = [8, 1], strides = [1, 1]} : vector<8x128xf32> to vector<8x1xf32>
    %c24_124 = arith.constant 24 : index
    %c0_125 = arith.constant 0 : index
    %422 = vector.load %arg15[%c24_124, %c0_125] : memref<64x128xf32, #tpu.memory_space<vmem>>, vector<8x128xf32>
    %423 = vector.broadcast %421 : vector<8x1xf32> to vector<8x128xf32>
    %424 = arith.mulf %423, %422 : vector<8x128xf32>
    %425 = arith.addf %420, %424 : vector<8x128xf32>
    %426 = vector.extract_strided_slice %402 {offsets = [0, 4], sizes = [8, 1], strides = [1, 1]} : vector<8x128xf32> to vector<8x1xf32>
    %c32_126 = arith.constant 32 : index
    %c0_127 = arith.constant 0 : index
    %427 = vector.load %arg15[%c32_126, %c0_127] : memref<64x128xf32, #tpu.memory_space<vmem>>, vector<8x128xf32>
    %428 = vector.broadcast %426 : vector<8x1xf32> to vector<8x128xf32>
    %429 = arith.mulf %428, %427 : vector<8x128xf32>
    %430 = arith.addf %425, %429 : vector<8x128xf32>
    %431 = vector.extract_strided_slice %402 {offsets = [0, 5], sizes = [8, 1], strides = [1, 1]} : vector<8x128xf32> to vector<8x1xf32>
    %c40_128 = arith.constant 40 : index
    %c0_129 = arith.constant 0 : index
    %432 = vector.load %arg15[%c40_128, %c0_129] : memref<64x128xf32, #tpu.memory_space<vmem>>, vector<8x128xf32>
    %433 = vector.broadcast %431 : vector<8x1xf32> to vector<8x128xf32>
    %434 = arith.mulf %433, %432 : vector<8x128xf32>
    %435 = arith.addf %430, %434 : vector<8x128xf32>
    %436 = vector.extract_strided_slice %402 {offsets = [0, 6], sizes = [8, 1], strides = [1, 1]} : vector<8x128xf32> to vector<8x1xf32>
    %c48_130 = arith.constant 48 : index
    %c0_131 = arith.constant 0 : index
    %437 = vector.load %arg15[%c48_130, %c0_131] : memref<64x128xf32, #tpu.memory_space<vmem>>, vector<8x128xf32>
    %438 = vector.broadcast %436 : vector<8x1xf32> to vector<8x128xf32>
    %439 = arith.mulf %438, %437 : vector<8x128xf32>
    %440 = arith.addf %435, %439 : vector<8x128xf32>
    %441 = vector.extract_strided_slice %402 {offsets = [0, 7], sizes = [8, 1], strides = [1, 1]} : vector<8x128xf32> to vector<8x1xf32>
    %c56_132 = arith.constant 56 : index
    %c0_133 = arith.constant 0 : index
    %442 = vector.load %arg15[%c56_132, %c0_133] : memref<64x128xf32, #tpu.memory_space<vmem>>, vector<8x128xf32>
    %443 = vector.broadcast %441 : vector<8x1xf32> to vector<8x128xf32>
    %444 = arith.mulf %443, %442 : vector<8x128xf32>
    %445 = arith.addf %440, %444 : vector<8x128xf32>
    %446 = arith.truncf %445 : vector<8x128xf32> to vector<8x128xbf16>
    %c0_134 = arith.constant 0 : index
    %c0_135 = arith.constant 0 : index
    %447 = vector.load %arg9[%c0_134, %c0_135] : memref<128x512xbf16, #tpu.memory_space<vmem>>, vector<128x512xbf16>
    %cst_136 = arith.constant dense<0.000000e+00> : vector<8x512xf32>
    %448 = tpu.matmul %446, %447, %cst_136 {dimension_numbers = #tpu.dot_dimension_numbers<[1], [0], [0], [1], [0, 0, 1, 1], [], []>} : vector<8x128xbf16>, vector<128x512xbf16>, vector<8x512xf32> -> vector<8x512xf32>
    %449 = arith.addf %448, %380 : vector<8x512xf32>
    %450 = vector.broadcast %6 : vector<1x512xf32> to vector<8x512xf32>
    %451 = arith.addf %449, %450 : vector<8x512xf32>
    %452 = vector.extract_strided_slice %451 {offsets = [0, 0], sizes = [8, 128], strides = [1, 1]} : vector<8x512xf32> to vector<8x128xf32>
    %453 = arith.negf %452 : vector<8x128xf32>
    %454 = math.exp %453 : vector<8x128xf32>
    %cst_137 = arith.constant 1.000000e+00 : f32
    %455 = vector.broadcast %cst_137 : f32 to vector<8x128xf32>
    %456 = arith.addf %455, %454 : vector<8x128xf32>
    %457 = arith.divf %455, %456 : vector<8x128xf32>
    %458 = vector.extract_strided_slice %451 {offsets = [0, 128], sizes = [8, 128], strides = [1, 1]} : vector<8x512xf32> to vector<8x128xf32>
    %459 = arith.negf %458 : vector<8x128xf32>
    %460 = math.exp %459 : vector<8x128xf32>
    %cst_138 = arith.constant 1.000000e+00 : f32
    %461 = vector.broadcast %cst_138 : f32 to vector<8x128xf32>
    %462 = arith.addf %461, %460 : vector<8x128xf32>
    %463 = arith.divf %461, %462 : vector<8x128xf32>
    %464 = vector.extract_strided_slice %451 {offsets = [0, 256], sizes = [8, 128], strides = [1, 1]} : vector<8x512xf32> to vector<8x128xf32>
    %465 = math.tanh %464 : vector<8x128xf32>
    %466 = vector.extract_strided_slice %451 {offsets = [0, 384], sizes = [8, 128], strides = [1, 1]} : vector<8x512xf32> to vector<8x128xf32>
    %467 = arith.negf %466 : vector<8x128xf32>
    %468 = math.exp %467 : vector<8x128xf32>
    %cst_139 = arith.constant 1.000000e+00 : f32
    %469 = vector.broadcast %cst_139 : f32 to vector<8x128xf32>
    %470 = arith.addf %469, %468 : vector<8x128xf32>
    %471 = arith.divf %469, %470 : vector<8x128xf32>
    %472 = arith.mulf %463, %377 : vector<8x128xf32>
    %473 = arith.mulf %457, %465 : vector<8x128xf32>
    %474 = arith.addf %472, %473 : vector<8x128xf32>
    %475 = math.tanh %474 : vector<8x128xf32>
    %476 = arith.mulf %471, %475 : vector<8x128xf32>
    %477 = tpu.concatenate %476, %474 in 1 : vector<8x128xf32>, vector<8x128xf32> -> vector<8x256xf32>
    %478 = arith.truncf %477 : vector<8x256xf32> to vector<8x256xbf16>
    %c0_140 = arith.constant 0 : index
    %c0_141 = arith.constant 0 : index
    %479 = vector.load %arg11[%c0_140, %c0_141] : memref<256x768xbf16, #tpu.memory_space<vmem>>, vector<256x768xbf16>
    %cst_142 = arith.constant dense<0.000000e+00> : vector<8x768xf32>
    %480 = tpu.matmul %478, %479, %cst_142 {dimension_numbers = #tpu.dot_dimension_numbers<[1], [0], [0], [1], [0, 0, 1, 1], [], []>} : vector<8x256xbf16>, vector<256x768xbf16>, vector<8x768xf32> -> vector<8x768xf32>
    %481 = vector.extract_strided_slice %480 {offsets = [0, 0], sizes = [8, 512], strides = [1, 1]} : vector<8x768xf32> to vector<8x512xf32>
    %482 = vector.extract_strided_slice %480 {offsets = [0, 512], sizes = [8, 128], strides = [1, 1]} : vector<8x768xf32> to vector<8x128xf32>
    %483 = vector.broadcast %7 : vector<1x128xf32> to vector<8x128xf32>
    %484 = arith.addf %482, %483 : vector<8x128xf32>
    %485 = vector.extract_strided_slice %480 {offsets = [0, 640], sizes = [8, 128], strides = [1, 1]} : vector<8x768xf32> to vector<8x128xf32>
    %c0_143 = arith.constant 0 : index
    %c0_144 = arith.constant 0 : index
    %c0_145 = arith.constant 0 : index
    %486 = vector.load %arg13[%c0_143, %c0_144, %c0_145] : memref<8x8x128xf32, #tpu.memory_space<vmem>>, vector<1x8x128xf32>
    %487 = vector.shape_cast %486 : vector<1x8x128xf32> to vector<8x128xf32>
    %488 = vector.shape_cast %484 : vector<8x128xf32> to vector<1x8x128xf32>
    tpu.vector_store %arg13[%c0_143, %c0_144, %c0_145], %488 {strides = array<i32>} : memref<8x8x128xf32, #tpu.memory_space<vmem>>, vector<1x8x128xf32>,
    %cst_146 = arith.constant dense<0xFF800000> : vector<8xf32>
    %489 = vector.multi_reduction <maximumf>, %484, %cst_146 [1] : vector<8x128xf32> to vector<8xf32>
    %490 = vector.shape_cast %489 : vector<8xf32> to vector<8x1xf32>
    %491 = vector.broadcast %490 : vector<8x1xf32> to vector<8x128xf32>
    %492 = arith.cmpf oge, %484, %491 : vector<8x128xf32>
    %c128_i32 = arith.constant 128 : i32
    %493 = vector.broadcast %c128_i32 : i32 to vector<8x128xi32>
    %494 = arith.select %492, %376, %493 : vector<8x128xi1>, vector<8x128xi32>
    %cst_147 = arith.constant dense<2147483647> : vector<8xi32>
    %495 = vector.multi_reduction <minsi>, %494, %cst_147 [1] : vector<8x128xi32> to vector<8xi32>
    %496 = vector.shape_cast %495 : vector<8xi32> to vector<8x1xi32>
    %497 = vector.broadcast %496 : vector<8x1xi32> to vector<8x128xi32>
    %498 = arith.cmpi eq, %376, %497 : vector<8x128xi32>
    %499 = arith.extui %498 : vector<8x128xi1> to vector<8x128xi32>
    %500 = arith.sitofp %499 : vector<8x128xi32> to vector<8x128xf32>
    %501 = arith.truncf %500 : vector<8x128xf32> to vector<8x128xbf16>
    %c0_148 = arith.constant 0 : index
    %c0_149 = arith.constant 0 : index
    %502 = vector.load %arg5[%c0_148, %c0_149] : memref<128x256xbf16, #tpu.memory_space<vmem>>, vector<128x256xbf16>
    %cst_150 = arith.constant dense<0.000000e+00> : vector<8x256xf32>
    %503 = tpu.matmul %501, %502, %cst_150 {dimension_numbers = #tpu.dot_dimension_numbers<[1], [0], [0], [1], [0, 0, 1, 1], [], []>} : vector<8x128xbf16>, vector<128x256xbf16>, vector<8x256xf32> -> vector<8x256xf32>
    %504 = vector.extract_strided_slice %503 {offsets = [0, 0], sizes = [8, 128], strides = [1, 1]} : vector<8x256xf32> to vector<8x128xf32>
    %505 = arith.addf %504, %485 : vector<8x128xf32>
    %506 = vector.broadcast %4 : vector<1x128xf32> to vector<8x128xf32>
    %507 = arith.addf %505, %506 : vector<8x128xf32>
    %cst_151 = arith.constant dense<0xFF800000> : vector<8xf32>
    %508 = vector.multi_reduction <maximumf>, %507, %cst_151 [1] : vector<8x128xf32> to vector<8xf32>
    %509 = vector.shape_cast %508 : vector<8xf32> to vector<8x1xf32>
    %510 = vector.broadcast %509 : vector<8x1xf32> to vector<8x128xf32>
    %511 = arith.subf %507, %510 : vector<8x128xf32>
    %512 = math.exp %511 : vector<8x128xf32>
    %cst_152 = arith.constant dense<0.000000e+00> : vector<8xf32>
    %513 = vector.multi_reduction <add>, %512, %cst_152 [1] : vector<8x128xf32> to vector<8xf32>
    %514 = vector.shape_cast %513 : vector<8xf32> to vector<8x1xf32>
    %515 = tpu.reciprocal %514 {approx = true} : vector<8x1xf32> -> vector<8x1xf32>
    %516 = vector.broadcast %515 : vector<8x1xf32> to vector<8x128xf32>
    %517 = arith.mulf %512, %516 : vector<8x128xf32>
    %518 = vector.extract_strided_slice %503 {offsets = [0, 128], sizes = [8, 128], strides = [1, 1]} : vector<8x256xf32> to vector<8x128xf32>
    %519 = vector.broadcast %5 : vector<1x128xf32> to vector<8x128xf32>
    %520 = arith.addf %518, %519 : vector<8x128xf32>
    %521 = vector.extract_strided_slice %517 {offsets = [0, 0], sizes = [8, 1], strides = [1, 1]} : vector<8x128xf32> to vector<8x1xf32>
    %c0_153 = arith.constant 0 : index
    %c0_154 = arith.constant 0 : index
    %522 = vector.load %arg15[%c0_153, %c0_154] : memref<64x128xf32, #tpu.memory_space<vmem>>, vector<8x128xf32>
    %523 = vector.broadcast %521 : vector<8x1xf32> to vector<8x128xf32>
    %524 = arith.mulf %523, %522 : vector<8x128xf32>
    %525 = arith.addf %520, %524 : vector<8x128xf32>
    %526 = vector.extract_strided_slice %517 {offsets = [0, 1], sizes = [8, 1], strides = [1, 1]} : vector<8x128xf32> to vector<8x1xf32>
    %c8_155 = arith.constant 8 : index
    %c0_156 = arith.constant 0 : index
    %527 = vector.load %arg15[%c8_155, %c0_156] : memref<64x128xf32, #tpu.memory_space<vmem>>, vector<8x128xf32>
    %528 = vector.broadcast %526 : vector<8x1xf32> to vector<8x128xf32>
    %529 = arith.mulf %528, %527 : vector<8x128xf32>
    %530 = arith.addf %525, %529 : vector<8x128xf32>
    %531 = vector.extract_strided_slice %517 {offsets = [0, 2], sizes = [8, 1], strides = [1, 1]} : vector<8x128xf32> to vector<8x1xf32>
    %c16_157 = arith.constant 16 : index
    %c0_158 = arith.constant 0 : index
    %532 = vector.load %arg15[%c16_157, %c0_158] : memref<64x128xf32, #tpu.memory_space<vmem>>, vector<8x128xf32>
    %533 = vector.broadcast %531 : vector<8x1xf32> to vector<8x128xf32>
    %534 = arith.mulf %533, %532 : vector<8x128xf32>
    %535 = arith.addf %530, %534 : vector<8x128xf32>
    %536 = vector.extract_strided_slice %517 {offsets = [0, 3], sizes = [8, 1], strides = [1, 1]} : vector<8x128xf32> to vector<8x1xf32>
    %c24_159 = arith.constant 24 : index
    %c0_160 = arith.constant 0 : index
    %537 = vector.load %arg15[%c24_159, %c0_160] : memref<64x128xf32, #tpu.memory_space<vmem>>, vector<8x128xf32>
    %538 = vector.broadcast %536 : vector<8x1xf32> to vector<8x128xf32>
    %539 = arith.mulf %538, %537 : vector<8x128xf32>
    %540 = arith.addf %535, %539 : vector<8x128xf32>
    %541 = vector.extract_strided_slice %517 {offsets = [0, 4], sizes = [8, 1], strides = [1, 1]} : vector<8x128xf32> to vector<8x1xf32>
    %c32_161 = arith.constant 32 : index
    %c0_162 = arith.constant 0 : index
    %542 = vector.load %arg15[%c32_161, %c0_162] : memref<64x128xf32, #tpu.memory_space<vmem>>, vector<8x128xf32>
    %543 = vector.broadcast %541 : vector<8x1xf32> to vector<8x128xf32>
    %544 = arith.mulf %543, %542 : vector<8x128xf32>
    %545 = arith.addf %540, %544 : vector<8x128xf32>
    %546 = vector.extract_strided_slice %517 {offsets = [0, 5], sizes = [8, 1], strides = [1, 1]} : vector<8x128xf32> to vector<8x1xf32>
    %c40_163 = arith.constant 40 : index
    %c0_164 = arith.constant 0 : index
    %547 = vector.load %arg15[%c40_163, %c0_164] : memref<64x128xf32, #tpu.memory_space<vmem>>, vector<8x128xf32>
    %548 = vector.broadcast %546 : vector<8x1xf32> to vector<8x128xf32>
    %549 = arith.mulf %548, %547 : vector<8x128xf32>
    %550 = arith.addf %545, %549 : vector<8x128xf32>
    %551 = vector.extract_strided_slice %517 {offsets = [0, 6], sizes = [8, 1], strides = [1, 1]} : vector<8x128xf32> to vector<8x1xf32>
    %c48_165 = arith.constant 48 : index
    %c0_166 = arith.constant 0 : index
    %552 = vector.load %arg15[%c48_165, %c0_166] : memref<64x128xf32, #tpu.memory_space<vmem>>, vector<8x128xf32>
    %553 = vector.broadcast %551 : vector<8x1xf32> to vector<8x128xf32>
    %554 = arith.mulf %553, %552 : vector<8x128xf32>
    %555 = arith.addf %550, %554 : vector<8x128xf32>
    %556 = vector.extract_strided_slice %517 {offsets = [0, 7], sizes = [8, 1], strides = [1, 1]} : vector<8x128xf32> to vector<8x1xf32>
    %c56_167 = arith.constant 56 : index
    %c0_168 = arith.constant 0 : index
    %557 = vector.load %arg15[%c56_167, %c0_168] : memref<64x128xf32, #tpu.memory_space<vmem>>, vector<8x128xf32>
    %558 = vector.broadcast %556 : vector<8x1xf32> to vector<8x128xf32>
    %559 = arith.mulf %558, %557 : vector<8x128xf32>
    %560 = arith.addf %555, %559 : vector<8x128xf32>
    %561 = arith.truncf %560 : vector<8x128xf32> to vector<8x128xbf16>
    %c0_169 = arith.constant 0 : index
    %c0_170 = arith.constant 0 : index
    %562 = vector.load %arg9[%c0_169, %c0_170] : memref<128x512xbf16, #tpu.memory_space<vmem>>, vector<128x512xbf16>
    %cst_171 = arith.constant dense<0.000000e+00> : vector<8x512xf32>
    %563 = tpu.matmul %561, %562, %cst_171 {dimension_numbers = #tpu.dot_dimension_numbers<[1], [0], [0], [1], [0, 0, 1, 1], [], []>} : vector<8x128xbf16>, vector<128x512xbf16>, vector<8x512xf32> -> vector<8x512xf32>
    %564 = arith.addf %563, %481 : vector<8x512xf32>
    %565 = vector.broadcast %6 : vector<1x512xf32> to vector<8x512xf32>
    %566 = arith.addf %564, %565 : vector<8x512xf32>
    %567 = vector.extract_strided_slice %566 {offsets = [0, 0], sizes = [8, 128], strides = [1, 1]} : vector<8x512xf32> to vector<8x128xf32>
    %568 = arith.negf %567 : vector<8x128xf32>
    %569 = math.exp %568 : vector<8x128xf32>
    %cst_172 = arith.constant 1.000000e+00 : f32
    %570 = vector.broadcast %cst_172 : f32 to vector<8x128xf32>
    %571 = arith.addf %570, %569 : vector<8x128xf32>
    %572 = arith.divf %570, %571 : vector<8x128xf32>
    %573 = vector.extract_strided_slice %566 {offsets = [0, 128], sizes = [8, 128], strides = [1, 1]} : vector<8x512xf32> to vector<8x128xf32>
    %574 = arith.negf %573 : vector<8x128xf32>
    %575 = math.exp %574 : vector<8x128xf32>
    %cst_173 = arith.constant 1.000000e+00 : f32
    %576 = vector.broadcast %cst_173 : f32 to vector<8x128xf32>
    %577 = arith.addf %576, %575 : vector<8x128xf32>
    %578 = arith.divf %576, %577 : vector<8x128xf32>
    %579 = vector.extract_strided_slice %566 {offsets = [0, 256], sizes = [8, 128], strides = [1, 1]} : vector<8x512xf32> to vector<8x128xf32>
    %580 = math.tanh %579 : vector<8x128xf32>
    %581 = vector.extract_strided_slice %566 {offsets = [0, 384], sizes = [8, 128], strides = [1, 1]} : vector<8x512xf32> to vector<8x128xf32>
    %582 = arith.negf %581 : vector<8x128xf32>
    %583 = math.exp %582 : vector<8x128xf32>
    %cst_174 = arith.constant 1.000000e+00 : f32
    %584 = vector.broadcast %cst_174 : f32 to vector<8x128xf32>
    %585 = arith.addf %584, %583 : vector<8x128xf32>
    %586 = arith.divf %584, %585 : vector<8x128xf32>
    %587 = arith.mulf %578, %474 : vector<8x128xf32>
    %588 = arith.mulf %572, %580 : vector<8x128xf32>
    %589 = arith.addf %587, %588 : vector<8x128xf32>
    %590 = math.tanh %589 : vector<8x128xf32>
    %591 = arith.mulf %586, %590 : vector<8x128xf32>
    %592 = tpu.concatenate %591, %589 in 1 : vector<8x128xf32>, vector<8x128xf32> -> vector<8x256xf32>
    %593 = arith.truncf %592 : vector<8x256xf32> to vector<8x256xbf16>
    %c0_175 = arith.constant 0 : index
    %c0_176 = arith.constant 0 : index
    %594 = vector.load %arg11[%c0_175, %c0_176] : memref<256x768xbf16, #tpu.memory_space<vmem>>, vector<256x768xbf16>
    %cst_177 = arith.constant dense<0.000000e+00> : vector<8x768xf32>
    %595 = tpu.matmul %593, %594, %cst_177 {dimension_numbers = #tpu.dot_dimension_numbers<[1], [0], [0], [1], [0, 0, 1, 1], [], []>} : vector<8x256xbf16>, vector<256x768xbf16>, vector<8x768xf32> -> vector<8x768xf32>
    %596 = vector.extract_strided_slice %595 {offsets = [0, 0], sizes = [8, 512], strides = [1, 1]} : vector<8x768xf32> to vector<8x512xf32>
    %597 = vector.extract_strided_slice %595 {offsets = [0, 512], sizes = [8, 128], strides = [1, 1]} : vector<8x768xf32> to vector<8x128xf32>
    %598 = vector.broadcast %7 : vector<1x128xf32> to vector<8x128xf32>
    %599 = arith.addf %597, %598 : vector<8x128xf32>
    %600 = vector.extract_strided_slice %595 {offsets = [0, 640], sizes = [8, 128], strides = [1, 1]} : vector<8x768xf32> to vector<8x128xf32>
    %c1 = arith.constant 1 : index
    %c0_178 = arith.constant 0 : index
    %c0_179 = arith.constant 0 : index
    %601 = vector.load %arg13[%c1, %c0_178, %c0_179] : memref<8x8x128xf32, #tpu.memory_space<vmem>>, vector<1x8x128xf32>
    %602 = vector.shape_cast %601 : vector<1x8x128xf32> to vector<8x128xf32>
    %603 = vector.shape_cast %599 : vector<8x128xf32> to vector<1x8x128xf32>
    tpu.vector_store %arg13[%c1, %c0_178, %c0_179], %603 {strides = array<i32>} : memref<8x8x128xf32, #tpu.memory_space<vmem>>, vector<1x8x128xf32>,
    %cst_180 = arith.constant dense<0xFF800000> : vector<8xf32>
    %604 = vector.multi_reduction <maximumf>, %599, %cst_180 [1] : vector<8x128xf32> to vector<8xf32>
    %605 = vector.shape_cast %604 : vector<8xf32> to vector<8x1xf32>
    %606 = vector.broadcast %605 : vector<8x1xf32> to vector<8x128xf32>
    %607 = arith.cmpf oge, %599, %606 : vector<8x128xf32>
    %c128_i32_181 = arith.constant 128 : i32
    %608 = vector.broadcast %c128_i32_181 : i32 to vector<8x128xi32>
    %609 = arith.select %607, %376, %608 : vector<8x128xi1>, vector<8x128xi32>
    %cst_182 = arith.constant dense<2147483647> : vector<8xi32>
    %610 = vector.multi_reduction <minsi>, %609, %cst_182 [1] : vector<8x128xi32> to vector<8xi32>
    %611 = vector.shape_cast %610 : vector<8xi32> to vector<8x1xi32>
    %612 = vector.broadcast %611 : vector<8x1xi32> to vector<8x128xi32>
    %613 = arith.cmpi eq, %376, %612 : vector<8x128xi32>
    %614 = arith.extui %613 : vector<8x128xi1> to vector<8x128xi32>
    %615 = arith.sitofp %614 : vector<8x128xi32> to vector<8x128xf32>
    %616 = arith.truncf %615 : vector<8x128xf32> to vector<8x128xbf16>
    %c0_183 = arith.constant 0 : index
    %c0_184 = arith.constant 0 : index
    %617 = vector.load %arg5[%c0_183, %c0_184] : memref<128x256xbf16, #tpu.memory_space<vmem>>, vector<128x256xbf16>
    %cst_185 = arith.constant dense<0.000000e+00> : vector<8x256xf32>
    %618 = tpu.matmul %616, %617, %cst_185 {dimension_numbers = #tpu.dot_dimension_numbers<[1], [0], [0], [1], [0, 0, 1, 1], [], []>} : vector<8x128xbf16>, vector<128x256xbf16>, vector<8x256xf32> -> vector<8x256xf32>
    %619 = vector.extract_strided_slice %618 {offsets = [0, 0], sizes = [8, 128], strides = [1, 1]} : vector<8x256xf32> to vector<8x128xf32>
    %620 = arith.addf %619, %600 : vector<8x128xf32>
    %621 = vector.broadcast %4 : vector<1x128xf32> to vector<8x128xf32>
    %622 = arith.addf %620, %621 : vector<8x128xf32>
    %cst_186 = arith.constant dense<0xFF800000> : vector<8xf32>
    %623 = vector.multi_reduction <maximumf>, %622, %cst_186 [1] : vector<8x128xf32> to vector<8xf32>
    %624 = vector.shape_cast %623 : vector<8xf32> to vector<8x1xf32>
    %625 = vector.broadcast %624 : vector<8x1xf32> to vector<8x128xf32>
    %626 = arith.subf %622, %625 : vector<8x128xf32>
    %627 = math.exp %626 : vector<8x128xf32>
    %cst_187 = arith.constant dense<0.000000e+00> : vector<8xf32>
    %628 = vector.multi_reduction <add>, %627, %cst_187 [1] : vector<8x128xf32> to vector<8xf32>
    %629 = vector.shape_cast %628 : vector<8xf32> to vector<8x1xf32>
    %630 = tpu.reciprocal %629 {approx = true} : vector<8x1xf32> -> vector<8x1xf32>
    %631 = vector.broadcast %630 : vector<8x1xf32> to vector<8x128xf32>
    %632 = arith.mulf %627, %631 : vector<8x128xf32>
    %633 = vector.extract_strided_slice %618 {offsets = [0, 128], sizes = [8, 128], strides = [1, 1]} : vector<8x256xf32> to vector<8x128xf32>
    %634 = vector.broadcast %5 : vector<1x128xf32> to vector<8x128xf32>
    %635 = arith.addf %633, %634 : vector<8x128xf32>
    %636 = vector.extract_strided_slice %632 {offsets = [0, 0], sizes = [8, 1], strides = [1, 1]} : vector<8x128xf32> to vector<8x1xf32>
    %c0_188 = arith.constant 0 : index
    %c0_189 = arith.constant 0 : index
    %637 = vector.load %arg15[%c0_188, %c0_189] : memref<64x128xf32, #tpu.memory_space<vmem>>, vector<8x128xf32>
    %638 = vector.broadcast %636 : vector<8x1xf32> to vector<8x128xf32>
    %639 = arith.mulf %638, %637 : vector<8x128xf32>
    %640 = arith.addf %635, %639 : vector<8x128xf32>
    %641 = vector.extract_strided_slice %632 {offsets = [0, 1], sizes = [8, 1], strides = [1, 1]} : vector<8x128xf32> to vector<8x1xf32>
    %c8_190 = arith.constant 8 : index
    %c0_191 = arith.constant 0 : index
    %642 = vector.load %arg15[%c8_190, %c0_191] : memref<64x128xf32, #tpu.memory_space<vmem>>, vector<8x128xf32>
    %643 = vector.broadcast %641 : vector<8x1xf32> to vector<8x128xf32>
    %644 = arith.mulf %643, %642 : vector<8x128xf32>
    %645 = arith.addf %640, %644 : vector<8x128xf32>
    %646 = vector.extract_strided_slice %632 {offsets = [0, 2], sizes = [8, 1], strides = [1, 1]} : vector<8x128xf32> to vector<8x1xf32>
    %c16_192 = arith.constant 16 : index
    %c0_193 = arith.constant 0 : index
    %647 = vector.load %arg15[%c16_192, %c0_193] : memref<64x128xf32, #tpu.memory_space<vmem>>, vector<8x128xf32>
    %648 = vector.broadcast %646 : vector<8x1xf32> to vector<8x128xf32>
    %649 = arith.mulf %648, %647 : vector<8x128xf32>
    %650 = arith.addf %645, %649 : vector<8x128xf32>
    %651 = vector.extract_strided_slice %632 {offsets = [0, 3], sizes = [8, 1], strides = [1, 1]} : vector<8x128xf32> to vector<8x1xf32>
    %c24_194 = arith.constant 24 : index
    %c0_195 = arith.constant 0 : index
    %652 = vector.load %arg15[%c24_194, %c0_195] : memref<64x128xf32, #tpu.memory_space<vmem>>, vector<8x128xf32>
    %653 = vector.broadcast %651 : vector<8x1xf32> to vector<8x128xf32>
    %654 = arith.mulf %653, %652 : vector<8x128xf32>
    %655 = arith.addf %650, %654 : vector<8x128xf32>
    %656 = vector.extract_strided_slice %632 {offsets = [0, 4], sizes = [8, 1], strides = [1, 1]} : vector<8x128xf32> to vector<8x1xf32>
    %c32_196 = arith.constant 32 : index
    %c0_197 = arith.constant 0 : index
    %657 = vector.load %arg15[%c32_196, %c0_197] : memref<64x128xf32, #tpu.memory_space<vmem>>, vector<8x128xf32>
    %658 = vector.broadcast %656 : vector<8x1xf32> to vector<8x128xf32>
    %659 = arith.mulf %658, %657 : vector<8x128xf32>
    %660 = arith.addf %655, %659 : vector<8x128xf32>
    %661 = vector.extract_strided_slice %632 {offsets = [0, 5], sizes = [8, 1], strides = [1, 1]} : vector<8x128xf32> to vector<8x1xf32>
    %c40_198 = arith.constant 40 : index
    %c0_199 = arith.constant 0 : index
    %662 = vector.load %arg15[%c40_198, %c0_199] : memref<64x128xf32, #tpu.memory_space<vmem>>, vector<8x128xf32>
    %663 = vector.broadcast %661 : vector<8x1xf32> to vector<8x128xf32>
    %664 = arith.mulf %663, %662 : vector<8x128xf32>
    %665 = arith.addf %660, %664 : vector<8x128xf32>
    %666 = vector.extract_strided_slice %632 {offsets = [0, 6], sizes = [8, 1], strides = [1, 1]} : vector<8x128xf32> to vector<8x1xf32>
    %c48_200 = arith.constant 48 : index
    %c0_201 = arith.constant 0 : index
    %667 = vector.load %arg15[%c48_200, %c0_201] : memref<64x128xf32, #tpu.memory_space<vmem>>, vector<8x128xf32>
    %668 = vector.broadcast %666 : vector<8x1xf32> to vector<8x128xf32>
    %669 = arith.mulf %668, %667 : vector<8x128xf32>
    %670 = arith.addf %665, %669 : vector<8x128xf32>
    %671 = vector.extract_strided_slice %632 {offsets = [0, 7], sizes = [8, 1], strides = [1, 1]} : vector<8x128xf32> to vector<8x1xf32>
    %c56_202 = arith.constant 56 : index
    %c0_203 = arith.constant 0 : index
    %672 = vector.load %arg15[%c56_202, %c0_203] : memref<64x128xf32, #tpu.memory_space<vmem>>, vector<8x128xf32>
    %673 = vector.broadcast %671 : vector<8x1xf32> to vector<8x128xf32>
    %674 = arith.mulf %673, %672 : vector<8x128xf32>
    %675 = arith.addf %670, %674 : vector<8x128xf32>
    %676 = arith.truncf %675 : vector<8x128xf32> to vector<8x128xbf16>
    %c0_204 = arith.constant 0 : index
    %c0_205 = arith.constant 0 : index
    %677 = vector.load %arg9[%c0_204, %c0_205] : memref<128x512xbf16, #tpu.memory_space<vmem>>, vector<128x512xbf16>
    %cst_206 = arith.constant dense<0.000000e+00> : vector<8x512xf32>
    %678 = tpu.matmul %676, %677, %cst_206 {dimension_numbers = #tpu.dot_dimension_numbers<[1], [0], [0], [1], [0, 0, 1, 1], [], []>} : vector<8x128xbf16>, vector<128x512xbf16>, vector<8x512xf32> -> vector<8x512xf32>
    %679 = arith.addf %678, %596 : vector<8x512xf32>
    %680 = vector.broadcast %6 : vector<1x512xf32> to vector<8x512xf32>
    %681 = arith.addf %679, %680 : vector<8x512xf32>
    %682 = vector.extract_strided_slice %681 {offsets = [0, 0], sizes = [8, 128], strides = [1, 1]} : vector<8x512xf32> to vector<8x128xf32>
    %683 = arith.negf %682 : vector<8x128xf32>
    %684 = math.exp %683 : vector<8x128xf32>
    %cst_207 = arith.constant 1.000000e+00 : f32
    %685 = vector.broadcast %cst_207 : f32 to vector<8x128xf32>
    %686 = arith.addf %685, %684 : vector<8x128xf32>
    %687 = arith.divf %685, %686 : vector<8x128xf32>
    %688 = vector.extract_strided_slice %681 {offsets = [0, 128], sizes = [8, 128], strides = [1, 1]} : vector<8x512xf32> to vector<8x128xf32>
    %689 = arith.negf %688 : vector<8x128xf32>
    %690 = math.exp %689 : vector<8x128xf32>
    %cst_208 = arith.constant 1.000000e+00 : f32
    %691 = vector.broadcast %cst_208 : f32 to vector<8x128xf32>
    %692 = arith.addf %691, %690 : vector<8x128xf32>
    %693 = arith.divf %691, %692 : vector<8x128xf32>
    %694 = vector.extract_strided_slice %681 {offsets = [0, 256], sizes = [8, 128], strides = [1, 1]} : vector<8x512xf32> to vector<8x128xf32>
    %695 = math.tanh %694 : vector<8x128xf32>
    %696 = vector.extract_strided_slice %681 {offsets = [0, 384], sizes = [8, 128], strides = [1, 1]} : vector<8x512xf32> to vector<8x128xf32>
    %697 = arith.negf %696 : vector<8x128xf32>
    %698 = math.exp %697 : vector<8x128xf32>
    %cst_209 = arith.constant 1.000000e+00 : f32
    %699 = vector.broadcast %cst_209 : f32 to vector<8x128xf32>
    %700 = arith.addf %699, %698 : vector<8x128xf32>
    %701 = arith.divf %699, %700 : vector<8x128xf32>
    %702 = arith.mulf %693, %589 : vector<8x128xf32>
    %703 = arith.mulf %687, %695 : vector<8x128xf32>
    %704 = arith.addf %702, %703 : vector<8x128xf32>
    %705 = math.tanh %704 : vector<8x128xf32>
    %706 = arith.mulf %701, %705 : vector<8x128xf32>
    %707 = tpu.concatenate %706, %704 in 1 : vector<8x128xf32>, vector<8x128xf32> -> vector<8x256xf32>
    %708 = arith.truncf %707 : vector<8x256xf32> to vector<8x256xbf16>
    %c0_210 = arith.constant 0 : index
    %c0_211 = arith.constant 0 : index
    %709 = vector.load %arg11[%c0_210, %c0_211] : memref<256x768xbf16, #tpu.memory_space<vmem>>, vector<256x768xbf16>
    %cst_212 = arith.constant dense<0.000000e+00> : vector<8x768xf32>
    %710 = tpu.matmul %708, %709, %cst_212 {dimension_numbers = #tpu.dot_dimension_numbers<[1], [0], [0], [1], [0, 0, 1, 1], [], []>} : vector<8x256xbf16>, vector<256x768xbf16>, vector<8x768xf32> -> vector<8x768xf32>
    %711 = vector.extract_strided_slice %710 {offsets = [0, 0], sizes = [8, 512], strides = [1, 1]} : vector<8x768xf32> to vector<8x512xf32>
    %712 = vector.extract_strided_slice %710 {offsets = [0, 512], sizes = [8, 128], strides = [1, 1]} : vector<8x768xf32> to vector<8x128xf32>
    %713 = vector.broadcast %7 : vector<1x128xf32> to vector<8x128xf32>
    %714 = arith.addf %712, %713 : vector<8x128xf32>
    %715 = vector.extract_strided_slice %710 {offsets = [0, 640], sizes = [8, 128], strides = [1, 1]} : vector<8x768xf32> to vector<8x128xf32>
    %c2 = arith.constant 2 : index
    %c0_213 = arith.constant 0 : index
    %c0_214 = arith.constant 0 : index
    %716 = vector.load %arg13[%c2, %c0_213, %c0_214] : memref<8x8x128xf32, #tpu.memory_space<vmem>>, vector<1x8x128xf32>
    %717 = vector.shape_cast %716 : vector<1x8x128xf32> to vector<8x128xf32>
    %718 = vector.shape_cast %714 : vector<8x128xf32> to vector<1x8x128xf32>
    tpu.vector_store %arg13[%c2, %c0_213, %c0_214], %718 {strides = array<i32>} : memref<8x8x128xf32, #tpu.memory_space<vmem>>, vector<1x8x128xf32>,
    %cst_215 = arith.constant dense<0xFF800000> : vector<8xf32>
    %719 = vector.multi_reduction <maximumf>, %714, %cst_215 [1] : vector<8x128xf32> to vector<8xf32>
    %720 = vector.shape_cast %719 : vector<8xf32> to vector<8x1xf32>
    %721 = vector.broadcast %720 : vector<8x1xf32> to vector<8x128xf32>
    %722 = arith.cmpf oge, %714, %721 : vector<8x128xf32>
    %c128_i32_216 = arith.constant 128 : i32
    %723 = vector.broadcast %c128_i32_216 : i32 to vector<8x128xi32>
    %724 = arith.select %722, %376, %723 : vector<8x128xi1>, vector<8x128xi32>
    %cst_217 = arith.constant dense<2147483647> : vector<8xi32>
    %725 = vector.multi_reduction <minsi>, %724, %cst_217 [1] : vector<8x128xi32> to vector<8xi32>
    %726 = vector.shape_cast %725 : vector<8xi32> to vector<8x1xi32>
    %727 = vector.broadcast %726 : vector<8x1xi32> to vector<8x128xi32>
    %728 = arith.cmpi eq, %376, %727 : vector<8x128xi32>
    %729 = arith.extui %728 : vector<8x128xi1> to vector<8x128xi32>
    %730 = arith.sitofp %729 : vector<8x128xi32> to vector<8x128xf32>
    %731 = arith.truncf %730 : vector<8x128xf32> to vector<8x128xbf16>
    %c0_218 = arith.constant 0 : index
    %c0_219 = arith.constant 0 : index
    %732 = vector.load %arg5[%c0_218, %c0_219] : memref<128x256xbf16, #tpu.memory_space<vmem>>, vector<128x256xbf16>
    %cst_220 = arith.constant dense<0.000000e+00> : vector<8x256xf32>
    %733 = tpu.matmul %731, %732, %cst_220 {dimension_numbers = #tpu.dot_dimension_numbers<[1], [0], [0], [1], [0, 0, 1, 1], [], []>} : vector<8x128xbf16>, vector<128x256xbf16>, vector<8x256xf32> -> vector<8x256xf32>
    %734 = vector.extract_strided_slice %733 {offsets = [0, 0], sizes = [8, 128], strides = [1, 1]} : vector<8x256xf32> to vector<8x128xf32>
    %735 = arith.addf %734, %715 : vector<8x128xf32>
    %736 = vector.broadcast %4 : vector<1x128xf32> to vector<8x128xf32>
    %737 = arith.addf %735, %736 : vector<8x128xf32>
    %cst_221 = arith.constant dense<0xFF800000> : vector<8xf32>
    %738 = vector.multi_reduction <maximumf>, %737, %cst_221 [1] : vector<8x128xf32> to vector<8xf32>
    %739 = vector.shape_cast %738 : vector<8xf32> to vector<8x1xf32>
    %740 = vector.broadcast %739 : vector<8x1xf32> to vector<8x128xf32>
    %741 = arith.subf %737, %740 : vector<8x128xf32>
    %742 = math.exp %741 : vector<8x128xf32>
    %cst_222 = arith.constant dense<0.000000e+00> : vector<8xf32>
    %743 = vector.multi_reduction <add>, %742, %cst_222 [1] : vector<8x128xf32> to vector<8xf32>
    %744 = vector.shape_cast %743 : vector<8xf32> to vector<8x1xf32>
    %745 = tpu.reciprocal %744 {approx = true} : vector<8x1xf32> -> vector<8x1xf32>
    %746 = vector.broadcast %745 : vector<8x1xf32> to vector<8x128xf32>
    %747 = arith.mulf %742, %746 : vector<8x128xf32>
    %748 = vector.extract_strided_slice %733 {offsets = [0, 128], sizes = [8, 128], strides = [1, 1]} : vector<8x256xf32> to vector<8x128xf32>
    %749 = vector.broadcast %5 : vector<1x128xf32> to vector<8x128xf32>
    %750 = arith.addf %748, %749 : vector<8x128xf32>
    %751 = vector.extract_strided_slice %747 {offsets = [0, 0], sizes = [8, 1], strides = [1, 1]} : vector<8x128xf32> to vector<8x1xf32>
    %c0_223 = arith.constant 0 : index
    %c0_224 = arith.constant 0 : index
    %752 = vector.load %arg15[%c0_223, %c0_224] : memref<64x128xf32, #tpu.memory_space<vmem>>, vector<8x128xf32>
    %753 = vector.broadcast %751 : vector<8x1xf32> to vector<8x128xf32>
    %754 = arith.mulf %753, %752 : vector<8x128xf32>
    %755 = arith.addf %750, %754 : vector<8x128xf32>
    %756 = vector.extract_strided_slice %747 {offsets = [0, 1], sizes = [8, 1], strides = [1, 1]} : vector<8x128xf32> to vector<8x1xf32>
    %c8_225 = arith.constant 8 : index
    %c0_226 = arith.constant 0 : index
    %757 = vector.load %arg15[%c8_225, %c0_226] : memref<64x128xf32, #tpu.memory_space<vmem>>, vector<8x128xf32>
    %758 = vector.broadcast %756 : vector<8x1xf32> to vector<8x128xf32>
    %759 = arith.mulf %758, %757 : vector<8x128xf32>
    %760 = arith.addf %755, %759 : vector<8x128xf32>
    %761 = vector.extract_strided_slice %747 {offsets = [0, 2], sizes = [8, 1], strides = [1, 1]} : vector<8x128xf32> to vector<8x1xf32>
    %c16_227 = arith.constant 16 : index
    %c0_228 = arith.constant 0 : index
    %762 = vector.load %arg15[%c16_227, %c0_228] : memref<64x128xf32, #tpu.memory_space<vmem>>, vector<8x128xf32>
    %763 = vector.broadcast %761 : vector<8x1xf32> to vector<8x128xf32>
    %764 = arith.mulf %763, %762 : vector<8x128xf32>
    %765 = arith.addf %760, %764 : vector<8x128xf32>
    %766 = vector.extract_strided_slice %747 {offsets = [0, 3], sizes = [8, 1], strides = [1, 1]} : vector<8x128xf32> to vector<8x1xf32>
    %c24_229 = arith.constant 24 : index
    %c0_230 = arith.constant 0 : index
    %767 = vector.load %arg15[%c24_229, %c0_230] : memref<64x128xf32, #tpu.memory_space<vmem>>, vector<8x128xf32>
    %768 = vector.broadcast %766 : vector<8x1xf32> to vector<8x128xf32>
    %769 = arith.mulf %768, %767 : vector<8x128xf32>
    %770 = arith.addf %765, %769 : vector<8x128xf32>
    %771 = vector.extract_strided_slice %747 {offsets = [0, 4], sizes = [8, 1], strides = [1, 1]} : vector<8x128xf32> to vector<8x1xf32>
    %c32_231 = arith.constant 32 : index
    %c0_232 = arith.constant 0 : index
    %772 = vector.load %arg15[%c32_231, %c0_232] : memref<64x128xf32, #tpu.memory_space<vmem>>, vector<8x128xf32>
    %773 = vector.broadcast %771 : vector<8x1xf32> to vector<8x128xf32>
    %774 = arith.mulf %773, %772 : vector<8x128xf32>
    %775 = arith.addf %770, %774 : vector<8x128xf32>
    %776 = vector.extract_strided_slice %747 {offsets = [0, 5], sizes = [8, 1], strides = [1, 1]} : vector<8x128xf32> to vector<8x1xf32>
    %c40_233 = arith.constant 40 : index
    %c0_234 = arith.constant 0 : index
    %777 = vector.load %arg15[%c40_233, %c0_234] : memref<64x128xf32, #tpu.memory_space<vmem>>, vector<8x128xf32>
    %778 = vector.broadcast %776 : vector<8x1xf32> to vector<8x128xf32>
    %779 = arith.mulf %778, %777 : vector<8x128xf32>
    %780 = arith.addf %775, %779 : vector<8x128xf32>
    %781 = vector.extract_strided_slice %747 {offsets = [0, 6], sizes = [8, 1], strides = [1, 1]} : vector<8x128xf32> to vector<8x1xf32>
    %c48_235 = arith.constant 48 : index
    %c0_236 = arith.constant 0 : index
    %782 = vector.load %arg15[%c48_235, %c0_236] : memref<64x128xf32, #tpu.memory_space<vmem>>, vector<8x128xf32>
    %783 = vector.broadcast %781 : vector<8x1xf32> to vector<8x128xf32>
    %784 = arith.mulf %783, %782 : vector<8x128xf32>
    %785 = arith.addf %780, %784 : vector<8x128xf32>
    %786 = vector.extract_strided_slice %747 {offsets = [0, 7], sizes = [8, 1], strides = [1, 1]} : vector<8x128xf32> to vector<8x1xf32>
    %c56_237 = arith.constant 56 : index
    %c0_238 = arith.constant 0 : index
    %787 = vector.load %arg15[%c56_237, %c0_238] : memref<64x128xf32, #tpu.memory_space<vmem>>, vector<8x128xf32>
    %788 = vector.broadcast %786 : vector<8x1xf32> to vector<8x128xf32>
    %789 = arith.mulf %788, %787 : vector<8x128xf32>
    %790 = arith.addf %785, %789 : vector<8x128xf32>
    %791 = arith.truncf %790 : vector<8x128xf32> to vector<8x128xbf16>
    %c0_239 = arith.constant 0 : index
    %c0_240 = arith.constant 0 : index
    %792 = vector.load %arg9[%c0_239, %c0_240] : memref<128x512xbf16, #tpu.memory_space<vmem>>, vector<128x512xbf16>
    %cst_241 = arith.constant dense<0.000000e+00> : vector<8x512xf32>
    %793 = tpu.matmul %791, %792, %cst_241 {dimension_numbers = #tpu.dot_dimension_numbers<[1], [0], [0], [1], [0, 0, 1, 1], [], []>} : vector<8x128xbf16>, vector<128x512xbf16>, vector<8x512xf32> -> vector<8x512xf32>
    %794 = arith.addf %793, %711 : vector<8x512xf32>
    %795 = vector.broadcast %6 : vector<1x512xf32> to vector<8x512xf32>
    %796 = arith.addf %794, %795 : vector<8x512xf32>
    %797 = vector.extract_strided_slice %796 {offsets = [0, 0], sizes = [8, 128], strides = [1, 1]} : vector<8x512xf32> to vector<8x128xf32>
    %798 = arith.negf %797 : vector<8x128xf32>
    %799 = math.exp %798 : vector<8x128xf32>
    %cst_242 = arith.constant 1.000000e+00 : f32
    %800 = vector.broadcast %cst_242 : f32 to vector<8x128xf32>
    %801 = arith.addf %800, %799 : vector<8x128xf32>
    %802 = arith.divf %800, %801 : vector<8x128xf32>
    %803 = vector.extract_strided_slice %796 {offsets = [0, 128], sizes = [8, 128], strides = [1, 1]} : vector<8x512xf32> to vector<8x128xf32>
    %804 = arith.negf %803 : vector<8x128xf32>
    %805 = math.exp %804 : vector<8x128xf32>
    %cst_243 = arith.constant 1.000000e+00 : f32
    %806 = vector.broadcast %cst_243 : f32 to vector<8x128xf32>
    %807 = arith.addf %806, %805 : vector<8x128xf32>
    %808 = arith.divf %806, %807 : vector<8x128xf32>
    %809 = vector.extract_strided_slice %796 {offsets = [0, 256], sizes = [8, 128], strides = [1, 1]} : vector<8x512xf32> to vector<8x128xf32>
    %810 = math.tanh %809 : vector<8x128xf32>
    %811 = vector.extract_strided_slice %796 {offsets = [0, 384], sizes = [8, 128], strides = [1, 1]} : vector<8x512xf32> to vector<8x128xf32>
    %812 = arith.negf %811 : vector<8x128xf32>
    %813 = math.exp %812 : vector<8x128xf32>
    %cst_244 = arith.constant 1.000000e+00 : f32
    %814 = vector.broadcast %cst_244 : f32 to vector<8x128xf32>
    %815 = arith.addf %814, %813 : vector<8x128xf32>
    %816 = arith.divf %814, %815 : vector<8x128xf32>
    %817 = arith.mulf %808, %704 : vector<8x128xf32>
    %818 = arith.mulf %802, %810 : vector<8x128xf32>
    %819 = arith.addf %817, %818 : vector<8x128xf32>
    %820 = math.tanh %819 : vector<8x128xf32>
    %821 = arith.mulf %816, %820 : vector<8x128xf32>
    %822 = tpu.concatenate %821, %819 in 1 : vector<8x128xf32>, vector<8x128xf32> -> vector<8x256xf32>
    %823 = arith.truncf %822 : vector<8x256xf32> to vector<8x256xbf16>
    %c0_245 = arith.constant 0 : index
    %c0_246 = arith.constant 0 : index
    %824 = vector.load %arg11[%c0_245, %c0_246] : memref<256x768xbf16, #tpu.memory_space<vmem>>, vector<256x768xbf16>
    %cst_247 = arith.constant dense<0.000000e+00> : vector<8x768xf32>
    %825 = tpu.matmul %823, %824, %cst_247 {dimension_numbers = #tpu.dot_dimension_numbers<[1], [0], [0], [1], [0, 0, 1, 1], [], []>} : vector<8x256xbf16>, vector<256x768xbf16>, vector<8x768xf32> -> vector<8x768xf32>
    %826 = vector.extract_strided_slice %825 {offsets = [0, 0], sizes = [8, 512], strides = [1, 1]} : vector<8x768xf32> to vector<8x512xf32>
    %827 = vector.extract_strided_slice %825 {offsets = [0, 512], sizes = [8, 128], strides = [1, 1]} : vector<8x768xf32> to vector<8x128xf32>
    %828 = vector.broadcast %7 : vector<1x128xf32> to vector<8x128xf32>
    %829 = arith.addf %827, %828 : vector<8x128xf32>
    %830 = vector.extract_strided_slice %825 {offsets = [0, 640], sizes = [8, 128], strides = [1, 1]} : vector<8x768xf32> to vector<8x128xf32>
    %c3 = arith.constant 3 : index
    %c0_248 = arith.constant 0 : index
    %c0_249 = arith.constant 0 : index
    %831 = vector.load %arg13[%c3, %c0_248, %c0_249] : memref<8x8x128xf32, #tpu.memory_space<vmem>>, vector<1x8x128xf32>
    %832 = vector.shape_cast %831 : vector<1x8x128xf32> to vector<8x128xf32>
    %833 = vector.shape_cast %829 : vector<8x128xf32> to vector<1x8x128xf32>
    tpu.vector_store %arg13[%c3, %c0_248, %c0_249], %833 {strides = array<i32>} : memref<8x8x128xf32, #tpu.memory_space<vmem>>, vector<1x8x128xf32>,
    %cst_250 = arith.constant dense<0xFF800000> : vector<8xf32>
    %834 = vector.multi_reduction <maximumf>, %829, %cst_250 [1] : vector<8x128xf32> to vector<8xf32>
    %835 = vector.shape_cast %834 : vector<8xf32> to vector<8x1xf32>
    %836 = vector.broadcast %835 : vector<8x1xf32> to vector<8x128xf32>
    %837 = arith.cmpf oge, %829, %836 : vector<8x128xf32>
    %c128_i32_251 = arith.constant 128 : i32
    %838 = vector.broadcast %c128_i32_251 : i32 to vector<8x128xi32>
    %839 = arith.select %837, %376, %838 : vector<8x128xi1>, vector<8x128xi32>
    %cst_252 = arith.constant dense<2147483647> : vector<8xi32>
    %840 = vector.multi_reduction <minsi>, %839, %cst_252 [1] : vector<8x128xi32> to vector<8xi32>
    %841 = vector.shape_cast %840 : vector<8xi32> to vector<8x1xi32>
    %842 = vector.broadcast %841 : vector<8x1xi32> to vector<8x128xi32>
    %843 = arith.cmpi eq, %376, %842 : vector<8x128xi32>
    %844 = arith.extui %843 : vector<8x128xi1> to vector<8x128xi32>
    %845 = arith.sitofp %844 : vector<8x128xi32> to vector<8x128xf32>
    %846 = arith.truncf %845 : vector<8x128xf32> to vector<8x128xbf16>
    %c0_253 = arith.constant 0 : index
    %c0_254 = arith.constant 0 : index
    %847 = vector.load %arg5[%c0_253, %c0_254] : memref<128x256xbf16, #tpu.memory_space<vmem>>, vector<128x256xbf16>
    %cst_255 = arith.constant dense<0.000000e+00> : vector<8x256xf32>
    %848 = tpu.matmul %846, %847, %cst_255 {dimension_numbers = #tpu.dot_dimension_numbers<[1], [0], [0], [1], [0, 0, 1, 1], [], []>} : vector<8x128xbf16>, vector<128x256xbf16>, vector<8x256xf32> -> vector<8x256xf32>
    %849 = vector.extract_strided_slice %848 {offsets = [0, 0], sizes = [8, 128], strides = [1, 1]} : vector<8x256xf32> to vector<8x128xf32>
    %850 = arith.addf %849, %830 : vector<8x128xf32>
    %851 = vector.broadcast %4 : vector<1x128xf32> to vector<8x128xf32>
    %852 = arith.addf %850, %851 : vector<8x128xf32>
    %cst_256 = arith.constant dense<0xFF800000> : vector<8xf32>
    %853 = vector.multi_reduction <maximumf>, %852, %cst_256 [1] : vector<8x128xf32> to vector<8xf32>
    %854 = vector.shape_cast %853 : vector<8xf32> to vector<8x1xf32>
    %855 = vector.broadcast %854 : vector<8x1xf32> to vector<8x128xf32>
    %856 = arith.subf %852, %855 : vector<8x128xf32>
    %857 = math.exp %856 : vector<8x128xf32>
    %cst_257 = arith.constant dense<0.000000e+00> : vector<8xf32>
    %858 = vector.multi_reduction <add>, %857, %cst_257 [1] : vector<8x128xf32> to vector<8xf32>
    %859 = vector.shape_cast %858 : vector<8xf32> to vector<8x1xf32>
    %860 = tpu.reciprocal %859 {approx = true} : vector<8x1xf32> -> vector<8x1xf32>
    %861 = vector.broadcast %860 : vector<8x1xf32> to vector<8x128xf32>
    %862 = arith.mulf %857, %861 : vector<8x128xf32>
    %863 = vector.extract_strided_slice %848 {offsets = [0, 128], sizes = [8, 128], strides = [1, 1]} : vector<8x256xf32> to vector<8x128xf32>
    %864 = vector.broadcast %5 : vector<1x128xf32> to vector<8x128xf32>
    %865 = arith.addf %863, %864 : vector<8x128xf32>
    %866 = vector.extract_strided_slice %862 {offsets = [0, 0], sizes = [8, 1], strides = [1, 1]} : vector<8x128xf32> to vector<8x1xf32>
    %c0_258 = arith.constant 0 : index
    %c0_259 = arith.constant 0 : index
    %867 = vector.load %arg15[%c0_258, %c0_259] : memref<64x128xf32, #tpu.memory_space<vmem>>, vector<8x128xf32>
    %868 = vector.broadcast %866 : vector<8x1xf32> to vector<8x128xf32>
    %869 = arith.mulf %868, %867 : vector<8x128xf32>
    %870 = arith.addf %865, %869 : vector<8x128xf32>
    %871 = vector.extract_strided_slice %862 {offsets = [0, 1], sizes = [8, 1], strides = [1, 1]} : vector<8x128xf32> to vector<8x1xf32>
    %c8_260 = arith.constant 8 : index
    %c0_261 = arith.constant 0 : index
    %872 = vector.load %arg15[%c8_260, %c0_261] : memref<64x128xf32, #tpu.memory_space<vmem>>, vector<8x128xf32>
    %873 = vector.broadcast %871 : vector<8x1xf32> to vector<8x128xf32>
    %874 = arith.mulf %873, %872 : vector<8x128xf32>
    %875 = arith.addf %870, %874 : vector<8x128xf32>
    %876 = vector.extract_strided_slice %862 {offsets = [0, 2], sizes = [8, 1], strides = [1, 1]} : vector<8x128xf32> to vector<8x1xf32>
    %c16_262 = arith.constant 16 : index
    %c0_263 = arith.constant 0 : index
    %877 = vector.load %arg15[%c16_262, %c0_263] : memref<64x128xf32, #tpu.memory_space<vmem>>, vector<8x128xf32>
    %878 = vector.broadcast %876 : vector<8x1xf32> to vector<8x128xf32>
    %879 = arith.mulf %878, %877 : vector<8x128xf32>
    %880 = arith.addf %875, %879 : vector<8x128xf32>
    %881 = vector.extract_strided_slice %862 {offsets = [0, 3], sizes = [8, 1], strides = [1, 1]} : vector<8x128xf32> to vector<8x1xf32>
    %c24_264 = arith.constant 24 : index
    %c0_265 = arith.constant 0 : index
    %882 = vector.load %arg15[%c24_264, %c0_265] : memref<64x128xf32, #tpu.memory_space<vmem>>, vector<8x128xf32>
    %883 = vector.broadcast %881 : vector<8x1xf32> to vector<8x128xf32>
    %884 = arith.mulf %883, %882 : vector<8x128xf32>
    %885 = arith.addf %880, %884 : vector<8x128xf32>
    %886 = vector.extract_strided_slice %862 {offsets = [0, 4], sizes = [8, 1], strides = [1, 1]} : vector<8x128xf32> to vector<8x1xf32>
    %c32_266 = arith.constant 32 : index
    %c0_267 = arith.constant 0 : index
    %887 = vector.load %arg15[%c32_266, %c0_267] : memref<64x128xf32, #tpu.memory_space<vmem>>, vector<8x128xf32>
    %888 = vector.broadcast %886 : vector<8x1xf32> to vector<8x128xf32>
    %889 = arith.mulf %888, %887 : vector<8x128xf32>
    %890 = arith.addf %885, %889 : vector<8x128xf32>
    %891 = vector.extract_strided_slice %862 {offsets = [0, 5], sizes = [8, 1], strides = [1, 1]} : vector<8x128xf32> to vector<8x1xf32>
    %c40_268 = arith.constant 40 : index
    %c0_269 = arith.constant 0 : index
    %892 = vector.load %arg15[%c40_268, %c0_269] : memref<64x128xf32, #tpu.memory_space<vmem>>, vector<8x128xf32>
    %893 = vector.broadcast %891 : vector<8x1xf32> to vector<8x128xf32>
    %894 = arith.mulf %893, %892 : vector<8x128xf32>
    %895 = arith.addf %890, %894 : vector<8x128xf32>
    %896 = vector.extract_strided_slice %862 {offsets = [0, 6], sizes = [8, 1], strides = [1, 1]} : vector<8x128xf32> to vector<8x1xf32>
    %c48_270 = arith.constant 48 : index
    %c0_271 = arith.constant 0 : index
    %897 = vector.load %arg15[%c48_270, %c0_271] : memref<64x128xf32, #tpu.memory_space<vmem>>, vector<8x128xf32>
    %898 = vector.broadcast %896 : vector<8x1xf32> to vector<8x128xf32>
    %899 = arith.mulf %898, %897 : vector<8x128xf32>
    %900 = arith.addf %895, %899 : vector<8x128xf32>
    %901 = vector.extract_strided_slice %862 {offsets = [0, 7], sizes = [8, 1], strides = [1, 1]} : vector<8x128xf32> to vector<8x1xf32>
    %c56_272 = arith.constant 56 : index
    %c0_273 = arith.constant 0 : index
    %902 = vector.load %arg15[%c56_272, %c0_273] : memref<64x128xf32, #tpu.memory_space<vmem>>, vector<8x128xf32>
    %903 = vector.broadcast %901 : vector<8x1xf32> to vector<8x128xf32>
    %904 = arith.mulf %903, %902 : vector<8x128xf32>
    %905 = arith.addf %900, %904 : vector<8x128xf32>
    %906 = arith.truncf %905 : vector<8x128xf32> to vector<8x128xbf16>
    %c0_274 = arith.constant 0 : index
    %c0_275 = arith.constant 0 : index
    %907 = vector.load %arg9[%c0_274, %c0_275] : memref<128x512xbf16, #tpu.memory_space<vmem>>, vector<128x512xbf16>
    %cst_276 = arith.constant dense<0.000000e+00> : vector<8x512xf32>
    %908 = tpu.matmul %906, %907, %cst_276 {dimension_numbers = #tpu.dot_dimension_numbers<[1], [0], [0], [1], [0, 0, 1, 1], [], []>} : vector<8x128xbf16>, vector<128x512xbf16>, vector<8x512xf32> -> vector<8x512xf32>
    %909 = arith.addf %908, %826 : vector<8x512xf32>
    %910 = vector.broadcast %6 : vector<1x512xf32> to vector<8x512xf32>
    %911 = arith.addf %909, %910 : vector<8x512xf32>
    %912 = vector.extract_strided_slice %911 {offsets = [0, 0], sizes = [8, 128], strides = [1, 1]} : vector<8x512xf32> to vector<8x128xf32>
    %913 = arith.negf %912 : vector<8x128xf32>
    %914 = math.exp %913 : vector<8x128xf32>
    %cst_277 = arith.constant 1.000000e+00 : f32
    %915 = vector.broadcast %cst_277 : f32 to vector<8x128xf32>
    %916 = arith.addf %915, %914 : vector<8x128xf32>
    %917 = arith.divf %915, %916 : vector<8x128xf32>
    %918 = vector.extract_strided_slice %911 {offsets = [0, 128], sizes = [8, 128], strides = [1, 1]} : vector<8x512xf32> to vector<8x128xf32>
    %919 = arith.negf %918 : vector<8x128xf32>
    %920 = math.exp %919 : vector<8x128xf32>
    %cst_278 = arith.constant 1.000000e+00 : f32
    %921 = vector.broadcast %cst_278 : f32 to vector<8x128xf32>
    %922 = arith.addf %921, %920 : vector<8x128xf32>
    %923 = arith.divf %921, %922 : vector<8x128xf32>
    %924 = vector.extract_strided_slice %911 {offsets = [0, 256], sizes = [8, 128], strides = [1, 1]} : vector<8x512xf32> to vector<8x128xf32>
    %925 = math.tanh %924 : vector<8x128xf32>
    %926 = vector.extract_strided_slice %911 {offsets = [0, 384], sizes = [8, 128], strides = [1, 1]} : vector<8x512xf32> to vector<8x128xf32>
    %927 = arith.negf %926 : vector<8x128xf32>
    %928 = math.exp %927 : vector<8x128xf32>
    %cst_279 = arith.constant 1.000000e+00 : f32
    %929 = vector.broadcast %cst_279 : f32 to vector<8x128xf32>
    %930 = arith.addf %929, %928 : vector<8x128xf32>
    %931 = arith.divf %929, %930 : vector<8x128xf32>
    %932 = arith.mulf %923, %819 : vector<8x128xf32>
    %933 = arith.mulf %917, %925 : vector<8x128xf32>
    %934 = arith.addf %932, %933 : vector<8x128xf32>
    %935 = math.tanh %934 : vector<8x128xf32>
    %936 = arith.mulf %931, %935 : vector<8x128xf32>
    %937 = tpu.concatenate %936, %934 in 1 : vector<8x128xf32>, vector<8x128xf32> -> vector<8x256xf32>
    %938 = arith.truncf %937 : vector<8x256xf32> to vector<8x256xbf16>
    %c0_280 = arith.constant 0 : index
    %c0_281 = arith.constant 0 : index
    %939 = vector.load %arg11[%c0_280, %c0_281] : memref<256x768xbf16, #tpu.memory_space<vmem>>, vector<256x768xbf16>
    %cst_282 = arith.constant dense<0.000000e+00> : vector<8x768xf32>
    %940 = tpu.matmul %938, %939, %cst_282 {dimension_numbers = #tpu.dot_dimension_numbers<[1], [0], [0], [1], [0, 0, 1, 1], [], []>} : vector<8x256xbf16>, vector<256x768xbf16>, vector<8x768xf32> -> vector<8x768xf32>
    %941 = vector.extract_strided_slice %940 {offsets = [0, 0], sizes = [8, 512], strides = [1, 1]} : vector<8x768xf32> to vector<8x512xf32>
    %942 = vector.extract_strided_slice %940 {offsets = [0, 512], sizes = [8, 128], strides = [1, 1]} : vector<8x768xf32> to vector<8x128xf32>
    %943 = vector.broadcast %7 : vector<1x128xf32> to vector<8x128xf32>
    %944 = arith.addf %942, %943 : vector<8x128xf32>
    %945 = vector.extract_strided_slice %940 {offsets = [0, 640], sizes = [8, 128], strides = [1, 1]} : vector<8x768xf32> to vector<8x128xf32>
    %c4 = arith.constant 4 : index
    %c0_283 = arith.constant 0 : index
    %c0_284 = arith.constant 0 : index
    %946 = vector.load %arg13[%c4, %c0_283, %c0_284] : memref<8x8x128xf32, #tpu.memory_space<vmem>>, vector<1x8x128xf32>
    %947 = vector.shape_cast %946 : vector<1x8x128xf32> to vector<8x128xf32>
    %948 = vector.shape_cast %944 : vector<8x128xf32> to vector<1x8x128xf32>
    tpu.vector_store %arg13[%c4, %c0_283, %c0_284], %948 {strides = array<i32>} : memref<8x8x128xf32, #tpu.memory_space<vmem>>, vector<1x8x128xf32>,
    %cst_285 = arith.constant dense<0xFF800000> : vector<8xf32>
    %949 = vector.multi_reduction <maximumf>, %944, %cst_285 [1] : vector<8x128xf32> to vector<8xf32>
    %950 = vector.shape_cast %949 : vector<8xf32> to vector<8x1xf32>
    %951 = vector.broadcast %950 : vector<8x1xf32> to vector<8x128xf32>
    %952 = arith.cmpf oge, %944, %951 : vector<8x128xf32>
    %c128_i32_286 = arith.constant 128 : i32
    %953 = vector.broadcast %c128_i32_286 : i32 to vector<8x128xi32>
    %954 = arith.select %952, %376, %953 : vector<8x128xi1>, vector<8x128xi32>
    %cst_287 = arith.constant dense<2147483647> : vector<8xi32>
    %955 = vector.multi_reduction <minsi>, %954, %cst_287 [1] : vector<8x128xi32> to vector<8xi32>
    %956 = vector.shape_cast %955 : vector<8xi32> to vector<8x1xi32>
    %957 = vector.broadcast %956 : vector<8x1xi32> to vector<8x128xi32>
    %958 = arith.cmpi eq, %376, %957 : vector<8x128xi32>
    %959 = arith.extui %958 : vector<8x128xi1> to vector<8x128xi32>
    %960 = arith.sitofp %959 : vector<8x128xi32> to vector<8x128xf32>
    %961 = arith.truncf %960 : vector<8x128xf32> to vector<8x128xbf16>
    %c0_288 = arith.constant 0 : index
    %c0_289 = arith.constant 0 : index
    %962 = vector.load %arg5[%c0_288, %c0_289] : memref<128x256xbf16, #tpu.memory_space<vmem>>, vector<128x256xbf16>
    %cst_290 = arith.constant dense<0.000000e+00> : vector<8x256xf32>
    %963 = tpu.matmul %961, %962, %cst_290 {dimension_numbers = #tpu.dot_dimension_numbers<[1], [0], [0], [1], [0, 0, 1, 1], [], []>} : vector<8x128xbf16>, vector<128x256xbf16>, vector<8x256xf32> -> vector<8x256xf32>
    %964 = vector.extract_strided_slice %963 {offsets = [0, 0], sizes = [8, 128], strides = [1, 1]} : vector<8x256xf32> to vector<8x128xf32>
    %965 = arith.addf %964, %945 : vector<8x128xf32>
    %966 = vector.broadcast %4 : vector<1x128xf32> to vector<8x128xf32>
    %967 = arith.addf %965, %966 : vector<8x128xf32>
    %cst_291 = arith.constant dense<0xFF800000> : vector<8xf32>
    %968 = vector.multi_reduction <maximumf>, %967, %cst_291 [1] : vector<8x128xf32> to vector<8xf32>
    %969 = vector.shape_cast %968 : vector<8xf32> to vector<8x1xf32>
    %970 = vector.broadcast %969 : vector<8x1xf32> to vector<8x128xf32>
    %971 = arith.subf %967, %970 : vector<8x128xf32>
    %972 = math.exp %971 : vector<8x128xf32>
    %cst_292 = arith.constant dense<0.000000e+00> : vector<8xf32>
    %973 = vector.multi_reduction <add>, %972, %cst_292 [1] : vector<8x128xf32> to vector<8xf32>
    %974 = vector.shape_cast %973 : vector<8xf32> to vector<8x1xf32>
    %975 = tpu.reciprocal %974 {approx = true} : vector<8x1xf32> -> vector<8x1xf32>
    %976 = vector.broadcast %975 : vector<8x1xf32> to vector<8x128xf32>
    %977 = arith.mulf %972, %976 : vector<8x128xf32>
    %978 = vector.extract_strided_slice %963 {offsets = [0, 128], sizes = [8, 128], strides = [1, 1]} : vector<8x256xf32> to vector<8x128xf32>
    %979 = vector.broadcast %5 : vector<1x128xf32> to vector<8x128xf32>
    %980 = arith.addf %978, %979 : vector<8x128xf32>
    %981 = vector.extract_strided_slice %977 {offsets = [0, 0], sizes = [8, 1], strides = [1, 1]} : vector<8x128xf32> to vector<8x1xf32>
    %c0_293 = arith.constant 0 : index
    %c0_294 = arith.constant 0 : index
    %982 = vector.load %arg15[%c0_293, %c0_294] : memref<64x128xf32, #tpu.memory_space<vmem>>, vector<8x128xf32>
    %983 = vector.broadcast %981 : vector<8x1xf32> to vector<8x128xf32>
    %984 = arith.mulf %983, %982 : vector<8x128xf32>
    %985 = arith.addf %980, %984 : vector<8x128xf32>
    %986 = vector.extract_strided_slice %977 {offsets = [0, 1], sizes = [8, 1], strides = [1, 1]} : vector<8x128xf32> to vector<8x1xf32>
    %c8_295 = arith.constant 8 : index
    %c0_296 = arith.constant 0 : index
    %987 = vector.load %arg15[%c8_295, %c0_296] : memref<64x128xf32, #tpu.memory_space<vmem>>, vector<8x128xf32>
    %988 = vector.broadcast %986 : vector<8x1xf32> to vector<8x128xf32>
    %989 = arith.mulf %988, %987 : vector<8x128xf32>
    %990 = arith.addf %985, %989 : vector<8x128xf32>
    %991 = vector.extract_strided_slice %977 {offsets = [0, 2], sizes = [8, 1], strides = [1, 1]} : vector<8x128xf32> to vector<8x1xf32>
    %c16_297 = arith.constant 16 : index
    %c0_298 = arith.constant 0 : index
    %992 = vector.load %arg15[%c16_297, %c0_298] : memref<64x128xf32, #tpu.memory_space<vmem>>, vector<8x128xf32>
    %993 = vector.broadcast %991 : vector<8x1xf32> to vector<8x128xf32>
    %994 = arith.mulf %993, %992 : vector<8x128xf32>
    %995 = arith.addf %990, %994 : vector<8x128xf32>
    %996 = vector.extract_strided_slice %977 {offsets = [0, 3], sizes = [8, 1], strides = [1, 1]} : vector<8x128xf32> to vector<8x1xf32>
    %c24_299 = arith.constant 24 : index
    %c0_300 = arith.constant 0 : index
    %997 = vector.load %arg15[%c24_299, %c0_300] : memref<64x128xf32, #tpu.memory_space<vmem>>, vector<8x128xf32>
    %998 = vector.broadcast %996 : vector<8x1xf32> to vector<8x128xf32>
    %999 = arith.mulf %998, %997 : vector<8x128xf32>
    %1000 = arith.addf %995, %999 : vector<8x128xf32>
    %1001 = vector.extract_strided_slice %977 {offsets = [0, 4], sizes = [8, 1], strides = [1, 1]} : vector<8x128xf32> to vector<8x1xf32>
    %c32_301 = arith.constant 32 : index
    %c0_302 = arith.constant 0 : index
    %1002 = vector.load %arg15[%c32_301, %c0_302] : memref<64x128xf32, #tpu.memory_space<vmem>>, vector<8x128xf32>
    %1003 = vector.broadcast %1001 : vector<8x1xf32> to vector<8x128xf32>
    %1004 = arith.mulf %1003, %1002 : vector<8x128xf32>
    %1005 = arith.addf %1000, %1004 : vector<8x128xf32>
    %1006 = vector.extract_strided_slice %977 {offsets = [0, 5], sizes = [8, 1], strides = [1, 1]} : vector<8x128xf32> to vector<8x1xf32>
    %c40_303 = arith.constant 40 : index
    %c0_304 = arith.constant 0 : index
    %1007 = vector.load %arg15[%c40_303, %c0_304] : memref<64x128xf32, #tpu.memory_space<vmem>>, vector<8x128xf32>
    %1008 = vector.broadcast %1006 : vector<8x1xf32> to vector<8x128xf32>
    %1009 = arith.mulf %1008, %1007 : vector<8x128xf32>
    %1010 = arith.addf %1005, %1009 : vector<8x128xf32>
    %1011 = vector.extract_strided_slice %977 {offsets = [0, 6], sizes = [8, 1], strides = [1, 1]} : vector<8x128xf32> to vector<8x1xf32>
    %c48_305 = arith.constant 48 : index
    %c0_306 = arith.constant 0 : index
    %1012 = vector.load %arg15[%c48_305, %c0_306] : memref<64x128xf32, #tpu.memory_space<vmem>>, vector<8x128xf32>
    %1013 = vector.broadcast %1011 : vector<8x1xf32> to vector<8x128xf32>
    %1014 = arith.mulf %1013, %1012 : vector<8x128xf32>
    %1015 = arith.addf %1010, %1014 : vector<8x128xf32>
    %1016 = vector.extract_strided_slice %977 {offsets = [0, 7], sizes = [8, 1], strides = [1, 1]} : vector<8x128xf32> to vector<8x1xf32>
    %c56_307 = arith.constant 56 : index
    %c0_308 = arith.constant 0 : index
    %1017 = vector.load %arg15[%c56_307, %c0_308] : memref<64x128xf32, #tpu.memory_space<vmem>>, vector<8x128xf32>
    %1018 = vector.broadcast %1016 : vector<8x1xf32> to vector<8x128xf32>
    %1019 = arith.mulf %1018, %1017 : vector<8x128xf32>
    %1020 = arith.addf %1015, %1019 : vector<8x128xf32>
    %1021 = arith.truncf %1020 : vector<8x128xf32> to vector<8x128xbf16>
    %c0_309 = arith.constant 0 : index
    %c0_310 = arith.constant 0 : index
    %1022 = vector.load %arg9[%c0_309, %c0_310] : memref<128x512xbf16, #tpu.memory_space<vmem>>, vector<128x512xbf16>
    %cst_311 = arith.constant dense<0.000000e+00> : vector<8x512xf32>
    %1023 = tpu.matmul %1021, %1022, %cst_311 {dimension_numbers = #tpu.dot_dimension_numbers<[1], [0], [0], [1], [0, 0, 1, 1], [], []>} : vector<8x128xbf16>, vector<128x512xbf16>, vector<8x512xf32> -> vector<8x512xf32>
    %1024 = arith.addf %1023, %941 : vector<8x512xf32>
    %1025 = vector.broadcast %6 : vector<1x512xf32> to vector<8x512xf32>
    %1026 = arith.addf %1024, %1025 : vector<8x512xf32>
    %1027 = vector.extract_strided_slice %1026 {offsets = [0, 0], sizes = [8, 128], strides = [1, 1]} : vector<8x512xf32> to vector<8x128xf32>
    %1028 = arith.negf %1027 : vector<8x128xf32>
    %1029 = math.exp %1028 : vector<8x128xf32>
    %cst_312 = arith.constant 1.000000e+00 : f32
    %1030 = vector.broadcast %cst_312 : f32 to vector<8x128xf32>
    %1031 = arith.addf %1030, %1029 : vector<8x128xf32>
    %1032 = arith.divf %1030, %1031 : vector<8x128xf32>
    %1033 = vector.extract_strided_slice %1026 {offsets = [0, 128], sizes = [8, 128], strides = [1, 1]} : vector<8x512xf32> to vector<8x128xf32>
    %1034 = arith.negf %1033 : vector<8x128xf32>
    %1035 = math.exp %1034 : vector<8x128xf32>
    %cst_313 = arith.constant 1.000000e+00 : f32
    %1036 = vector.broadcast %cst_313 : f32 to vector<8x128xf32>
    %1037 = arith.addf %1036, %1035 : vector<8x128xf32>
    %1038 = arith.divf %1036, %1037 : vector<8x128xf32>
    %1039 = vector.extract_strided_slice %1026 {offsets = [0, 256], sizes = [8, 128], strides = [1, 1]} : vector<8x512xf32> to vector<8x128xf32>
    %1040 = math.tanh %1039 : vector<8x128xf32>
    %1041 = vector.extract_strided_slice %1026 {offsets = [0, 384], sizes = [8, 128], strides = [1, 1]} : vector<8x512xf32> to vector<8x128xf32>
    %1042 = arith.negf %1041 : vector<8x128xf32>
    %1043 = math.exp %1042 : vector<8x128xf32>
    %cst_314 = arith.constant 1.000000e+00 : f32
    %1044 = vector.broadcast %cst_314 : f32 to vector<8x128xf32>
    %1045 = arith.addf %1044, %1043 : vector<8x128xf32>
    %1046 = arith.divf %1044, %1045 : vector<8x128xf32>
    %1047 = arith.mulf %1038, %934 : vector<8x128xf32>
    %1048 = arith.mulf %1032, %1040 : vector<8x128xf32>
    %1049 = arith.addf %1047, %1048 : vector<8x128xf32>
    %1050 = math.tanh %1049 : vector<8x128xf32>
    %1051 = arith.mulf %1046, %1050 : vector<8x128xf32>
    %1052 = tpu.concatenate %1051, %1049 in 1 : vector<8x128xf32>, vector<8x128xf32> -> vector<8x256xf32>
    %1053 = arith.truncf %1052 : vector<8x256xf32> to vector<8x256xbf16>
    %c0_315 = arith.constant 0 : index
    %c0_316 = arith.constant 0 : index
    %1054 = vector.load %arg11[%c0_315, %c0_316] : memref<256x768xbf16, #tpu.memory_space<vmem>>, vector<256x768xbf16>
    %cst_317 = arith.constant dense<0.000000e+00> : vector<8x768xf32>
    %1055 = tpu.matmul %1053, %1054, %cst_317 {dimension_numbers = #tpu.dot_dimension_numbers<[1], [0], [0], [1], [0, 0, 1, 1], [], []>} : vector<8x256xbf16>, vector<256x768xbf16>, vector<8x768xf32> -> vector<8x768xf32>
    %1056 = vector.extract_strided_slice %1055 {offsets = [0, 0], sizes = [8, 512], strides = [1, 1]} : vector<8x768xf32> to vector<8x512xf32>
    %1057 = vector.extract_strided_slice %1055 {offsets = [0, 512], sizes = [8, 128], strides = [1, 1]} : vector<8x768xf32> to vector<8x128xf32>
    %1058 = vector.broadcast %7 : vector<1x128xf32> to vector<8x128xf32>
    %1059 = arith.addf %1057, %1058 : vector<8x128xf32>
    %1060 = vector.extract_strided_slice %1055 {offsets = [0, 640], sizes = [8, 128], strides = [1, 1]} : vector<8x768xf32> to vector<8x128xf32>
    %c5 = arith.constant 5 : index
    %c0_318 = arith.constant 0 : index
    %c0_319 = arith.constant 0 : index
    %1061 = vector.load %arg13[%c5, %c0_318, %c0_319] : memref<8x8x128xf32, #tpu.memory_space<vmem>>, vector<1x8x128xf32>
    %1062 = vector.shape_cast %1061 : vector<1x8x128xf32> to vector<8x128xf32>
    %1063 = vector.shape_cast %1059 : vector<8x128xf32> to vector<1x8x128xf32>
    tpu.vector_store %arg13[%c5, %c0_318, %c0_319], %1063 {strides = array<i32>} : memref<8x8x128xf32, #tpu.memory_space<vmem>>, vector<1x8x128xf32>,
    %cst_320 = arith.constant dense<0xFF800000> : vector<8xf32>
    %1064 = vector.multi_reduction <maximumf>, %1059, %cst_320 [1] : vector<8x128xf32> to vector<8xf32>
    %1065 = vector.shape_cast %1064 : vector<8xf32> to vector<8x1xf32>
    %1066 = vector.broadcast %1065 : vector<8x1xf32> to vector<8x128xf32>
    %1067 = arith.cmpf oge, %1059, %1066 : vector<8x128xf32>
    %c128_i32_321 = arith.constant 128 : i32
    %1068 = vector.broadcast %c128_i32_321 : i32 to vector<8x128xi32>
    %1069 = arith.select %1067, %376, %1068 : vector<8x128xi1>, vector<8x128xi32>
    %cst_322 = arith.constant dense<2147483647> : vector<8xi32>
    %1070 = vector.multi_reduction <minsi>, %1069, %cst_322 [1] : vector<8x128xi32> to vector<8xi32>
    %1071 = vector.shape_cast %1070 : vector<8xi32> to vector<8x1xi32>
    %1072 = vector.broadcast %1071 : vector<8x1xi32> to vector<8x128xi32>
    %1073 = arith.cmpi eq, %376, %1072 : vector<8x128xi32>
    %1074 = arith.extui %1073 : vector<8x128xi1> to vector<8x128xi32>
    %1075 = arith.sitofp %1074 : vector<8x128xi32> to vector<8x128xf32>
    %1076 = arith.truncf %1075 : vector<8x128xf32> to vector<8x128xbf16>
    %c0_323 = arith.constant 0 : index
    %c0_324 = arith.constant 0 : index
    %1077 = vector.load %arg5[%c0_323, %c0_324] : memref<128x256xbf16, #tpu.memory_space<vmem>>, vector<128x256xbf16>
    %cst_325 = arith.constant dense<0.000000e+00> : vector<8x256xf32>
    %1078 = tpu.matmul %1076, %1077, %cst_325 {dimension_numbers = #tpu.dot_dimension_numbers<[1], [0], [0], [1], [0, 0, 1, 1], [], []>} : vector<8x128xbf16>, vector<128x256xbf16>, vector<8x256xf32> -> vector<8x256xf32>
    %1079 = vector.extract_strided_slice %1078 {offsets = [0, 0], sizes = [8, 128], strides = [1, 1]} : vector<8x256xf32> to vector<8x128xf32>
    %1080 = arith.addf %1079, %1060 : vector<8x128xf32>
    %1081 = vector.broadcast %4 : vector<1x128xf32> to vector<8x128xf32>
    %1082 = arith.addf %1080, %1081 : vector<8x128xf32>
    %cst_326 = arith.constant dense<0xFF800000> : vector<8xf32>
    %1083 = vector.multi_reduction <maximumf>, %1082, %cst_326 [1] : vector<8x128xf32> to vector<8xf32>
    %1084 = vector.shape_cast %1083 : vector<8xf32> to vector<8x1xf32>
    %1085 = vector.broadcast %1084 : vector<8x1xf32> to vector<8x128xf32>
    %1086 = arith.subf %1082, %1085 : vector<8x128xf32>
    %1087 = math.exp %1086 : vector<8x128xf32>
    %cst_327 = arith.constant dense<0.000000e+00> : vector<8xf32>
    %1088 = vector.multi_reduction <add>, %1087, %cst_327 [1] : vector<8x128xf32> to vector<8xf32>
    %1089 = vector.shape_cast %1088 : vector<8xf32> to vector<8x1xf32>
    %1090 = tpu.reciprocal %1089 {approx = true} : vector<8x1xf32> -> vector<8x1xf32>
    %1091 = vector.broadcast %1090 : vector<8x1xf32> to vector<8x128xf32>
    %1092 = arith.mulf %1087, %1091 : vector<8x128xf32>
    %1093 = vector.extract_strided_slice %1078 {offsets = [0, 128], sizes = [8, 128], strides = [1, 1]} : vector<8x256xf32> to vector<8x128xf32>
    %1094 = vector.broadcast %5 : vector<1x128xf32> to vector<8x128xf32>
    %1095 = arith.addf %1093, %1094 : vector<8x128xf32>
    %1096 = vector.extract_strided_slice %1092 {offsets = [0, 0], sizes = [8, 1], strides = [1, 1]} : vector<8x128xf32> to vector<8x1xf32>
    %c0_328 = arith.constant 0 : index
    %c0_329 = arith.constant 0 : index
    %1097 = vector.load %arg15[%c0_328, %c0_329] : memref<64x128xf32, #tpu.memory_space<vmem>>, vector<8x128xf32>
    %1098 = vector.broadcast %1096 : vector<8x1xf32> to vector<8x128xf32>
    %1099 = arith.mulf %1098, %1097 : vector<8x128xf32>
    %1100 = arith.addf %1095, %1099 : vector<8x128xf32>
    %1101 = vector.extract_strided_slice %1092 {offsets = [0, 1], sizes = [8, 1], strides = [1, 1]} : vector<8x128xf32> to vector<8x1xf32>
    %c8_330 = arith.constant 8 : index
    %c0_331 = arith.constant 0 : index
    %1102 = vector.load %arg15[%c8_330, %c0_331] : memref<64x128xf32, #tpu.memory_space<vmem>>, vector<8x128xf32>
    %1103 = vector.broadcast %1101 : vector<8x1xf32> to vector<8x128xf32>
    %1104 = arith.mulf %1103, %1102 : vector<8x128xf32>
    %1105 = arith.addf %1100, %1104 : vector<8x128xf32>
    %1106 = vector.extract_strided_slice %1092 {offsets = [0, 2], sizes = [8, 1], strides = [1, 1]} : vector<8x128xf32> to vector<8x1xf32>
    %c16_332 = arith.constant 16 : index
    %c0_333 = arith.constant 0 : index
    %1107 = vector.load %arg15[%c16_332, %c0_333] : memref<64x128xf32, #tpu.memory_space<vmem>>, vector<8x128xf32>
    %1108 = vector.broadcast %1106 : vector<8x1xf32> to vector<8x128xf32>
    %1109 = arith.mulf %1108, %1107 : vector<8x128xf32>
    %1110 = arith.addf %1105, %1109 : vector<8x128xf32>
    %1111 = vector.extract_strided_slice %1092 {offsets = [0, 3], sizes = [8, 1], strides = [1, 1]} : vector<8x128xf32> to vector<8x1xf32>
    %c24_334 = arith.constant 24 : index
    %c0_335 = arith.constant 0 : index
    %1112 = vector.load %arg15[%c24_334, %c0_335] : memref<64x128xf32, #tpu.memory_space<vmem>>, vector<8x128xf32>
    %1113 = vector.broadcast %1111 : vector<8x1xf32> to vector<8x128xf32>
    %1114 = arith.mulf %1113, %1112 : vector<8x128xf32>
    %1115 = arith.addf %1110, %1114 : vector<8x128xf32>
    %1116 = vector.extract_strided_slice %1092 {offsets = [0, 4], sizes = [8, 1], strides = [1, 1]} : vector<8x128xf32> to vector<8x1xf32>
    %c32_336 = arith.constant 32 : index
    %c0_337 = arith.constant 0 : index
    %1117 = vector.load %arg15[%c32_336, %c0_337] : memref<64x128xf32, #tpu.memory_space<vmem>>, vector<8x128xf32>
    %1118 = vector.broadcast %1116 : vector<8x1xf32> to vector<8x128xf32>
    %1119 = arith.mulf %1118, %1117 : vector<8x128xf32>
    %1120 = arith.addf %1115, %1119 : vector<8x128xf32>
    %1121 = vector.extract_strided_slice %1092 {offsets = [0, 5], sizes = [8, 1], strides = [1, 1]} : vector<8x128xf32> to vector<8x1xf32>
    %c40_338 = arith.constant 40 : index
    %c0_339 = arith.constant 0 : index
    %1122 = vector.load %arg15[%c40_338, %c0_339] : memref<64x128xf32, #tpu.memory_space<vmem>>, vector<8x128xf32>
    %1123 = vector.broadcast %1121 : vector<8x1xf32> to vector<8x128xf32>
    %1124 = arith.mulf %1123, %1122 : vector<8x128xf32>
    %1125 = arith.addf %1120, %1124 : vector<8x128xf32>
    %1126 = vector.extract_strided_slice %1092 {offsets = [0, 6], sizes = [8, 1], strides = [1, 1]} : vector<8x128xf32> to vector<8x1xf32>
    %c48_340 = arith.constant 48 : index
    %c0_341 = arith.constant 0 : index
    %1127 = vector.load %arg15[%c48_340, %c0_341] : memref<64x128xf32, #tpu.memory_space<vmem>>, vector<8x128xf32>
    %1128 = vector.broadcast %1126 : vector<8x1xf32> to vector<8x128xf32>
    %1129 = arith.mulf %1128, %1127 : vector<8x128xf32>
    %1130 = arith.addf %1125, %1129 : vector<8x128xf32>
    %1131 = vector.extract_strided_slice %1092 {offsets = [0, 7], sizes = [8, 1], strides = [1, 1]} : vector<8x128xf32> to vector<8x1xf32>
    %c56_342 = arith.constant 56 : index
    %c0_343 = arith.constant 0 : index
    %1132 = vector.load %arg15[%c56_342, %c0_343] : memref<64x128xf32, #tpu.memory_space<vmem>>, vector<8x128xf32>
    %1133 = vector.broadcast %1131 : vector<8x1xf32> to vector<8x128xf32>
    %1134 = arith.mulf %1133, %1132 : vector<8x128xf32>
    %1135 = arith.addf %1130, %1134 : vector<8x128xf32>
    %1136 = arith.truncf %1135 : vector<8x128xf32> to vector<8x128xbf16>
    %c0_344 = arith.constant 0 : index
    %c0_345 = arith.constant 0 : index
    %1137 = vector.load %arg9[%c0_344, %c0_345] : memref<128x512xbf16, #tpu.memory_space<vmem>>, vector<128x512xbf16>
    %cst_346 = arith.constant dense<0.000000e+00> : vector<8x512xf32>
    %1138 = tpu.matmul %1136, %1137, %cst_346 {dimension_numbers = #tpu.dot_dimension_numbers<[1], [0], [0], [1], [0, 0, 1, 1], [], []>} : vector<8x128xbf16>, vector<128x512xbf16>, vector<8x512xf32> -> vector<8x512xf32>
    %1139 = arith.addf %1138, %1056 : vector<8x512xf32>
    %1140 = vector.broadcast %6 : vector<1x512xf32> to vector<8x512xf32>
    %1141 = arith.addf %1139, %1140 : vector<8x512xf32>
    %1142 = vector.extract_strided_slice %1141 {offsets = [0, 0], sizes = [8, 128], strides = [1, 1]} : vector<8x512xf32> to vector<8x128xf32>
    %1143 = arith.negf %1142 : vector<8x128xf32>
    %1144 = math.exp %1143 : vector<8x128xf32>
    %cst_347 = arith.constant 1.000000e+00 : f32
    %1145 = vector.broadcast %cst_347 : f32 to vector<8x128xf32>
    %1146 = arith.addf %1145, %1144 : vector<8x128xf32>
    %1147 = arith.divf %1145, %1146 : vector<8x128xf32>
    %1148 = vector.extract_strided_slice %1141 {offsets = [0, 128], sizes = [8, 128], strides = [1, 1]} : vector<8x512xf32> to vector<8x128xf32>
    %1149 = arith.negf %1148 : vector<8x128xf32>
    %1150 = math.exp %1149 : vector<8x128xf32>
    %cst_348 = arith.constant 1.000000e+00 : f32
    %1151 = vector.broadcast %cst_348 : f32 to vector<8x128xf32>
    %1152 = arith.addf %1151, %1150 : vector<8x128xf32>
    %1153 = arith.divf %1151, %1152 : vector<8x128xf32>
    %1154 = vector.extract_strided_slice %1141 {offsets = [0, 256], sizes = [8, 128], strides = [1, 1]} : vector<8x512xf32> to vector<8x128xf32>
    %1155 = math.tanh %1154 : vector<8x128xf32>
    %1156 = vector.extract_strided_slice %1141 {offsets = [0, 384], sizes = [8, 128], strides = [1, 1]} : vector<8x512xf32> to vector<8x128xf32>
    %1157 = arith.negf %1156 : vector<8x128xf32>
    %1158 = math.exp %1157 : vector<8x128xf32>
    %cst_349 = arith.constant 1.000000e+00 : f32
    %1159 = vector.broadcast %cst_349 : f32 to vector<8x128xf32>
    %1160 = arith.addf %1159, %1158 : vector<8x128xf32>
    %1161 = arith.divf %1159, %1160 : vector<8x128xf32>
    %1162 = arith.mulf %1153, %1049 : vector<8x128xf32>
    %1163 = arith.mulf %1147, %1155 : vector<8x128xf32>
    %1164 = arith.addf %1162, %1163 : vector<8x128xf32>
    %1165 = math.tanh %1164 : vector<8x128xf32>
    %1166 = arith.mulf %1161, %1165 : vector<8x128xf32>
    %1167 = tpu.concatenate %1166, %1164 in 1 : vector<8x128xf32>, vector<8x128xf32> -> vector<8x256xf32>
    %1168 = arith.truncf %1167 : vector<8x256xf32> to vector<8x256xbf16>
    %c0_350 = arith.constant 0 : index
    %c0_351 = arith.constant 0 : index
    %1169 = vector.load %arg11[%c0_350, %c0_351] : memref<256x768xbf16, #tpu.memory_space<vmem>>, vector<256x768xbf16>
    %cst_352 = arith.constant dense<0.000000e+00> : vector<8x768xf32>
    %1170 = tpu.matmul %1168, %1169, %cst_352 {dimension_numbers = #tpu.dot_dimension_numbers<[1], [0], [0], [1], [0, 0, 1, 1], [], []>} : vector<8x256xbf16>, vector<256x768xbf16>, vector<8x768xf32> -> vector<8x768xf32>
    %1171 = vector.extract_strided_slice %1170 {offsets = [0, 0], sizes = [8, 512], strides = [1, 1]} : vector<8x768xf32> to vector<8x512xf32>
    %1172 = vector.extract_strided_slice %1170 {offsets = [0, 512], sizes = [8, 128], strides = [1, 1]} : vector<8x768xf32> to vector<8x128xf32>
    %1173 = vector.broadcast %7 : vector<1x128xf32> to vector<8x128xf32>
    %1174 = arith.addf %1172, %1173 : vector<8x128xf32>
    %1175 = vector.extract_strided_slice %1170 {offsets = [0, 640], sizes = [8, 128], strides = [1, 1]} : vector<8x768xf32> to vector<8x128xf32>
    %c6 = arith.constant 6 : index
    %c0_353 = arith.constant 0 : index
    %c0_354 = arith.constant 0 : index
    %1176 = vector.load %arg13[%c6, %c0_353, %c0_354] : memref<8x8x128xf32, #tpu.memory_space<vmem>>, vector<1x8x128xf32>
    %1177 = vector.shape_cast %1176 : vector<1x8x128xf32> to vector<8x128xf32>
    %1178 = vector.shape_cast %1174 : vector<8x128xf32> to vector<1x8x128xf32>
    tpu.vector_store %arg13[%c6, %c0_353, %c0_354], %1178 {strides = array<i32>} : memref<8x8x128xf32, #tpu.memory_space<vmem>>, vector<1x8x128xf32>,
    %cst_355 = arith.constant dense<0xFF800000> : vector<8xf32>
    %1179 = vector.multi_reduction <maximumf>, %1174, %cst_355 [1] : vector<8x128xf32> to vector<8xf32>
    %1180 = vector.shape_cast %1179 : vector<8xf32> to vector<8x1xf32>
    %1181 = vector.broadcast %1180 : vector<8x1xf32> to vector<8x128xf32>
    %1182 = arith.cmpf oge, %1174, %1181 : vector<8x128xf32>
    %c128_i32_356 = arith.constant 128 : i32
    %1183 = vector.broadcast %c128_i32_356 : i32 to vector<8x128xi32>
    %1184 = arith.select %1182, %376, %1183 : vector<8x128xi1>, vector<8x128xi32>
    %cst_357 = arith.constant dense<2147483647> : vector<8xi32>
    %1185 = vector.multi_reduction <minsi>, %1184, %cst_357 [1] : vector<8x128xi32> to vector<8xi32>
    %1186 = vector.shape_cast %1185 : vector<8xi32> to vector<8x1xi32>
    %1187 = vector.broadcast %1186 : vector<8x1xi32> to vector<8x128xi32>
    %1188 = arith.cmpi eq, %376, %1187 : vector<8x128xi32>
    %1189 = arith.extui %1188 : vector<8x128xi1> to vector<8x128xi32>
    %1190 = arith.sitofp %1189 : vector<8x128xi32> to vector<8x128xf32>
    %1191 = arith.truncf %1190 : vector<8x128xf32> to vector<8x128xbf16>
    %c0_358 = arith.constant 0 : index
    %c0_359 = arith.constant 0 : index
    %1192 = vector.load %arg5[%c0_358, %c0_359] : memref<128x256xbf16, #tpu.memory_space<vmem>>, vector<128x256xbf16>
    %cst_360 = arith.constant dense<0.000000e+00> : vector<8x256xf32>
    %1193 = tpu.matmul %1191, %1192, %cst_360 {dimension_numbers = #tpu.dot_dimension_numbers<[1], [0], [0], [1], [0, 0, 1, 1], [], []>} : vector<8x128xbf16>, vector<128x256xbf16>, vector<8x256xf32> -> vector<8x256xf32>
    %1194 = vector.extract_strided_slice %1193 {offsets = [0, 0], sizes = [8, 128], strides = [1, 1]} : vector<8x256xf32> to vector<8x128xf32>
    %1195 = arith.addf %1194, %1175 : vector<8x128xf32>
    %1196 = vector.broadcast %4 : vector<1x128xf32> to vector<8x128xf32>
    %1197 = arith.addf %1195, %1196 : vector<8x128xf32>
    %cst_361 = arith.constant dense<0xFF800000> : vector<8xf32>
    %1198 = vector.multi_reduction <maximumf>, %1197, %cst_361 [1] : vector<8x128xf32> to vector<8xf32>
    %1199 = vector.shape_cast %1198 : vector<8xf32> to vector<8x1xf32>
    %1200 = vector.broadcast %1199 : vector<8x1xf32> to vector<8x128xf32>
    %1201 = arith.subf %1197, %1200 : vector<8x128xf32>
    %1202 = math.exp %1201 : vector<8x128xf32>
    %cst_362 = arith.constant dense<0.000000e+00> : vector<8xf32>
    %1203 = vector.multi_reduction <add>, %1202, %cst_362 [1] : vector<8x128xf32> to vector<8xf32>
    %1204 = vector.shape_cast %1203 : vector<8xf32> to vector<8x1xf32>
    %1205 = tpu.reciprocal %1204 {approx = true} : vector<8x1xf32> -> vector<8x1xf32>
    %1206 = vector.broadcast %1205 : vector<8x1xf32> to vector<8x128xf32>
    %1207 = arith.mulf %1202, %1206 : vector<8x128xf32>
    %1208 = vector.extract_strided_slice %1193 {offsets = [0, 128], sizes = [8, 128], strides = [1, 1]} : vector<8x256xf32> to vector<8x128xf32>
    %1209 = vector.broadcast %5 : vector<1x128xf32> to vector<8x128xf32>
    %1210 = arith.addf %1208, %1209 : vector<8x128xf32>
    %1211 = vector.extract_strided_slice %1207 {offsets = [0, 0], sizes = [8, 1], strides = [1, 1]} : vector<8x128xf32> to vector<8x1xf32>
    %c0_363 = arith.constant 0 : index
    %c0_364 = arith.constant 0 : index
    %1212 = vector.load %arg15[%c0_363, %c0_364] : memref<64x128xf32, #tpu.memory_space<vmem>>, vector<8x128xf32>
    %1213 = vector.broadcast %1211 : vector<8x1xf32> to vector<8x128xf32>
    %1214 = arith.mulf %1213, %1212 : vector<8x128xf32>
    %1215 = arith.addf %1210, %1214 : vector<8x128xf32>
    %1216 = vector.extract_strided_slice %1207 {offsets = [0, 1], sizes = [8, 1], strides = [1, 1]} : vector<8x128xf32> to vector<8x1xf32>
    %c8_365 = arith.constant 8 : index
    %c0_366 = arith.constant 0 : index
    %1217 = vector.load %arg15[%c8_365, %c0_366] : memref<64x128xf32, #tpu.memory_space<vmem>>, vector<8x128xf32>
    %1218 = vector.broadcast %1216 : vector<8x1xf32> to vector<8x128xf32>
    %1219 = arith.mulf %1218, %1217 : vector<8x128xf32>
    %1220 = arith.addf %1215, %1219 : vector<8x128xf32>
    %1221 = vector.extract_strided_slice %1207 {offsets = [0, 2], sizes = [8, 1], strides = [1, 1]} : vector<8x128xf32> to vector<8x1xf32>
    %c16_367 = arith.constant 16 : index
    %c0_368 = arith.constant 0 : index
    %1222 = vector.load %arg15[%c16_367, %c0_368] : memref<64x128xf32, #tpu.memory_space<vmem>>, vector<8x128xf32>
    %1223 = vector.broadcast %1221 : vector<8x1xf32> to vector<8x128xf32>
    %1224 = arith.mulf %1223, %1222 : vector<8x128xf32>
    %1225 = arith.addf %1220, %1224 : vector<8x128xf32>
    %1226 = vector.extract_strided_slice %1207 {offsets = [0, 3], sizes = [8, 1], strides = [1, 1]} : vector<8x128xf32> to vector<8x1xf32>
    %c24_369 = arith.constant 24 : index
    %c0_370 = arith.constant 0 : index
    %1227 = vector.load %arg15[%c24_369, %c0_370] : memref<64x128xf32, #tpu.memory_space<vmem>>, vector<8x128xf32>
    %1228 = vector.broadcast %1226 : vector<8x1xf32> to vector<8x128xf32>
    %1229 = arith.mulf %1228, %1227 : vector<8x128xf32>
    %1230 = arith.addf %1225, %1229 : vector<8x128xf32>
    %1231 = vector.extract_strided_slice %1207 {offsets = [0, 4], sizes = [8, 1], strides = [1, 1]} : vector<8x128xf32> to vector<8x1xf32>
    %c32_371 = arith.constant 32 : index
    %c0_372 = arith.constant 0 : index
    %1232 = vector.load %arg15[%c32_371, %c0_372] : memref<64x128xf32, #tpu.memory_space<vmem>>, vector<8x128xf32>
    %1233 = vector.broadcast %1231 : vector<8x1xf32> to vector<8x128xf32>
    %1234 = arith.mulf %1233, %1232 : vector<8x128xf32>
    %1235 = arith.addf %1230, %1234 : vector<8x128xf32>
    %1236 = vector.extract_strided_slice %1207 {offsets = [0, 5], sizes = [8, 1], strides = [1, 1]} : vector<8x128xf32> to vector<8x1xf32>
    %c40_373 = arith.constant 40 : index
    %c0_374 = arith.constant 0 : index
    %1237 = vector.load %arg15[%c40_373, %c0_374] : memref<64x128xf32, #tpu.memory_space<vmem>>, vector<8x128xf32>
    %1238 = vector.broadcast %1236 : vector<8x1xf32> to vector<8x128xf32>
    %1239 = arith.mulf %1238, %1237 : vector<8x128xf32>
    %1240 = arith.addf %1235, %1239 : vector<8x128xf32>
    %1241 = vector.extract_strided_slice %1207 {offsets = [0, 6], sizes = [8, 1], strides = [1, 1]} : vector<8x128xf32> to vector<8x1xf32>
    %c48_375 = arith.constant 48 : index
    %c0_376 = arith.constant 0 : index
    %1242 = vector.load %arg15[%c48_375, %c0_376] : memref<64x128xf32, #tpu.memory_space<vmem>>, vector<8x128xf32>
    %1243 = vector.broadcast %1241 : vector<8x1xf32> to vector<8x128xf32>
    %1244 = arith.mulf %1243, %1242 : vector<8x128xf32>
    %1245 = arith.addf %1240, %1244 : vector<8x128xf32>
    %1246 = vector.extract_strided_slice %1207 {offsets = [0, 7], sizes = [8, 1], strides = [1, 1]} : vector<8x128xf32> to vector<8x1xf32>
    %c56_377 = arith.constant 56 : index
    %c0_378 = arith.constant 0 : index
    %1247 = vector.load %arg15[%c56_377, %c0_378] : memref<64x128xf32, #tpu.memory_space<vmem>>, vector<8x128xf32>
    %1248 = vector.broadcast %1246 : vector<8x1xf32> to vector<8x128xf32>
    %1249 = arith.mulf %1248, %1247 : vector<8x128xf32>
    %1250 = arith.addf %1245, %1249 : vector<8x128xf32>
    %1251 = arith.truncf %1250 : vector<8x128xf32> to vector<8x128xbf16>
    %c0_379 = arith.constant 0 : index
    %c0_380 = arith.constant 0 : index
    %1252 = vector.load %arg9[%c0_379, %c0_380] : memref<128x512xbf16, #tpu.memory_space<vmem>>, vector<128x512xbf16>
    %cst_381 = arith.constant dense<0.000000e+00> : vector<8x512xf32>
    %1253 = tpu.matmul %1251, %1252, %cst_381 {dimension_numbers = #tpu.dot_dimension_numbers<[1], [0], [0], [1], [0, 0, 1, 1], [], []>} : vector<8x128xbf16>, vector<128x512xbf16>, vector<8x512xf32> -> vector<8x512xf32>
    %1254 = arith.addf %1253, %1171 : vector<8x512xf32>
    %1255 = vector.broadcast %6 : vector<1x512xf32> to vector<8x512xf32>
    %1256 = arith.addf %1254, %1255 : vector<8x512xf32>
    %1257 = vector.extract_strided_slice %1256 {offsets = [0, 0], sizes = [8, 128], strides = [1, 1]} : vector<8x512xf32> to vector<8x128xf32>
    %1258 = arith.negf %1257 : vector<8x128xf32>
    %1259 = math.exp %1258 : vector<8x128xf32>
    %cst_382 = arith.constant 1.000000e+00 : f32
    %1260 = vector.broadcast %cst_382 : f32 to vector<8x128xf32>
    %1261 = arith.addf %1260, %1259 : vector<8x128xf32>
    %1262 = arith.divf %1260, %1261 : vector<8x128xf32>
    %1263 = vector.extract_strided_slice %1256 {offsets = [0, 128], sizes = [8, 128], strides = [1, 1]} : vector<8x512xf32> to vector<8x128xf32>
    %1264 = arith.negf %1263 : vector<8x128xf32>
    %1265 = math.exp %1264 : vector<8x128xf32>
    %cst_383 = arith.constant 1.000000e+00 : f32
    %1266 = vector.broadcast %cst_383 : f32 to vector<8x128xf32>
    %1267 = arith.addf %1266, %1265 : vector<8x128xf32>
    %1268 = arith.divf %1266, %1267 : vector<8x128xf32>
    %1269 = vector.extract_strided_slice %1256 {offsets = [0, 256], sizes = [8, 128], strides = [1, 1]} : vector<8x512xf32> to vector<8x128xf32>
    %1270 = math.tanh %1269 : vector<8x128xf32>
    %1271 = vector.extract_strided_slice %1256 {offsets = [0, 384], sizes = [8, 128], strides = [1, 1]} : vector<8x512xf32> to vector<8x128xf32>
    %1272 = arith.negf %1271 : vector<8x128xf32>
    %1273 = math.exp %1272 : vector<8x128xf32>
    %cst_384 = arith.constant 1.000000e+00 : f32
    %1274 = vector.broadcast %cst_384 : f32 to vector<8x128xf32>
    %1275 = arith.addf %1274, %1273 : vector<8x128xf32>
    %1276 = arith.divf %1274, %1275 : vector<8x128xf32>
    %1277 = arith.mulf %1268, %1164 : vector<8x128xf32>
    %1278 = arith.mulf %1262, %1270 : vector<8x128xf32>
    %1279 = arith.addf %1277, %1278 : vector<8x128xf32>
    %1280 = math.tanh %1279 : vector<8x128xf32>
    %1281 = arith.mulf %1276, %1280 : vector<8x128xf32>
    %1282 = tpu.concatenate %1281, %1279 in 1 : vector<8x128xf32>, vector<8x128xf32> -> vector<8x256xf32>
    %1283 = arith.truncf %1282 : vector<8x256xf32> to vector<8x256xbf16>
    %c0_385 = arith.constant 0 : index
    %c0_386 = arith.constant 0 : index
    %1284 = vector.load %arg11[%c0_385, %c0_386] : memref<256x768xbf16, #tpu.memory_space<vmem>>, vector<256x768xbf16>
    %cst_387 = arith.constant dense<0.000000e+00> : vector<8x768xf32>
    %1285 = tpu.matmul %1283, %1284, %cst_387 {dimension_numbers = #tpu.dot_dimension_numbers<[1], [0], [0], [1], [0, 0, 1, 1], [], []>} : vector<8x256xbf16>, vector<256x768xbf16>, vector<8x768xf32> -> vector<8x768xf32>
    %1286 = vector.extract_strided_slice %1285 {offsets = [0, 512], sizes = [8, 128], strides = [1, 1]} : vector<8x768xf32> to vector<8x128xf32>
    %1287 = vector.broadcast %7 : vector<1x128xf32> to vector<8x128xf32>
    %1288 = arith.addf %1286, %1287 : vector<8x128xf32>
    %c7 = arith.constant 7 : index
    %c0_388 = arith.constant 0 : index
    %c0_389 = arith.constant 0 : index
    %1289 = vector.load %arg13[%c7, %c0_388, %c0_389] : memref<8x8x128xf32, #tpu.memory_space<vmem>>, vector<1x8x128xf32>
    %1290 = vector.shape_cast %1289 : vector<1x8x128xf32> to vector<8x128xf32>
    %1291 = vector.shape_cast %1288 : vector<8x128xf32> to vector<1x8x128xf32>
    tpu.vector_store %arg13[%c7, %c0_388, %c0_389], %1291 {strides = array<i32>} : memref<8x8x128xf32, #tpu.memory_space<vmem>>, vector<1x8x128xf32>,
    return
  }
}

</mosaic_0001>

<bundles_post_ra>
// kernel: tpu_custom_call.1
= control target key start
LH: loop header
LB: loop body
LE: loop exit
PB: predicated region body
PF: predicated region fallthrough
CT: control target
= control target key end

     0   :  { %18 = vsyncpa [#allocation5], 0  ;;  %s18903_s0 = inlined_call_operand.vmem [shape: s32[64,1], index: 0, kind: input, shape index: {}]   ;;  %s18904_s1 = inlined_call_operand.vmem [shape: bf16[128,16], index: 1, kind: input, shape index: {}]   ;;  %s18905_s2 = inlined_call_operand.hbm [shape: bf16[16,512], index: 2, kind: input, shape index: {}]   ;;  %s18906_s3 = inlined_call_operand.hbm [shape: bf16[128,512], index: 3, kind: input, shape index: {}]   ;;  %s18907_s4 = inlined_call_operand.vmem [shape: f32[1,512], index: 4, kind: input, shape index: {}]   ;;  %s18908_s5 = inlined_call_operand.vmem [shape: bf16[128,256], index: 5, kind: input, shape index: {}]   ;;  %s18909_s6 = inlined_call_operand.vmem [shape: f32[1,128], index: 6, kind: input, shape index: {}]   ;;  %s18910_s7 = inlined_call_operand.hbm [shape: bf16[128,128], index: 7, kind: input, shape index: {}]   ;;  %s18911_s8 = inlined_call_operand.vmem [shape: f32[1,128], index: 8, kind: input, shape index: {}]   ;;  %s18912_s9 = inlined_call_operand.hbm [shape: bf16[128,512], index: 9, kind: input, shape index: {}]   ;;  %s18913_s10 = inlined_call_operand.vmem [shape: f32[1,512], index: 10, kind: input, shape index: {}]   ;;  %s18914_s11 = inlined_call_operand.hbm [shape: bf16[256,768], index: 11, kind: input, shape index: {}]   ;;  %s18915_s12 = inlined_call_operand.vmem [shape: f32[1,128], index: 12, kind: input, shape index: {}]   ;;  %s18916_s13 = inlined_call_operand.hbm [shape: f32[8,8,128], index: 13, kind: output, shape index: {}]  }
   0x1   :  { %19 = vsyncpa [#allocation8], 0 }
   0x2   :  { %20 = vsyncpa [#allocation11], 0 }
   0x3   :  { %21 = vsyncpa [#allocation6], 0  ;;  %s16800_s25 = smov [#allocation7]   ;;  %s16801_s27 = smov [#allocation10]  }
   0x4   :  { %s43_s26 = sshll.u32 %s16800_s25, 4  ;;  %s75_s28 = sshll.u32 %s16801_s27, 4  ;;  %s44_s26 = int_to_ptr.vmem [resolvable:$true] %s43_s26  ;;  %s76_s28 = int_to_ptr.vmem [resolvable:$true] %s75_s28 }
   0x5   :  { %s16680_s29 = scalar_lea.vmem %s44_s26, 4096  ;;  %p16685_p1 = scmp.lt.s32.totalorder %s44_s26, %s44_s26 }
   0x6   :  { %p16681_p0 = scmp.ne.s32.totalorder %s44_s26, %s16680_s29  ;;  %p16686_p2 = scmp.lt.s32.totalorder %s16680_s29, %s16680_s29 }
   0x8   :  { %p16687_p3 = por %p16686_p2, %p16685_p1 }
   0xa   :  { %p16688_p4 = pnand %p16687_p3, %p16681_p0 }
   0xc   :  { %16691 = shalt.err (!%p16688_p4)
}
   0xd   :  { %s16802_s30 = smov 256   ;;  %s16803_s14 = smov 16  }
   0xe   :  { %49 = dma.hbm_to_vmem [thread:$0]  %s18906_s3, 4096, %s44_s26, [#allocation8], %s16802_s30, %s16802_s30, %s16803_s14  }
   0xf   :  { %s16700_s17 = scalar_lea.vmem %s76_s28, 4096  ;;  %p16705_p6 = scmp.lt.s32.totalorder %s76_s28, %s76_s28 }
  0x10   :  { %p16701_p5 = scmp.ne.s32.totalorder %s76_s28, %s16700_s17  ;;  %p16706_p7 = scmp.lt.s32.totalorder %s16700_s17, %s16700_s17 }
  0x12   :  { %p16707_p8 = por %p16706_p7, %p16705_p6 }
  0x14   :  { %p16708_p9 = pnand %p16707_p8, %p16701_p5 }
  0x16   :  { %16711 = shalt.err (!%p16708_p9)
}
  0x17   :  { %81 = dma.hbm_to_vmem [thread:$0]  %s18912_s9, 4096, %s76_s28, [#allocation11], %s16802_s30, %s16802_s30, %s16803_s14  }
  0x18   :  { %s16804_s20 = smov [#allocation4]   ;;  %s16805_s22 = smov [#allocation9]  }
  0x19   :  { %s31_s21 = sshll.u32 %s16804_s20, 4  ;;  %s61_s23 = sshll.u32 %s16805_s22, 4  ;;  %s32_s21 = int_to_ptr.vmem [resolvable:$true] %s31_s21  ;;  %s62_s23 = int_to_ptr.vmem [resolvable:$true] %s61_s23 }
  0x1a   :  { %s16720_s24 = scalar_lea.vmem %s32_s21, 512  ;;  %p16725_p11 = scmp.lt.s32.totalorder %s32_s21, %s32_s21 }
  0x1b   :  { %p16721_p10 = scmp.ne.s32.totalorder %s32_s21, %s16720_s24  ;;  %p16726_p12 = scmp.lt.s32.totalorder %s16720_s24, %s16720_s24 }
  0x1d   :  { %p16727_p13 = por %p16726_p12, %p16725_p11 }
  0x1f   :  { %p16728_p0 = pnand %p16727_p13, %p16721_p10 }
  0x21   :  { %16731 = shalt.err (!%p16728_p0)
}
  0x22   :  { %37 = dma.hbm_to_vmem [thread:$0]  %s18905_s2, 512, %s32_s21, [#allocation5], %s16802_s30, %s16802_s30, %s16803_s14  }
  0x23   :  { %s16740_s26 = scalar_lea.vmem %s62_s23, 1024  ;;  %p16745_p2 = scmp.lt.s32.totalorder %s62_s23, %s62_s23 }
  0x24   :  { %p16741_p1 = scmp.ne.s32.totalorder %s62_s23, %s16740_s26  ;;  %p16746_p3 = scmp.lt.s32.totalorder %s16740_s26, %s16740_s26 }
  0x26   :  { %p16747_p4 = por %p16746_p3, %p16745_p2 }
  0x28   :  { %p16748_p5 = pnand %p16747_p4, %p16741_p1 }
  0x2a   :  { %16751 = shalt.err (!%p16748_p5)
}
  0x2b   :  { %s16806_s9 = smov 64   ;;  %s16807_s27 = smov 4  }
  0x2c   :  { %67 = dma.hbm_to_vmem [thread:$0]  %s18910_s7, 1024, %s62_s23, [#allocation8], %s16806_s9, %s16806_s9, %s16807_s27  }
  0x2d   :  { %s16808_s15 = smov [#allocation12]  }
  0x2e   :  { %s89_s16 = sshll.u32 %s16808_s15, 4  ;;  %s90_s16 = int_to_ptr.vmem [resolvable:$true] %s89_s16 }
  0x2f   :  { %s16760_s17 = scalar_lea.vmem %s90_s16, 12288  ;;  %p16765_p7 = scmp.lt.s32.totalorder %s90_s16, %s90_s16 }
  0x30   :  { %p16761_p6 = scmp.ne.s32.totalorder %s90_s16, %s16760_s17  ;;  %p16766_p8 = scmp.lt.s32.totalorder %s16760_s17, %s16760_s17 }
  0x32   :  { %p16767_p9 = por %p16766_p8, %p16765_p7 }
  0x34   :  { %p16768_p10 = pnand %p16767_p9, %p16761_p6 }
  0x36   :  { %16771 = shalt.err (!%p16768_p10)
}
  0x37   :  { %s16809_s2 = smov 384   ;;  %s16810_s30 = smov 24  }
  0x38   :  { %95 = dma.hbm_to_vmem [thread:$0]  %s18914_s11, 12288, %s90_s16, [#allocation11], %s16809_s2, %s16809_s2, %s16810_s30  }
  0x39   :  { %16792 = dma.done.wait [#allocation5], 512  }
  0x3a   :  { %16793 = vsyncadd [#allocation5], 4294966784 }
  0x3b   :  { %16794 = dma.done.wait [#allocation8], 5120  }
  0x3c   :  { %16795 = vsyncadd [#allocation8], 4294962176 }
  0x3d   :  { %16796 = dma.done.wait [#allocation11], 16384  }
  0x3e   :  { %16797 = vsyncadd [#allocation11], 4294950912  ;;  %v18919_v0 = vmov 0   ;;  %v116_v1 = vld [vmem:[%s18903_s0 + $0x10] sm:$0xff]  ;;  %v114_v2 = vld [vmem:[%s18903_s0] sm:$0xff]  ;;  %v135_v26 = vlaneseq }
  0x3f   :  { %14600 = vset.pattern.permute.xlu1 %v18919_v0  ;;  %14599 = vset.pattern.permute.xlu0 %v18919_v0  ;;  %v117_v3 = vld [vmem:[%s18903_s0 + $0x18] sm:$0xff]  ;;  %v115_v4 = vld [vmem:[%s18903_s0 + $0x8] sm:$0xff]  ;;  %v118_v6 = vld [vmem:[%s18903_s0 + $0x20] sm:$0xff]  ;;  %vm122_vm0 = vcmp.ne.s32.totalorder %v114_v2, 0  ;;  %vm124_vm2 = vcmp.ne.s32.totalorder %v116_v1, 0 }
  0x40   :  { %464 = vmatprep.mubr.bf16.mxu1 %v18919_v0  ;;  %144 = vperm.xlu1 %14600, %v116_v1   ;;  %v119_v5 = vld [vmem:[%s18903_s0 + $0x28] sm:$0xff]  ;;  %v14663_v7 = vld [vmem:[%s18904_s1 + $0x38] sm:$0xff]   ;;  %v14664_v8 = vld [vmem:[%s18904_s1 + $0x30] sm:$0xff]   ;;  %vm123_vm1 = vcmp.ne.s32.totalorder %v115_v4, 0  ;;  %v868_v14 = vsel %vm122_vm0, 1, %v18919_v0  ;;  %vm125_vm3 = vcmp.ne.s32.totalorder %v117_v3, 0 }
  0x41   :  { %138 = vperm.xlu0 %14599, %v114_v2   ;;  %14528 = vmatprep.subr.bf16.mxu0 %v14663_v7  ;;  %v121_v9 = vld [vmem:[%s18903_s0 + $0x38] sm:$0xff]  ;;  %v120_v10 = vld [vmem:[%s18903_s0 + $0x30] sm:$0xff]  ;;  %v14665_v11 = vld [vmem:[%s18904_s1 + $0x28] sm:$0xff]   ;;  %v1187_v13 = vsel %vm123_vm1, 1, %v18919_v0  ;;  %v1827_v16 = vsel %vm125_vm3, 1, %v18919_v0  ;;  %v1507_v17 = vsel %vm124_vm2, 1, %v18919_v0 }
  0x42   :  { %14529 = vmatpush3.bf16.msra.mxu0 %v14663_v7  ;;  %v14666_v12 = vld [vmem:[%s18904_s1 + $0x20] sm:$0xff]   ;;  %v14667_v15 = vld [vmem:[%s18904_s1 + $0x18] sm:$0xff]   ;;  %vm127_vm4 = vcmp.ne.s32.totalorder %v119_v5, 0  ;;  %vm126_vm5 = vcmp.ne.s32.totalorder %v118_v6, 0  ;;  %v14668_v18 = vld [vmem:[%s18904_s1 + $0x10] sm:$0xff]   ;;  %vm129_vm6 = vcmp.ne.s32.totalorder %v121_v9, 0 }
  0x43   :  { %14530 = vmatprep.subr.bf16.mxu0 %v14664_v8  ;;  %v2467_v19 = vsel %vm127_vm4, 1, %v18919_v0  ;;  %v2147_v20 = vsel %vm126_vm5, 1, %v18919_v0  ;;  %vm128_vm7 = vcmp.ne.s32.totalorder %v120_v10, 0  ;;  %v3107_v21 = vsel %vm129_vm6, 1, %v18919_v0  ;;  %v14669_v23 = vld [vmem:[%s18904_s1 + $0x8] sm:$0xff]   ;;  %v14670_v24 = vld [vmem:[%s18904_s1] sm:$0xff]  }
  0x44   :  { %147 = vperm.xlu1 %14600, %v117_v3   ;;  %v2787_v22 = vsel %vm128_vm7, 1, %v18919_v0  ;;  %v14673_v25 = vld [vmem:[#allocation4 + $0x4] ss:$16 sps:$4 sm:$0xff]   ;;  %v16968_v29 = vand.u32 127, %v135_v26  ;;  %v14671_v32 = vld [vmem:[#allocation4] ss:$16 sps:$4 sm:$0xff]  }
  0x45   :  { %141 = vperm.xlu0 %14599, %v115_v4   ;;  %v18917_v33 = vmov 1.0|1.0   ;;  %v14674_v38 = vld [vmem:[#allocation4 + $0xc] ss:$16 sps:$4 sm:$0xff]   ;;  %v14676_v39 = vld [vmem:[#allocation4 + $0x8] ss:$16 sps:$4 sm:$0xff]  }
  0x46   :  { %14531 = vmatpush3.bf16.msra.mxu0 %v14664_v8  ;;  %18954 = vst [vmem:[#allocation18_spill] sm:$0xff] %v16968_v29  ;;  %446 = vmatprep.subr.bf16.mxu1 %v14674_v38  ;;  %v14679_v40 = vld [vmem:[#allocation7 + $0xe4] ss:$16 sps:$4 sm:$0xff]   ;;  %v14682_v41 = vld [vmem:[#allocation7 + $0xec] ss:$16 sps:$4 sm:$0xff]   ;;  %vm346_vm4 = vcmask 130048  }
  0x47   :  { %14532 = vmatprep.subr.bf16.mxu0 %v14665_v11  ;;  %447 = vmatpush1.bf16.msra.mxu1 %v14676_v39  ;;  %v16983_v45 = vld [vmem:[#allocation7 + $0xe0] ss:$16 sps:$4 sm:$0xff]   ;;  %v16985_v46 = vld [vmem:[#allocation7 + $0xe8] ss:$16 sps:$4 sm:$0xff]   ;;  %v16987_v47 = vld [vmem:[#allocation7 + $0xc4] ss:$16 sps:$4 sm:$0xff]  }
  0x48   :  { %153 = vperm.xlu1 %14600, %v119_v5   ;;  %774 = vmatprep.subr.bf16.mxu1 %v14682_v41  ;;  %v16989_v48 = vld [vmem:[#allocation7 + $0xcc] ss:$16 sps:$4 sm:$0xff]   ;;  %v16993_v52 = vld [vmem:[#allocation7 + $0xc0] ss:$16 sps:$4 sm:$0xff]   ;;  %v16995_v53 = vld [vmem:[#allocation7 + $0xc8] ss:$16 sps:$4 sm:$0xff]  }
  0x49   :  { %150 = vperm.xlu0 %14599, %v118_v6   ;;  %v16999_v54 = vld [vmem:[#allocation7 + $0xa4] ss:$16 sps:$4 sm:$0xff]   ;;  %v17001_v55 = vld [vmem:[#allocation7 + $0xac] ss:$16 sps:$4 sm:$0xff]   ;;  %v17009_v57 = vld [vmem:[#allocation7 + $0xa0] ss:$16 sps:$4 sm:$0xff]  }
  0x4a   :  { %14533 = vmatpush3.bf16.msra.mxu0 %v14665_v11  ;;  %v17011_v58 = vld [vmem:[#allocation7 + $0xa8] ss:$16 sps:$4 sm:$0xff]   ;;  %v17013_v59 = vld [vmem:[#allocation7 + $0x84] ss:$16 sps:$4 sm:$0xff]   ;;  %v17015_v60 = vld [vmem:[#allocation7 + $0x8c] ss:$16 sps:$4 sm:$0xff]  }
  0x4b   :  { %14534 = vmatprep.subr.bf16.mxu0 %v14666_v12  ;;  %v17021_v63 = vld [vmem:[#allocation7 + $0x80] ss:$16 sps:$4 sm:$0xff]   ;;  %v17023_v1 = vld [vmem:[#allocation7 + $0x88] ss:$16 sps:$4 sm:$0xff]   ;;  %v17027_v2 = vld [vmem:[#allocation7 + $0x64] ss:$16 sps:$4 sm:$0xff]  }
  0x4c   :  { %159 = vperm.xlu1 %14600, %v121_v9   ;;  %v17029_v3 = vld [vmem:[#allocation7 + $0x6c] ss:$16 sps:$4 sm:$0xff]   ;;  %v17037_v5 = vld [vmem:[#allocation7 + $0x60] ss:$16 sps:$4 sm:$0xff]   ;;  %v17039_v6 = vld [vmem:[#allocation7 + $0x68] ss:$16 sps:$4 sm:$0xff]  }
  0x4d   :  { %156 = vperm.xlu0 %14599, %v120_v10   ;;  %v17041_v7 = vld [vmem:[#allocation7 + $0x44] ss:$16 sps:$4 sm:$0xff]   ;;  %v17043_v8 = vld [vmem:[#allocation7 + $0x4c] ss:$16 sps:$4 sm:$0xff]   ;;  %v17049_v10 = vld [vmem:[#allocation7 + $0x40] ss:$16 sps:$4 sm:$0xff]  }
  0x4e   :  { %14535 = vmatpush3.bf16.msra.mxu0 %v14666_v12  ;;  %v17051_v11 = vld [vmem:[#allocation7 + $0x48] ss:$16 sps:$4 sm:$0xff]   ;;  %v17055_v12 = vld [vmem:[#allocation7 + $0x24] ss:$16 sps:$4 sm:$0xff]  }
  0x4f   :  { %14536 = vmatprep.subr.bf16.mxu0 %v14667_v15 }
  0x50   :  { %1189 = vperm.xlu1 %14600, %v1187_v13   ;;  %v17057_v13 = vld [vmem:[#allocation7 + $0x2c] ss:$16 sps:$4 sm:$0xff]  }
  0x51   :  { %870 = vperm.xlu0 %14599, %v868_v14   ;;  %v17065_v14 = vld [vmem:[#allocation7 + $0x20] ss:$16 sps:$4 sm:$0xff]  }
  0x52   :  { %14537 = vmatpush3.bf16.msra.mxu0 %v14667_v15  ;;  %v17067_v15 = vld [vmem:[#allocation7 + $0x28] ss:$16 sps:$4 sm:$0xff]  }
  0x53   :  { %14538 = vmatprep.subr.bf16.mxu0 %v14668_v18 }
  0x54   :  { %1829 = vperm.xlu1 %14600, %v1827_v16   ;;  %v17069_v16 = vld [vmem:[#allocation7 + $0x4] ss:$16 sps:$4 sm:$0xff]  }
  0x55   :  { %1509 = vperm.xlu0 %14599, %v1507_v17   ;;  %v17071_v17 = vld [vmem:[#allocation7 + $0xc] ss:$16 sps:$4 sm:$0xff]  }
  0x56   :  { %14539 = vmatpush3.bf16.msra.mxu0 %v14668_v18 }
  0x57   :  { %14540 = vmatprep.subr.bf16.mxu0 %v14669_v23 }
  0x58   :  { %2469 = vperm.xlu1 %14600, %v2467_v19   ;;  %v17078_v19 = vld [vmem:[#allocation7] ss:$16 sps:$4 sm:$0xff]  }
  0x59   :  { %2149 = vperm.xlu0 %14599, %v2147_v20   ;;  %v17080_v20 = vld [vmem:[#allocation7 + $0x8] ss:$16 sps:$4 sm:$0xff]  }
  0x5a   :  { %14541 = vmatpush3.bf16.msra.mxu0 %v14669_v23 }
  0x5b   :  { %14542 = vmatprep.subr.bf16.mxu0 %v14670_v24 }
  0x5c   :  { %3109 = vperm.xlu1 %14600, %v3107_v21   ;;  %v17092_v21 = vld [vmem:[#allocation7 + $0xe4] ss:$16 sps:$4 sm:$0xff]  }
  0x5d   :  { %2789 = vperm.xlu0 %14599, %v2787_v22   ;;  %v17095_v22 = vld [vmem:[#allocation7 + $0xec] ss:$16 sps:$4 sm:$0xff]  }
  0x5e   :  { %14543 = vmatpush3.bf16.msra.mxu0 %v14670_v24 }
  0x5f   :  { %373 = vmatprep.subr.bf16.mxu0 %v14673_v25 }
  0xbb   :  { %v145_v27 = vpop.permute.xlu1 %144 }
  0xbc   :  { %v139_v28 = vpop.permute.xlu0 %138  ;;  %vm163_vm8 = vcmp.eq.s32.totalorder %v16968_v29, %v145_v27 }
  0xbd   :  { %vm161_vm11 = vcmp.eq.s32.totalorder %v16968_v29, %v139_v28 }
  0xbf   :  { %v148_v30 = vpop.permute.xlu1 %147 }
  0xc0   :  { %v142_v31 = vpop.permute.xlu0 %141  ;;  %vm164_vm9 = vcmp.eq.s32.totalorder %v16968_v29, %v148_v30 }
  0xc1   :  { %vm162_vm10 = vcmp.eq.s32.totalorder %v16968_v29, %v142_v31  ;;  %vm13009_vm12 = vmpackc.low %vm164_vm9, %vm163_vm8 }
  0xc2   :  { %vm13007_vm13 = vmpackc.low %vm162_vm10, %vm161_vm11 }
  0xc3   :  { %14544 = vmatprep.mubr.msk.bf16.mxu0 %vm13007_vm13, %v18917_v33  ;;  %v154_v34 = vpop.permute.xlu1 %153 }
  0xc4   :  { %v151_v35 = vpop.permute.xlu0 %150  ;;  %vm166_vm14 = vcmp.eq.s32.totalorder %v16968_v29, %v154_v34  ;;  %14545 = vmatmul.mubr.msk.bf16.vlgmr.msra.gmra.mxu0 %vm13009_vm12, %v18917_v33 }
  0xc5   :  { %vm165_vm15 = vcmp.eq.s32.totalorder %v16968_v29, %v151_v35  ;;  %374 = vmatpush1.bf16.msra.mxu0 %v14671_v32 }
  0xc6   :  { %vm13011_vm0 = vmpackc.low %vm166_vm14, %vm165_vm15  ;;  %733 = vmatprep.subr.bf16.mxu0 %v14679_v40 }
  0xc7   :  { %14548 = vmatprep.mubr.msk.bf16.mxu0 %vm13011_vm0, %v18917_v33  ;;  %v160_v36 = vpop.permute.xlu1 %159 }
  0xc8   :  { %v157_v37 = vpop.permute.xlu0 %156  ;;  %vm168_vm1 = vcmp.eq.s32.totalorder %v16968_v29, %v160_v36 }
  0xc9   :  { %vm167_vm2 = vcmp.eq.s32.totalorder %v16968_v29, %v157_v37 }
  0xca   :  { %vm13013_vm3 = vmpackc.low %vm168_vm1, %vm167_vm2 }
  0xcc   :  { %14549 = vmatmul.mubr.msk.bf16.gmra.mxu0 %vm13013_vm3, %v18917_v33 }
  0xcd   :  { %391 = vmatprep.mubr.bf16.mxu0 %v18919_v0 }
 0x184   :  { %v14546_v42 = vpop.f32.mrf.mxu0 }
 0x186   :  { %v287_v43 = vpop.f32.mrf.mxu0 }
 0x188   :  { %v14547_v44 = vpop.f32.mrf.mxu0 }
 0x189   :  { %v319_v61 = vpack.c.bf16 %v14547_v44, %v14546_v42 }
 0x18a   :  { %v290_v49 = vpop.f32.mrf.mxu0 }
 0x18b   :  { %v318_v50 = vpack.c.bf16 %v290_v49, %v287_v43 }
 0x18c   :  { %v16991_v51 = vpop.f32.mrf.mxu0 }
 0x18d   :  { %13019 = vmatmul.mubr.msk.bf16.vlgmr.msra.gmra.mxu0 %vm346_vm4, %v318_v50  ;;  %13023 = vmatmul.mubr.msk.bf16.vlgmr.msra.gmra.mxu1 %vm346_vm4, %v318_v50 }
 0x18e   :  { %734 = vmatpush1.bf16.msra.mxu0 %v16983_v45  ;;  %775 = vmatpush1.bf16.msra.mxu1 %v16985_v46  ;;  %v303_v56 = vpop.f32.mrf.mxu0 }
 0x18f   :  { %735 = vmatprep.subr.bf16.mxu0 %v16987_v47  ;;  %776 = vmatprep.subr.bf16.mxu1 %v16989_v48 }
 0x190   :  { %401 = vmatprep.mubr.bf16.mxu0 %v18919_v0  ;;  %474 = vmatprep.mubr.bf16.mxu1 %v18919_v0  ;;  %v14551_v62 = vpop.f32.mrf.mxu0 }
 0x191   :  { %v321_v18 = vpack.c.bf16 %v14551_v62, %v16991_v51  ;;  %v17175_v62 = vshrl.u32 %v135_v26, 7 }
 0x192   :  { %736 = vmatpush1.bf16.msra.mxu0 %v16993_v52  ;;  %777 = vmatpush1.bf16.msra.mxu1 %v16995_v53  ;;  %v306_v4 = vpop.f32.mrf.mxu0 }
 0x193   :  { %737 = vmatprep.subr.bf16.mxu0 %v16999_v54  ;;  %778 = vmatprep.subr.bf16.mxu1 %v17001_v55  ;;  %v320_v9 = vpack.c.bf16 %v306_v4, %v303_v56  ;;  %18966 = vst [vmem:[#allocation30_spill] sm:$0xff] %v17175_v62  ;;  %v18924_v26 = vsub.s32 1, %v17175_v62 }
 0x195   :  { %13020 = vmatmul.mubr.msk.bf16.gmra.mxu0 %vm346_vm4, %v319_v61  ;;  %13024 = vmatmul.mubr.msk.bf16.gmra.mxu1 %vm346_vm4, %v319_v61 }
 0x196   :  { %738 = vmatpush1.bf16.msra.mxu0 %v17009_v57  ;;  %779 = vmatpush1.bf16.msra.mxu1 %v17011_v58 }
 0x197   :  { %739 = vmatprep.subr.bf16.mxu0 %v17013_v59  ;;  %780 = vmatprep.subr.bf16.mxu1 %v17015_v60 }
 0x198   :  { %411 = vmatprep.mubr.bf16.mxu0 %v18919_v0  ;;  %484 = vmatprep.mubr.bf16.mxu1 %v18919_v0 }
 0x19a   :  { %740 = vmatpush1.bf16.msra.mxu0 %v17021_v63  ;;  %781 = vmatpush1.bf16.msra.mxu1 %v17023_v1 }
 0x19b   :  { %741 = vmatprep.subr.bf16.mxu0 %v17027_v2  ;;  %782 = vmatprep.subr.bf16.mxu1 %v17029_v3 }
 0x19d   :  { %13021 = vmatmul.mubr.msk.bf16.gmra.mxu0 %vm346_vm4, %v320_v9  ;;  %13025 = vmatmul.mubr.msk.bf16.gmra.mxu1 %vm346_vm4, %v320_v9 }
 0x19e   :  { %742 = vmatpush1.bf16.msra.mxu0 %v17037_v5  ;;  %783 = vmatpush1.bf16.msra.mxu1 %v17039_v6 }
 0x19f   :  { %743 = vmatprep.subr.bf16.mxu0 %v17041_v7  ;;  %784 = vmatprep.subr.bf16.mxu1 %v17043_v8 }
 0x1a0   :  { %421 = vmatprep.mubr.bf16.mxu0 %v18919_v0  ;;  %494 = vmatprep.mubr.bf16.mxu1 %v18919_v0 }
 0x1a2   :  { %744 = vmatpush1.bf16.msra.mxu0 %v17049_v10  ;;  %785 = vmatpush1.bf16.msra.mxu1 %v17051_v11 }
 0x1a3   :  { %745 = vmatprep.subr.bf16.mxu0 %v17055_v12  ;;  %786 = vmatprep.subr.bf16.mxu1 %v17057_v13 }
 0x1a5   :  { %13022 = vmatmul.mubr.msk.bf16.gmra.mxu0 %vm346_vm4, %v321_v18  ;;  %13026 = vmatmul.mubr.msk.bf16.gmra.mxu1 %vm346_vm4, %v321_v18 }
 0x1a6   :  { %746 = vmatpush1.bf16.msra.mxu0 %v17065_v14  ;;  %787 = vmatpush1.bf16.msra.mxu1 %v17067_v15 }
 0x1a7   :  { %747 = vmatprep.subr.bf16.mxu0 %v17069_v16  ;;  %788 = vmatprep.subr.bf16.mxu1 %v17071_v17 }
 0x1a8   :  { %765 = vmatprep.mubr.bf16.mxu0 %v18919_v0  ;;  %806 = vmatprep.mubr.bf16.mxu1 %v18919_v0 }
 0x1aa   :  { %748 = vmatpush1.bf16.msra.mxu0 %v17078_v19  ;;  %789 = vmatpush1.bf16.msra.mxu1 %v17080_v20 }
 0x1ab   :  { %1073 = vmatprep.subr.bf16.mxu0 %v17092_v21  ;;  %1114 = vmatprep.subr.bf16.mxu1 %v17095_v22 }
 0x1ad   :  { %766 = vmatmul.mubr.bf16.vlgmr.msra.gmra.mxu0 %v18919_v0  ;;  %807 = vmatmul.mubr.bf16.vlgmr.msra.gmra.mxu1 %v18919_v0 }
 0x1ae   :  { %1074 = vmatpush1.bf16.msra.mxu0 %v16983_v45  ;;  %1115 = vmatpush1.bf16.msra.mxu1 %v16985_v46 }
 0x1af   :  { %1075 = vmatprep.subr.bf16.mxu0 %v16987_v47  ;;  %1116 = vmatprep.subr.bf16.mxu1 %v16989_v48 }
 0x1b0   :  { %1105 = vmatprep.mubr.bf16.mxu0 %v18919_v0  ;;  %1146 = vmatprep.mubr.bf16.mxu1 %v18919_v0  ;;  %v18923_v0 = vsub.s32 0, %v17175_v62 }
 0x1b2   :  { %1076 = vmatpush1.bf16.msra.mxu0 %v16993_v52  ;;  %1117 = vmatpush1.bf16.msra.mxu1 %v16995_v53 }
 0x1b3   :  { %1077 = vmatprep.subr.bf16.mxu0 %v16999_v54  ;;  %1118 = vmatprep.subr.bf16.mxu1 %v17001_v55 }
 0x1b6   :  { %1078 = vmatpush1.bf16.msra.mxu0 %v17009_v57  ;;  %1119 = vmatpush1.bf16.msra.mxu1 %v17011_v58 }
 0x1b7   :  { %1079 = vmatprep.subr.bf16.mxu0 %v17013_v59  ;;  %1120 = vmatprep.subr.bf16.mxu1 %v17015_v60 }
 0x1ba   :  { %1080 = vmatpush1.bf16.msra.mxu0 %v17021_v63  ;;  %1121 = vmatpush1.bf16.msra.mxu1 %v17023_v1 }
 0x1bb   :  { %1081 = vmatprep.subr.bf16.mxu0 %v17027_v2  ;;  %1122 = vmatprep.subr.bf16.mxu1 %v17029_v3 }
 0x1be   :  { %1082 = vmatpush1.bf16.msra.mxu0 %v17037_v5  ;;  %1123 = vmatpush1.bf16.msra.mxu1 %v17039_v6 }
 0x1bf   :  { %1083 = vmatprep.subr.bf16.mxu0 %v17041_v7  ;;  %1124 = vmatprep.subr.bf16.mxu1 %v17043_v8 }
 0x1c2   :  { %1084 = vmatpush1.bf16.msra.mxu0 %v17049_v10  ;;  %1125 = vmatpush1.bf16.msra.mxu1 %v17051_v11 }
 0x1c3   :  { %1085 = vmatprep.subr.bf16.mxu0 %v17055_v12  ;;  %1126 = vmatprep.subr.bf16.mxu1 %v17057_v13 }
 0x1c6   :  { %1086 = vmatpush1.bf16.msra.mxu0 %v17065_v14  ;;  %1127 = vmatpush1.bf16.msra.mxu1 %v17067_v15 }
 0x1c7   :  { %1087 = vmatprep.subr.bf16.mxu0 %v17069_v16  ;;  %1128 = vmatprep.subr.bf16.mxu1 %v17071_v17 }
 0x1ca   :  { %1088 = vmatpush1.bf16.msra.mxu0 %v17078_v19  ;;  %1129 = vmatpush1.bf16.msra.mxu1 %v17080_v20 }
 0x1cb   :  { %1393 = vmatprep.subr.bf16.mxu0 %v17092_v21  ;;  %1434 = vmatprep.subr.bf16.mxu1 %v17095_v22 }
 0x24d   :  { %v393_v23 = vpop.f32.mrf.mxu0  ;;  %v466_v24 = vpop.f32.mrf.mxu1 }
 0x24f   :  { %v395_v25 = vpop.f32.mrf.mxu0  ;;  %v468_v27 = vpop.f32.mrf.mxu1 }
 0x251   :  { %v17134_v28 = vpop.f32.mrf.mxu0  ;;  %v17136_v30 = vpop.f32.mrf.mxu1 }
 0x253   :  { %v17138_v31 = vpop.f32.mrf.mxu0  ;;  %v17140_v32 = vpop.f32.mrf.mxu1 }
 0x255   :  { %v17142_v34 = vpop.f32.mrf.mxu0  ;;  %v17144_v35 = vpop.f32.mrf.mxu1 }
 0x257   :  { %v17146_v36 = vpop.f32.mrf.mxu0  ;;  %v17148_v37 = vpop.f32.mrf.mxu1 }
 0x259   :  { %v17150_v38 = vpop.f32.mrf.mxu0  ;;  %v17152_v39 = vpop.f32.mrf.mxu1 }
 0x25a   :  { %18955 = vst [vmem:[#allocation19_spill] sm:$0xff] %v17152_v39 }
 0x25b   :  { %v17154_v40 = vpop.f32.mrf.mxu0  ;;  %v17156_v41 = vpop.f32.mrf.mxu1 }
 0x25c   :  { %18956 = vst [vmem:[#allocation20_spill] sm:$0xff] %v17154_v40  ;;  %18957 = vst [vmem:[#allocation21_spill] sm:$0xff] %v17156_v41 }
 0x25d   :  { %v17158_v42 = vpop.f32.mrf.mxu0  ;;  %v17160_v43 = vpop.f32.mrf.mxu1 }
 0x25e   :  { %18958 = vst [vmem:[#allocation22_spill] sm:$0xff] %v17158_v42  ;;  %18959 = vst [vmem:[#allocation23_spill] sm:$0xff] %v17160_v43 }
 0x25f   :  { %v17162_v44 = vpop.f32.mrf.mxu0  ;;  %v17164_v49 = vpop.f32.mrf.mxu1 }
 0x260   :  { %18960 = vst [vmem:[#allocation24_spill] sm:$0xff] %v17162_v44  ;;  %18961 = vst [vmem:[#allocation25_spill] sm:$0xff] %v17164_v49 }
 0x261   :  { %v17166_v50 = vpop.f32.mrf.mxu0  ;;  %v17168_v51 = vpop.f32.mrf.mxu1 }
 0x262   :  { %18962 = vst [vmem:[#allocation26_spill] sm:$0xff] %v17166_v50  ;;  %18963 = vst [vmem:[#allocation27_spill] sm:$0xff] %v17168_v51 }
 0x263   :  { %v17170_v56 = vpop.f32.mrf.mxu0  ;;  %v17172_v61 = vpop.f32.mrf.mxu1 }
 0x264   :  { %18964 = vst [vmem:[#allocation28_spill] sm:$0xff] %v17170_v56  ;;  %18965 = vst [vmem:[#allocation29_spill] sm:$0xff] %v17172_v61  ;;  %v130_v61 = vld [vmem:[%s18907_s4] sm:$0xf] }
 0x265   :  { %v17177_v4 = vpop.f32.mrf.mxu0  ;;  %v17179_v9 = vpop.f32.mrf.mxu1 }
 0x266   :  { %18967 = vst [vmem:[#allocation31_spill] sm:$0xff] %v17177_v4  ;;  %18968 = vst [vmem:[#allocation32_spill] sm:$0xff] %v17179_v9  ;;  %v17200_v9 = vrot.slane %v130_v61, %v18923_v0  ;;  %v18926_v0 = vsub.s32 3, %v17175_v62 }
 0x267   :  { %v17181_v18 = vpop.f32.mrf.mxu0  ;;  %v17183_v33 = vpop.f32.mrf.mxu1 }
 0x268   :  { %18969 = vst [vmem:[#allocation33_spill] sm:$0xff] %v17181_v18  ;;  %18970 = vst [vmem:[#allocation34_spill] sm:$0xff] %v17183_v33 }
 0x269   :  { %v17186_v29 = vpop.f32.mrf.mxu0  ;;  %v17188_v51 = vpop.f32.mrf.mxu1 }
 0x26a   :  { %18971 = vst [vmem:[#allocation35_spill] sm:$0xff] %v17186_v29  ;;  %18972 = vst [vmem:[#allocation36_spill] sm:$0xff] %v17188_v51  ;;  %v17204_v51 = vrot.slane %v130_v61, %v18924_v26  ;;  %v17211_v26 = vrot.slane %v130_v61, %v18926_v0 }
 0x26b   :  { %v17194_v56 = vpop.f32.mrf.mxu0  ;;  %v17196_v4 = vpop.f32.mrf.mxu1 }
 0x26c   :  { %18973 = vst [vmem:[#allocation37_spill] sm:$0xff] %v17194_v56  ;;  %18974 = vst [vmem:[#allocation38_spill] sm:$0xff] %v17196_v4 }
 0x26d   :  { %v767_v33 = vpop.f32.mrf.mxu0  ;;  %v808_v18 = vpop.f32.mrf.mxu1 }
 0x26e   :  { %v815_v50 = vadd.f32 %v767_v33, %v393_v23 }
 0x26f   :  { %v769_v29 = vpop.f32.mrf.mxu0  ;;  %v810_v43 = vpop.f32.mrf.mxu1 }
 0x270   :  { %v840_v49 = vadd.f32 %v17200_v9, %v815_v50  ;;  %v816_v44 = vadd.f32 %v769_v29, %v395_v25  ;;  %v818_v23 = vadd.f32 %v810_v43, %v468_v27  ;;  %v18925_v50 = vsub.s32 2, %v17175_v62 }
 0x271   :  { %v771_v42 = vpop.f32.mrf.mxu0  ;;  %v812_v56 = vpop.f32.mrf.mxu1  ;;  %v817_v25 = vadd.f32 %v808_v18, %v466_v24 }
 0x272   :  { %v13059_v39 = vmul.f32 -1.442695, %v840_v49  ;;  %v841_v4 = vadd.f32 %v17204_v51, %v816_v44  ;;  %v843_v29 = vadd.f32 %v17211_v26, %v818_v23  ;;  %v17217_v42 = vrot.slane %v130_v61, %v18925_v50  ;;  %v18978_v50 = vld [vmem:[#allocation21_spill] sm:$0xff] }
 0x273   :  { %v772_v41 = vpop.f32.mrf.mxu0  ;;  %v813_v40 = vpop.f32.mrf.mxu1 }
 0x274   :  { %16365 = vpow2.f32 %v13059_v39  ;;  %v13060_v33 = vmul.f32 -1.442695, %v841_v4  ;;  %v13061_v44 = vmul.f32 -1.442695, %v843_v29  ;;  %v842_v39 = vadd.f32 %v17217_v42, %v817_v25  ;;  %v17223_v29 = vpop.permute.xlu0 %870 }
 0x275   :  { %vm872_vm5 = vcmp.eq.s32.totalorder %v17223_v29, 1  ;;  %v14779_v29 = vld [vmem:[#allocation9 + $0x8] sm:$0xff]  }
 0x276   :  { %16367 = vpow2.f32 %v13060_v33  ;;  %vm13094_vm6 = vmpackc.low %vm872_vm5, %vm872_vm5 }
 0x277   :  { %16369 = vpow2.f32 %v13061_v44 }
 0x281   :  { %v16366_v41 = vpop.eup %16365 }
 0x282   :  { %v847_v40 = vadd.f32 1.0, %v16366_v41 }
 0x283   :  { %v16368_v49 = vpop.eup %16367 }
 0x284   :  { %16371 = vrcp.f32 %v847_v40  ;;  %v853_v27 = vadd.f32 1.0, %v16368_v49  ;;  %v16370_v43 = vpop.eup %16369  ;;  %v18975_v40 = vmov 0  }
 0x285   :  { %16373 = vtanh.f32 %v842_v39  ;;  %v860_v24 = vadd.f32 1.0, %v16370_v43 }
 0x286   :  { %16375 = vrcp.f32 %v853_v27 }
 0x287   :  { %16377 = vrcp.f32 %v860_v24 }
 0x291   :  { %v16372_v56 = vpop.eup %16371 }
 0x292   :  { %v16374_v4 = vpop.eup %16373 }
 0x293   :  { %v16376_v33 = vpop.eup %16375  ;;  %v864_v23 = vmul.f32 %v16374_v4, %v16372_v56 }
 0x294   :  { %v863_v18 = vmul.f32 0.0, %v16376_v33  ;;  %v16378_v25 = vpop.eup %16377 }
 0x296   :  { %v17220_v61 = vadd.f32 %v864_v23, %v863_v18 }
 0x298   :  { %16379 = vtanh.f32 %v17220_v61 }
 0x2a5   :  { %v16380_v44 = vpop.eup %16379 }
 0x2a6   :  { %v17226_v41 = vmul.f32 %v16380_v44, %v16378_v25 }
 0x2a8   :  { %v13095_v39 = vpack.c.bf16 %v17226_v41, %v17226_v41 }
 0x2aa   :  { %13096 = vmatmul.mubr.msk.bf16.vlgmr.msra.gmra.mxu0 %vm13094_vm6, %v13095_v39  ;;  %13099 = vmatmul.mubr.msk.bf16.vlgmr.msra.gmra.mxu1 %vm13094_vm6, %v13095_v39 }
 0x2ab   :  { %1394 = vmatpush1.bf16.msra.mxu0 %v16983_v45  ;;  %1435 = vmatpush1.bf16.msra.mxu1 %v16985_v46 }
 0x2ac   :  { %1395 = vmatprep.subr.bf16.mxu0 %v16987_v47  ;;  %1436 = vmatprep.subr.bf16.mxu1 %v16989_v48 }
 0x2ad   :  { %1425 = vmatprep.mubr.bf16.mxu0 %v18975_v40  ;;  %1466 = vmatprep.mubr.bf16.mxu1 %v18975_v40 }
 0x2af   :  { %1396 = vmatpush1.bf16.msra.mxu0 %v16993_v52  ;;  %1437 = vmatpush1.bf16.msra.mxu1 %v16995_v53 }
 0x2b0   :  { %1397 = vmatprep.subr.bf16.mxu0 %v16999_v54  ;;  %1438 = vmatprep.subr.bf16.mxu1 %v17001_v55 }
 0x2b3   :  { %1398 = vmatpush1.bf16.msra.mxu0 %v17009_v57  ;;  %1439 = vmatpush1.bf16.msra.mxu1 %v17011_v58 }
 0x2b4   :  { %1399 = vmatprep.subr.bf16.mxu0 %v17013_v59  ;;  %1440 = vmatprep.subr.bf16.mxu1 %v17015_v60 }
 0x2b7   :  { %1400 = vmatpush1.bf16.msra.mxu0 %v17021_v63  ;;  %1441 = vmatpush1.bf16.msra.mxu1 %v17023_v1 }
 0x2b8   :  { %1401 = vmatprep.subr.bf16.mxu0 %v17027_v2  ;;  %1442 = vmatprep.subr.bf16.mxu1 %v17029_v3 }
 0x2bb   :  { %1402 = vmatpush1.bf16.msra.mxu0 %v17037_v5  ;;  %1443 = vmatpush1.bf16.msra.mxu1 %v17039_v6 }
 0x2bc   :  { %1403 = vmatprep.subr.bf16.mxu0 %v17041_v7  ;;  %1444 = vmatprep.subr.bf16.mxu1 %v17043_v8 }
 0x2bf   :  { %1404 = vmatpush1.bf16.msra.mxu0 %v17049_v10  ;;  %1445 = vmatpush1.bf16.msra.mxu1 %v17051_v11 }
 0x2c0   :  { %1405 = vmatprep.subr.bf16.mxu0 %v17055_v12  ;;  %1446 = vmatprep.subr.bf16.mxu1 %v17057_v13 }
 0x2c3   :  { %1406 = vmatpush1.bf16.msra.mxu0 %v17065_v14  ;;  %1447 = vmatpush1.bf16.msra.mxu1 %v17067_v15 }
 0x2c4   :  { %1407 = vmatprep.subr.bf16.mxu0 %v17069_v16  ;;  %1448 = vmatprep.subr.bf16.mxu1 %v17071_v17 }
 0x2c7   :  { %1408 = vmatpush1.bf16.msra.mxu0 %v17078_v19  ;;  %1449 = vmatpush1.bf16.msra.mxu1 %v17080_v20 }
 0x2c8   :  { %1713 = vmatprep.subr.bf16.mxu0 %v17092_v21  ;;  %1754 = vmatprep.subr.bf16.mxu1 %v17095_v22 }
 0x36a   :  { %v1107_v45 = vpop.f32.mrf.mxu0  ;;  %v1148_v46 = vpop.f32.mrf.mxu1 }
 0x36b   :  { %v1155_v47 = vadd.f32 %v1107_v45, %v17134_v28  ;;  %v1157_v33 = vadd.f32 %v1148_v46, %v17136_v30  ;;  %v17278_v46 = vpop.permute.xlu1 %1189 }
 0x36c   :  { %v1109_v48 = vpop.f32.mrf.mxu0  ;;  %v1150_v52 = vpop.f32.mrf.mxu1  ;;  %vm1191_vm7 = vcmp.eq.s32.totalorder %v17278_v46, 1  ;;  %v14780_v46 = vld [vmem:[#allocation9] sm:$0xff]  }
 0x36d   :  { %v1159_v53 = vadd.f32 %v1155_v47, %v17200_v9  ;;  %v1156_v54 = vadd.f32 %v1109_v48, %v17138_v31  ;;  %v1158_v22 = vadd.f32 %v1150_v52, %v17140_v32  ;;  %v1161_v31 = vadd.f32 %v1157_v33, %v17217_v42  ;;  %v16658_v33 = vld [vmem:[#allocation7 + $0xcc] ss:$16 sps:$4 sm:$0xff]   ;;  %vm14492_vm13 = vmpackc.low %vm1191_vm7, %vm872_vm5 }
 0x36e   :  { %v1111_v55 = vpop.f32.mrf.mxu0  ;;  %v1152_v49 = vpop.f32.mrf.mxu1  ;;  %v874_v32 = vsel %vm872_vm5, %v17220_v61, 0.0  ;;  %v873_v61 = vsel %vm872_vm5, %v17226_v41, 0.0 }
 0x36f   :  { %v13100_v27 = vmul.f32 -1.442695, %v1159_v53  ;;  %v1160_v43 = vadd.f32 %v1156_v54, %v17204_v51  ;;  %v1162_v28 = vadd.f32 %v1158_v22, %v17211_v26  ;;  %v16656_v22 = vld [vmem:[#allocation7 + $0xe8] ss:$16 sps:$4 sm:$0xff]  }
 0x370   :  { %v1112_v56 = vpop.f32.mrf.mxu0  ;;  %v1153_v4 = vpop.f32.mrf.mxu1 }
 0x371   :  { %16381 = vpow2.f32 %v13100_v27  ;;  %v13101_v21 = vmul.f32 -1.442695, %v1160_v43  ;;  %v13102_v24 = vmul.f32 -1.442695, %v1162_v28  ;;  %v16657_v28 = vld [vmem:[#allocation7 + $0xc4] ss:$16 sps:$4 sm:$0xff]  }
 0x373   :  { %16383 = vpow2.f32 %v13101_v21  ;;  %v16655_v21 = vld [vmem:[#allocation7 + $0xe0] ss:$16 sps:$4 sm:$0xff]  }
 0x374   :  { %16385 = vpow2.f32 %v13102_v24  ;;  %v16659_v24 = vld [vmem:[#allocation7 + $0xc0] ss:$16 sps:$4 sm:$0xff]  }
 0x37e   :  { %v16382_v18 = vpop.eup %16381 }
 0x37f   :  { %v1166_v23 = vadd.f32 1.0, %v16382_v18  ;;  %v16660_v18 = vld [vmem:[#allocation7 + $0xc8] ss:$16 sps:$4 sm:$0xff]  }
 0x380   :  { %v16384_v25 = vpop.eup %16383 }
 0x381   :  { %16387 = vrcp.f32 %v1166_v23  ;;  %v1172_v44 = vadd.f32 1.0, %v16384_v25  ;;  %v16386_v39 = vpop.eup %16385  ;;  %v16662_v23 = vld [vmem:[#allocation7 + $0xac] ss:$16 sps:$4 sm:$0xff]  }
 0x382   :  { %16389 = vtanh.f32 %v1161_v31  ;;  %v1179_v30 = vadd.f32 1.0, %v16386_v39  ;;  %v16661_v31 = vld [vmem:[#allocation7 + $0xa4] ss:$16 sps:$4 sm:$0xff]  }
 0x383   :  { %16391 = vrcp.f32 %v1172_v44 }
 0x384   :  { %16393 = vrcp.f32 %v1179_v30 }
 0x38e   :  { %v16388_v45 = vpop.eup %16387 }
 0x38f   :  { %v16390_v47 = vpop.eup %16389 }
 0x390   :  { %v16392_v48 = vpop.eup %16391  ;;  %v1183_v52 = vmul.f32 %v16390_v47, %v16388_v45  ;;  %v17329_v45 = vpop.permute.xlu0 %1509 }
 0x391   :  { %v1182_v53 = vmul.f32 %v16392_v48, %v874_v32  ;;  %v16394_v49 = vpop.eup %16393  ;;  %18976 = vst [vmem:[#allocation39_spill] sm:$0xff] %v17329_v45  ;;  %vm1511_vm8 = vcmp.eq.s32.totalorder %v17329_v45, 1 }
 0x393   :  { %v1184_v54 = vadd.f32 %v1183_v52, %v1182_v53 }
 0x395   :  { %16395 = vtanh.f32 %v1184_v54  ;;  %v17283_v55 = vsel %vm1191_vm7, %v1184_v54, %v874_v32 }
 0x3a2   :  { %v16396_v27 = vpop.eup %16395 }
 0x3a3   :  { %v17285_v43 = vmul.f32 %v16396_v27, %v16394_v49  ;;  %v17352_v27 = vld [vmem:[#allocation7 + $0xec] ss:$16 sps:$4 sm:$0xff]  }
 0x3a5   :  { %v17293_v56 = vsel %vm1191_vm7, %v17285_v43, %v873_v61  ;;  %v17354_v61 = vld [vmem:[#allocation7 + $0xe0] ss:$16 sps:$4 sm:$0xff]  }
 0x3a6   :  { %v1200_v4 = vpack.c.bf16 %v17293_v56, %v17293_v56 }
 0x3a8   :  { %1426 = vmatmul.mubr.bf16.vlgmr.msra.gmra.mxu0 %v1200_v4  ;;  %1467 = vmatmul.mubr.bf16.vlgmr.msra.gmra.mxu1 %v1200_v4  ;;  %v17356_v4 = vld [vmem:[#allocation7 + $0xe8] ss:$16 sps:$4 sm:$0xff]  }
 0x3a9   :  { %1714 = vmatpush1.bf16.msra.mxu0 %v16655_v21  ;;  %1755 = vmatpush1.bf16.msra.mxu1 %v16656_v22  ;;  %v17364_v21 = vld [vmem:[#allocation7 + $0xcc] ss:$16 sps:$4 sm:$0xff]   ;;  %v17366_v22 = vld [vmem:[#allocation7 + $0xc0] ss:$16 sps:$4 sm:$0xff]  }
 0x3aa   :  { %1715 = vmatprep.subr.bf16.mxu0 %v16657_v28  ;;  %1756 = vmatprep.subr.bf16.mxu1 %v16658_v33  ;;  %v17368_v28 = vld [vmem:[#allocation7 + $0xc8] ss:$16 sps:$4 sm:$0xff]   ;;  %v17374_v33 = vld [vmem:[#allocation7 + $0xa4] ss:$16 sps:$4 sm:$0xff]  }
 0x3ab   :  { %1745 = vmatprep.mubr.bf16.mxu0 %v18975_v40  ;;  %1786 = vmatprep.mubr.bf16.mxu1 %v18975_v40 }
 0x3ad   :  { %1716 = vmatpush1.bf16.msra.mxu0 %v16659_v24  ;;  %1757 = vmatpush1.bf16.msra.mxu1 %v16660_v18  ;;  %v17376_v24 = vld [vmem:[#allocation7 + $0xac] ss:$16 sps:$4 sm:$0xff]   ;;  %v17378_v18 = vld [vmem:[#allocation7 + $0xa0] ss:$16 sps:$4 sm:$0xff]  }
 0x3ae   :  { %1717 = vmatprep.subr.bf16.mxu0 %v16661_v31  ;;  %1758 = vmatprep.subr.bf16.mxu1 %v16662_v23  ;;  %v17380_v31 = vld [vmem:[#allocation7 + $0xa8] ss:$16 sps:$4 sm:$0xff]   ;;  %v17386_v23 = vld [vmem:[#allocation7 + $0x84] ss:$16 sps:$4 sm:$0xff]  }
 0x3b1   :  { %1718 = vmatpush1.bf16.msra.mxu0 %v17009_v57  ;;  %1759 = vmatpush1.bf16.msra.mxu1 %v17011_v58 }
 0x3b2   :  { %1719 = vmatprep.subr.bf16.mxu0 %v17013_v59  ;;  %1760 = vmatprep.subr.bf16.mxu1 %v17015_v60 }
 0x3b5   :  { %1720 = vmatpush1.bf16.msra.mxu0 %v17021_v63  ;;  %1761 = vmatpush1.bf16.msra.mxu1 %v17023_v1 }
 0x3b6   :  { %1721 = vmatprep.subr.bf16.mxu0 %v17027_v2  ;;  %1762 = vmatprep.subr.bf16.mxu1 %v17029_v3 }
 0x3b9   :  { %1722 = vmatpush1.bf16.msra.mxu0 %v17037_v5  ;;  %1763 = vmatpush1.bf16.msra.mxu1 %v17039_v6 }
 0x3ba   :  { %1723 = vmatprep.subr.bf16.mxu0 %v17041_v7  ;;  %1764 = vmatprep.subr.bf16.mxu1 %v17043_v8 }
 0x3bd   :  { %1724 = vmatpush1.bf16.msra.mxu0 %v17049_v10  ;;  %1765 = vmatpush1.bf16.msra.mxu1 %v17051_v11 }
 0x3be   :  { %1725 = vmatprep.subr.bf16.mxu0 %v17055_v12  ;;  %1766 = vmatprep.subr.bf16.mxu1 %v17057_v13 }
 0x3c1   :  { %1726 = vmatpush1.bf16.msra.mxu0 %v17065_v14  ;;  %1767 = vmatpush1.bf16.msra.mxu1 %v17067_v15 }
 0x3c2   :  { %1727 = vmatprep.subr.bf16.mxu0 %v17069_v16  ;;  %1768 = vmatprep.subr.bf16.mxu1 %v17071_v17 }
 0x3c5   :  { %1728 = vmatpush1.bf16.msra.mxu0 %v17078_v19  ;;  %1769 = vmatpush1.bf16.msra.mxu1 %v17080_v20 }
 0x3c6   :  { %2074 = vmatprep.subr.bf16.mxu1 %v17352_v27 }
 0x468   :  { %v1427_v57 = vpop.f32.mrf.mxu0  ;;  %v1468_v58 = vpop.f32.mrf.mxu1 }
 0x469   :  { %v1475_v59 = vadd.f32 %v1427_v57, %v17142_v34  ;;  %v1477_v14 = vadd.f32 %v1468_v58, %v17144_v35  ;;  %v17388_v57 = vld [vmem:[#allocation7 + $0x8c] ss:$16 sps:$4 sm:$0xff]   ;;  %v17390_v58 = vld [vmem:[#allocation7 + $0x80] ss:$16 sps:$4 sm:$0xff]  }
 0x46a   :  { %v1429_v60 = vpop.f32.mrf.mxu0  ;;  %v1470_v63 = vpop.f32.mrf.mxu1 }
 0x46b   :  { %v1479_v1 = vadd.f32 %v1475_v59, %v17200_v9  ;;  %v1476_v2 = vadd.f32 %v1429_v60, %v17146_v36  ;;  %v1478_v12 = vadd.f32 %v1470_v63, %v17148_v37  ;;  %v1481_v17 = vadd.f32 %v1477_v14, %v17217_v42  ;;  %v17392_v59 = vld [vmem:[#allocation7 + $0x88] ss:$16 sps:$4 sm:$0xff]   ;;  %v17396_v60 = vld [vmem:[#allocation7 + $0x64] ss:$16 sps:$4 sm:$0xff]   ;;  %v17400_v63 = vld [vmem:[#allocation7 + $0x60] ss:$16 sps:$4 sm:$0xff]  }
 0x46c   :  { %v1431_v3 = vpop.f32.mrf.mxu0  ;;  %v1472_v5 = vpop.f32.mrf.mxu1  ;;  %v17434_v14 = vld [vmem:[#allocation7 + $0xc] ss:$16 sps:$4 sm:$0xff]  }
 0x46d   :  { %v13135_v6 = vmul.f32 -1.442695, %v1479_v1  ;;  %v1480_v7 = vadd.f32 %v1476_v2, %v17204_v51  ;;  %v1482_v13 = vadd.f32 %v1478_v12, %v17211_v26  ;;  %v17402_v1 = vld [vmem:[#allocation7 + $0x68] ss:$16 sps:$4 sm:$0xff]   ;;  %v17404_v2 = vld [vmem:[#allocation7 + $0x6c] ss:$16 sps:$4 sm:$0xff]  }
 0x46e   :  { %v1432_v8 = vpop.f32.mrf.mxu0  ;;  %v1473_v10 = vpop.f32.mrf.mxu1  ;;  %v17407_v3 = vld [vmem:[#allocation7 + $0x44] ss:$16 sps:$4 sm:$0xff]   ;;  %v17409_v5 = vld [vmem:[#allocation7 + $0x4c] ss:$16 sps:$4 sm:$0xff]   ;;  %v17428_v12 = vld [vmem:[#allocation7 + $0x28] ss:$16 sps:$4 sm:$0xff]  }
 0x46f   :  { %16397 = vpow2.f32 %v13135_v6  ;;  %v13136_v11 = vmul.f32 -1.442695, %v1480_v7  ;;  %v13137_v15 = vmul.f32 -1.442695, %v1482_v13  ;;  %v17414_v6 = vld [vmem:[#allocation7 + $0x40] ss:$16 sps:$4 sm:$0xff]  }
 0x470   :  { %v17416_v7 = vld [vmem:[#allocation7 + $0x48] ss:$16 sps:$4 sm:$0xff]   ;;  %v17420_v8 = vld [vmem:[#allocation7 + $0x24] ss:$16 sps:$4 sm:$0xff]   ;;  %v17422_v10 = vld [vmem:[#allocation7 + $0x2c] ss:$16 sps:$4 sm:$0xff]  }
 0x471   :  { %16399 = vpow2.f32 %v13136_v11  ;;  %v17426_v11 = vld [vmem:[#allocation7 + $0x20] ss:$16 sps:$4 sm:$0xff]   ;;  %v17432_v13 = vld [vmem:[#allocation7 + $0x4] ss:$16 sps:$4 sm:$0xff]  }
 0x472   :  { %16401 = vpow2.f32 %v13137_v15  ;;  %v17438_v15 = vld [vmem:[#allocation7] ss:$16 sps:$4 sm:$0xff]  }
 0x47c   :  { %v16398_v16 = vpop.eup %16397 }
 0x47d   :  { %v1486_v19 = vadd.f32 1.0, %v16398_v16  ;;  %v17440_v16 = vld [vmem:[#allocation7 + $0x8] ss:$16 sps:$4 sm:$0xff]  }
 0x47e   :  { %v16400_v20 = vpop.eup %16399 }
 0x47f   :  { %16403 = vrcp.f32 %v1486_v19  ;;  %v1492_v34 = vadd.f32 1.0, %v16400_v20  ;;  %v16402_v36 = vpop.eup %16401 }
 0x480   :  { %16405 = vtanh.f32 %v1481_v17  ;;  %v1499_v37 = vadd.f32 1.0, %v16402_v36 }
 0x481   :  { %16407 = vrcp.f32 %v1492_v34 }
 0x482   :  { %16409 = vrcp.f32 %v1499_v37 }
 0x48c   :  { %v16404_v25 = vpop.eup %16403 }
 0x48d   :  { %v16406_v44 = vpop.eup %16405 }
 0x48e   :  { %v16408_v39 = vpop.eup %16407  ;;  %v1503_v47 = vmul.f32 %v16406_v44, %v16404_v25  ;;  %v18977_v44 = vld [vmem:[#allocation20_spill] sm:$0xff] }
 0x48f   :  { %v1502_v35 = vmul.f32 %v16408_v39, %v17283_v55  ;;  %v16410_v30 = vpop.eup %16409 }
 0x491   :  { %v1504_v48 = vadd.f32 %v1503_v47, %v1502_v35 }
 0x493   :  { %16411 = vtanh.f32 %v1504_v48  ;;  %v17336_v32 = vsel %vm1511_vm8, %v1504_v48, %v17283_v55  ;;  %v17350_v55 = vld [vmem:[#allocation7 + $0xe4] ss:$16 sps:$4 sm:$0xff]  }
 0x494   :  { %2033 = vmatprep.subr.bf16.mxu0 %v17350_v55 }
 0x4a0   :  { %v16412_v52 = vpop.eup %16411 }
 0x4a1   :  { %v17338_v53 = vmul.f32 %v16412_v52, %v16410_v30 }
 0x4a3   :  { %v17344_v54 = vsel %vm1511_vm8, %v17338_v53, %v17293_v56  ;;  %v17362_v56 = vld [vmem:[#allocation7 + $0xc4] ss:$16 sps:$4 sm:$0xff]  }
 0x4a4   :  { %v1520_v49 = vpack.c.bf16 %v17344_v54, %v17344_v54 }
 0x4a6   :  { %1746 = vmatmul.mubr.bf16.vlgmr.msra.gmra.mxu0 %v1520_v49  ;;  %1787 = vmatmul.mubr.bf16.vlgmr.msra.gmra.mxu1 %v1520_v49 }
 0x4a7   :  { %2065 = vmatprep.mubr.bf16.mxu0 %v18975_v40  ;;  %2106 = vmatprep.mubr.bf16.mxu1 %v18975_v40 }
 0x4a8   :  { %2034 = vmatpush1.bf16.msra.mxu0 %v17354_v61  ;;  %2075 = vmatpush1.bf16.msra.mxu1 %v17356_v4 }
 0x4a9   :  { %2035 = vmatprep.subr.bf16.mxu0 %v17362_v56  ;;  %2076 = vmatprep.subr.bf16.mxu1 %v17364_v21 }
 0x4ac   :  { %2036 = vmatpush1.bf16.msra.mxu0 %v17366_v22  ;;  %2077 = vmatpush1.bf16.msra.mxu1 %v17368_v28 }
 0x4ad   :  { %2037 = vmatprep.subr.bf16.mxu0 %v17374_v33  ;;  %2078 = vmatprep.subr.bf16.mxu1 %v17376_v24 }
 0x4b0   :  { %2038 = vmatpush1.bf16.msra.mxu0 %v17378_v18  ;;  %2079 = vmatpush1.bf16.msra.mxu1 %v17380_v31 }
 0x4b1   :  { %2039 = vmatprep.subr.bf16.mxu0 %v17386_v23  ;;  %2080 = vmatprep.subr.bf16.mxu1 %v17388_v57 }
 0x4b4   :  { %2040 = vmatpush1.bf16.msra.mxu0 %v17390_v58  ;;  %2081 = vmatpush1.bf16.msra.mxu1 %v17392_v59 }
 0x4b5   :  { %2041 = vmatprep.subr.bf16.mxu0 %v17396_v60  ;;  %2082 = vmatprep.subr.bf16.mxu1 %v17404_v2 }
 0x4b8   :  { %2042 = vmatpush1.bf16.msra.mxu0 %v17400_v63  ;;  %2083 = vmatpush1.bf16.msra.mxu1 %v17402_v1 }
 0x4b9   :  { %2043 = vmatprep.subr.bf16.mxu0 %v17407_v3  ;;  %2084 = vmatprep.subr.bf16.mxu1 %v17409_v5 }
 0x4bc   :  { %2044 = vmatpush1.bf16.msra.mxu0 %v17414_v6  ;;  %2085 = vmatpush1.bf16.msra.mxu1 %v17416_v7 }
 0x4bd   :  { %2045 = vmatprep.subr.bf16.mxu0 %v17420_v8  ;;  %2086 = vmatprep.subr.bf16.mxu1 %v17422_v10 }
 0x4c0   :  { %2046 = vmatpush1.bf16.msra.mxu0 %v17426_v11  ;;  %2087 = vmatpush1.bf16.msra.mxu1 %v17428_v12 }
 0x4c1   :  { %2047 = vmatprep.subr.bf16.mxu0 %v17432_v13  ;;  %2088 = vmatprep.subr.bf16.mxu1 %v17434_v14 }
 0x4c4   :  { %2048 = vmatpush1.bf16.msra.mxu0 %v17438_v15  ;;  %2089 = vmatpush1.bf16.msra.mxu1 %v17440_v16 }
 0x4c5   :  { %2353 = vmatprep.subr.bf16.mxu0 %v17350_v55  ;;  %2394 = vmatprep.subr.bf16.mxu1 %v17352_v27 }
 0x566   :  { %v1747_v17 = vpop.f32.mrf.mxu0  ;;  %v1788_v19 = vpop.f32.mrf.mxu1 }
 0x567   :  { %v1795_v20 = vadd.f32 %v1747_v17, %v17150_v38  ;;  %v18979_v17 = vld [vmem:[#allocation19_spill] sm:$0xff] }
 0x568   :  { %v1749_v34 = vpop.f32.mrf.mxu0  ;;  %v1790_v36 = vpop.f32.mrf.mxu1  ;;  %v1797_v62 = vadd.f32 %v1788_v19, %v18979_v17 }
 0x569   :  { %v1799_v25 = vadd.f32 %v1795_v20, %v17200_v9  ;;  %v1796_v39 = vadd.f32 %v1749_v34, %v18977_v44  ;;  %v1798_v0 = vadd.f32 %v1790_v36, %v18978_v50  ;;  %v17456_v36 = vpop.permute.xlu1 %1829 }
 0x56a   :  { %v1751_v37 = vpop.f32.mrf.mxu0  ;;  %v1792_v47 = vpop.f32.mrf.mxu1  ;;  %v1801_v34 = vadd.f32 %v1797_v62, %v17217_v42  ;;  %18980 = vst [vmem:[#allocation20_spill] sm:$0xff] %v17456_v36  ;;  %vm1831_vm9 = vcmp.eq.s32.totalorder %v17456_v36, 1 }
 0x56b   :  { %v13170_v35 = vmul.f32 -1.442695, %v1799_v25  ;;  %v1800_v48 = vadd.f32 %v1796_v39, %v17204_v51  ;;  %v1802_v38 = vadd.f32 %v1798_v0, %v17211_v26  ;;  %vm14495_vm14 = vmpackc.low %vm1831_vm9, %vm1511_vm8 }
 0x56c   :  { %v1752_v30 = vpop.f32.mrf.mxu0  ;;  %v1793_v52 = vpop.f32.mrf.mxu1 }
 0x56d   :  { %16413 = vpow2.f32 %v13170_v35  ;;  %v13171_v49 = vmul.f32 -1.442695, %v1800_v48  ;;  %v13172_v45 = vmul.f32 -1.442695, %v1802_v38 }
 0x56f   :  { %16415 = vpow2.f32 %v13171_v49 }
 0x570   :  { %16417 = vpow2.f32 %v13172_v45 }
 0x57a   :  { %v16414_v20 = vpop.eup %16413 }
 0x57b   :  { %v1806_v44 = vadd.f32 1.0, %v16414_v20  ;;  %v18982_v20 = vld [vmem:[#allocation22_spill] sm:$0xff] }
 0x57c   :  { %v16416_v37 = vpop.eup %16415 }
 0x57d   :  { %16419 = vrcp.f32 %v1806_v44  ;;  %v1812_v25 = vadd.f32 1.0, %v16416_v37  ;;  %v16418_v39 = vpop.eup %16417 }
 0x57e   :  { %16421 = vtanh.f32 %v1801_v34  ;;  %v1819_v50 = vadd.f32 1.0, %v16418_v39  ;;  %v18983_v39 = vld [vmem:[#allocation24_spill] sm:$0xff] }
 0x57f   :  { %16423 = vrcp.f32 %v1812_v25 }
 0x580   :  { %16425 = vrcp.f32 %v1819_v50 }
 0x58a   :  { %v16420_v47 = vpop.eup %16419 }
 0x58b   :  { %v16422_v35 = vpop.eup %16421 }
 0x58c   :  { %v16424_v48 = vpop.eup %16423  ;;  %v1823_v0 = vmul.f32 %v16422_v35, %v16420_v47 }
 0x58d   :  { %v1822_v19 = vmul.f32 %v16424_v48, %v17336_v32  ;;  %v16426_v45 = vpop.eup %16425 }
 0x58f   :  { %v1824_v30 = vadd.f32 %v1823_v0, %v1822_v19 }
 0x591   :  { %16427 = vtanh.f32 %v1824_v30  ;;  %v17463_v62 = vsel %vm1831_vm9, %v1824_v30, %v17336_v32 }
 0x59e   :  { %v16428_v52 = vpop.eup %16427 }
 0x59f   :  { %v17465_v49 = vmul.f32 %v16428_v52, %v16426_v45  ;;  %v18984_v52 = vld [vmem:[#allocation25_spill] sm:$0xff] }
 0x5a1   :  { %18981 = vst [vmem:[#allocation21_spill] sm:$0xff] %v17465_v49  ;;  %v17471_v38 = vsel %vm1831_vm9, %v17465_v49, %v17344_v54 }
 0x5a2   :  { %v1840_v17 = vpack.c.bf16 %v17471_v38, %v17471_v38 }
 0x5a4   :  { %2066 = vmatmul.mubr.bf16.vlgmr.msra.gmra.mxu0 %v1840_v17  ;;  %2107 = vmatmul.mubr.bf16.vlgmr.msra.gmra.mxu1 %v1840_v17 }
 0x5a5   :  { %2354 = vmatpush1.bf16.msra.mxu0 %v17354_v61  ;;  %2395 = vmatpush1.bf16.msra.mxu1 %v17356_v4 }
 0x5a6   :  { %2355 = vmatprep.subr.bf16.mxu0 %v17362_v56  ;;  %2396 = vmatprep.subr.bf16.mxu1 %v17364_v21 }
 0x5a7   :  { %2385 = vmatprep.mubr.bf16.mxu0 %v18975_v40  ;;  %2426 = vmatprep.mubr.bf16.mxu1 %v18975_v40 }
 0x5a9   :  { %2356 = vmatpush1.bf16.msra.mxu0 %v17366_v22  ;;  %2397 = vmatpush1.bf16.msra.mxu1 %v17368_v28 }
 0x5aa   :  { %2357 = vmatprep.subr.bf16.mxu0 %v17374_v33  ;;  %2398 = vmatprep.subr.bf16.mxu1 %v17376_v24 }
 0x5ad   :  { %2358 = vmatpush1.bf16.msra.mxu0 %v17378_v18  ;;  %2399 = vmatpush1.bf16.msra.mxu1 %v17380_v31 }
 0x5ae   :  { %2359 = vmatprep.subr.bf16.mxu0 %v17386_v23  ;;  %2400 = vmatprep.subr.bf16.mxu1 %v17388_v57 }
 0x5b1   :  { %2360 = vmatpush1.bf16.msra.mxu0 %v17390_v58  ;;  %2401 = vmatpush1.bf16.msra.mxu1 %v17392_v59 }
 0x5b2   :  { %2361 = vmatprep.subr.bf16.mxu0 %v17396_v60  ;;  %2402 = vmatprep.subr.bf16.mxu1 %v17404_v2 }
 0x5b5   :  { %2362 = vmatpush1.bf16.msra.mxu0 %v17400_v63  ;;  %2403 = vmatpush1.bf16.msra.mxu1 %v17402_v1 }
 0x5b6   :  { %2363 = vmatprep.subr.bf16.mxu0 %v17407_v3  ;;  %2404 = vmatprep.subr.bf16.mxu1 %v17409_v5 }
 0x5b9   :  { %2364 = vmatpush1.bf16.msra.mxu0 %v17414_v6  ;;  %2405 = vmatpush1.bf16.msra.mxu1 %v17416_v7 }
 0x5ba   :  { %2365 = vmatprep.subr.bf16.mxu0 %v17420_v8  ;;  %2406 = vmatprep.subr.bf16.mxu1 %v17422_v10 }
 0x5bd   :  { %2366 = vmatpush1.bf16.msra.mxu0 %v17426_v11  ;;  %2407 = vmatpush1.bf16.msra.mxu1 %v17428_v12 }
 0x5be   :  { %2367 = vmatprep.subr.bf16.mxu0 %v17432_v13  ;;  %2408 = vmatprep.subr.bf16.mxu1 %v17434_v14 }
 0x5c1   :  { %2368 = vmatpush1.bf16.msra.mxu0 %v17438_v15  ;;  %2409 = vmatpush1.bf16.msra.mxu1 %v17440_v16 }
 0x5c2   :  { %2673 = vmatprep.subr.bf16.mxu0 %v17350_v55  ;;  %2714 = vmatprep.subr.bf16.mxu1 %v17352_v27 }
 0x664   :  { %v2067_v32 = vpop.f32.mrf.mxu0  ;;  %v2108_v54 = vpop.f32.mrf.mxu1 }
 0x665   :  { %v2115_v34 = vadd.f32 %v2067_v32, %v18982_v20  ;;  %v18985_v20 = vld [vmem:[#allocation23_spill] sm:$0xff] }
 0x666   :  { %v2069_v44 = vpop.f32.mrf.mxu0  ;;  %v2110_v37 = vpop.f32.mrf.mxu1  ;;  %v2117_v36 = vadd.f32 %v2108_v54, %v18985_v20 }
 0x667   :  { %v2119_v25 = vadd.f32 %v2115_v34, %v17200_v9  ;;  %v2116_v47 = vadd.f32 %v2069_v44, %v18983_v39  ;;  %v2118_v17 = vadd.f32 %v2110_v37, %v18984_v52 }
 0x668   :  { %v2071_v35 = vpop.f32.mrf.mxu0  ;;  %v2112_v48 = vpop.f32.mrf.mxu1  ;;  %v2121_v44 = vadd.f32 %v2117_v36, %v17217_v42 }
 0x669   :  { %v13205_v50 = vmul.f32 -1.442695, %v2119_v25  ;;  %v2120_v0 = vadd.f32 %v2116_v47, %v17204_v51  ;;  %v2122_v32 = vadd.f32 %v2118_v17, %v17211_v26 }
 0x66a   :  { %v2072_v19 = vpop.f32.mrf.mxu0  ;;  %v2113_v30 = vpop.f32.mrf.mxu1 }
 0x66b   :  { %16429 = vpow2.f32 %v13205_v50  ;;  %v13206_v45 = vmul.f32 -1.442695, %v2120_v0  ;;  %v13207_v49 = vmul.f32 -1.442695, %v2122_v32  ;;  %v17517_v19 = vpop.permute.xlu0 %2149 }
 0x66c   :  { %vm2151_vm10 = vcmp.eq.s32.totalorder %v17517_v19, 1  ;;  %v17687_v19 = vld [vmem:[#allocation12 + $0xf4] ss:$24 sps:$4 sm:$0xff]  }
 0x66d   :  { %16431 = vpow2.f32 %v13206_v45 }
 0x66e   :  { %16433 = vpow2.f32 %v13207_v49 }
 0x678   :  { %v16430_v34 = vpop.eup %16429 }
 0x679   :  { %v2126_v39 = vadd.f32 1.0, %v16430_v34  ;;  %v18986_v34 = vld [vmem:[#allocation26_spill] sm:$0xff] }
 0x67a   :  { %v16432_v35 = vpop.eup %16431 }
 0x67b   :  { %16435 = vrcp.f32 %v2126_v39  ;;  %v2132_v25 = vadd.f32 1.0, %v16432_v35  ;;  %v16434_v47 = vpop.eup %16433 }
 0x67c   :  { %16437 = vtanh.f32 %v2121_v44  ;;  %v2139_v37 = vadd.f32 1.0, %v16434_v47  ;;  %v18987_v47 = vld [vmem:[#allocation28_spill] sm:$0xff] }
 0x67d   :  { %16439 = vrcp.f32 %v2132_v25 }
 0x67e   :  { %16441 = vrcp.f32 %v2139_v37 }
 0x688   :  { %v16436_v48 = vpop.eup %16435 }
 0x689   :  { %v16438_v50 = vpop.eup %16437 }
 0x68a   :  { %v16440_v0 = vpop.eup %16439  ;;  %v2143_v30 = vmul.f32 %v16438_v50, %v16436_v48 }
 0x68b   :  { %v2142_v54 = vmul.f32 %v16440_v0, %v17463_v62  ;;  %v16442_v49 = vpop.eup %16441 }
 0x68d   :  { %v2144_v45 = vadd.f32 %v2143_v30, %v2142_v54 }
 0x68f   :  { %16443 = vtanh.f32 %v2144_v45  ;;  %v17524_v36 = vsel %vm2151_vm10, %v2144_v45, %v17463_v62 }
 0x69c   :  { %v16444_v52 = vpop.eup %16443 }
 0x69d   :  { %v17526_v17 = vmul.f32 %v16444_v52, %v16442_v49 }
 0x69f   :  { %v17532_v32 = vsel %vm2151_vm10, %v17526_v17, %v17471_v38 }
 0x6a0   :  { %v2160_v20 = vpack.c.bf16 %v17532_v32, %v17532_v32 }
 0x6a2   :  { %2386 = vmatmul.mubr.bf16.vlgmr.msra.gmra.mxu0 %v2160_v20  ;;  %2427 = vmatmul.mubr.bf16.vlgmr.msra.gmra.mxu1 %v2160_v20  ;;  %v18989_v20 = vld [vmem:[#allocation27_spill] sm:$0xff] }
 0x6a3   :  { %2674 = vmatpush1.bf16.msra.mxu0 %v17354_v61  ;;  %2715 = vmatpush1.bf16.msra.mxu1 %v17356_v4 }
 0x6a4   :  { %2675 = vmatprep.subr.bf16.mxu0 %v17362_v56  ;;  %2716 = vmatprep.subr.bf16.mxu1 %v17364_v21 }
 0x6a5   :  { %2705 = vmatprep.mubr.bf16.mxu0 %v18975_v40  ;;  %2746 = vmatprep.mubr.bf16.mxu1 %v18975_v40 }
 0x6a7   :  { %2676 = vmatpush1.bf16.msra.mxu0 %v17366_v22  ;;  %2717 = vmatpush1.bf16.msra.mxu1 %v17368_v28 }
 0x6a8   :  { %2677 = vmatprep.subr.bf16.mxu0 %v17374_v33  ;;  %2718 = vmatprep.subr.bf16.mxu1 %v17376_v24 }
 0x6ab   :  { %2678 = vmatpush1.bf16.msra.mxu0 %v17378_v18  ;;  %2719 = vmatpush1.bf16.msra.mxu1 %v17380_v31 }
 0x6ac   :  { %2679 = vmatprep.subr.bf16.mxu0 %v17386_v23  ;;  %2720 = vmatprep.subr.bf16.mxu1 %v17388_v57 }
 0x6af   :  { %2680 = vmatpush1.bf16.msra.mxu0 %v17390_v58  ;;  %2721 = vmatpush1.bf16.msra.mxu1 %v17392_v59 }
 0x6b0   :  { %2681 = vmatprep.subr.bf16.mxu0 %v17396_v60  ;;  %2722 = vmatprep.subr.bf16.mxu1 %v17404_v2 }
 0x6b3   :  { %2682 = vmatpush1.bf16.msra.mxu0 %v17400_v63  ;;  %2723 = vmatpush1.bf16.msra.mxu1 %v17402_v1 }
 0x6b4   :  { %2683 = vmatprep.subr.bf16.mxu0 %v17407_v3  ;;  %2724 = vmatprep.subr.bf16.mxu1 %v17409_v5 }
 0x6b7   :  { %2684 = vmatpush1.bf16.msra.mxu0 %v17414_v6  ;;  %2725 = vmatpush1.bf16.msra.mxu1 %v17416_v7 }
 0x6b8   :  { %2685 = vmatprep.subr.bf16.mxu0 %v17420_v8  ;;  %2726 = vmatprep.subr.bf16.mxu1 %v17422_v10 }
 0x6bb   :  { %2686 = vmatpush1.bf16.msra.mxu0 %v17426_v11  ;;  %2727 = vmatpush1.bf16.msra.mxu1 %v17428_v12 }
 0x6bc   :  { %2687 = vmatprep.subr.bf16.mxu0 %v17432_v13  ;;  %2728 = vmatprep.subr.bf16.mxu1 %v17434_v14 }
 0x6bf   :  { %2688 = vmatpush1.bf16.msra.mxu0 %v17438_v15  ;;  %2729 = vmatpush1.bf16.msra.mxu1 %v17440_v16 }
 0x6c0   :  { %2993 = vmatprep.subr.bf16.mxu0 %v17350_v55  ;;  %3034 = vmatprep.subr.bf16.mxu1 %v17352_v27  ;;  %v18988_v27 = vld [vmem:[#allocation29_spill] sm:$0xff] }
 0x762   :  { %v2387_v62 = vpop.f32.mrf.mxu0  ;;  %v2428_v38 = vpop.f32.mrf.mxu1 }
 0x763   :  { %v2435_v44 = vadd.f32 %v2387_v62, %v18986_v34  ;;  %v2437_v62 = vadd.f32 %v2428_v38, %v18989_v20 }
 0x764   :  { %v2389_v39 = vpop.f32.mrf.mxu0  ;;  %v2430_v35 = vpop.f32.mrf.mxu1 }
 0x765   :  { %v2439_v25 = vadd.f32 %v2435_v44, %v17200_v9  ;;  %v2436_v48 = vadd.f32 %v2389_v39, %v18987_v47  ;;  %v2438_v49 = vadd.f32 %v2430_v35, %v18988_v27  ;;  %v2441_v39 = vadd.f32 %v2437_v62, %v17217_v42 }
 0x766   :  { %v2391_v50 = vpop.f32.mrf.mxu0  ;;  %v2432_v0 = vpop.f32.mrf.mxu1 }
 0x767   :  { %v13240_v37 = vmul.f32 -1.442695, %v2439_v25  ;;  %v2440_v30 = vadd.f32 %v2436_v48, %v17204_v51  ;;  %v2442_v52 = vadd.f32 %v2438_v49, %v17211_v26 }
 0x768   :  { %v2392_v54 = vpop.f32.mrf.mxu0  ;;  %v2433_v45 = vpop.f32.mrf.mxu1 }
 0x769   :  { %16445 = vpow2.f32 %v13240_v37  ;;  %v13241_v55 = vmul.f32 -1.442695, %v2440_v30  ;;  %v13242_v34 = vmul.f32 -1.442695, %v2442_v52  ;;  %v17578_v54 = vpop.permute.xlu1 %2469 }
 0x76a   :  { %vm2471_vm11 = vcmp.eq.s32.totalorder %v17578_v54, 1  ;;  %v17691_v54 = vld [vmem:[#allocation12 + $0xf0] ss:$24 sps:$4 sm:$0xff]  }
 0x76b   :  { %16447 = vpow2.f32 %v13241_v55  ;;  %vm14498_vm15 = vmpackc.low %vm2471_vm11, %vm2151_vm10 }
 0x76c   :  { %16449 = vpow2.f32 %v13242_v34 }
 0x776   :  { %v16446_v44 = vpop.eup %16445 }
 0x777   :  { %v2446_v47 = vadd.f32 1.0, %v16446_v44 }
 0x778   :  { %v16448_v50 = vpop.eup %16447 }
 0x779   :  { %16451 = vrcp.f32 %v2446_v47  ;;  %v2452_v25 = vadd.f32 1.0, %v16448_v50  ;;  %v16450_v48 = vpop.eup %16449 }
 0x77a   :  { %16453 = vtanh.f32 %v2441_v39  ;;  %v2459_v35 = vadd.f32 1.0, %v16450_v48  ;;  %v17637_v39 = vpop.permute.xlu0 %2789 }
 0x77b   :  { %16455 = vrcp.f32 %v2452_v25  ;;  %vm2791_vm12 = vcmp.eq.s32.totalorder %v17637_v39, 1  ;;  %v14837_v39 = vld [vmem:[%s18908_s5 + $0x54] ss:$8 sps:$4 sm:$0xff]  }
 0x77c   :  { %16457 = vrcp.f32 %v2459_v35 }
 0x786   :  { %v16452_v0 = vpop.eup %16451 }
 0x787   :  { %v16454_v37 = vpop.eup %16453 }
 0x788   :  { %v16456_v30 = vpop.eup %16455  ;;  %v2463_v45 = vmul.f32 %v16454_v37, %v16452_v0 }
 0x789   :  { %v2462_v38 = vmul.f32 %v16456_v30, %v17524_v36  ;;  %v16458_v49 = vpop.eup %16457 }
 0x78b   :  { %v2464_v55 = vadd.f32 %v2463_v45, %v2462_v38  ;;  %v14774_v38 = vld [vmem:[#allocation9 + $0x30] sm:$0xff]  }
 0x78d   :  { %16459 = vtanh.f32 %v2464_v55  ;;  %v17585_v27 = vsel %vm2471_vm11, %v2464_v55, %v17524_v36  ;;  %v14493_v55 = vpack.c.bf16 %v17285_v43, %v17226_v41  ;;  %v14778_v41 = vld [vmem:[#allocation9 + $0x10] sm:$0xff]   ;;  %v18994_v43 = vld [vmem:[#allocation21_spill] sm:$0xff] }
 0x79a   :  { %v16460_v52 = vpop.eup %16459 }
 0x79b   :  { %v17587_v20 = vmul.f32 %v16460_v52, %v16458_v49  ;;  %v14776_v49 = vld [vmem:[#allocation9 + $0x20] sm:$0xff]   ;;  %v14777_v52 = vld [vmem:[#allocation9 + $0x18] sm:$0xff]  }
 0x79d   :  { %v17593_v62 = vsel %vm2471_vm11, %v17587_v20, %v17532_v32 }
 0x79e   :  { %v2480_v34 = vpack.c.bf16 %v17593_v62, %v17593_v62 }
 0x7a0   :  { %2706 = vmatmul.mubr.bf16.vlgmr.msra.gmra.mxu0 %v2480_v34  ;;  %2747 = vmatmul.mubr.bf16.vlgmr.msra.gmra.mxu1 %v2480_v34  ;;  %v19000_v34 = vld [vmem:[#allocation36_spill] sm:$0xff] }
 0x7a1   :  { %2994 = vmatpush1.bf16.msra.mxu0 %v17354_v61  ;;  %3035 = vmatpush1.bf16.msra.mxu1 %v17356_v4  ;;  %v14773_v61 = vld [vmem:[#allocation9 + $0x38] sm:$0xff]  }
 0x7a2   :  { %2995 = vmatprep.subr.bf16.mxu0 %v17362_v56  ;;  %3036 = vmatprep.subr.bf16.mxu1 %v17364_v21  ;;  %v18990_v21 = vld [vmem:[#allocation31_spill] sm:$0xff] }
 0x7a3   :  { %3025 = vmatprep.mubr.bf16.mxu0 %v18975_v40  ;;  %3066 = vmatprep.mubr.bf16.mxu1 %v18975_v40 }
 0x7a5   :  { %2996 = vmatpush1.bf16.msra.mxu0 %v17366_v22  ;;  %3037 = vmatpush1.bf16.msra.mxu1 %v17368_v28 }
 0x7a6   :  { %2997 = vmatprep.subr.bf16.mxu0 %v17374_v33  ;;  %3038 = vmatprep.subr.bf16.mxu1 %v17376_v24 }
 0x7a9   :  { %2998 = vmatpush1.bf16.msra.mxu0 %v17378_v18  ;;  %3039 = vmatpush1.bf16.msra.mxu1 %v17380_v31  ;;  %v18991_v18 = vld [vmem:[#allocation33_spill] sm:$0xff] }
 0x7aa   :  { %2999 = vmatprep.subr.bf16.mxu0 %v17386_v23  ;;  %3040 = vmatprep.subr.bf16.mxu1 %v17388_v57 }
 0x7ad   :  { %3000 = vmatpush1.bf16.msra.mxu0 %v17390_v58  ;;  %3041 = vmatpush1.bf16.msra.mxu1 %v17392_v59 }
 0x7ae   :  { %3001 = vmatprep.subr.bf16.mxu0 %v17396_v60  ;;  %3042 = vmatprep.subr.bf16.mxu1 %v17404_v2  ;;  %v18992_v2 = vld [vmem:[#allocation34_spill] sm:$0xff] }
 0x7b1   :  { %3002 = vmatpush1.bf16.msra.mxu0 %v17400_v63  ;;  %3043 = vmatpush1.bf16.msra.mxu1 %v17402_v1 }
 0x7b2   :  { %3003 = vmatprep.subr.bf16.mxu0 %v17407_v3  ;;  %3044 = vmatprep.subr.bf16.mxu1 %v17409_v5 }
 0x7b5   :  { %3004 = vmatpush1.bf16.msra.mxu0 %v17414_v6  ;;  %3045 = vmatpush1.bf16.msra.mxu1 %v17416_v7  ;;  %v18993_v6 = vld [vmem:[#allocation32_spill] sm:$0xff] }
 0x7b6   :  { %3005 = vmatprep.subr.bf16.mxu0 %v17420_v8  ;;  %3046 = vmatprep.subr.bf16.mxu1 %v17422_v10 }
 0x7b9   :  { %3006 = vmatpush1.bf16.msra.mxu0 %v17426_v11  ;;  %3047 = vmatpush1.bf16.msra.mxu1 %v17428_v12 }
 0x7ba   :  { %3007 = vmatprep.subr.bf16.mxu0 %v17432_v13  ;;  %3048 = vmatprep.subr.bf16.mxu1 %v17434_v14 }
 0x7bd   :  { %3008 = vmatpush1.bf16.msra.mxu0 %v17438_v15  ;;  %3049 = vmatpush1.bf16.msra.mxu1 %v17440_v16 }
 0x7be   :  { %14552 = vmatprep.subr.bf16.mxu0 %v14773_v61 }
 0x860   :  { %v2707_v4 = vpop.f32.mrf.mxu0  ;;  %v2748_v56 = vpop.f32.mrf.mxu1 }
 0x861   :  { %v2755_v22 = vadd.f32 %v2707_v4, %v18990_v21  ;;  %v2757_v7 = vadd.f32 %v2748_v56, %v18993_v6  ;;  %v14499_v4 = vpack.c.bf16 %v17587_v20, %v17526_v17  ;;  %v17675_v56 = vld [vmem:[#allocation12 + $0x154] ss:$24 sps:$4 sm:$0xff]   ;;  %v17677_v21 = vld [vmem:[#allocation12 + $0x150] ss:$24 sps:$4 sm:$0xff]  }
 0x862   :  { %v2709_v28 = vpop.f32.mrf.mxu0  ;;  %v2750_v33 = vpop.f32.mrf.mxu1  ;;  %3457 = vmatprep.subr.bf16.mxu1 %v17675_v56  ;;  %v17689_v17 = vld [vmem:[#allocation12 + $0x15c] ss:$24 sps:$4 sm:$0xff]   ;;  %v17693_v20 = vld [vmem:[#allocation12 + $0x158] ss:$24 sps:$4 sm:$0xff]  }
 0x863   :  { %v2759_v24 = vadd.f32 %v2755_v22, %v17200_v9  ;;  %v2756_v31 = vadd.f32 %v2709_v28, %v18991_v18  ;;  %v2758_v3 = vadd.f32 %v2750_v33, %v18992_v2  ;;  %v2761_v11 = vadd.f32 %v2757_v7, %v17217_v42  ;;  %v17683_v22 = vld [vmem:[#allocation12 + $0x120] ss:$24 sps:$4 sm:$0xff]   ;;  %v17699_v28 = vld [vmem:[#allocation12 + $0xc4] ss:$24 sps:$4 sm:$0xff]   ;;  %v17733_v2 = vld [vmem:[#allocation12 + $0x34] ss:$24 sps:$4 sm:$0xff]  }
 0x864   :  { %v2711_v23 = vpop.f32.mrf.mxu0  ;;  %v2752_v57 = vpop.f32.mrf.mxu1  ;;  %v17701_v33 = vld [vmem:[#allocation12 + $0x12c] ss:$24 sps:$4 sm:$0xff]   ;;  %v17705_v18 = vld [vmem:[#allocation12 + $0x128] ss:$24 sps:$4 sm:$0xff]   ;;  %v17741_v6 = vld [vmem:[#allocation12 + $0x98] ss:$24 sps:$4 sm:$0xff]  }
 0x865   :  { %v13275_v58 = vmul.f32 -1.442695, %v2759_v24  ;;  %v2760_v59 = vadd.f32 %v2756_v31, %v17204_v51  ;;  %v2762_v5 = vadd.f32 %v2758_v3, %v17211_v26  ;;  %v17703_v24 = vld [vmem:[#allocation12 + $0xc0] ss:$24 sps:$4 sm:$0xff]   ;;  %v17709_v31 = vld [vmem:[#allocation12 + $0x94] ss:$24 sps:$4 sm:$0xff]  }
 0x866   :  { %v2712_v60 = vpop.f32.mrf.mxu0  ;;  %v2753_v63 = vpop.f32.mrf.mxu1  ;;  %v17711_v23 = vld [vmem:[#allocation12 + $0xfc] ss:$24 sps:$4 sm:$0xff]   ;;  %v17715_v57 = vld [vmem:[#allocation12 + $0x90] ss:$24 sps:$4 sm:$0xff]  }
 0x867   :  { %16461 = vpow2.f32 %v13275_v58  ;;  %v13276_v1 = vmul.f32 -1.442695, %v2760_v59  ;;  %v13277_v8 = vmul.f32 -1.442695, %v2762_v5  ;;  %v17717_v58 = vld [vmem:[#allocation12 + $0xf8] ss:$24 sps:$4 sm:$0xff]  }
 0x868   :  { %v17721_v59 = vld [vmem:[#allocation12 + $0x64] ss:$24 sps:$4 sm:$0xff]   ;;  %v17727_v63 = vld [vmem:[#allocation12 + $0x60] ss:$24 sps:$4 sm:$0xff]   ;;  %v17739_v5 = vld [vmem:[#allocation12 + $0x30] ss:$24 sps:$4 sm:$0xff]  }
 0x869   :  { %16463 = vpow2.f32 %v13276_v1  ;;  %v17723_v60 = vld [vmem:[#allocation12 + $0xcc] ss:$24 sps:$4 sm:$0xff]   ;;  %v17729_v1 = vld [vmem:[#allocation12 + $0xc8] ss:$24 sps:$4 sm:$0xff]   ;;  %v17735_v3 = vld [vmem:[#allocation12 + $0x9c] ss:$24 sps:$4 sm:$0xff]  }
 0x86a   :  { %16465 = vpow2.f32 %v13277_v8  ;;  %v17745_v7 = vld [vmem:[#allocation12 + $0x4] ss:$24 sps:$4 sm:$0xff]  }
 0x86b   :  { %v17747_v8 = vld [vmem:[#allocation12 + $0x6c] ss:$24 sps:$4 sm:$0xff]  }
 0x874   :  { %v16462_v10 = vpop.eup %16461 }
 0x875   :  { %v2766_v12 = vadd.f32 1.0, %v16462_v10  ;;  %v17751_v10 = vld [vmem:[#allocation12] ss:$24 sps:$4 sm:$0xff]  }
 0x876   :  { %v16464_v13 = vpop.eup %16463 }
 0x877   :  { %16467 = vrcp.f32 %v2766_v12  ;;  %v2772_v14 = vadd.f32 1.0, %v16464_v13  ;;  %v16466_v15 = vpop.eup %16465  ;;  %v17759_v12 = vld [vmem:[#allocation12 + $0x3c] ss:$24 sps:$4 sm:$0xff]  }
 0x878   :  { %16469 = vtanh.f32 %v2761_v11  ;;  %v2779_v44 = vadd.f32 1.0, %v16466_v15  ;;  %v17753_v11 = vld [vmem:[#allocation12 + $0x68] ss:$24 sps:$4 sm:$0xff]   ;;  %v14828_v13 = vld [vmem:[%s18908_s5 + $0x74] ss:$8 sps:$4 sm:$0xff]  }
 0x879   :  { %16471 = vrcp.f32 %v2772_v14  ;;  %v17764_v14 = vld [vmem:[#allocation12 + $0x38] ss:$24 sps:$4 sm:$0xff]   ;;  %v17768_v15 = vld [vmem:[#allocation12 + $0x8] ss:$24 sps:$4 sm:$0xff]  }
 0x87a   :  { %16473 = vrcp.f32 %v2779_v44  ;;  %v18997_v44 = vld [vmem:[#allocation35_spill] sm:$0xff] }
 0x884   :  { %v16468_v16 = vpop.eup %16467 }
 0x885   :  { %v16470_v36 = vpop.eup %16469 }
 0x886   :  { %v16472_v32 = vpop.eup %16471  ;;  %v2783_v47 = vmul.f32 %v16470_v36, %v16468_v16  ;;  %v17770_v16 = vld [vmem:[#allocation12 + $0xc] ss:$24 sps:$4 sm:$0xff]  }
 0x887   :  { %v2782_v50 = vmul.f32 %v16472_v32, %v17585_v27  ;;  %v16474_v0 = vpop.eup %16473 }
 0x889   :  { %v2784_v25 = vadd.f32 %v2783_v47, %v2782_v50 }
 0x88b   :  { %16475 = vtanh.f32 %v2784_v25  ;;  %v17644_v48 = vsel %vm2791_vm12, %v2784_v25, %v17585_v27  ;;  %v14775_v27 = vld [vmem:[#allocation9 + $0x28] sm:$0xff]  }
 0x898   :  { %v16476_v37 = vpop.eup %16475 }
 0x899   :  { %v17646_v30 = vmul.f32 %v16476_v37, %v16474_v0  ;;  %v18998_v37 = vld [vmem:[#allocation37_spill] sm:$0xff] }
 0x89b   :  { %v17652_v35 = vsel %vm2791_vm12, %v17646_v30, %v17593_v62  ;;  %v14496_v62 = vpack.c.bf16 %v18994_v43, %v17338_v53  ;;  %v17681_v53 = vld [vmem:[#allocation12 + $0x124] ss:$24 sps:$4 sm:$0xff]  }
 0x89c   :  { %v2800_v45 = vpack.c.bf16 %v17652_v35, %v17652_v35 }
 0x89e   :  { %3026 = vmatmul.mubr.bf16.vlgmr.msra.gmra.mxu0 %v2800_v45  ;;  %3067 = vmatmul.mubr.bf16.vlgmr.msra.gmra.mxu1 %v2800_v45 }
 0x89f   :  { %14553 = vmatpush3.bf16.msra.mxu0 %v14773_v61  ;;  %14568 = vmatprep.mubr.msk.bf16.mxu0 %vm14492_vm13, %v14493_v55 }
 0x8a0   :  { %14554 = vmatprep.subr.bf16.mxu0 %v14774_v38  ;;  %3489 = vmatprep.mubr.bf16.mxu1 %v18975_v40 }
 0x8a1   :  { %3458 = vmatpush1.bf16.msra.mxu1 %v17677_v21 }
 0x8a2   :  { %3459 = vmatprep.subr.bf16.mxu1 %v17681_v53 }
 0x8a3   :  { %14555 = vmatpush3.bf16.msra.mxu0 %v14774_v38 }
 0x8a4   :  { %14556 = vmatprep.subr.bf16.mxu0 %v14775_v27 }
 0x8a5   :  { %3460 = vmatpush1.bf16.msra.mxu1 %v17683_v22 }
 0x8a6   :  { %3461 = vmatprep.subr.bf16.mxu1 %v17687_v19 }
 0x8a7   :  { %14557 = vmatpush3.bf16.msra.mxu0 %v14775_v27 }
 0x8a8   :  { %14558 = vmatprep.subr.bf16.mxu0 %v14776_v49 }
 0x8a9   :  { %3462 = vmatpush1.bf16.msra.mxu1 %v17691_v54 }
 0x8aa   :  { %3463 = vmatprep.subr.bf16.mxu1 %v17699_v28 }
 0x8ab   :  { %14559 = vmatpush3.bf16.msra.mxu0 %v14776_v49 }
 0x8ac   :  { %14560 = vmatprep.subr.bf16.mxu0 %v14777_v52 }
 0x8ad   :  { %3464 = vmatpush1.bf16.msra.mxu1 %v17703_v24 }
 0x8ae   :  { %3465 = vmatprep.subr.bf16.mxu1 %v17709_v31 }
 0x8af   :  { %14561 = vmatpush3.bf16.msra.mxu0 %v14777_v52 }
 0x8b0   :  { %14562 = vmatprep.subr.bf16.mxu0 %v14778_v41 }
 0x8b1   :  { %3466 = vmatpush1.bf16.msra.mxu1 %v17715_v57 }
 0x8b2   :  { %3467 = vmatprep.subr.bf16.mxu1 %v17721_v59 }
 0x8b3   :  { %14563 = vmatpush3.bf16.msra.mxu0 %v14778_v41 }
 0x8b4   :  { %14564 = vmatprep.subr.bf16.mxu0 %v14779_v29 }
 0x8b5   :  { %3468 = vmatpush1.bf16.msra.mxu1 %v17727_v63 }
 0x8b6   :  { %3469 = vmatprep.subr.bf16.mxu1 %v17733_v2 }
 0x8b7   :  { %14565 = vmatpush3.bf16.msra.mxu0 %v14779_v29 }
 0x8b8   :  { %14566 = vmatprep.subr.bf16.mxu0 %v14780_v46 }
 0x8b9   :  { %3470 = vmatpush1.bf16.msra.mxu1 %v17739_v5 }
 0x8ba   :  { %3471 = vmatprep.subr.bf16.mxu1 %v17745_v7 }
 0x8bb   :  { %14567 = vmatpush3.bf16.msra.mxu0 %v14780_v46  ;;  %v18999_v46 = vld [vmem:[#allocation38_spill] sm:$0xff] }
 0x8bc   :  { %3498 = vmatprep.subr.bf16.mxu0 %v17689_v17 }
 0x8bd   :  { %3472 = vmatpush1.bf16.msra.mxu1 %v17751_v10 }
 0x8be   :  { %14569 = vmatmul.mubr.msk.bf16.vlgmr.msra.gmra.mxu0 %vm14495_vm14, %v14496_v62  ;;  %3639 = vmatprep.subr.bf16.mxu1 %v14828_v13 }
 0x8bf   :  { %14572 = vmatprep.mubr.msk.bf16.mxu0 %vm14498_vm15, %v14499_v4  ;;  %3499 = vmatpush1.bf16.msra.mxu0 %v17693_v20 }
 0x8c0   :  { %3500 = vmatprep.subr.bf16.mxu0 %v17701_v33 }
 0x8c3   :  { %3501 = vmatpush1.bf16.msra.mxu0 %v17705_v18 }
 0x8c4   :  { %3502 = vmatprep.subr.bf16.mxu0 %v17711_v23 }
 0x8c7   :  { %3503 = vmatpush1.bf16.msra.mxu0 %v17717_v58 }
 0x8c8   :  { %3504 = vmatprep.subr.bf16.mxu0 %v17723_v60 }
 0x8cb   :  { %3505 = vmatpush1.bf16.msra.mxu0 %v17729_v1 }
 0x8cc   :  { %3506 = vmatprep.subr.bf16.mxu0 %v17735_v3 }
 0x8cf   :  { %3507 = vmatpush1.bf16.msra.mxu0 %v17741_v6 }
 0x8d0   :  { %3508 = vmatprep.subr.bf16.mxu0 %v17747_v8 }
 0x8d3   :  { %3509 = vmatpush1.bf16.msra.mxu0 %v17753_v11 }
 0x8d4   :  { %3510 = vmatprep.subr.bf16.mxu0 %v17759_v12 }
 0x8d7   :  { %3511 = vmatpush1.bf16.msra.mxu0 %v17764_v14 }
 0x8d8   :  { %3512 = vmatprep.subr.bf16.mxu0 %v17770_v16 }
 0x8db   :  { %3513 = vmatpush1.bf16.msra.mxu0 %v17768_v15 }
 0x95e   :  { %v3027_v36 = vpop.f32.mrf.mxu0  ;;  %v3068_v32 = vpop.f32.mrf.mxu1 }
 0x95f   :  { %v3075_v47 = vadd.f32 %v3027_v36, %v18997_v44  ;;  %v3077_v61 = vadd.f32 %v3068_v32, %v19000_v34  ;;  %v14841_v34 = vld [vmem:[%s18908_s5 + $0x30] ss:$8 sps:$4 sm:$0xff]  }
 0x960   :  { %v3029_v50 = vpop.f32.mrf.mxu0  ;;  %v3070_v25 = vpop.f32.mrf.mxu1 }
 0x961   :  { %v3079_v0 = vadd.f32 %v3075_v47, %v17200_v9  ;;  %v3076_v45 = vadd.f32 %v3029_v50, %v18998_v37  ;;  %v3078_v43 = vadd.f32 %v3070_v25, %v18999_v46  ;;  %v3081_v13 = vadd.f32 %v3077_v61, %v17217_v42  ;;  %v14840_v46 = vld [vmem:[%s18908_s5 + $0x44] ss:$8 sps:$4 sm:$0xff]  }
 0x962   :  { %v3031_v38 = vpop.f32.mrf.mxu0  ;;  %v3072_v55 = vpop.f32.mrf.mxu1  ;;  %v14846_v61 = vld [vmem:[%s18908_s5 + $0x24] ss:$8 sps:$4 sm:$0xff]  }
 0x963   :  { %v13310_v27 = vmul.f32 -1.442695, %v3079_v0  ;;  %v3080_v49 = vadd.f32 %v3076_v45, %v17204_v51  ;;  %v3082_v62 = vadd.f32 %v3078_v43, %v17211_v26  ;;  %v3110_v38 = vpop.permute.xlu1 %3109  ;;  %v14838_v43 = vld [vmem:[%s18908_s5 + $0x40] ss:$8 sps:$4 sm:$0xff]  }
 0x964   :  { %v3032_v52 = vpop.f32.mrf.mxu0  ;;  %v3073_v41 = vpop.f32.mrf.mxu1  ;;  %vm3111_vm0 = vcmp.eq.s32.totalorder %v3110_v38, 1 }
 0x965   :  { %16477 = vpow2.f32 %v13310_v27  ;;  %v13311_v29 = vmul.f32 -1.442695, %v3080_v49  ;;  %v13312_v4 = vmul.f32 -1.442695, %v3082_v62  ;;  %v14826_v52 = vld [vmem:[%s18908_s5 + $0x70] ss:$8 sps:$4 sm:$0xff]   ;;  %vm14501_vm1 = vmpackc.low %vm3111_vm0, %vm2791_vm12 }
 0x966   :  { %v14843_v62 = vld [vmem:[%s18908_s5 + $0x34] ss:$8 sps:$4 sm:$0xff]  }
 0x967   :  { %16479 = vpow2.f32 %v13311_v29  ;;  %v14834_v29 = vld [vmem:[%s18908_s5 + $0x64] ss:$8 sps:$4 sm:$0xff]  }
 0x968   :  { %16481 = vpow2.f32 %v13312_v4  ;;  %v14844_v4 = vld [vmem:[%s18908_s5 + $0x20] ss:$8 sps:$4 sm:$0xff]  }
 0x972   :  { %v16478_v9 = vpop.eup %16477 }
 0x973   :  { %v3086_v36 = vadd.f32 1.0, %v16478_v9  ;;  %v14849_v9 = vld [vmem:[%s18908_s5 + $0x14] ss:$8 sps:$4 sm:$0xff]  }
 0x974   :  { %v16480_v44 = vpop.eup %16479 }
 0x975   :  { %16483 = vrcp.f32 %v3086_v36  ;;  %v3092_v51 = vadd.f32 1.0, %v16480_v44  ;;  %v16482_v47 = vpop.eup %16481  ;;  %v14852_v36 = vld [vmem:[%s18908_s5 + $0x4] ss:$8 sps:$4 sm:$0xff]   ;;  %v14850_v44 = vld [vmem:[%s18908_s5] ss:$8 sps:$4 sm:$0xff]  }
 0x976   :  { %16485 = vtanh.f32 %v3081_v13  ;;  %v3099_v25 = vadd.f32 1.0, %v16482_v47  ;;  %v14847_v13 = vld [vmem:[%s18908_s5 + $0x10] ss:$8 sps:$4 sm:$0xff]   ;;  %v19002_v47 = vmov 1.0|1.0  }
 0x977   :  { %16487 = vrcp.f32 %v3092_v51  ;;  %v19001_v51 = vld [vmem:[#allocation18_spill] sm:$0xff] }
 0x978   :  { %16489 = vrcp.f32 %v3099_v25  ;;  %vm3539_vm2 = vcmp.eq.s32.totalorder %v19001_v51, 1 }
 0x979   :  { %vm13370_vm3 = vmpackc.low %vm3539_vm2, %vm3539_vm2 }
 0x982   :  { %v16484_v50 = vpop.eup %16483 }
 0x983   :  { %v16486_v0 = vpop.eup %16485 }
 0x984   :  { %v16488_v37 = vpop.eup %16487  ;;  %v3103_v45 = vmul.f32 %v16486_v0, %v16484_v50  ;;  %v17838_v50 = vpop.f32.mrf.mxu0 }
 0x985   :  { %v3102_v26 = vmul.f32 %v16488_v37, %v17644_v48  ;;  %v16490_v42 = vpop.eup %16489 }
 0x986   :  { %v17840_v0 = vpop.f32.mrf.mxu0 }
 0x987   :  { %v3104_v32 = vadd.f32 %v3103_v45, %v3102_v26 }
 0x988   :  { %v17842_v37 = vpop.f32.mrf.mxu0 }
 0x989   :  { %16491 = vtanh.f32 %v3104_v32 }
 0x98a   :  { %v17844_v25 = vpop.f32.mrf.mxu0 }
 0x996   :  { %v16492_v55 = vpop.eup %16491 }
 0x997   :  { %v3106_v27 = vmul.f32 %v16492_v55, %v16490_v42 }
 0x999   :  { %v14502_v49 = vpack.c.bf16 %v3106_v27, %v17646_v30  ;;  %v3112_v41 = vsel %vm3111_vm0, %v3106_v27, %v17652_v35  ;;  %v14832_v30 = vld [vmem:[%s18908_s5 + $0x60] ss:$8 sps:$4 sm:$0xff]   ;;  %v14835_v35 = vld [vmem:[%s18908_s5 + $0x50] ss:$8 sps:$4 sm:$0xff]  }
 0x99a   :  { %v3264_v48 = vpack.c.bf16 %v3112_v41, %v3112_v41 }
 0x99b   :  { %14573 = vmatmul.mubr.msk.bf16.gmra.mxu0 %vm14501_vm1, %v14502_v49 }
 0x99c   :  { %3490 = vmatmul.mubr.bf16.vlgmr.msra.gmra.mxu1 %v3264_v48  ;;  %3530 = vmatprep.mubr.bf16.mxu0 %v18975_v40 }
 0x99d   :  { %3640 = vmatpush1.bf16.msra.mxu1 %v14826_v52  ;;  %3671 = vmatprep.mubr.bf16.mxu1 %v18975_v40 }
 0x99e   :  { %3641 = vmatprep.subr.bf16.mxu1 %v14834_v29 }
 0x9a1   :  { %3642 = vmatpush1.bf16.msra.mxu1 %v14832_v30  ;;  %v17865_v30 = vld [vmem:[%s18909_s6] ss:$0 sm:$0xff] }
 0x9a2   :  { %3643 = vmatprep.subr.bf16.mxu1 %v14837_v39  ;;  %19003 = vst [vmem:[#allocation19_spill] sm:$0xff] %v17865_v30 }
 0x9a3   :  { %3531 = vmatmul.mubr.bf16.vlgmr.msra.gmra.mxu0 %v3264_v48 }
 0x9a4   :  { %3986 = vmatprep.mubr.bf16.mxu0 %v18975_v40 }
 0x9a5   :  { %3644 = vmatpush1.bf16.msra.mxu1 %v14835_v35 }
 0x9a6   :  { %3645 = vmatprep.subr.bf16.mxu1 %v14840_v46 }
 0x9a9   :  { %3646 = vmatpush1.bf16.msra.mxu1 %v14838_v43 }
 0x9aa   :  { %3647 = vmatprep.subr.bf16.mxu1 %v14843_v62 }
 0x9ad   :  { %3648 = vmatpush1.bf16.msra.mxu1 %v14841_v34 }
 0x9ae   :  { %3649 = vmatprep.subr.bf16.mxu1 %v14846_v61 }
 0x9b1   :  { %3650 = vmatpush1.bf16.msra.mxu1 %v14844_v4 }
 0x9b2   :  { %3651 = vmatprep.subr.bf16.mxu1 %v14849_v9 }
 0x9b5   :  { %3652 = vmatpush1.bf16.msra.mxu1 %v14847_v13  ;;  %v18932_v13 = vmov 1  }
 0x9b6   :  { %3653 = vmatprep.subr.bf16.mxu1 %v14852_v36  ;;  %14601 = vset.pattern.permute.xlu1 %v18932_v13  ;;  %v14853_v36 = vld [vmem:[#allocation10 + $0xe0] ss:$16 sps:$4 sm:$0xff]   ;;  %v14868_v13 = vld [vmem:[#allocation10 + $0xa8] ss:$16 sps:$4 sm:$0xff]  }
 0x9b9   :  { %3654 = vmatpush1.bf16.msra.mxu1 %v14850_v44  ;;  %v14855_v44 = vld [vmem:[#allocation10 + $0xe4] ss:$16 sps:$4 sm:$0xff]  }
 0x9ba   :  { %3954 = vmatprep.subr.bf16.mxu0 %v14855_v44  ;;  %v14876_v44 = vld [vmem:[#allocation10 + $0x8c] ss:$16 sps:$4 sm:$0xff]  }
 0x9bb   :  { %3955 = vmatpush1.bf16.msra.mxu0 %v14853_v36  ;;  %v14873_v36 = vld [vmem:[#allocation10 + $0x84] ss:$16 sps:$4 sm:$0xff]  }
 0x9bc   :  { %13371 = vmatmul.mubr.msk.bf16.vlgmr.msra.gmra.mxu1 %vm13370_vm3, %v19002_v47 }
 0x9bd   :  { %4027 = vmatprep.mubr.bf16.mxu1 %v18975_v40 }
 0xa5b   :  { %v17846_v45 = vpop.f32.mrf.mxu0 }
 0xa5c   :  { %v17848_v26 = vpop.f32.mrf.mxu1 }
 0xa5d   :  { %v17850_v32 = vpop.f32.mrf.mxu0 }
 0xa5e   :  { %v17852_v38 = vpop.f32.mrf.mxu1 }
 0xa5f   :  { %v17854_v42 = vpop.f32.mrf.mxu0 }
 0xa60   :  { %v3495_v55 = vpop.f32.mrf.mxu1 }
 0xa61   :  { %v17856_v27 = vpop.f32.mrf.mxu0  ;;  %v14856_v55 = vld [vmem:[#allocation10 + $0xe8] ss:$16 sps:$4 sm:$0xff]  }
 0xa62   :  { %v3496_v49 = vpop.f32.mrf.mxu1 }
 0xa63   :  { %v17858_v52 = vpop.f32.mrf.mxu0  ;;  %v14858_v49 = vld [vmem:[#allocation10 + $0xec] ss:$16 sps:$4 sm:$0xff]  }
 0xa64   :  { %3995 = vmatprep.subr.bf16.mxu1 %v14858_v49  ;;  %v14874_v49 = vld [vmem:[#allocation10 + $0x88] ss:$16 sps:$4 sm:$0xff]  }
 0xa65   :  { %v17860_v41 = vpop.f32.mrf.mxu0  ;;  %3996 = vmatpush1.bf16.msra.mxu1 %v14856_v55  ;;  %v14871_v55 = vld [vmem:[#allocation10 + $0x80] ss:$16 sps:$4 sm:$0xff]  }
 0xa67   :  { %v3536_v48 = vpop.f32.mrf.mxu0 }
 0xa68   :  { %v14861_v48 = vld [vmem:[#allocation10 + $0xc4] ss:$16 sps:$4 sm:$0xff]  }
 0xa69   :  { %v3537_v29 = vpop.f32.mrf.mxu0  ;;  %3956 = vmatprep.subr.bf16.mxu0 %v14861_v48  ;;  %v18943_v48 = vmov 3  }
 0xa6a   :  { %v14864_v29 = vld [vmem:[#allocation10 + $0xcc] ss:$16 sps:$4 sm:$0xff]  }
 0xa6b   :  { %3997 = vmatprep.subr.bf16.mxu1 %v14864_v29  ;;  %v18945_v29 = vmov 2  }
 0xa7c   :  { %v3673_v39 = vpop.f32.mrf.mxu1 }
 0xa7d   :  { %v3687_v35 = vadd.f32 %v17865_v30, %v3673_v39  ;;  %v14859_v39 = vld [vmem:[#allocation10 + $0xc0] ss:$16 sps:$4 sm:$0xff]  }
 0xa7e   :  { %v17868_v46 = vpop.f32.mrf.mxu1  ;;  %3957 = vmatpush1.bf16.msra.mxu0 %v14859_v39  ;;  %v14882_v39 = vld [vmem:[#allocation10 + $0x6c] ss:$16 sps:$4 sm:$0xff]  }
 0xa7f   :  { %3688 = vmax.xlane.f32.xlu0 %v3687_v35 }
 0xa80   :  { %v3677_v43 = vpop.f32.mrf.mxu1 }
 0xa82   :  { %v3678_v62 = vpop.f32.mrf.mxu1 }
 0xa83   :  { %v14867_v62 = vld [vmem:[#allocation10 + $0xa4] ss:$16 sps:$4 sm:$0xff]  }
 0xa84   :  { %3958 = vmatprep.subr.bf16.mxu0 %v14867_v62  ;;  %v14888_v62 = vld [vmem:[#allocation10 + $0x4c] ss:$16 sps:$4 sm:$0xff]  }
 0xb08   :  { %v3689_v34 = vpop.xlane.xlu0 %3688 }
 0xb09   :  { %v3690_v61 = vsub.f32 %v3687_v35, %v3689_v34  ;;  %v14862_v35 = vld [vmem:[#allocation10 + $0xc8] ss:$16 sps:$4 sm:$0xff]   ;;  %v14870_v34 = vld [vmem:[#allocation10 + $0xac] ss:$16 sps:$4 sm:$0xff]  }
 0xb0a   :  { %3998 = vmatpush1.bf16.msra.mxu1 %v14862_v35  ;;  %v14880_v35 = vld [vmem:[#allocation10 + $0x68] ss:$16 sps:$4 sm:$0xff]  }
 0xb0b   :  { %v3691_v4 = vmul.f32 1.442695, %v3690_v61  ;;  %3999 = vmatprep.subr.bf16.mxu1 %v14870_v34  ;;  %v18937_v34 = vmov 4  }
 0xb0d   :  { %16493 = vpow2.f32 %v3691_v4  ;;  %v14865_v4 = vld [vmem:[#allocation10 + $0xa0] ss:$16 sps:$4 sm:$0xff]  }
 0xb0e   :  { %3959 = vmatpush1.bf16.msra.mxu0 %v14865_v4  ;;  %4000 = vmatpush1.bf16.msra.mxu1 %v14868_v13  ;;  %v14877_v13 = vld [vmem:[#allocation10 + $0x60] ss:$16 sps:$4 sm:$0xff]  }
 0xb0f   :  { %3960 = vmatprep.subr.bf16.mxu0 %v14873_v36  ;;  %4001 = vmatprep.subr.bf16.mxu1 %v14876_v44  ;;  %v14883_v4 = vld [vmem:[#allocation10 + $0x40] ss:$16 sps:$4 sm:$0xff]   ;;  %v14886_v36 = vld [vmem:[#allocation10 + $0x48] ss:$16 sps:$4 sm:$0xff]   ;;  %v14891_v44 = vld [vmem:[#allocation10 + $0x24] ss:$16 sps:$4 sm:$0xff]  }
 0xb12   :  { %3961 = vmatpush1.bf16.msra.mxu0 %v14871_v55  ;;  %4002 = vmatpush1.bf16.msra.mxu1 %v14874_v49  ;;  %v14894_v55 = vld [vmem:[#allocation10 + $0x2c] ss:$16 sps:$4 sm:$0xff]   ;;  %v14889_v49 = vld [vmem:[#allocation10 + $0x20] ss:$16 sps:$4 sm:$0xff]  }
 0xb13   :  { %4003 = vmatprep.subr.bf16.mxu1 %v14882_v39  ;;  %v18941_v39 = vmov 6  }
 0xb16   :  { %4004 = vmatpush1.bf16.msra.mxu1 %v14880_v35  ;;  %v14900_v35 = vld [vmem:[#allocation10 + $0xc] ss:$16 sps:$4 sm:$0xff]  }
 0xb17   :  { %4005 = vmatprep.subr.bf16.mxu1 %v14888_v62  ;;  %v19004_v62 = vmov 1  }
 0xb1a   :  { %v16494_v9 = vpop.eup %16493  ;;  %4006 = vmatpush1.bf16.msra.mxu1 %v14886_v36 }
 0xb1b   :  { %3693 = vadd.xlane.f32.xlu1 %v16494_v9  ;;  %4007 = vmatprep.subr.bf16.mxu1 %v14894_v55 }
 0xba4   :  { %v3694_v43 = vpop.xlane.xlu1 %3693 }
 0xba5   :  { %16495 = vrcp.f32 %v3694_v43  ;;  %v14885_v43 = vld [vmem:[#allocation10 + $0x44] ss:$16 sps:$4 sm:$0xff]  }
 0xbb2   :  { %v16496_v61 = vpop.eup %16495 }
 0xbb3   :  { %v3696_v30 = vmul.f32 %v16496_v61, %v16494_v9  ;;  %v14879_v9 = vld [vmem:[#allocation10 + $0x64] ss:$16 sps:$4 sm:$0xff]   ;;  %v18935_v61 = vmov 5  }
 0xbb4   :  { %3962 = vmatprep.subr.bf16.mxu0 %v14879_v9  ;;  %v14892_v9 = vld [vmem:[#allocation10 + $0x28] ss:$16 sps:$4 sm:$0xff]  }
 0xbb5   :  { %3714 = vperm.xlu1 %14601, %v3696_v30   ;;  %3707 = vperm.xlu0 %14599, %v3696_v30  }
 0xbb6   :  { %3963 = vmatpush1.bf16.msra.mxu0 %v14877_v13  ;;  %4008 = vmatpush1.bf16.msra.mxu1 %v14892_v9  ;;  %v14897_v13 = vld [vmem:[#allocation10 + $0x4] ss:$16 sps:$4 sm:$0xff]  }
 0xbb7   :  { %3964 = vmatprep.subr.bf16.mxu0 %v14885_v43  ;;  %4009 = vmatprep.subr.bf16.mxu1 %v14900_v35  ;;  %v18939_v43 = vmov 7  }
 0xbb9   :  { %14603 = vset.pattern.permute.xlu1 %v18943_v48  ;;  %14602 = vset.pattern.permute.xlu0 %v18945_v29 }
 0xbba   :  { %3728 = vperm.xlu1 %14603, %v3696_v30   ;;  %3721 = vperm.xlu0 %14602, %v3696_v30  }
 0xbbb   :  { %3965 = vmatpush1.bf16.msra.mxu0 %v14883_v4  ;;  %v17884_v4 = vld [vmem:[%s18911_s8] ss:$0 sm:$0xff] }
 0xbbc   :  { %3966 = vmatprep.subr.bf16.mxu0 %v14891_v44  ;;  %19005 = vst [vmem:[#allocation22_spill] sm:$0xff] %v17884_v4  ;;  %v3703_v55 = vadd.f32 %v17884_v4, %v17868_v46 }
 0xbbe   :  { %14604 = vset.pattern.permute.xlu1 %v18937_v34  ;;  %14605 = vset.pattern.permute.xlu0 %v18935_v61  ;;  %v14895_v61 = vld [vmem:[#allocation10] ss:$16 sps:$4 sm:$0xff]   ;;  %v14898_v34 = vld [vmem:[#allocation10 + $0x8] ss:$16 sps:$4 sm:$0xff]  }
 0xbbf   :  { %3735 = vperm.xlu1 %14604, %v3696_v30   ;;  %3742 = vperm.xlu0 %14605, %v3696_v30  }
 0xbc0   :  { %3967 = vmatpush1.bf16.msra.mxu0 %v14889_v49  ;;  %4010 = vmatpush1.bf16.msra.mxu1 %v14898_v34 }
 0xbc1   :  { %3968 = vmatprep.subr.bf16.mxu0 %v14897_v13  ;;  %4704 = vmatprep.subr.bf16.mxu1 %v17689_v17 }
 0xbc3   :  { %14606 = vset.pattern.permute.xlu1 %v18941_v39  ;;  %14608 = vset.pattern.permute.xlu0 %v18975_v40 }
 0xbc4   :  { %3749 = vperm.xlu1 %14606, %v3696_v30   ;;  %3969 = vmatpush1.bf16.msra.mxu0 %v14895_v61 }
 0xbc5   :  { %4663 = vmatprep.subr.bf16.mxu0 %v17675_v56 }
 0xbc8   :  { %14607 = vset.pattern.permute.xlu1 %v18939_v43 }
 0xbc9   :  { %3756 = vperm.xlu1 %14607, %v3696_v30  }
 0xbcd   :  { %14609 = vset.pattern.permute.xlu1 %v19004_v62 }
 0xc30   :  { %v3715_v36 = vpop.permute.xlu1 %3714  ;;  %v3708_v44 = vpop.permute.xlu0 %3707 }
 0xc31   :  { %v3710_v30 = vmul.f32 %v3708_v44, %v17840_v0  ;;  %v3717_v34 = vmul.f32 %v3715_v36, %v17844_v25 }
 0xc33   :  { %v3711_v61 = vadd.f32 %v3710_v30, %v3703_v55 }
 0xc35   :  { %v3729_v56 = vpop.permute.xlu1 %3728  ;;  %v3722_v49 = vpop.permute.xlu0 %3721  ;;  %v3718_v17 = vadd.f32 %v3717_v34, %v3711_v61 }
 0xc36   :  { %v3724_v9 = vmul.f32 %v17838_v50, %v3722_v49  ;;  %v3731_v13 = vmul.f32 %v17842_v37, %v3729_v56 }
 0xc38   :  { %v3725_v35 = vadd.f32 %v3724_v9, %v3718_v17 }
 0xc3a   :  { %v3732_v43 = vadd.f32 %v3731_v13, %v3725_v35  ;;  %v3736_v39 = vpop.permute.xlu1 %3735  ;;  %v3743_v29 = vpop.permute.xlu0 %3742 }
 0xc3b   :  { %v3738_v48 = vmul.f32 %v3736_v39, %v17850_v32  ;;  %v3745_v46 = vmul.f32 %v3743_v29, %v17856_v27  ;;  %v14951_v29 = vld [vmem:[#allocation12 + $0x164] ss:$24 sps:$4 sm:$0xff]   ;;  %v14946_v39 = vld [vmem:[#allocation12 + $0x188] ss:$24 sps:$4 sm:$0xff]  }
 0xc3d   :  { %v3739_v62 = vadd.f32 %v3738_v48, %v3732_v43  ;;  %v14943_v48 = vld [vmem:[#allocation12 + $0x180] ss:$24 sps:$4 sm:$0xff]  }
 0xc3e   :  { %v133_v43 = vld [vmem:[%s18913_s10] sm:$0xf] }
 0xc3f   :  { %v3750_v44 = vpop.permute.xlu1 %3749  ;;  %v3746_v4 = vadd.f32 %v3745_v46, %v3739_v62  ;;  %v19006_v62 = vld [vmem:[#allocation30_spill] sm:$0xff] }
 0xc40   :  { %v3752_v36 = vmul.f32 %v17846_v45, %v3750_v44  ;;  %v19009_v35 = vsub.s32 1, %v19006_v62 }
 0xc42   :  { %v3753_v30 = vadd.f32 %v3752_v36, %v3746_v4  ;;  %v19007_v4 = vsub.s32 0, %v19006_v62  ;;  %v17936_v46 = vrot.slane %v133_v43, %v19009_v35  ;;  %v14972_v35 = vld [vmem:[#allocation12 + $0x14] ss:$24 sps:$4 sm:$0xff]  }
 0xc44   :  { %v3757_v55 = vpop.permute.xlu1 %3756  ;;  %v17931_v56 = vrot.slane %v133_v43, %v19007_v4  ;;  %19010 = vst [vmem:[#allocation25_spill] sm:$0xff] %v17936_v46  ;;  %v14966_v4 = vld [vmem:[#allocation12 + $0x74] ss:$24 sps:$4 sm:$0xff]  }
 0xc45   :  { %v3759_v34 = vmul.f32 %v17854_v42, %v3757_v55 }
 0xc46   :  { %19008 = vst [vmem:[#allocation24_spill] sm:$0xff] %v17931_v56 }
 0xc47   :  { %v3760_v61 = vadd.f32 %v3759_v34, %v3753_v30 }
 0xc49   :  { %v3761_v49 = vpack.c.bf16 %v3760_v61, %v3760_v61 }
 0xc4b   :  { %3987 = vmatmul.mubr.bf16.vlgmr.msra.gmra.mxu0 %v3761_v49  ;;  %4028 = vmatmul.mubr.bf16.vlgmr.msra.gmra.mxu1 %v3761_v49 }
 0xc4c   :  { %4664 = vmatpush1.bf16.msra.mxu0 %v17677_v21  ;;  %4705 = vmatpush1.bf16.msra.mxu1 %v17693_v20  ;;  %v14901_v21 = vld [vmem:[#allocation12 + $0x2d0] ss:$24 sps:$4 sm:$0xff]   ;;  %v14912_v20 = vld [vmem:[#allocation12 + $0x2ac] ss:$24 sps:$4 sm:$0xff]  }
 0xc4d   :  { %4665 = vmatprep.subr.bf16.mxu0 %v17681_v53  ;;  %4706 = vmatprep.subr.bf16.mxu1 %v17701_v33  ;;  %v14903_v53 = vld [vmem:[#allocation12 + $0x2d4] ss:$24 sps:$4 sm:$0xff]   ;;  %v14910_v33 = vld [vmem:[#allocation12 + $0x2a8] ss:$24 sps:$4 sm:$0xff]  }
 0xc50   :  { %4666 = vmatpush1.bf16.msra.mxu0 %v17683_v22  ;;  %4707 = vmatpush1.bf16.msra.mxu1 %v17705_v18  ;;  %v14904_v22 = vld [vmem:[#allocation12 + $0x2d8] ss:$24 sps:$4 sm:$0xff]   ;;  %v14918_v18 = vld [vmem:[#allocation12 + $0x27c] ss:$24 sps:$4 sm:$0xff]  }
 0xc51   :  { %4667 = vmatprep.subr.bf16.mxu0 %v17687_v19  ;;  %4708 = vmatprep.subr.bf16.mxu1 %v17711_v23  ;;  %v14906_v19 = vld [vmem:[#allocation12 + $0x2dc] ss:$24 sps:$4 sm:$0xff]   ;;  %v14916_v23 = vld [vmem:[#allocation12 + $0x278] ss:$24 sps:$4 sm:$0xff]  }
 0xc54   :  { %4668 = vmatpush1.bf16.msra.mxu0 %v17691_v54  ;;  %4709 = vmatpush1.bf16.msra.mxu1 %v17717_v58  ;;  %v14909_v54 = vld [vmem:[#allocation12 + $0x2a4] ss:$24 sps:$4 sm:$0xff]  }
 0xc55   :  { %4669 = vmatprep.subr.bf16.mxu0 %v17699_v28  ;;  %4710 = vmatprep.subr.bf16.mxu1 %v17723_v60  ;;  %v14907_v28 = vld [vmem:[#allocation12 + $0x2a0] ss:$24 sps:$4 sm:$0xff]   ;;  %v14924_v58 = vld [vmem:[#allocation12 + $0x24c] ss:$24 sps:$4 sm:$0xff]  }
 0xc56   :  { %v14922_v60 = vld [vmem:[#allocation12 + $0x248] ss:$24 sps:$4 sm:$0xff]  }
 0xc58   :  { %4670 = vmatpush1.bf16.msra.mxu0 %v17703_v24  ;;  %4711 = vmatpush1.bf16.msra.mxu1 %v17729_v1  ;;  %v14915_v24 = vld [vmem:[#allocation12 + $0x274] ss:$24 sps:$4 sm:$0xff]   ;;  %v14925_v1 = vld [vmem:[#allocation12 + $0x210] ss:$24 sps:$4 sm:$0xff]  }
 0xc59   :  { %4671 = vmatprep.subr.bf16.mxu0 %v17709_v31  ;;  %4712 = vmatprep.subr.bf16.mxu1 %v17735_v3  ;;  %v14913_v31 = vld [vmem:[#allocation12 + $0x270] ss:$24 sps:$4 sm:$0xff]  }
 0xc5a   :  { %v14928_v3 = vld [vmem:[#allocation12 + $0x218] ss:$24 sps:$4 sm:$0xff]  }
 0xc5c   :  { %4672 = vmatpush1.bf16.msra.mxu0 %v17715_v57  ;;  %4713 = vmatpush1.bf16.msra.mxu1 %v17741_v6  ;;  %v14921_v57 = vld [vmem:[#allocation12 + $0x244] ss:$24 sps:$4 sm:$0xff]  }
 0xc5d   :  { %4673 = vmatprep.subr.bf16.mxu0 %v17721_v59  ;;  %4714 = vmatprep.subr.bf16.mxu1 %v17747_v8  ;;  %v14919_v59 = vld [vmem:[#allocation12 + $0x240] ss:$24 sps:$4 sm:$0xff]   ;;  %v14933_v6 = vld [vmem:[#allocation12 + $0x1e4] ss:$24 sps:$4 sm:$0xff]  }
 0xc5e   :  { %v14934_v8 = vld [vmem:[#allocation12 + $0x1e8] ss:$24 sps:$4 sm:$0xff]  }
 0xc60   :  { %4674 = vmatpush1.bf16.msra.mxu0 %v17727_v63  ;;  %4715 = vmatpush1.bf16.msra.mxu1 %v17753_v11  ;;  %v14927_v63 = vld [vmem:[#allocation12 + $0x214] ss:$24 sps:$4 sm:$0xff]  }
 0xc61   :  { %4675 = vmatprep.subr.bf16.mxu0 %v17733_v2  ;;  %4716 = vmatprep.subr.bf16.mxu1 %v17759_v12  ;;  %v14930_v2 = vld [vmem:[#allocation12 + $0x21c] ss:$24 sps:$4 sm:$0xff]   ;;  %v14937_v12 = vld [vmem:[#allocation12 + $0x1b0] ss:$24 sps:$4 sm:$0xff]  }
 0xc62   :  { %v14942_v11 = vld [vmem:[#allocation12 + $0x1bc] ss:$24 sps:$4 sm:$0xff]  }
 0xc64   :  { %4676 = vmatpush1.bf16.msra.mxu0 %v17739_v5  ;;  %4717 = vmatpush1.bf16.msra.mxu1 %v17764_v14  ;;  %v14931_v5 = vld [vmem:[#allocation12 + $0x1e0] ss:$24 sps:$4 sm:$0xff]   ;;  %v14945_v14 = vld [vmem:[#allocation12 + $0x184] ss:$24 sps:$4 sm:$0xff]  }
 0xc65   :  { %4677 = vmatprep.subr.bf16.mxu0 %v17745_v7  ;;  %4718 = vmatprep.subr.bf16.mxu1 %v17770_v16  ;;  %v14936_v7 = vld [vmem:[#allocation12 + $0x1ec] ss:$24 sps:$4 sm:$0xff]  }
 0xc66   :  { %v14948_v16 = vld [vmem:[#allocation12 + $0x18c] ss:$24 sps:$4 sm:$0xff]  }
 0xc68   :  { %4678 = vmatpush1.bf16.msra.mxu0 %v17751_v10  ;;  %4719 = vmatpush1.bf16.msra.mxu1 %v17768_v15  ;;  %v14939_v10 = vld [vmem:[#allocation12 + $0x1b4] ss:$24 sps:$4 sm:$0xff]   ;;  %v14940_v15 = vld [vmem:[#allocation12 + $0x1b8] ss:$24 sps:$4 sm:$0xff]  }
 0xc69   :  { %4679 = vmatprep.subr.bf16.mxu0 %v14903_v53  ;;  %4720 = vmatprep.subr.bf16.mxu1 %v14906_v19 }
 0xc6c   :  { %4680 = vmatpush2.bf16.msra.mxu0 %v14901_v21  ;;  %4721 = vmatpush2.bf16.msra.mxu1 %v14904_v22 }
 0xc6d   :  { %4681 = vmatprep.subr.bf16.mxu0 %v14909_v54  ;;  %4722 = vmatprep.subr.bf16.mxu1 %v14912_v20  ;;  %v19011_v54 = vsub.s32 3, %v19006_v62 }
 0xc6f   :  { %v17944_v20 = vrot.slane %v133_v43, %v19011_v54  ;;  %v14988_v54 = vld [vmem:[#allocation12 + $0x1f0] ss:$24 sps:$4 sm:$0xff]  }
 0xc70   :  { %4682 = vmatpush2.bf16.msra.mxu0 %v14907_v28  ;;  %4723 = vmatpush2.bf16.msra.mxu1 %v14910_v33  ;;  %v19013_v33 = vsub.s32 2, %v19006_v62  ;;  %v14961_v62 = vld [vmem:[#allocation12 + $0xa0] ss:$24 sps:$4 sm:$0xff]  }
 0xc71   :  { %4683 = vmatprep.subr.bf16.mxu0 %v14915_v24  ;;  %4724 = vmatprep.subr.bf16.mxu1 %v14918_v18  ;;  %19012 = vst [vmem:[#allocation23_spill] sm:$0xff] %v17944_v20 }
 0xc72   :  { %v17950_v24 = vrot.slane %v133_v43, %v19013_v33  ;;  %v14963_v43 = vld [vmem:[#allocation12 + $0xa4] ss:$24 sps:$4 sm:$0xff]   ;;  %v14996_v33 = vld [vmem:[#allocation12 + $0x194] ss:$24 sps:$4 sm:$0xff]  }
 0xc74   :  { %4684 = vmatpush2.bf16.msra.mxu0 %v14913_v31  ;;  %4725 = vmatpush2.bf16.msra.mxu1 %v14916_v23  ;;  %19014 = vst [vmem:[#allocation26_spill] sm:$0xff] %v17950_v24 }
 0xc75   :  { %4685 = vmatprep.subr.bf16.mxu0 %v14921_v57  ;;  %4726 = vmatprep.subr.bf16.mxu1 %v14924_v58 }
 0xc78   :  { %4686 = vmatpush2.bf16.msra.mxu0 %v14919_v59  ;;  %4727 = vmatpush2.bf16.msra.mxu1 %v14922_v60 }
 0xc79   :  { %4687 = vmatprep.subr.bf16.mxu0 %v14927_v63  ;;  %4728 = vmatprep.subr.bf16.mxu1 %v14930_v2 }
 0xc7c   :  { %4688 = vmatpush2.bf16.msra.mxu0 %v14925_v1  ;;  %4729 = vmatpush2.bf16.msra.mxu1 %v14928_v3 }
 0xc7d   :  { %4689 = vmatprep.subr.bf16.mxu0 %v14933_v6  ;;  %4730 = vmatprep.subr.bf16.mxu1 %v14936_v7 }
 0xc80   :  { %4690 = vmatpush2.bf16.msra.mxu0 %v14931_v5  ;;  %4731 = vmatpush2.bf16.msra.mxu1 %v14934_v8 }
 0xc81   :  { %4691 = vmatprep.subr.bf16.mxu0 %v14939_v10  ;;  %4732 = vmatprep.subr.bf16.mxu1 %v14942_v11  ;;  %v14949_v11 = vld [vmem:[#allocation12 + $0x160] ss:$24 sps:$4 sm:$0xff]  }
 0xc84   :  { %4692 = vmatpush2.bf16.msra.mxu0 %v14937_v12  ;;  %4733 = vmatpush2.bf16.msra.mxu1 %v14940_v15  ;;  %v14952_v15 = vld [vmem:[#allocation12 + $0x130] ss:$24 sps:$4 sm:$0xff]  }
 0xc85   :  { %4693 = vmatprep.subr.bf16.mxu0 %v14945_v14  ;;  %4734 = vmatprep.subr.bf16.mxu1 %v14948_v16  ;;  %v14954_v14 = vld [vmem:[#allocation12 + $0x134] ss:$24 sps:$4 sm:$0xff]   ;;  %v14957_v16 = vld [vmem:[#allocation12 + $0x104] ss:$24 sps:$4 sm:$0xff]  }
 0xc88   :  { %4694 = vmatpush2.bf16.msra.mxu0 %v14943_v48  ;;  %4735 = vmatpush2.bf16.msra.mxu1 %v14946_v39  ;;  %v14955_v48 = vld [vmem:[#allocation12 + $0x100] ss:$24 sps:$4 sm:$0xff]   ;;  %v14958_v39 = vld [vmem:[#allocation12 + $0xd0] ss:$24 sps:$4 sm:$0xff]  }
 0xc89   :  { %4745 = vmatprep.subr.bf16.mxu0 %v14951_v29  ;;  %v14960_v29 = vld [vmem:[#allocation12 + $0xd4] ss:$24 sps:$4 sm:$0xff]  }
 0xd0b   :  { %v3988_v17 = vpop.f32.mrf.mxu0  ;;  %v4029_v9 = vpop.f32.mrf.mxu1 }
 0xd0c   :  { %v3989_v13 = vadd.f32 %v3988_v17, %v17848_v26  ;;  %v14964_v17 = vld [vmem:[#allocation12 + $0x70] ss:$24 sps:$4 sm:$0xff]  }
 0xd0d   :  { %v3990_v44 = vpop.f32.mrf.mxu0  ;;  %v4031_v36 = vpop.f32.mrf.mxu1 }
 0xd0e   :  { %v4057_v55 = vadd.f32 %v17931_v56, %v3989_v13  ;;  %v3991_v30 = vadd.f32 %v3990_v44, %v17852_v38  ;;  %v4032_v26 = vadd.f32 %v4031_v36, %v17860_v41  ;;  %v4030_v38 = vadd.f32 %v4029_v9, %v17858_v52  ;;  %v14969_v9 = vld [vmem:[#allocation12 + $0x44] ss:$24 sps:$4 sm:$0xff]   ;;  %v14967_v13 = vld [vmem:[#allocation12 + $0x40] ss:$24 sps:$4 sm:$0xff]   ;;  %v14970_v44 = vld [vmem:[#allocation12 + $0x10] ss:$24 sps:$4 sm:$0xff]  }
 0xd0f   :  { %v3992_v34 = vpop.f32.mrf.mxu0  ;;  %v4033_v61 = vpop.f32.mrf.mxu1  ;;  %v14975_v36 = vld [vmem:[#allocation12 + $0x2e4] ss:$24 sps:$4 sm:$0xff]  }
 0xd10   :  { %v13406_v49 = vmul.f32 -1.442695, %v4057_v55  ;;  %v4058_v21 = vadd.f32 %v17936_v46, %v3991_v30  ;;  %v4060_v28 = vadd.f32 %v17944_v20, %v4032_v26  ;;  %v4059_v23 = vadd.f32 %v17950_v24, %v4030_v38  ;;  %v14973_v55 = vld [vmem:[#allocation12 + $0x2e0] ss:$24 sps:$4 sm:$0xff]   ;;  %v14978_v30 = vld [vmem:[#allocation12 + $0x2b4] ss:$24 sps:$4 sm:$0xff]  }
 0xd11   :  { %v3993_v53 = vpop.f32.mrf.mxu0  ;;  %v4034_v22 = vpop.f32.mrf.mxu1  ;;  %v14976_v34 = vld [vmem:[#allocation12 + $0x2b0] ss:$24 sps:$4 sm:$0xff]   ;;  %v14981_v61 = vld [vmem:[#allocation12 + $0x284] ss:$24 sps:$4 sm:$0xff]   ;;  %v14990_v26 = vld [vmem:[#allocation12 + $0x1f4] ss:$24 sps:$4 sm:$0xff]  }
 0xd12   :  { %16497 = vpow2.f32 %v13406_v49  ;;  %v13407_v19 = vmul.f32 -1.442695, %v4058_v21  ;;  %v13408_v18 = vmul.f32 -1.442695, %v4060_v28  ;;  %v14979_v49 = vld [vmem:[#allocation12 + $0x280] ss:$24 sps:$4 sm:$0xff]  }
 0xd13   :  { %v14984_v21 = vld [vmem:[#allocation12 + $0x254] ss:$24 sps:$4 sm:$0xff]   ;;  %v14982_v53 = vld [vmem:[#allocation12 + $0x250] ss:$24 sps:$4 sm:$0xff]   ;;  %v14987_v22 = vld [vmem:[#allocation12 + $0x224] ss:$24 sps:$4 sm:$0xff]  }
 0xd14   :  { %16499 = vpow2.f32 %v13407_v19  ;;  %v14985_v19 = vld [vmem:[#allocation12 + $0x220] ss:$24 sps:$4 sm:$0xff]   ;;  %v14993_v28 = vld [vmem:[#allocation12 + $0x1c4] ss:$24 sps:$4 sm:$0xff]  }
 0xd15   :  { %16501 = vpow2.f32 %v13408_v18  ;;  %v14991_v38 = vld [vmem:[#allocation12 + $0x1c0] ss:$24 sps:$4 sm:$0xff]   ;;  %v14994_v18 = vld [vmem:[#allocation12 + $0x190] ss:$24 sps:$4 sm:$0xff]  }
 0xd1f   :  { %v16498_v31 = vpop.eup %16497 }
 0xd20   :  { %v4064_v57 = vadd.f32 1.0, %v16498_v31 }
 0xd21   :  { %v16500_v58 = vpop.eup %16499 }
 0xd22   :  { %16503 = vrcp.f32 %v4064_v57  ;;  %v4070_v41 = vadd.f32 1.0, %v16500_v58  ;;  %v16502_v59 = vpop.eup %16501 }
 0xd23   :  { %16505 = vtanh.f32 %v4059_v23  ;;  %v4077_v52 = vadd.f32 1.0, %v16502_v59 }
 0xd24   :  { %16507 = vrcp.f32 %v4070_v41 }
 0xd25   :  { %16509 = vrcp.f32 %v4077_v52 }
 0xd2f   :  { %v16504_v60 = vpop.eup %16503 }
 0xd30   :  { %v16506_v63 = vpop.eup %16505 }
 0xd31   :  { %v16508_v1 = vpop.eup %16507  ;;  %v4081_v3 = vmul.f32 %v16506_v63, %v16504_v60 }
 0xd32   :  { %v4080_v2 = vmul.f32 0.0, %v16508_v1  ;;  %v16510_v7 = vpop.eup %16509  ;;  %v17976_v1 = vld [vmem:[%s18915_s12] ss:$0 sm:$0xff] }
 0xd34   :  { %v17953_v5 = vadd.f32 %v4081_v3, %v4080_v2 }
 0xd36   :  { %16511 = vtanh.f32 %v17953_v5  ;;  %v4086_v6 = vpack.c.bf16 %v17953_v5, %v17953_v5 }
 0xd38   :  { %4695 = vmatprep.mubr.bf16.mxu0 %v4086_v6  ;;  %4736 = vmatprep.mubr.bf16.mxu1 %v4086_v6 }
 0xd43   :  { %v16512_v8 = vpop.eup %16511 }
 0xd44   :  { %v4084_v10 = vmul.f32 %v16512_v8, %v16510_v7 }
 0xd46   :  { %v17958_v12 = vpack.c.bf16 %v4084_v10, %v4084_v10 }
 0xd48   :  { %4696 = vmatmul.mubr.bf16.vlgmr.msra.gmra.mxu0 %v17958_v12  ;;  %4737 = vmatmul.mubr.bf16.vlgmr.msra.gmra.mxu1 %v17958_v12 }
 0xd49   :  { %4746 = vmatpush1.bf16.msra.mxu0 %v14949_v11  ;;  %4777 = vmatprep.mubr.bf16.mxu0 %v4086_v6 }
 0xd4a   :  { %4747 = vmatprep.subr.bf16.mxu0 %v14954_v14  ;;  %4944 = vmatprep.mubr.bf16.mxu1 %v18975_v40  ;;  %v14997_v14 = vld [vmem:[%s18908_s5 + $0x70] ss:$8 sps:$4 sm:$0xff]  }
 0xd4d   :  { %4748 = vmatpush1.bf16.msra.mxu0 %v14952_v15  ;;  %v14999_v15 = vld [vmem:[%s18908_s5 + $0x74] ss:$8 sps:$4 sm:$0xff]  }
 0xd4e   :  { %4749 = vmatprep.subr.bf16.mxu0 %v14957_v16  ;;  %v15002_v16 = vld [vmem:[%s18908_s5 + $0x64] ss:$8 sps:$4 sm:$0xff]   ;;  %4912 = vmatprep.subr.bf16.mxu1 %v14999_v15 }
 0xd4f   :  { %4913 = vmatpush1.bf16.msra.mxu1 %v14997_v14  ;;  %v15029_v14 = vld [vmem:[#allocation10 + $0xc4] ss:$16 sps:$4 sm:$0xff]   ;;  %v15032_v15 = vld [vmem:[#allocation10 + $0xcc] ss:$16 sps:$4 sm:$0xff]  }
 0xd50   :  { %4914 = vmatprep.subr.bf16.mxu1 %v15002_v16  ;;  %v15027_v16 = vld [vmem:[#allocation10 + $0xc0] ss:$16 sps:$4 sm:$0xff]  }
 0xd51   :  { %4750 = vmatpush1.bf16.msra.mxu0 %v14955_v48  ;;  %v15000_v48 = vld [vmem:[%s18908_s5 + $0x60] ss:$8 sps:$4 sm:$0xff]  }
 0xd52   :  { %4751 = vmatprep.subr.bf16.mxu0 %v14960_v29  ;;  %v15005_v29 = vld [vmem:[%s18908_s5 + $0x54] ss:$8 sps:$4 sm:$0xff]  }
 0xd53   :  { %4915 = vmatpush1.bf16.msra.mxu1 %v15000_v48  ;;  %v15030_v48 = vld [vmem:[#allocation10 + $0xc8] ss:$16 sps:$4 sm:$0xff]  }
 0xd54   :  { %4916 = vmatprep.subr.bf16.mxu1 %v15005_v29  ;;  %v19016_v29 = vmov 2  }
 0xd55   :  { %4752 = vmatpush1.bf16.msra.mxu0 %v14958_v39  ;;  %v15003_v39 = vld [vmem:[%s18908_s5 + $0x50] ss:$8 sps:$4 sm:$0xff]  }
 0xd56   :  { %4753 = vmatprep.subr.bf16.mxu0 %v14963_v43  ;;  %v15008_v43 = vld [vmem:[%s18908_s5 + $0x44] ss:$8 sps:$4 sm:$0xff]  }
 0xd57   :  { %4917 = vmatpush1.bf16.msra.mxu1 %v15003_v39  ;;  %v15035_v39 = vld [vmem:[#allocation10 + $0xa4] ss:$16 sps:$4 sm:$0xff]  }
 0xd58   :  { %4918 = vmatprep.subr.bf16.mxu1 %v15008_v43  ;;  %v15038_v43 = vld [vmem:[#allocation10 + $0xac] ss:$16 sps:$4 sm:$0xff]  }
 0xd59   :  { %4754 = vmatpush1.bf16.msra.mxu0 %v14961_v62  ;;  %v15006_v62 = vld [vmem:[%s18908_s5 + $0x40] ss:$8 sps:$4 sm:$0xff]  }
 0xd5a   :  { %4755 = vmatprep.subr.bf16.mxu0 %v14966_v4  ;;  %v15011_v4 = vld [vmem:[%s18908_s5 + $0x34] ss:$8 sps:$4 sm:$0xff]  }
 0xd5b   :  { %4919 = vmatpush1.bf16.msra.mxu1 %v15006_v62  ;;  %v15033_v62 = vld [vmem:[#allocation10 + $0xa0] ss:$16 sps:$4 sm:$0xff]  }
 0xd5c   :  { %4920 = vmatprep.subr.bf16.mxu1 %v15011_v4  ;;  %v15036_v4 = vld [vmem:[#allocation10 + $0xa8] ss:$16 sps:$4 sm:$0xff]  }
 0xd5d   :  { %4756 = vmatpush1.bf16.msra.mxu0 %v14964_v17  ;;  %v15009_v17 = vld [vmem:[%s18908_s5 + $0x30] ss:$8 sps:$4 sm:$0xff]  }
 0xd5e   :  { %4757 = vmatprep.subr.bf16.mxu0 %v14969_v9  ;;  %v15014_v9 = vld [vmem:[%s18908_s5 + $0x24] ss:$8 sps:$4 sm:$0xff]  }
 0xd5f   :  { %4921 = vmatpush1.bf16.msra.mxu1 %v15009_v17  ;;  %v19017_v17 = vmov 1  }
 0xd60   :  { %4922 = vmatprep.subr.bf16.mxu1 %v15014_v9  ;;  %v19018_v9 = vmov 3  }
 0xd61   :  { %4758 = vmatpush1.bf16.msra.mxu0 %v14967_v13  ;;  %v15012_v13 = vld [vmem:[%s18908_s5 + $0x20] ss:$8 sps:$4 sm:$0xff]  }
 0xd62   :  { %4759 = vmatprep.subr.bf16.mxu0 %v14972_v35  ;;  %v15017_v35 = vld [vmem:[%s18908_s5 + $0x14] ss:$8 sps:$4 sm:$0xff]  }
 0xd63   :  { %4923 = vmatpush1.bf16.msra.mxu1 %v15012_v13  ;;  %v15041_v13 = vld [vmem:[#allocation10 + $0x84] ss:$16 sps:$4 sm:$0xff]  }
 0xd64   :  { %4924 = vmatprep.subr.bf16.mxu1 %v15017_v35  ;;  %v15044_v35 = vld [vmem:[#allocation10 + $0x8c] ss:$16 sps:$4 sm:$0xff]  }
 0xd65   :  { %4760 = vmatpush1.bf16.msra.mxu0 %v14970_v44  ;;  %v15015_v44 = vld [vmem:[%s18908_s5 + $0x10] ss:$8 sps:$4 sm:$0xff]  }
 0xd66   :  { %4761 = vmatprep.subr.bf16.mxu0 %v14975_v36 }
 0xd67   :  { %4925 = vmatpush1.bf16.msra.mxu1 %v15015_v44  ;;  %v15039_v44 = vld [vmem:[#allocation10 + $0x80] ss:$16 sps:$4 sm:$0xff]  }
 0xd69   :  { %4762 = vmatpush2.bf16.msra.mxu0 %v14973_v55 }
 0xd6a   :  { %4763 = vmatprep.subr.bf16.mxu0 %v14978_v30 }
 0xd6d   :  { %4764 = vmatpush2.bf16.msra.mxu0 %v14976_v34 }
 0xd6e   :  { %4765 = vmatprep.subr.bf16.mxu0 %v14981_v61  ;;  %v15020_v61 = vld [vmem:[%s18908_s5 + $0x4] ss:$8 sps:$4 sm:$0xff]  }
 0xd6f   :  { %4926 = vmatprep.subr.bf16.mxu1 %v15020_v61  ;;  %v15045_v61 = vld [vmem:[#allocation10 + $0x60] ss:$16 sps:$4 sm:$0xff]  }
 0xd71   :  { %4766 = vmatpush2.bf16.msra.mxu0 %v14979_v49  ;;  %v15018_v49 = vld [vmem:[%s18908_s5] ss:$8 sps:$4 sm:$0xff]  }
 0xd72   :  { %4767 = vmatprep.subr.bf16.mxu0 %v14984_v21  ;;  %4927 = vmatpush1.bf16.msra.mxu1 %v15018_v49  ;;  %v15048_v49 = vld [vmem:[#allocation10 + $0x68] ss:$16 sps:$4 sm:$0xff]  }
 0xd75   :  { %4768 = vmatpush2.bf16.msra.mxu0 %v14982_v53 }
 0xd76   :  { %4769 = vmatprep.subr.bf16.mxu0 %v14987_v22 }
 0xd79   :  { %4770 = vmatpush2.bf16.msra.mxu0 %v14985_v19 }
 0xd7a   :  { %4771 = vmatprep.subr.bf16.mxu0 %v14990_v26 }
 0xd7d   :  { %4772 = vmatpush2.bf16.msra.mxu0 %v14988_v54 }
 0xd7e   :  { %4773 = vmatprep.subr.bf16.mxu0 %v14993_v28 }
 0xd81   :  { %4774 = vmatpush2.bf16.msra.mxu0 %v14991_v38 }
 0xd82   :  { %4775 = vmatprep.subr.bf16.mxu0 %v14996_v33  ;;  %v19015_v33 = vld [vmem:[#allocation19_spill] sm:$0xff] }
 0xd85   :  { %4776 = vmatpush2.bf16.msra.mxu0 %v14994_v18 }
 0xd88   :  { %4778 = vmatmul.mubr.bf16.vlgmr.msra.gmra.mxu0 %v17958_v12 }
 0xd89   :  { %5288 = vmatprep.mubr.bf16.mxu0 %v18975_v40 }
 0xe08   :  { %v17965_v31 = vpop.f32.mrf.mxu0  ;;  %v17967_v23 = vpop.f32.mrf.mxu1 }
 0xe0a   :  { %v17969_v57 = vpop.f32.mrf.mxu0  ;;  %v17971_v58 = vpop.f32.mrf.mxu1 }
 0xe0c   :  { %v4701_v41 = vpop.f32.mrf.mxu0  ;;  %v4742_v59 = vpop.f32.mrf.mxu1 }
 0xe0e   :  { %v4702_v60 = vpop.f32.mrf.mxu0  ;;  %v4743_v63 = vpop.f32.mrf.mxu1 }
 0xe48   :  { %v4779_v52 = vpop.f32.mrf.mxu0 }
 0xe49   :  { %v4792_v2 = vadd.f32 %v17976_v1, %v4779_v52 }
 0xe4a   :  { %v4781_v3 = vpop.f32.mrf.mxu0 }
 0xe4b   :  { %4793 = vst [vmem:[#allocation13] sm:$0xff] %v4792_v2  ;;  %4794 = vmax.xlane.f32.xlu0 %v4792_v2 }
 0xe4c   :  { %v4783_v6 = vpop.f32.mrf.mxu0 }
 0xe4e   :  { %v4784_v7 = vpop.f32.mrf.mxu0 }
 0xed4   :  { %v4795_v8 = vpop.xlane.xlu0 %4794 }
 0xed5   :  { %vm4796_vm4 = vcmp.ge.f32.partialorder %v4792_v2, %v4795_v8 }
 0xed6   :  { %v4797_v10 = vsel %vm4796_vm4, %v19001_v51, 128 }
 0xed7   :  { %v4799_v11 = vshra.s32 %v4797_v10, 16  ;;  %v4798_v36 = vand.u32 65535, %v4797_v10  ;;  %v15023_v10 = vld [vmem:[#allocation10 + $0xe4] ss:$16 sps:$4 sm:$0xff]  }
 0xed8   :  { %5215 = vmatprep.subr.bf16.mxu1 %v15023_v10 }
 0xed9   :  { %v4801_v12 = vcvt.s32.f32 %v4799_v11  ;;  %v4800_v30 = vcvt.s32.f32 %v4798_v36  ;;  %v15021_v11 = vld [vmem:[#allocation10 + $0xe0] ss:$16 sps:$4 sm:$0xff]   ;;  %v15042_v36 = vld [vmem:[#allocation10 + $0x88] ss:$16 sps:$4 sm:$0xff]  }
 0xedb   :  { %4802 = vmin.xlane.f32.xlu1 %v4801_v12 }
 0xf64   :  { %v4803_v55 = vpop.xlane.xlu1 %4802 }
 0xf65   :  { %vm4804_vm5 = vcmp.eq.f32.partialorder %v4801_v12, %v4803_v55  ;;  %v4809_v21 = vcvt.f32.s32 %v4803_v55  ;;  %v15024_v12 = vld [vmem:[#allocation10 + $0xe8] ss:$16 sps:$4 sm:$0xff]   ;;  %v19019_v55 = vmov 4  }
 0xf66   :  { %v4805_v34 = vsel %vm4804_vm5, %v4800_v30, inf  ;;  %v15047_v30 = vld [vmem:[#allocation10 + $0x64] ss:$16 sps:$4 sm:$0xff]  }
 0xf67   :  { %4806 = vmin.xlane.f32.xlu0 %v4805_v34  ;;  %v4810_v22 = vshll.u32 %v4809_v21, 16  ;;  %v15050_v34 = vld [vmem:[#allocation10 + $0x6c] ss:$16 sps:$4 sm:$0xff]   ;;  %v15051_v21 = vld [vmem:[#allocation10 + $0x40] ss:$16 sps:$4 sm:$0xff]  }
 0xff0   :  { %v4807_v53 = vpop.xlane.xlu0 %4806 }
 0xff1   :  { %v4808_v19 = vcvt.f32.s32 %v4807_v53  ;;  %v15053_v53 = vld [vmem:[#allocation10 + $0x44] ss:$16 sps:$4 sm:$0xff]  }
 0xff3   :  { %v4811_v26 = vadd.s32 %v4810_v22, %v4808_v19  ;;  %v19020_v22 = vmov 5   ;;  %v15054_v19 = vld [vmem:[#allocation10 + $0x48] ss:$16 sps:$4 sm:$0xff]  }
 0xff5   :  { %vm4812_vm6 = vcmp.eq.s32.totalorder %v19001_v51, %v4811_v26  ;;  %v15056_v26 = vld [vmem:[#allocation10 + $0x4c] ss:$16 sps:$4 sm:$0xff]  }
 0xff6   :  { %vm13523_vm7 = vmpackc.low %vm4812_vm6, %vm4812_vm6 }
 0xff7   :  { %13524 = vmatmul.mubr.msk.bf16.vlgmr.msra.gmra.mxu1 %vm13523_vm7, %v19002_v47 }
 0xff8   :  { %5247 = vmatprep.mubr.bf16.mxu1 %v18975_v40  ;;  %5216 = vmatpush1.bf16.msra.mxu1 %v15021_v11 }
 0xff9   :  { %5217 = vmatprep.subr.bf16.mxu1 %v15029_v14 }
 0xffc   :  { %5218 = vmatpush1.bf16.msra.mxu1 %v15027_v16 }
 0xffd   :  { %5219 = vmatprep.subr.bf16.mxu1 %v15035_v39 }
0x1000   :  { %5220 = vmatpush1.bf16.msra.mxu1 %v15033_v62 }
0x1001   :  { %5221 = vmatprep.subr.bf16.mxu1 %v15041_v13 }
0x1004   :  { %5222 = vmatpush1.bf16.msra.mxu1 %v15039_v44 }
0x1005   :  { %5223 = vmatprep.subr.bf16.mxu1 %v15047_v30 }
0x1008   :  { %5224 = vmatpush1.bf16.msra.mxu1 %v15045_v61 }
0x1009   :  { %5225 = vmatprep.subr.bf16.mxu1 %v15053_v53 }
0x100c   :  { %5226 = vmatpush1.bf16.msra.mxu1 %v15051_v21 }
0x10b7   :  { %v4946_v54 = vpop.f32.mrf.mxu1 }
0x10b8   :  { %v4953_v28 = vadd.f32 %v4946_v54, %v4781_v3  ;;  %v15026_v3 = vld [vmem:[#allocation10 + $0xec] ss:$16 sps:$4 sm:$0xff]   ;;  %v15059_v54 = vld [vmem:[#allocation10 + $0x24] ss:$16 sps:$4 sm:$0xff]  }
0x10b9   :  { %v18031_v38 = vpop.f32.mrf.mxu1  ;;  %5256 = vmatprep.subr.bf16.mxu0 %v15026_v3  ;;  %5227 = vmatprep.subr.bf16.mxu1 %v15059_v54  ;;  %v15069_v54 = vld [vmem:[#allocation12 + $0x150] ss:$24 sps:$4 sm:$0xff]  }
0x10ba   :  { %v4954_v18 = vadd.f32 %v19015_v33, %v4953_v28  ;;  %5257 = vmatpush1.bf16.msra.mxu0 %v15024_v12  ;;  %v15062_v28 = vld [vmem:[#allocation10 + $0x2c] ss:$16 sps:$4 sm:$0xff]   ;;  %v15057_v33 = vld [vmem:[#allocation10 + $0x20] ss:$16 sps:$4 sm:$0xff]  }
0x10bb   :  { %v4950_v41 = vpop.f32.mrf.mxu1  ;;  %5258 = vmatprep.subr.bf16.mxu0 %v15032_v15  ;;  %5228 = vmatpush1.bf16.msra.mxu1 %v15057_v33  ;;  %v19023_v15 = vld [vmem:[#allocation22_spill] sm:$0xff] }
0x10bc   :  { %4955 = vmax.xlane.f32.xlu0 %v4954_v18  ;;  %v19021_v41 = vmov 6   ;;  %v4964_v16 = vadd.f32 %v19023_v15, %v18031_v38  ;;  %v15095_v15 = vld [vmem:[#allocation12 + $0x94] ss:$24 sps:$4 sm:$0xff]  }
0x10bd   :  { %v4951_v59 = vpop.f32.mrf.mxu1 }
0x10be   :  { %5259 = vmatpush1.bf16.msra.mxu0 %v15030_v48  ;;  %v15065_v59 = vld [vmem:[#allocation10 + $0x4] ss:$16 sps:$4 sm:$0xff]  }
0x10bf   :  { %5260 = vmatprep.subr.bf16.mxu0 %v15038_v43  ;;  %5229 = vmatprep.subr.bf16.mxu1 %v15065_v59  ;;  %v15075_v59 = vld [vmem:[#allocation12 + $0x120] ss:$24 sps:$4 sm:$0xff]  }
0x10c2   :  { %5261 = vmatpush1.bf16.msra.mxu0 %v15036_v4 }
0x10c3   :  { %5262 = vmatprep.subr.bf16.mxu0 %v15044_v35 }
0x10c6   :  { %5263 = vmatpush1.bf16.msra.mxu0 %v15042_v36 }
0x10c7   :  { %5264 = vmatprep.subr.bf16.mxu0 %v15050_v34 }
0x10ca   :  { %5265 = vmatpush1.bf16.msra.mxu0 %v15048_v49 }
0x10cb   :  { %5266 = vmatprep.subr.bf16.mxu0 %v15056_v26 }
0x10ce   :  { %5267 = vmatpush1.bf16.msra.mxu0 %v15054_v19 }
0x10cf   :  { %5268 = vmatprep.subr.bf16.mxu0 %v15062_v28  ;;  %v15072_v28 = vld [vmem:[#allocation12 + $0x158] ss:$24 sps:$4 sm:$0xff]  }
0x1145   :  { %v4956_v60 = vpop.xlane.xlu0 %4955 }
0x1146   :  { %v4957_v63 = vsub.f32 %v4954_v18, %v4956_v60  ;;  %v15060_v18 = vld [vmem:[#allocation10 + $0x28] ss:$16 sps:$4 sm:$0xff]   ;;  %v15068_v60 = vld [vmem:[#allocation10 + $0xc] ss:$16 sps:$4 sm:$0xff]  }
0x1147   :  { %5269 = vmatpush1.bf16.msra.mxu0 %v15060_v18  ;;  %v15077_v18 = vld [vmem:[#allocation12 + $0x124] ss:$24 sps:$4 sm:$0xff]  }
0x1148   :  { %v4958_v52 = vmul.f32 1.442695, %v4957_v63  ;;  %v15063_v63 = vld [vmem:[#allocation10] ss:$16 sps:$4 sm:$0xff]   ;;  %5270 = vmatprep.subr.bf16.mxu0 %v15068_v60  ;;  %v15080_v60 = vld [vmem:[#allocation12 + $0x12c] ss:$24 sps:$4 sm:$0xff]  }
0x1149   :  { %5230 = vmatpush1.bf16.msra.mxu1 %v15063_v63  ;;  %v15078_v63 = vld [vmem:[#allocation12 + $0x128] ss:$24 sps:$4 sm:$0xff]  }
0x114a   :  { %16513 = vpow2.f32 %v4958_v52  ;;  %v15066_v52 = vld [vmem:[#allocation10 + $0x8] ss:$16 sps:$4 sm:$0xff]  }
0x114b   :  { %5271 = vmatpush1.bf16.msra.mxu0 %v15066_v52  ;;  %v15083_v52 = vld [vmem:[#allocation12 + $0xf4] ss:$24 sps:$4 sm:$0xff]  }
0x1157   :  { %v16514_v2 = vpop.eup %16513 }
0x1158   :  { %4960 = vadd.xlane.f32.xlu1 %v16514_v2 }
0x11e1   :  { %v4961_v6 = vpop.xlane.xlu1 %4960 }
0x11e2   :  { %16515 = vrcp.f32 %v4961_v6  ;;  %v15071_v6 = vld [vmem:[#allocation12 + $0x154] ss:$24 sps:$4 sm:$0xff]  }
0x11e3   :  { %5903 = vmatprep.subr.bf16.mxu1 %v15071_v6  ;;  %v15081_v6 = vld [vmem:[#allocation12 + $0xf0] ss:$24 sps:$4 sm:$0xff]  }
0x11ef   :  { %v16516_v7 = vpop.eup %16515 }
0x11f0   :  { %v18034_v8 = vmul.f32 %v16516_v7, %v16514_v2  ;;  %v19022_v2 = vmov 7   ;;  %v15074_v7 = vld [vmem:[#allocation12 + $0x15c] ss:$24 sps:$4 sm:$0xff]  }
0x11f1   :  { %5944 = vmatprep.subr.bf16.mxu0 %v15074_v7  ;;  %v15086_v7 = vld [vmem:[#allocation12 + $0xfc] ss:$24 sps:$4 sm:$0xff]  }
0x11f2   :  { %4975 = vperm.xlu1 %14609, %v18034_v8   ;;  %4968 = vperm.xlu0 %14608, %v18034_v8  }
0x11f6   :  { %14610 = vset.pattern.permute.xlu1 %v19016_v29  ;;  %14617 = vset.pattern.permute.xlu0 %v19017_v17 }
0x11f7   :  { %4982 = vperm.xlu1 %14610, %v18034_v8  }
0x11fb   :  { %14611 = vset.pattern.permute.xlu1 %v19018_v9 }
0x11fc   :  { %4989 = vperm.xlu1 %14611, %v18034_v8  }
0x1200   :  { %14612 = vset.pattern.permute.xlu1 %v19019_v55 }
0x1201   :  { %4996 = vperm.xlu1 %14612, %v18034_v8  }
0x1205   :  { %14613 = vset.pattern.permute.xlu1 %v19020_v22 }
0x1206   :  { %5003 = vperm.xlu1 %14613, %v18034_v8  }
0x120a   :  { %14614 = vset.pattern.permute.xlu1 %v19021_v41 }
0x120b   :  { %5010 = vperm.xlu1 %14614, %v18034_v8  }
0x120f   :  { %14615 = vset.pattern.permute.xlu1 %v19022_v2 }
0x1210   :  { %5017 = vperm.xlu1 %14615, %v18034_v8  }
0x1214   :  { %14616 = vset.pattern.permute.xlu1 %v18975_v40 }
0x126d   :  { %v4976_v10 = vpop.permute.xlu1 %4975  ;;  %v4969_v11 = vpop.permute.xlu0 %4968 }
0x126e   :  { %v4971_v14 = vmul.f32 %v4969_v11, %v17840_v0  ;;  %v4978_v8 = vmul.f32 %v4976_v10, %v17844_v25  ;;  %v15084_v10 = vld [vmem:[#allocation12 + $0xf8] ss:$24 sps:$4 sm:$0xff]  }
0x126f   :  { %v15087_v11 = vld [vmem:[#allocation12 + $0xc0] ss:$24 sps:$4 sm:$0xff]  }
0x1270   :  { %v4972_v48 = vadd.f32 %v4971_v14, %v4964_v16  ;;  %v15090_v14 = vld [vmem:[#allocation12 + $0xc8] ss:$24 sps:$4 sm:$0xff]  }
0x1271   :  { %v15093_v16 = vld [vmem:[#allocation12 + $0x90] ss:$24 sps:$4 sm:$0xff]  }
0x1272   :  { %v4983_v3 = vpop.permute.xlu1 %4982  ;;  %v4979_v43 = vadd.f32 %v4978_v8, %v4972_v48  ;;  %v15098_v48 = vld [vmem:[#allocation12 + $0x9c] ss:$24 sps:$4 sm:$0xff]  }
0x1273   :  { %v4985_v62 = vmul.f32 %v17838_v50, %v4983_v3  ;;  %v15089_v3 = vld [vmem:[#allocation12 + $0xc4] ss:$24 sps:$4 sm:$0xff]  }
0x1274   :  { %v15101_v8 = vld [vmem:[#allocation12 + $0x64] ss:$24 sps:$4 sm:$0xff]  }
0x1275   :  { %v4986_v35 = vadd.f32 %v4985_v62, %v4979_v43  ;;  %v15099_v43 = vld [vmem:[#allocation12 + $0x60] ss:$24 sps:$4 sm:$0xff]   ;;  %v15104_v62 = vld [vmem:[#allocation12 + $0x6c] ss:$24 sps:$4 sm:$0xff]  }
0x1277   :  { %v4990_v12 = vpop.permute.xlu1 %4989 }
0x1278   :  { %v4992_v13 = vmul.f32 %v17842_v37, %v4990_v12  ;;  %v15092_v12 = vld [vmem:[#allocation12 + $0xcc] ss:$24 sps:$4 sm:$0xff]  }
0x127a   :  { %v4993_v36 = vadd.f32 %v4992_v13, %v4986_v35  ;;  %v15107_v13 = vld [vmem:[#allocation12 + $0x34] ss:$24 sps:$4 sm:$0xff]   ;;  %v15105_v35 = vld [vmem:[#allocation12 + $0x30] ss:$24 sps:$4 sm:$0xff]  }
0x127c   :  { %v4997_v39 = vpop.permute.xlu1 %4996 }
0x127d   :  { %v4999_v44 = vmul.f32 %v4997_v39, %v17850_v32  ;;  %v15096_v39 = vld [vmem:[#allocation12 + $0x98] ss:$24 sps:$4 sm:$0xff]  }
0x127f   :  { %v5000_v61 = vadd.f32 %v4999_v44, %v4993_v36  ;;  %v15110_v44 = vld [vmem:[#allocation12 + $0x3c] ss:$24 sps:$4 sm:$0xff]   ;;  %v15108_v36 = vld [vmem:[#allocation12 + $0x38] ss:$24 sps:$4 sm:$0xff]  }
0x1281   :  { %v5004_v4 = vpop.permute.xlu1 %5003 }
0x1282   :  { %v5006_v30 = vmul.f32 %v5004_v4, %v17856_v27  ;;  %v15102_v4 = vld [vmem:[#allocation12 + $0x68] ss:$24 sps:$4 sm:$0xff]  }
0x1284   :  { %v5007_v49 = vadd.f32 %v5006_v30, %v5000_v61  ;;  %v15113_v30 = vld [vmem:[#allocation12 + $0x4] ss:$24 sps:$4 sm:$0xff]  }
0x1285   :  { %v15116_v61 = vld [vmem:[#allocation12 + $0xc] ss:$24 sps:$4 sm:$0xff]  }
0x1286   :  { %v5011_v34 = vpop.permute.xlu1 %5010 }
0x1287   :  { %v5013_v38 = vmul.f32 %v17846_v45, %v5011_v34  ;;  %v15111_v34 = vld [vmem:[#allocation12] ss:$24 sps:$4 sm:$0xff]  }
0x1289   :  { %v5014_v53 = vadd.f32 %v5013_v38, %v5007_v49  ;;  %v15114_v38 = vld [vmem:[#allocation12 + $0x8] ss:$24 sps:$4 sm:$0xff]  }
0x128a   :  { %v15117_v49 = vld [vmem:[#allocation12 + $0x2d0] ss:$24 sps:$4 sm:$0xff]  }
0x128b   :  { %v5018_v21 = vpop.permute.xlu1 %5017 }
0x128c   :  { %v5020_v19 = vmul.f32 %v17854_v42, %v5018_v21  ;;  %v15119_v21 = vld [vmem:[#allocation12 + $0x2d4] ss:$24 sps:$4 sm:$0xff]  }
0x128e   :  { %v5021_v26 = vadd.f32 %v5020_v19, %v5014_v53  ;;  %v15120_v53 = vld [vmem:[#allocation12 + $0x2d8] ss:$24 sps:$4 sm:$0xff]   ;;  %v15122_v19 = vld [vmem:[#allocation12 + $0x2dc] ss:$24 sps:$4 sm:$0xff]  }
0x1290   :  { %v5022_v33 = vpack.c.bf16 %v5021_v26, %v5021_v26  ;;  %v15125_v26 = vld [vmem:[#allocation12 + $0x2a4] ss:$24 sps:$4 sm:$0xff]  }
0x1292   :  { %5248 = vmatmul.mubr.bf16.vlgmr.msra.gmra.mxu1 %v5022_v33  ;;  %5289 = vmatmul.mubr.bf16.vlgmr.msra.gmra.mxu0 %v5022_v33  ;;  %v15126_v33 = vld [vmem:[#allocation12 + $0x2a8] ss:$24 sps:$4 sm:$0xff]  }
0x1293   :  { %5904 = vmatpush1.bf16.msra.mxu1 %v15069_v54  ;;  %5945 = vmatpush1.bf16.msra.mxu0 %v15072_v28  ;;  %v15128_v54 = vld [vmem:[#allocation12 + $0x2ac] ss:$24 sps:$4 sm:$0xff]   ;;  %v15123_v28 = vld [vmem:[#allocation12 + $0x2a0] ss:$24 sps:$4 sm:$0xff]  }
0x1294   :  { %5905 = vmatprep.subr.bf16.mxu1 %v15077_v18  ;;  %5946 = vmatprep.subr.bf16.mxu0 %v15080_v60  ;;  %v15131_v18 = vld [vmem:[#allocation12 + $0x274] ss:$24 sps:$4 sm:$0xff]   ;;  %v15129_v60 = vld [vmem:[#allocation12 + $0x270] ss:$24 sps:$4 sm:$0xff]  }
0x1297   :  { %5906 = vmatpush1.bf16.msra.mxu1 %v15075_v59  ;;  %5947 = vmatpush1.bf16.msra.mxu0 %v15078_v63  ;;  %v15134_v59 = vld [vmem:[#allocation12 + $0x27c] ss:$24 sps:$4 sm:$0xff]   ;;  %v15132_v63 = vld [vmem:[#allocation12 + $0x278] ss:$24 sps:$4 sm:$0xff]  }
0x1298   :  { %5907 = vmatprep.subr.bf16.mxu1 %v15083_v52  ;;  %5948 = vmatprep.subr.bf16.mxu0 %v15086_v7  ;;  %v15137_v52 = vld [vmem:[#allocation12 + $0x244] ss:$24 sps:$4 sm:$0xff]   ;;  %v15135_v7 = vld [vmem:[#allocation12 + $0x240] ss:$24 sps:$4 sm:$0xff]  }
0x129b   :  { %5908 = vmatpush1.bf16.msra.mxu1 %v15081_v6  ;;  %5949 = vmatpush1.bf16.msra.mxu0 %v15084_v10  ;;  %v15140_v6 = vld [vmem:[#allocation12 + $0x24c] ss:$24 sps:$4 sm:$0xff]   ;;  %v15138_v10 = vld [vmem:[#allocation12 + $0x248] ss:$24 sps:$4 sm:$0xff]  }
0x129c   :  { %5909 = vmatprep.subr.bf16.mxu1 %v15089_v3  ;;  %5950 = vmatprep.subr.bf16.mxu0 %v15092_v12  ;;  %v15143_v3 = vld [vmem:[#allocation12 + $0x214] ss:$24 sps:$4 sm:$0xff]  }
0x129d   :  { %v15146_v12 = vld [vmem:[#allocation12 + $0x21c] ss:$24 sps:$4 sm:$0xff]  }
0x129f   :  { %5910 = vmatpush1.bf16.msra.mxu1 %v15087_v11  ;;  %5951 = vmatpush1.bf16.msra.mxu0 %v15090_v14  ;;  %v15141_v11 = vld [vmem:[#allocation12 + $0x210] ss:$24 sps:$4 sm:$0xff]  }
0x12a0   :  { %5911 = vmatprep.subr.bf16.mxu1 %v15095_v15  ;;  %5952 = vmatprep.subr.bf16.mxu0 %v15098_v48  ;;  %v15144_v14 = vld [vmem:[#allocation12 + $0x218] ss:$24 sps:$4 sm:$0xff]   ;;  %v15149_v15 = vld [vmem:[#allocation12 + $0x1e4] ss:$24 sps:$4 sm:$0xff]  }
0x12a1   :  { %v15152_v48 = vld [vmem:[#allocation12 + $0x1ec] ss:$24 sps:$4 sm:$0xff]  }
0x12a3   :  { %5912 = vmatpush1.bf16.msra.mxu1 %v15093_v16  ;;  %5953 = vmatpush1.bf16.msra.mxu0 %v15096_v39  ;;  %v15147_v16 = vld [vmem:[#allocation12 + $0x1e0] ss:$24 sps:$4 sm:$0xff]  }
0x12a4   :  { %5913 = vmatprep.subr.bf16.mxu1 %v15101_v8  ;;  %5954 = vmatprep.subr.bf16.mxu0 %v15104_v62  ;;  %v15150_v39 = vld [vmem:[#allocation12 + $0x1e8] ss:$24 sps:$4 sm:$0xff]   ;;  %v15155_v8 = vld [vmem:[#allocation12 + $0x1b4] ss:$24 sps:$4 sm:$0xff]  }
0x12a5   :  { %v15153_v62 = vld [vmem:[#allocation12 + $0x1b0] ss:$24 sps:$4 sm:$0xff]  }
0x12a7   :  { %5914 = vmatpush1.bf16.msra.mxu1 %v15099_v43  ;;  %5955 = vmatpush1.bf16.msra.mxu0 %v15102_v4  ;;  %v15158_v43 = vld [vmem:[#allocation12 + $0x1bc] ss:$24 sps:$4 sm:$0xff]   ;;  %v15156_v4 = vld [vmem:[#allocation12 + $0x1b8] ss:$24 sps:$4 sm:$0xff]  }
0x12a8   :  { %5915 = vmatprep.subr.bf16.mxu1 %v15107_v13  ;;  %5956 = vmatprep.subr.bf16.mxu0 %v15110_v44  ;;  %v15161_v13 = vld [vmem:[#allocation12 + $0x184] ss:$24 sps:$4 sm:$0xff]   ;;  %v15159_v44 = vld [vmem:[#allocation12 + $0x180] ss:$24 sps:$4 sm:$0xff]  }
0x12ab   :  { %5916 = vmatpush1.bf16.msra.mxu1 %v15105_v35  ;;  %5957 = vmatpush1.bf16.msra.mxu0 %v15108_v36  ;;  %v15164_v35 = vld [vmem:[#allocation12 + $0x18c] ss:$24 sps:$4 sm:$0xff]   ;;  %v15162_v36 = vld [vmem:[#allocation12 + $0x188] ss:$24 sps:$4 sm:$0xff]  }
0x12ac   :  { %5917 = vmatprep.subr.bf16.mxu1 %v15113_v30  ;;  %5958 = vmatprep.subr.bf16.mxu0 %v15116_v61  ;;  %v15167_v30 = vld [vmem:[#allocation12 + $0x164] ss:$24 sps:$4 sm:$0xff]  }
0x12af   :  { %5918 = vmatpush1.bf16.msra.mxu1 %v15111_v34  ;;  %5959 = vmatpush1.bf16.msra.mxu0 %v15114_v38 }
0x12b0   :  { %5919 = vmatprep.subr.bf16.mxu1 %v15119_v21  ;;  %5960 = vmatprep.subr.bf16.mxu0 %v15122_v19 }
0x12b3   :  { %5920 = vmatpush2.bf16.msra.mxu1 %v15117_v49  ;;  %5961 = vmatpush2.bf16.msra.mxu0 %v15120_v53 }
0x12b4   :  { %5921 = vmatprep.subr.bf16.mxu1 %v15125_v26  ;;  %5962 = vmatprep.subr.bf16.mxu0 %v15128_v54 }
0x12b7   :  { %5922 = vmatpush2.bf16.msra.mxu1 %v15123_v28  ;;  %5963 = vmatpush2.bf16.msra.mxu0 %v15126_v33 }
0x12b8   :  { %5923 = vmatprep.subr.bf16.mxu1 %v15131_v18  ;;  %5964 = vmatprep.subr.bf16.mxu0 %v15134_v59 }
0x12bb   :  { %5924 = vmatpush2.bf16.msra.mxu1 %v15129_v60  ;;  %5965 = vmatpush2.bf16.msra.mxu0 %v15132_v63 }
0x12bc   :  { %5925 = vmatprep.subr.bf16.mxu1 %v15137_v52  ;;  %5966 = vmatprep.subr.bf16.mxu0 %v15140_v6 }
0x12bf   :  { %5926 = vmatpush2.bf16.msra.mxu1 %v15135_v7  ;;  %5967 = vmatpush2.bf16.msra.mxu0 %v15138_v10 }
0x12c0   :  { %5927 = vmatprep.subr.bf16.mxu1 %v15143_v3  ;;  %5968 = vmatprep.subr.bf16.mxu0 %v15146_v12 }
0x12c3   :  { %5928 = vmatpush2.bf16.msra.mxu1 %v15141_v11  ;;  %5969 = vmatpush2.bf16.msra.mxu0 %v15144_v14 }
0x12c4   :  { %5929 = vmatprep.subr.bf16.mxu1 %v15149_v15  ;;  %5970 = vmatprep.subr.bf16.mxu0 %v15152_v48 }
0x12c7   :  { %5930 = vmatpush2.bf16.msra.mxu1 %v15147_v16  ;;  %5971 = vmatpush2.bf16.msra.mxu0 %v15150_v39 }
0x12c8   :  { %5931 = vmatprep.subr.bf16.mxu1 %v15155_v8  ;;  %5972 = vmatprep.subr.bf16.mxu0 %v15158_v43 }
0x12cb   :  { %5932 = vmatpush2.bf16.msra.mxu1 %v15153_v62  ;;  %5973 = vmatpush2.bf16.msra.mxu0 %v15156_v4 }
0x12cc   :  { %5933 = vmatprep.subr.bf16.mxu1 %v15161_v13  ;;  %5974 = vmatprep.subr.bf16.mxu0 %v15164_v35  ;;  %v15165_v13 = vld [vmem:[#allocation12 + $0x160] ss:$24 sps:$4 sm:$0xff]  }
0x12cf   :  { %5934 = vmatpush2.bf16.msra.mxu1 %v15159_v44  ;;  %5975 = vmatpush2.bf16.msra.mxu0 %v15162_v36  ;;  %v15170_v44 = vld [vmem:[#allocation12 + $0x134] ss:$24 sps:$4 sm:$0xff]   ;;  %v15173_v36 = vld [vmem:[#allocation12 + $0x104] ss:$24 sps:$4 sm:$0xff]  }
0x12d0   :  { %5985 = vmatprep.subr.bf16.mxu1 %v15167_v30  ;;  %v15171_v30 = vld [vmem:[#allocation12 + $0x100] ss:$24 sps:$4 sm:$0xff]  }
0x1352   :  { %v5249_v34 = vpop.f32.mrf.mxu1  ;;  %v5290_v61 = vpop.f32.mrf.mxu0 }
0x1353   :  { %v5250_v38 = vadd.f32 %v5249_v34, %v17965_v31  ;;  %v5291_v52 = vadd.f32 %v5290_v61, %v17967_v23  ;;  %v15176_v34 = vld [vmem:[#allocation12 + $0xd4] ss:$24 sps:$4 sm:$0xff]   ;;  %v15174_v61 = vld [vmem:[#allocation12 + $0xd0] ss:$24 sps:$4 sm:$0xff]  }
0x1354   :  { %v5251_v49 = vpop.f32.mrf.mxu1  ;;  %v5292_v21 = vpop.f32.mrf.mxu0 }
0x1355   :  { %v5297_v53 = vadd.f32 %v5250_v38, %v17931_v56  ;;  %v5252_v19 = vadd.f32 %v5251_v49, %v17969_v57  ;;  %v5293_v63 = vadd.f32 %v5292_v21, %v17971_v58  ;;  %v5299_v57 = vadd.f32 %v5291_v52, %v17950_v24  ;;  %v15179_v38 = vld [vmem:[#allocation12 + $0xa4] ss:$24 sps:$4 sm:$0xff]   ;;  %v15177_v49 = vld [vmem:[#allocation12 + $0xa0] ss:$24 sps:$4 sm:$0xff]   ;;  %v15182_v21 = vld [vmem:[#allocation12 + $0x74] ss:$24 sps:$4 sm:$0xff]  }
0x1356   :  { %v5253_v26 = vpop.f32.mrf.mxu1  ;;  %v5294_v54 = vpop.f32.mrf.mxu0  ;;  %v15200_v52 = vld [vmem:[#allocation12 + $0x254] ss:$24 sps:$4 sm:$0xff]  }
0x1357   :  { %v13557_v28 = vmul.f32 -1.442695, %v5297_v53  ;;  %v5298_v33 = vadd.f32 %v5252_v19, %v17936_v46  ;;  %v5300_v31 = vadd.f32 %v5293_v63, %v17944_v20  ;;  %v15180_v53 = vld [vmem:[#allocation12 + $0x70] ss:$24 sps:$4 sm:$0xff]   ;;  %v15185_v19 = vld [vmem:[#allocation12 + $0x44] ss:$24 sps:$4 sm:$0xff]  }
0x1358   :  { %v5254_v18 = vpop.f32.mrf.mxu1  ;;  %v5295_v59 = vpop.f32.mrf.mxu0  ;;  %v15183_v26 = vld [vmem:[#allocation12 + $0x40] ss:$24 sps:$4 sm:$0xff]   ;;  %v15188_v54 = vld [vmem:[#allocation12 + $0x14] ss:$24 sps:$4 sm:$0xff]   ;;  %v15197_v63 = vld [vmem:[#allocation12 + $0x284] ss:$24 sps:$4 sm:$0xff]  }
0x1359   :  { %16517 = vpow2.f32 %v13557_v28  ;;  %v13558_v60 = vmul.f32 -1.442695, %v5298_v33  ;;  %v13559_v6 = vmul.f32 -1.442695, %v5300_v31  ;;  %v15186_v28 = vld [vmem:[#allocation12 + $0x10] ss:$24 sps:$4 sm:$0xff]  }
0x135a   :  { %v15191_v33 = vld [vmem:[#allocation12 + $0x2e4] ss:$24 sps:$4 sm:$0xff]   ;;  %v15189_v18 = vld [vmem:[#allocation12 + $0x2e0] ss:$24 sps:$4 sm:$0xff]   ;;  %v15194_v59 = vld [vmem:[#allocation12 + $0x2b4] ss:$24 sps:$4 sm:$0xff]  }
0x135b   :  { %16519 = vpow2.f32 %v13558_v60  ;;  %v15192_v60 = vld [vmem:[#allocation12 + $0x2b0] ss:$24 sps:$4 sm:$0xff]   ;;  %v15195_v31 = vld [vmem:[#allocation12 + $0x280] ss:$24 sps:$4 sm:$0xff]  }
0x135c   :  { %16521 = vpow2.f32 %v13559_v6  ;;  %v15198_v6 = vld [vmem:[#allocation12 + $0x250] ss:$24 sps:$4 sm:$0xff]  }
0x1366   :  { %v16518_v7 = vpop.eup %16517 }
0x1367   :  { %v5304_v10 = vadd.f32 1.0, %v16518_v7  ;;  %v15203_v7 = vld [vmem:[#allocation12 + $0x224] ss:$24 sps:$4 sm:$0xff]  }
0x1368   :  { %v16520_v3 = vpop.eup %16519 }
0x1369   :  { %16523 = vrcp.f32 %v5304_v10  ;;  %v5310_v11 = vadd.f32 1.0, %v16520_v3  ;;  %v16522_v12 = vpop.eup %16521  ;;  %v15206_v10 = vld [vmem:[#allocation12 + $0x1f4] ss:$24 sps:$4 sm:$0xff]   ;;  %v15204_v3 = vld [vmem:[#allocation12 + $0x1f0] ss:$24 sps:$4 sm:$0xff]  }
0x136a   :  { %16525 = vtanh.f32 %v5299_v57  ;;  %v5317_v58 = vadd.f32 1.0, %v16522_v12  ;;  %v15201_v57 = vld [vmem:[#allocation12 + $0x220] ss:$24 sps:$4 sm:$0xff]  }
0x136b   :  { %16527 = vrcp.f32 %v5310_v11  ;;  %v15209_v11 = vld [vmem:[#allocation12 + $0x1c4] ss:$24 sps:$4 sm:$0xff]   ;;  %v15207_v12 = vld [vmem:[#allocation12 + $0x1c0] ss:$24 sps:$4 sm:$0xff]  }
0x136c   :  { %16529 = vrcp.f32 %v5317_v58 }
0x1376   :  { %v16524_v14 = vpop.eup %16523 }
0x1377   :  { %v16526_v15 = vpop.eup %16525 }
0x1378   :  { %v16528_v16 = vpop.eup %16527  ;;  %v5321_v39 = vmul.f32 %v16526_v15, %v16524_v14  ;;  %v15212_v14 = vld [vmem:[#allocation12 + $0x194] ss:$24 sps:$4 sm:$0xff]   ;;  %v15210_v15 = vld [vmem:[#allocation12 + $0x190] ss:$24 sps:$4 sm:$0xff]  }
0x1379   :  { %v5320_v48 = vmul.f32 %v16528_v16, %v17953_v5  ;;  %v16530_v43 = vpop.eup %16529  ;;  %v15168_v5 = vld [vmem:[#allocation12 + $0x130] ss:$24 sps:$4 sm:$0xff]  }
0x137b   :  { %v18071_v23 = vadd.f32 %v5321_v39, %v5320_v48 }
0x137d   :  { %16531 = vtanh.f32 %v18071_v23  ;;  %v5326_v8 = vpack.c.bf16 %v18071_v23, %v18071_v23 }
0x137f   :  { %5935 = vmatprep.mubr.bf16.mxu1 %v5326_v8  ;;  %5976 = vmatprep.mubr.bf16.mxu0 %v5326_v8 }
0x138a   :  { %v16532_v62 = vpop.eup %16531 }
0x138b   :  { %v5324_v4 = vmul.f32 %v16532_v62, %v16530_v43 }
0x138d   :  { %v18076_v35 = vpack.c.bf16 %v5324_v4, %v5324_v4 }
0x138f   :  { %5936 = vmatmul.mubr.bf16.vlgmr.msra.gmra.mxu1 %v18076_v35  ;;  %5977 = vmatmul.mubr.bf16.vlgmr.msra.gmra.mxu0 %v18076_v35 }
0x1390   :  { %5986 = vmatpush1.bf16.msra.mxu1 %v15165_v13  ;;  %6017 = vmatprep.mubr.bf16.mxu1 %v5326_v8 }
0x1391   :  { %5987 = vmatprep.subr.bf16.mxu1 %v15170_v44  ;;  %6179 = vmatprep.mubr.bf16.mxu0 %v18975_v40 }
0x1394   :  { %5988 = vmatpush1.bf16.msra.mxu1 %v15168_v5 }
0x1395   :  { %5989 = vmatprep.subr.bf16.mxu1 %v15173_v36 }
0x1398   :  { %5990 = vmatpush1.bf16.msra.mxu1 %v15171_v30 }
0x1399   :  { %5991 = vmatprep.subr.bf16.mxu1 %v15176_v34 }
0x139c   :  { %5992 = vmatpush1.bf16.msra.mxu1 %v15174_v61 }
0x139d   :  { %5993 = vmatprep.subr.bf16.mxu1 %v15179_v38 }
0x13a0   :  { %5994 = vmatpush1.bf16.msra.mxu1 %v15177_v49  ;;  %v15213_v49 = vld [vmem:[%s18908_s5 + $0x70] ss:$8 sps:$4 sm:$0xff]  }
0x13a1   :  { %5995 = vmatprep.subr.bf16.mxu1 %v15182_v21  ;;  %v15218_v21 = vld [vmem:[%s18908_s5 + $0x64] ss:$8 sps:$4 sm:$0xff]  }
0x13a4   :  { %5996 = vmatpush1.bf16.msra.mxu1 %v15180_v53  ;;  %v15216_v53 = vld [vmem:[%s18908_s5 + $0x60] ss:$8 sps:$4 sm:$0xff]  }
0x13a5   :  { %5997 = vmatprep.subr.bf16.mxu1 %v15185_v19  ;;  %v15221_v19 = vld [vmem:[%s18908_s5 + $0x54] ss:$8 sps:$4 sm:$0xff]  }
0x13a8   :  { %5998 = vmatpush1.bf16.msra.mxu1 %v15183_v26  ;;  %v15219_v26 = vld [vmem:[%s18908_s5 + $0x50] ss:$8 sps:$4 sm:$0xff]  }
0x13a9   :  { %5999 = vmatprep.subr.bf16.mxu1 %v15188_v54  ;;  %v15224_v54 = vld [vmem:[%s18908_s5 + $0x44] ss:$8 sps:$4 sm:$0xff]  }
0x13ac   :  { %6000 = vmatpush1.bf16.msra.mxu1 %v15186_v28  ;;  %v15222_v28 = vld [vmem:[%s18908_s5 + $0x40] ss:$8 sps:$4 sm:$0xff]  }
0x13ad   :  { %6001 = vmatprep.subr.bf16.mxu1 %v15191_v33  ;;  %v15227_v33 = vld [vmem:[%s18908_s5 + $0x34] ss:$8 sps:$4 sm:$0xff]  }
0x13b0   :  { %6002 = vmatpush2.bf16.msra.mxu1 %v15189_v18  ;;  %v15225_v18 = vld [vmem:[%s18908_s5 + $0x30] ss:$8 sps:$4 sm:$0xff]  }
0x13b1   :  { %6003 = vmatprep.subr.bf16.mxu1 %v15194_v59  ;;  %v15230_v59 = vld [vmem:[%s18908_s5 + $0x24] ss:$8 sps:$4 sm:$0xff]  }
0x13b4   :  { %6004 = vmatpush2.bf16.msra.mxu1 %v15192_v60  ;;  %v15228_v60 = vld [vmem:[%s18908_s5 + $0x20] ss:$8 sps:$4 sm:$0xff]  }
0x13b5   :  { %6005 = vmatprep.subr.bf16.mxu1 %v15197_v63  ;;  %v15233_v63 = vld [vmem:[%s18908_s5 + $0x14] ss:$8 sps:$4 sm:$0xff]  }
0x13b8   :  { %6006 = vmatpush2.bf16.msra.mxu1 %v15195_v31  ;;  %v15231_v31 = vld [vmem:[%s18908_s5 + $0x10] ss:$8 sps:$4 sm:$0xff]  }
0x13b9   :  { %6007 = vmatprep.subr.bf16.mxu1 %v15200_v52 }
0x13bc   :  { %6008 = vmatpush2.bf16.msra.mxu1 %v15198_v6 }
0x13bd   :  { %6009 = vmatprep.subr.bf16.mxu1 %v15203_v7 }
0x13c0   :  { %6010 = vmatpush2.bf16.msra.mxu1 %v15201_v57 }
0x13c1   :  { %6011 = vmatprep.subr.bf16.mxu1 %v15206_v10  ;;  %v15236_v10 = vld [vmem:[%s18908_s5 + $0x4] ss:$8 sps:$4 sm:$0xff]  }
0x13c4   :  { %6012 = vmatpush2.bf16.msra.mxu1 %v15204_v3  ;;  %v15234_v3 = vld [vmem:[%s18908_s5] ss:$8 sps:$4 sm:$0xff]  }
0x13c5   :  { %6013 = vmatprep.subr.bf16.mxu1 %v15209_v11 }
0x13c8   :  { %6014 = vmatpush2.bf16.msra.mxu1 %v15207_v12 }
0x13c9   :  { %6015 = vmatprep.subr.bf16.mxu1 %v15212_v14 }
0x13cc   :  { %6016 = vmatpush2.bf16.msra.mxu1 %v15210_v15 }
0x13cf   :  { %6018 = vmatmul.mubr.bf16.vlgmr.msra.gmra.mxu1 %v18076_v35 }
0x13d0   :  { %6523 = vmatprep.mubr.bf16.mxu1 %v18975_v40 }
0x144f   :  { %v18083_v16 = vpop.f32.mrf.mxu1  ;;  %v18085_v58 = vpop.f32.mrf.mxu0 }
0x1451   :  { %v18087_v48 = vpop.f32.mrf.mxu1  ;;  %v18089_v39 = vpop.f32.mrf.mxu0 }
0x1453   :  { %v5941_v8 = vpop.f32.mrf.mxu1  ;;  %v5982_v43 = vpop.f32.mrf.mxu0 }
0x1455   :  { %v5942_v62 = vpop.f32.mrf.mxu1  ;;  %v5983_v4 = vpop.f32.mrf.mxu0 }
0x148f   :  { %v6019_v13 = vpop.f32.mrf.mxu1 }
0x1490   :  { %v6026_v44 = vadd.f32 %v17976_v1, %v6019_v13  ;;  %v15215_v1 = vld [vmem:[%s18908_s5 + $0x74] ss:$8 sps:$4 sm:$0xff]   ;;  %v18149_v13 = vld [vmem:[%s18909_s6] ss:$0 sm:$0xff] }
0x1491   :  { %v6021_v5 = vpop.f32.mrf.mxu1  ;;  %6147 = vmatprep.subr.bf16.mxu0 %v15215_v1 }
0x1492   :  { %6028 = vst [vmem:[#allocation13 + $0x8] sm:$0xff] %v6026_v44  ;;  %6029 = vmax.xlane.f32.xlu1 %v6026_v44  ;;  %6148 = vmatpush1.bf16.msra.mxu0 %v15213_v49 }
0x1493   :  { %v6023_v35 = vpop.f32.mrf.mxu1  ;;  %6149 = vmatprep.subr.bf16.mxu0 %v15218_v21  ;;  %v15237_v21 = vld [vmem:[#allocation10 + $0xe0] ss:$16 sps:$4 sm:$0xff]  }
0x1495   :  { %v6024_v36 = vpop.f32.mrf.mxu1 }
0x1496   :  { %6150 = vmatpush1.bf16.msra.mxu0 %v15216_v53  ;;  %v15239_v53 = vld [vmem:[#allocation10 + $0xe4] ss:$16 sps:$4 sm:$0xff]  }
0x1497   :  { %6151 = vmatprep.subr.bf16.mxu0 %v15221_v19  ;;  %v15240_v19 = vld [vmem:[#allocation10 + $0xe8] ss:$16 sps:$4 sm:$0xff]  }
0x149a   :  { %6152 = vmatpush1.bf16.msra.mxu0 %v15219_v26  ;;  %v15242_v26 = vld [vmem:[#allocation10 + $0xec] ss:$16 sps:$4 sm:$0xff]  }
0x149b   :  { %6153 = vmatprep.subr.bf16.mxu0 %v15224_v54  ;;  %6491 = vmatprep.subr.bf16.mxu1 %v15242_v26  ;;  %v15245_v54 = vld [vmem:[#allocation10 + $0xc4] ss:$16 sps:$4 sm:$0xff]  }
0x149c   :  { %6492 = vmatpush1.bf16.msra.mxu1 %v15240_v19 }
0x149e   :  { %6154 = vmatpush1.bf16.msra.mxu0 %v15222_v28  ;;  %v15248_v28 = vld [vmem:[#allocation10 + $0xcc] ss:$16 sps:$4 sm:$0xff]  }
0x149f   :  { %6155 = vmatprep.subr.bf16.mxu0 %v15227_v33  ;;  %v15243_v33 = vld [vmem:[#allocation10 + $0xc0] ss:$16 sps:$4 sm:$0xff]   ;;  %6493 = vmatprep.subr.bf16.mxu1 %v15248_v28 }
0x14a2   :  { %6156 = vmatpush1.bf16.msra.mxu0 %v15225_v18  ;;  %v15246_v18 = vld [vmem:[#allocation10 + $0xc8] ss:$16 sps:$4 sm:$0xff]  }
0x14a3   :  { %6157 = vmatprep.subr.bf16.mxu0 %v15230_v59  ;;  %6494 = vmatpush1.bf16.msra.mxu1 %v15246_v18  ;;  %v15251_v59 = vld [vmem:[#allocation10 + $0xa4] ss:$16 sps:$4 sm:$0xff]  }
0x14a6   :  { %6158 = vmatpush1.bf16.msra.mxu0 %v15228_v60  ;;  %v15254_v60 = vld [vmem:[#allocation10 + $0xac] ss:$16 sps:$4 sm:$0xff]  }
0x14a7   :  { %6159 = vmatprep.subr.bf16.mxu0 %v15233_v63  ;;  %v15249_v63 = vld [vmem:[#allocation10 + $0xa0] ss:$16 sps:$4 sm:$0xff]   ;;  %6495 = vmatprep.subr.bf16.mxu1 %v15254_v60 }
0x14aa   :  { %6160 = vmatpush1.bf16.msra.mxu0 %v15231_v31  ;;  %v15252_v31 = vld [vmem:[#allocation10 + $0xa8] ss:$16 sps:$4 sm:$0xff]  }
0x14ab   :  { %6161 = vmatprep.subr.bf16.mxu0 %v15236_v10  ;;  %6496 = vmatpush1.bf16.msra.mxu1 %v15252_v31  ;;  %v15263_v10 = vld [vmem:[#allocation10 + $0x64] ss:$16 sps:$4 sm:$0xff]  }
0x14ae   :  { %6162 = vmatpush1.bf16.msra.mxu0 %v15234_v3  ;;  %v15266_v3 = vld [vmem:[#allocation10 + $0x6c] ss:$16 sps:$4 sm:$0xff]  }
0x14af   :  { %6450 = vmatprep.subr.bf16.mxu0 %v15239_v53 }
0x151b   :  { %v6030_v30 = vpop.xlane.xlu1 %6029 }
0x151c   :  { %vm6031_vm8 = vcmp.ge.f32.partialorder %v6026_v44, %v6030_v30 }
0x151d   :  { %v6032_v34 = vsel %vm6031_vm8, %v19001_v51, 128 }
0x151e   :  { %v6034_v61 = vshra.s32 %v6032_v34, 16  ;;  %v6033_v52 = vand.u32 65535, %v6032_v34 }
0x1520   :  { %v6036_v38 = vcvt.s32.f32 %v6034_v61  ;;  %v6035_v7 = vcvt.s32.f32 %v6033_v52  ;;  %v15257_v52 = vld [vmem:[#allocation10 + $0x84] ss:$16 sps:$4 sm:$0xff]  }
0x1522   :  { %6037 = vmin.xlane.f32.xlu0 %v6036_v38 }
0x15ab   :  { %v6038_v6 = vpop.xlane.xlu0 %6037 }
0x15ac   :  { %vm6039_vm9 = vcmp.eq.f32.partialorder %v6036_v38, %v6038_v6  ;;  %v6044_v11 = vcvt.f32.s32 %v6038_v6  ;;  %v15260_v6 = vld [vmem:[#allocation10 + $0x8c] ss:$16 sps:$4 sm:$0xff]  }
0x15ad   :  { %v6040_v57 = vsel %vm6039_vm9, %v6035_v7, inf  ;;  %v15255_v7 = vld [vmem:[#allocation10 + $0x80] ss:$16 sps:$4 sm:$0xff]   ;;  %6497 = vmatprep.subr.bf16.mxu1 %v15260_v6 }
0x15ae   :  { %6041 = vmin.xlane.f32.xlu0 %v6040_v57  ;;  %v6045_v14 = vshll.u32 %v6044_v11, 16  ;;  %v15258_v57 = vld [vmem:[#allocation10 + $0x88] ss:$16 sps:$4 sm:$0xff]   ;;  %v15261_v11 = vld [vmem:[#allocation10 + $0x60] ss:$16 sps:$4 sm:$0xff]  }
0x15af   :  { %6498 = vmatpush1.bf16.msra.mxu1 %v15258_v57 }
0x15b0   :  { %6499 = vmatprep.subr.bf16.mxu1 %v15266_v3 }
0x1637   :  { %v6042_v12 = vpop.xlane.xlu0 %6041 }
0x1638   :  { %v6043_v15 = vcvt.f32.s32 %v6042_v12  ;;  %v15264_v12 = vld [vmem:[#allocation10 + $0x68] ss:$16 sps:$4 sm:$0xff]  }
0x1639   :  { %6500 = vmatpush1.bf16.msra.mxu1 %v15264_v12 }
0x163a   :  { %v6046_v8 = vadd.s32 %v6045_v14, %v6043_v15  ;;  %v15267_v14 = vld [vmem:[#allocation10 + $0x40] ss:$16 sps:$4 sm:$0xff]   ;;  %v15269_v15 = vld [vmem:[#allocation10 + $0x44] ss:$16 sps:$4 sm:$0xff]  }
0x163c   :  { %vm6047_vm10 = vcmp.eq.s32.totalorder %v19001_v51, %v6046_v8  ;;  %v15270_v8 = vld [vmem:[#allocation10 + $0x48] ss:$16 sps:$4 sm:$0xff]  }
0x163d   :  { %vm13673_vm11 = vmpackc.low %vm6047_vm10, %vm6047_vm10 }
0x163e   :  { %13674 = vmatmul.mubr.msk.bf16.vlgmr.msra.gmra.mxu0 %vm13673_vm11, %v19002_v47 }
0x163f   :  { %6482 = vmatprep.mubr.bf16.mxu0 %v18975_v40  ;;  %6451 = vmatpush1.bf16.msra.mxu0 %v15237_v21 }
0x1640   :  { %6452 = vmatprep.subr.bf16.mxu0 %v15245_v54  ;;  %v18173_v54 = vld [vmem:[%s18911_s8] ss:$0 sm:$0xff] }
0x1643   :  { %6453 = vmatpush1.bf16.msra.mxu0 %v15243_v33 }
0x1644   :  { %6454 = vmatprep.subr.bf16.mxu0 %v15251_v59 }
0x1647   :  { %6455 = vmatpush1.bf16.msra.mxu0 %v15249_v63 }
0x1648   :  { %6456 = vmatprep.subr.bf16.mxu0 %v15257_v52 }
0x164b   :  { %6457 = vmatpush1.bf16.msra.mxu0 %v15255_v7 }
0x164c   :  { %6458 = vmatprep.subr.bf16.mxu0 %v15263_v10 }
0x164f   :  { %6459 = vmatpush1.bf16.msra.mxu0 %v15261_v11 }
0x1650   :  { %6460 = vmatprep.subr.bf16.mxu0 %v15269_v15 }
0x1653   :  { %6461 = vmatpush1.bf16.msra.mxu0 %v15267_v14 }
0x16fe   :  { %v6181_v43 = vpop.f32.mrf.mxu0 }
0x16ff   :  { %v6188_v62 = vadd.f32 %v6181_v43, %v6021_v5  ;;  %v15272_v43 = vld [vmem:[#allocation10 + $0x4c] ss:$16 sps:$4 sm:$0xff]  }
0x1700   :  { %v18144_v4 = vpop.f32.mrf.mxu0  ;;  %6501 = vmatprep.subr.bf16.mxu1 %v15272_v43 }
0x1701   :  { %v6189_v44 = vadd.f32 %v18149_v13, %v6188_v62  ;;  %v15275_v62 = vld [vmem:[#allocation10 + $0x24] ss:$16 sps:$4 sm:$0xff]   ;;  %6502 = vmatpush1.bf16.msra.mxu1 %v15270_v8 }
0x1702   :  { %v6185_v35 = vpop.f32.mrf.mxu0  ;;  %6462 = vmatprep.subr.bf16.mxu0 %v15275_v62  ;;  %v15285_v62 = vld [vmem:[#allocation12 + $0x150] ss:$24 sps:$4 sm:$0xff]  }
0x1703   :  { %6190 = vmax.xlane.f32.xlu1 %v6189_v44  ;;  %v15273_v35 = vld [vmem:[#allocation10 + $0x20] ss:$16 sps:$4 sm:$0xff]  }
0x1704   :  { %v6186_v36 = vpop.f32.mrf.mxu0  ;;  %6463 = vmatpush1.bf16.msra.mxu0 %v15273_v35 }
0x1705   :  { %v15276_v36 = vld [vmem:[#allocation10 + $0x28] ss:$16 sps:$4 sm:$0xff]  }
0x178c   :  { %v6191_v30 = vpop.xlane.xlu1 %6190 }
0x178d   :  { %v6192_v34 = vsub.f32 %v6189_v44, %v6191_v30  ;;  %v15278_v44 = vld [vmem:[#allocation10 + $0x2c] ss:$16 sps:$4 sm:$0xff]   ;;  %v15281_v30 = vld [vmem:[#allocation10 + $0x4] ss:$16 sps:$4 sm:$0xff]  }
0x178e   :  { %6503 = vmatprep.subr.bf16.mxu1 %v15278_v44  ;;  %6464 = vmatprep.subr.bf16.mxu0 %v15281_v30  ;;  %v15288_v44 = vld [vmem:[#allocation12 + $0x158] ss:$24 sps:$4 sm:$0xff]  }
0x178f   :  { %v6193_v61 = vmul.f32 1.442695, %v6192_v34  ;;  %v15284_v34 = vld [vmem:[#allocation10 + $0xc] ss:$16 sps:$4 sm:$0xff]   ;;  %6504 = vmatpush1.bf16.msra.mxu1 %v15276_v36  ;;  %v15291_v30 = vld [vmem:[#allocation12 + $0x120] ss:$24 sps:$4 sm:$0xff]  }
0x1790   :  { %6505 = vmatprep.subr.bf16.mxu1 %v15284_v34  ;;  %v15293_v36 = vld [vmem:[#allocation12 + $0x124] ss:$24 sps:$4 sm:$0xff]  }
0x1791   :  { %16533 = vpow2.f32 %v6193_v61  ;;  %v15279_v61 = vld [vmem:[#allocation10] ss:$16 sps:$4 sm:$0xff]   ;;  %v15296_v34 = vld [vmem:[#allocation12 + $0x12c] ss:$24 sps:$4 sm:$0xff]  }
0x1792   :  { %6465 = vmatpush1.bf16.msra.mxu0 %v15279_v61  ;;  %v15294_v61 = vld [vmem:[#allocation12 + $0x128] ss:$24 sps:$4 sm:$0xff]  }
0x179e   :  { %v16534_v38 = vpop.eup %16533 }
0x179f   :  { %6195 = vadd.xlane.f32.xlu0 %v16534_v38 }
0x1828   :  { %v6196_v49 = vpop.xlane.xlu0 %6195 }
0x1829   :  { %16535 = vrcp.f32 %v6196_v49  ;;  %v15287_v49 = vld [vmem:[#allocation12 + $0x154] ss:$24 sps:$4 sm:$0xff]  }
0x182a   :  { %7138 = vmatprep.subr.bf16.mxu0 %v15287_v49  ;;  %v15297_v49 = vld [vmem:[#allocation12 + $0xf0] ss:$24 sps:$4 sm:$0xff]  }
0x1836   :  { %v16536_v5 = vpop.eup %16535 }
0x1837   :  { %v18152_v1 = vmul.f32 %v16536_v5, %v16534_v38  ;;  %v15282_v38 = vld [vmem:[#allocation10 + $0x8] ss:$16 sps:$4 sm:$0xff]   ;;  %v15290_v5 = vld [vmem:[#allocation12 + $0x15c] ss:$24 sps:$4 sm:$0xff]  }
0x1838   :  { %6506 = vmatpush1.bf16.msra.mxu1 %v15282_v38  ;;  %v15299_v38 = vld [vmem:[#allocation12 + $0xf4] ss:$24 sps:$4 sm:$0xff]  }
0x1839   :  { %6210 = vperm.xlu0 %14617, %v18152_v1   ;;  %6203 = vperm.xlu1 %14616, %v18152_v1  }
0x183a   :  { %7179 = vmatprep.subr.bf16.mxu1 %v15290_v5  ;;  %v15302_v5 = vld [vmem:[#allocation12 + $0xfc] ss:$24 sps:$4 sm:$0xff]  }
0x183d   :  { %14618 = vset.pattern.permute.xlu1 %v19016_v29 }
0x183e   :  { %6217 = vperm.xlu1 %14618, %v18152_v1  }
0x1842   :  { %14619 = vset.pattern.permute.xlu1 %v19018_v9 }
0x1843   :  { %6224 = vperm.xlu1 %14619, %v18152_v1  }
0x1847   :  { %14620 = vset.pattern.permute.xlu1 %v19019_v55 }
0x1848   :  { %6231 = vperm.xlu1 %14620, %v18152_v1  }
0x184c   :  { %14621 = vset.pattern.permute.xlu1 %v19020_v22 }
0x184d   :  { %6238 = vperm.xlu1 %14621, %v18152_v1  }
0x1851   :  { %14622 = vset.pattern.permute.xlu1 %v19021_v41 }
0x1852   :  { %6245 = vperm.xlu1 %14622, %v18152_v1  }
0x1856   :  { %14623 = vset.pattern.permute.xlu1 %v19022_v2 }
0x1857   :  { %6252 = vperm.xlu1 %14623, %v18152_v1   ;;  %v6199_v1 = vadd.f32 %v18173_v54, %v18144_v4 }
0x185b   :  { %14624 = vset.pattern.permute.xlu1 %v18975_v40 }
0x18b4   :  { %v6204_v21 = vpop.permute.xlu1 %6203  ;;  %v6211_v28 = vpop.permute.xlu0 %6210 }
0x18b5   :  { %v6206_v26 = vmul.f32 %v6204_v21, %v17840_v0  ;;  %v6213_v59 = vmul.f32 %v6211_v28, %v17844_v25  ;;  %v15300_v21 = vld [vmem:[#allocation12 + $0xf8] ss:$24 sps:$4 sm:$0xff]   ;;  %v15311_v28 = vld [vmem:[#allocation12 + $0x94] ss:$24 sps:$4 sm:$0xff]  }
0x18b7   :  { %v6207_v33 = vadd.f32 %v6206_v26, %v6199_v1  ;;  %v15308_v26 = vld [vmem:[#allocation12 + $0xcc] ss:$24 sps:$4 sm:$0xff]   ;;  %v15306_v1 = vld [vmem:[#allocation12 + $0xc8] ss:$24 sps:$4 sm:$0xff]  }
0x18b9   :  { %v6218_v53 = vpop.permute.xlu1 %6217  ;;  %v6214_v60 = vadd.f32 %v6213_v59, %v6207_v33  ;;  %v15309_v33 = vld [vmem:[#allocation12 + $0x90] ss:$24 sps:$4 sm:$0xff]  }
0x18ba   :  { %v6220_v63 = vmul.f32 %v17838_v50, %v6218_v53  ;;  %v15305_v53 = vld [vmem:[#allocation12 + $0xc4] ss:$24 sps:$4 sm:$0xff]   ;;  %v15312_v59 = vld [vmem:[#allocation12 + $0x98] ss:$24 sps:$4 sm:$0xff]  }
0x18bc   :  { %v6221_v6 = vadd.f32 %v6220_v63, %v6214_v60  ;;  %v15317_v60 = vld [vmem:[#allocation12 + $0x64] ss:$24 sps:$4 sm:$0xff]   ;;  %v15315_v63 = vld [vmem:[#allocation12 + $0x60] ss:$24 sps:$4 sm:$0xff]  }
0x18be   :  { %v6225_v19 = vpop.permute.xlu1 %6224 }
0x18bf   :  { %v6227_v52 = vmul.f32 %v17842_v37, %v6225_v19  ;;  %v15303_v19 = vld [vmem:[#allocation12 + $0xc0] ss:$24 sps:$4 sm:$0xff]  }
0x18c1   :  { %v6228_v57 = vadd.f32 %v6227_v52, %v6221_v6  ;;  %v15318_v52 = vld [vmem:[#allocation12 + $0x68] ss:$24 sps:$4 sm:$0xff]   ;;  %v15323_v6 = vld [vmem:[#allocation12 + $0x34] ss:$24 sps:$4 sm:$0xff]  }
0x18c3   :  { %v6232_v18 = vpop.permute.xlu1 %6231 }
0x18c4   :  { %v6234_v7 = vmul.f32 %v6232_v18, %v17850_v32  ;;  %v15314_v18 = vld [vmem:[#allocation12 + $0x9c] ss:$24 sps:$4 sm:$0xff]  }
0x18c6   :  { %v6235_v11 = vadd.f32 %v6234_v7, %v6228_v57  ;;  %v15321_v7 = vld [vmem:[#allocation12 + $0x30] ss:$24 sps:$4 sm:$0xff]   ;;  %v15326_v57 = vld [vmem:[#allocation12 + $0x3c] ss:$24 sps:$4 sm:$0xff]  }
0x18c8   :  { %v6239_v31 = vpop.permute.xlu1 %6238 }
0x18c9   :  { %v6241_v10 = vmul.f32 %v6239_v31, %v17856_v27  ;;  %v15320_v31 = vld [vmem:[#allocation12 + $0x6c] ss:$24 sps:$4 sm:$0xff]  }
0x18cb   :  { %v6242_v12 = vadd.f32 %v6241_v10, %v6235_v11  ;;  %v15324_v10 = vld [vmem:[#allocation12 + $0x38] ss:$24 sps:$4 sm:$0xff]  }
0x18cc   :  { %v15327_v11 = vld [vmem:[#allocation12] ss:$24 sps:$4 sm:$0xff]  }
0x18cd   :  { %v6246_v3 = vpop.permute.xlu1 %6245 }
0x18ce   :  { %v6248_v4 = vmul.f32 %v17846_v45, %v6246_v3  ;;  %v15329_v3 = vld [vmem:[#allocation12 + $0x4] ss:$24 sps:$4 sm:$0xff]  }
0x18d0   :  { %v6249_v15 = vadd.f32 %v6248_v4, %v6242_v12  ;;  %v15332_v4 = vld [vmem:[#allocation12 + $0xc] ss:$24 sps:$4 sm:$0xff]   ;;  %v15330_v12 = vld [vmem:[#allocation12 + $0x8] ss:$24 sps:$4 sm:$0xff]  }
0x18d2   :  { %v6253_v14 = vpop.permute.xlu1 %6252 }
0x18d3   :  { %v6255_v8 = vmul.f32 %v17854_v42, %v6253_v14  ;;  %v15333_v14 = vld [vmem:[#allocation12 + $0x2d0] ss:$24 sps:$4 sm:$0xff]  }
0x18d5   :  { %v6256_v43 = vadd.f32 %v6255_v8, %v6249_v15  ;;  %v15335_v15 = vld [vmem:[#allocation12 + $0x2d4] ss:$24 sps:$4 sm:$0xff]   ;;  %v15336_v8 = vld [vmem:[#allocation12 + $0x2d8] ss:$24 sps:$4 sm:$0xff]  }
0x18d7   :  { %v6257_v35 = vpack.c.bf16 %v6256_v43, %v6256_v43  ;;  %v15338_v43 = vld [vmem:[#allocation12 + $0x2dc] ss:$24 sps:$4 sm:$0xff]  }
0x18d9   :  { %6483 = vmatmul.mubr.bf16.vlgmr.msra.gmra.mxu0 %v6257_v35  ;;  %6524 = vmatmul.mubr.bf16.vlgmr.msra.gmra.mxu1 %v6257_v35  ;;  %v15339_v35 = vld [vmem:[#allocation12 + $0x2a0] ss:$24 sps:$4 sm:$0xff]  }
0x18da   :  { %7139 = vmatpush1.bf16.msra.mxu0 %v15285_v62  ;;  %7180 = vmatpush1.bf16.msra.mxu1 %v15288_v44  ;;  %v15341_v62 = vld [vmem:[#allocation12 + $0x2a4] ss:$24 sps:$4 sm:$0xff]  }
0x18db   :  { %7140 = vmatprep.subr.bf16.mxu0 %v15293_v36  ;;  %7181 = vmatprep.subr.bf16.mxu1 %v15296_v34  ;;  %v15344_v44 = vld [vmem:[#allocation12 + $0x2ac] ss:$24 sps:$4 sm:$0xff]   ;;  %v15342_v36 = vld [vmem:[#allocation12 + $0x2a8] ss:$24 sps:$4 sm:$0xff]   ;;  %v15350_v34 = vld [vmem:[#allocation12 + $0x27c] ss:$24 sps:$4 sm:$0xff]  }
0x18de   :  { %7141 = vmatpush1.bf16.msra.mxu0 %v15291_v30  ;;  %7182 = vmatpush1.bf16.msra.mxu1 %v15294_v61  ;;  %v15347_v30 = vld [vmem:[#allocation12 + $0x274] ss:$24 sps:$4 sm:$0xff]   ;;  %v15345_v61 = vld [vmem:[#allocation12 + $0x270] ss:$24 sps:$4 sm:$0xff]  }
0x18df   :  { %7142 = vmatprep.subr.bf16.mxu0 %v15299_v38  ;;  %7183 = vmatprep.subr.bf16.mxu1 %v15302_v5  ;;  %v15348_v38 = vld [vmem:[#allocation12 + $0x278] ss:$24 sps:$4 sm:$0xff]   ;;  %v15356_v5 = vld [vmem:[#allocation12 + $0x24c] ss:$24 sps:$4 sm:$0xff]  }
0x18e2   :  { %7143 = vmatpush1.bf16.msra.mxu0 %v15297_v49  ;;  %7184 = vmatpush1.bf16.msra.mxu1 %v15300_v21  ;;  %v15353_v49 = vld [vmem:[#allocation12 + $0x244] ss:$24 sps:$4 sm:$0xff]   ;;  %v15351_v21 = vld [vmem:[#allocation12 + $0x240] ss:$24 sps:$4 sm:$0xff]  }
0x18e3   :  { %7144 = vmatprep.subr.bf16.mxu0 %v15305_v53  ;;  %7185 = vmatprep.subr.bf16.mxu1 %v15308_v26  ;;  %v15354_v53 = vld [vmem:[#allocation12 + $0x248] ss:$24 sps:$4 sm:$0xff]  }
0x18e4   :  { %v15357_v26 = vld [vmem:[#allocation12 + $0x210] ss:$24 sps:$4 sm:$0xff]  }
0x18e6   :  { %7145 = vmatpush1.bf16.msra.mxu0 %v15303_v19  ;;  %7186 = vmatpush1.bf16.msra.mxu1 %v15306_v1  ;;  %v15359_v19 = vld [vmem:[#allocation12 + $0x214] ss:$24 sps:$4 sm:$0xff]  }
0x18e7   :  { %7146 = vmatprep.subr.bf16.mxu0 %v15311_v28  ;;  %7187 = vmatprep.subr.bf16.mxu1 %v15314_v18  ;;  %v15362_v1 = vld [vmem:[#allocation12 + $0x21c] ss:$24 sps:$4 sm:$0xff]   ;;  %v15360_v28 = vld [vmem:[#allocation12 + $0x218] ss:$24 sps:$4 sm:$0xff]  }
0x18e8   :  { %v15363_v18 = vld [vmem:[#allocation12 + $0x1e0] ss:$24 sps:$4 sm:$0xff]  }
0x18ea   :  { %7147 = vmatpush1.bf16.msra.mxu0 %v15309_v33  ;;  %7188 = vmatpush1.bf16.msra.mxu1 %v15312_v59  ;;  %v15365_v33 = vld [vmem:[#allocation12 + $0x1e4] ss:$24 sps:$4 sm:$0xff]  }
0x18eb   :  { %7148 = vmatprep.subr.bf16.mxu0 %v15317_v60  ;;  %7189 = vmatprep.subr.bf16.mxu1 %v15320_v31  ;;  %v15368_v59 = vld [vmem:[#allocation12 + $0x1ec] ss:$24 sps:$4 sm:$0xff]   ;;  %v15366_v60 = vld [vmem:[#allocation12 + $0x1e8] ss:$24 sps:$4 sm:$0xff]   ;;  %v15374_v31 = vld [vmem:[#allocation12 + $0x1bc] ss:$24 sps:$4 sm:$0xff]  }
0x18ee   :  { %7149 = vmatpush1.bf16.msra.mxu0 %v15315_v63  ;;  %7190 = vmatpush1.bf16.msra.mxu1 %v15318_v52  ;;  %v15371_v63 = vld [vmem:[#allocation12 + $0x1b4] ss:$24 sps:$4 sm:$0xff]   ;;  %v15369_v52 = vld [vmem:[#allocation12 + $0x1b0] ss:$24 sps:$4 sm:$0xff]  }
0x18ef   :  { %7150 = vmatprep.subr.bf16.mxu0 %v15323_v6  ;;  %7191 = vmatprep.subr.bf16.mxu1 %v15326_v57  ;;  %v15372_v6 = vld [vmem:[#allocation12 + $0x1b8] ss:$24 sps:$4 sm:$0xff]   ;;  %v15380_v57 = vld [vmem:[#allocation12 + $0x18c] ss:$24 sps:$4 sm:$0xff]  }
0x18f2   :  { %7151 = vmatpush1.bf16.msra.mxu0 %v15321_v7  ;;  %7192 = vmatpush1.bf16.msra.mxu1 %v15324_v10  ;;  %v15377_v7 = vld [vmem:[#allocation12 + $0x184] ss:$24 sps:$4 sm:$0xff]   ;;  %v15375_v10 = vld [vmem:[#allocation12 + $0x180] ss:$24 sps:$4 sm:$0xff]  }
0x18f3   :  { %7152 = vmatprep.subr.bf16.mxu0 %v15329_v3  ;;  %7193 = vmatprep.subr.bf16.mxu1 %v15332_v4  ;;  %v15378_v3 = vld [vmem:[#allocation12 + $0x188] ss:$24 sps:$4 sm:$0xff]  }
0x18f6   :  { %7153 = vmatpush1.bf16.msra.mxu0 %v15327_v11  ;;  %7194 = vmatpush1.bf16.msra.mxu1 %v15330_v12  ;;  %v15383_v11 = vld [vmem:[#allocation12 + $0x164] ss:$24 sps:$4 sm:$0xff]  }
0x18f7   :  { %7154 = vmatprep.subr.bf16.mxu0 %v15335_v15  ;;  %7195 = vmatprep.subr.bf16.mxu1 %v15338_v43 }
0x18fa   :  { %7155 = vmatpush2.bf16.msra.mxu0 %v15333_v14  ;;  %7196 = vmatpush2.bf16.msra.mxu1 %v15336_v8 }
0x18fb   :  { %7156 = vmatprep.subr.bf16.mxu0 %v15341_v62  ;;  %7197 = vmatprep.subr.bf16.mxu1 %v15344_v44 }
0x18fe   :  { %7157 = vmatpush2.bf16.msra.mxu0 %v15339_v35  ;;  %7198 = vmatpush2.bf16.msra.mxu1 %v15342_v36 }
0x18ff   :  { %7158 = vmatprep.subr.bf16.mxu0 %v15347_v30  ;;  %7199 = vmatprep.subr.bf16.mxu1 %v15350_v34 }
0x1902   :  { %7159 = vmatpush2.bf16.msra.mxu0 %v15345_v61  ;;  %7200 = vmatpush2.bf16.msra.mxu1 %v15348_v38 }
0x1903   :  { %7160 = vmatprep.subr.bf16.mxu0 %v15353_v49  ;;  %7201 = vmatprep.subr.bf16.mxu1 %v15356_v5 }
0x1906   :  { %7161 = vmatpush2.bf16.msra.mxu0 %v15351_v21  ;;  %7202 = vmatpush2.bf16.msra.mxu1 %v15354_v53 }
0x1907   :  { %7162 = vmatprep.subr.bf16.mxu0 %v15359_v19  ;;  %7203 = vmatprep.subr.bf16.mxu1 %v15362_v1 }
0x190a   :  { %7163 = vmatpush2.bf16.msra.mxu0 %v15357_v26  ;;  %7204 = vmatpush2.bf16.msra.mxu1 %v15360_v28 }
0x190b   :  { %7164 = vmatprep.subr.bf16.mxu0 %v15365_v33  ;;  %7205 = vmatprep.subr.bf16.mxu1 %v15368_v59 }
0x190e   :  { %7165 = vmatpush2.bf16.msra.mxu0 %v15363_v18  ;;  %7206 = vmatpush2.bf16.msra.mxu1 %v15366_v60 }
0x190f   :  { %7166 = vmatprep.subr.bf16.mxu0 %v15371_v63  ;;  %7207 = vmatprep.subr.bf16.mxu1 %v15374_v31 }
0x1912   :  { %7167 = vmatpush2.bf16.msra.mxu0 %v15369_v52  ;;  %7208 = vmatpush2.bf16.msra.mxu1 %v15372_v6 }
0x1913   :  { %7168 = vmatprep.subr.bf16.mxu0 %v15377_v7  ;;  %7209 = vmatprep.subr.bf16.mxu1 %v15380_v57  ;;  %v15381_v57 = vld [vmem:[#allocation12 + $0x160] ss:$24 sps:$4 sm:$0xff]  }
0x1916   :  { %7169 = vmatpush2.bf16.msra.mxu0 %v15375_v10  ;;  %7210 = vmatpush2.bf16.msra.mxu1 %v15378_v3  ;;  %v15386_v3 = vld [vmem:[#allocation12 + $0x134] ss:$24 sps:$4 sm:$0xff]  }
0x1917   :  { %7220 = vmatprep.subr.bf16.mxu0 %v15383_v11  ;;  %v15389_v11 = vld [vmem:[#allocation12 + $0x104] ss:$24 sps:$4 sm:$0xff]  }
0x1999   :  { %v6484_v4 = vpop.f32.mrf.mxu0  ;;  %v6525_v12 = vpop.f32.mrf.mxu1 }
0x199a   :  { %v6485_v14 = vadd.f32 %v6484_v4, %v18083_v16  ;;  %v6526_v5 = vadd.f32 %v6525_v12, %v18085_v58  ;;  %v15387_v4 = vld [vmem:[#allocation12 + $0x100] ss:$24 sps:$4 sm:$0xff]   ;;  %v15392_v12 = vld [vmem:[#allocation12 + $0xd4] ss:$24 sps:$4 sm:$0xff]  }
0x199b   :  { %v6486_v15 = vpop.f32.mrf.mxu0  ;;  %v6527_v8 = vpop.f32.mrf.mxu1 }
0x199c   :  { %v6532_v43 = vadd.f32 %v6485_v14, %v17931_v56  ;;  %v6487_v62 = vadd.f32 %v6486_v15, %v18087_v48  ;;  %v6528_v49 = vadd.f32 %v6527_v8, %v18089_v39  ;;  %v6534_v48 = vadd.f32 %v6526_v5, %v17950_v24  ;;  %v15390_v14 = vld [vmem:[#allocation12 + $0xd0] ss:$24 sps:$4 sm:$0xff]   ;;  %v15395_v15 = vld [vmem:[#allocation12 + $0xa4] ss:$24 sps:$4 sm:$0xff]   ;;  %v15393_v8 = vld [vmem:[#allocation12 + $0xa0] ss:$24 sps:$4 sm:$0xff]  }
0x199d   :  { %v6488_v44 = vpop.f32.mrf.mxu0  ;;  %v6529_v35 = vpop.f32.mrf.mxu1  ;;  %v15411_v5 = vld [vmem:[#allocation12 + $0x280] ss:$24 sps:$4 sm:$0xff]  }
0x199e   :  { %v13707_v36 = vmul.f32 -1.442695, %v6532_v43  ;;  %v6533_v30 = vadd.f32 %v6487_v62, %v17936_v46  ;;  %v6535_v16 = vadd.f32 %v6528_v49, %v17944_v20  ;;  %v15398_v43 = vld [vmem:[#allocation12 + $0x74] ss:$24 sps:$4 sm:$0xff]   ;;  %v15396_v62 = vld [vmem:[#allocation12 + $0x70] ss:$24 sps:$4 sm:$0xff]  }
0x199f   :  { %v6489_v34 = vpop.f32.mrf.mxu0  ;;  %v6530_v61 = vpop.f32.mrf.mxu1  ;;  %v15401_v44 = vld [vmem:[#allocation12 + $0x44] ss:$24 sps:$4 sm:$0xff]   ;;  %v15399_v35 = vld [vmem:[#allocation12 + $0x40] ss:$24 sps:$4 sm:$0xff]   ;;  %v15408_v49 = vld [vmem:[#allocation12 + $0x2b0] ss:$24 sps:$4 sm:$0xff]  }
0x19a0   :  { %16537 = vpow2.f32 %v13707_v36  ;;  %v13708_v38 = vmul.f32 -1.442695, %v6533_v30  ;;  %v13709_v21 = vmul.f32 -1.442695, %v6535_v16  ;;  %v15404_v36 = vld [vmem:[#allocation12 + $0x14] ss:$24 sps:$4 sm:$0xff]  }
0x19a1   :  { %v15402_v30 = vld [vmem:[#allocation12 + $0x10] ss:$24 sps:$4 sm:$0xff]   ;;  %v15407_v34 = vld [vmem:[#allocation12 + $0x2e4] ss:$24 sps:$4 sm:$0xff]   ;;  %v15405_v61 = vld [vmem:[#allocation12 + $0x2e0] ss:$24 sps:$4 sm:$0xff]  }
0x19a2   :  { %16539 = vpow2.f32 %v13708_v38  ;;  %v15410_v38 = vld [vmem:[#allocation12 + $0x2b4] ss:$24 sps:$4 sm:$0xff]   ;;  %v15413_v16 = vld [vmem:[#allocation12 + $0x284] ss:$24 sps:$4 sm:$0xff]  }
0x19a3   :  { %16541 = vpow2.f32 %v13709_v21  ;;  %v15416_v21 = vld [vmem:[#allocation12 + $0x254] ss:$24 sps:$4 sm:$0xff]  }
0x19ad   :  { %v16538_v53 = vpop.eup %16537 }
0x19ae   :  { %v6539_v19 = vadd.f32 1.0, %v16538_v53  ;;  %v15414_v53 = vld [vmem:[#allocation12 + $0x250] ss:$24 sps:$4 sm:$0xff]  }
0x19af   :  { %v16540_v26 = vpop.eup %16539 }
0x19b0   :  { %16543 = vrcp.f32 %v6539_v19  ;;  %v6545_v1 = vadd.f32 1.0, %v16540_v26  ;;  %v16542_v28 = vpop.eup %16541  ;;  %v15417_v19 = vld [vmem:[#allocation12 + $0x220] ss:$24 sps:$4 sm:$0xff]   ;;  %v15422_v26 = vld [vmem:[#allocation12 + $0x1f4] ss:$24 sps:$4 sm:$0xff]  }
0x19b1   :  { %16545 = vtanh.f32 %v6534_v48  ;;  %v6552_v39 = vadd.f32 1.0, %v16542_v28  ;;  %v15419_v48 = vld [vmem:[#allocation12 + $0x224] ss:$24 sps:$4 sm:$0xff]  }
0x19b2   :  { %16547 = vrcp.f32 %v6545_v1  ;;  %v15420_v1 = vld [vmem:[#allocation12 + $0x1f0] ss:$24 sps:$4 sm:$0xff]   ;;  %v15425_v28 = vld [vmem:[#allocation12 + $0x1c4] ss:$24 sps:$4 sm:$0xff]  }
0x19b3   :  { %16549 = vrcp.f32 %v6552_v39 }
0x19bd   :  { %v16544_v33 = vpop.eup %16543 }
0x19be   :  { %v16546_v18 = vpop.eup %16545 }
0x19bf   :  { %v16548_v59 = vpop.eup %16547  ;;  %v6556_v63 = vmul.f32 %v16546_v18, %v16544_v33  ;;  %v15423_v33 = vld [vmem:[#allocation12 + $0x1c0] ss:$24 sps:$4 sm:$0xff]   ;;  %v15428_v18 = vld [vmem:[#allocation12 + $0x194] ss:$24 sps:$4 sm:$0xff]  }
0x19c0   :  { %v6555_v60 = vmul.f32 %v16548_v59, %v18071_v23  ;;  %v16550_v52 = vpop.eup %16549  ;;  %v15384_v23 = vld [vmem:[#allocation12 + $0x130] ss:$24 sps:$4 sm:$0xff]  }
0x19c1   :  { %v15426_v59 = vld [vmem:[#allocation12 + $0x190] ss:$24 sps:$4 sm:$0xff]  }
0x19c2   :  { %v18193_v58 = vadd.f32 %v6556_v63, %v6555_v60 }
0x19c4   :  { %16551 = vtanh.f32 %v18193_v58  ;;  %v6561_v31 = vpack.c.bf16 %v18193_v58, %v18193_v58 }
0x19c6   :  { %7170 = vmatprep.mubr.bf16.mxu0 %v6561_v31  ;;  %7211 = vmatprep.mubr.bf16.mxu1 %v6561_v31 }
0x19d1   :  { %v16552_v6 = vpop.eup %16551 }
0x19d2   :  { %v6559_v7 = vmul.f32 %v16552_v6, %v16550_v52 }
0x19d4   :  { %v18198_v10 = vpack.c.bf16 %v6559_v7, %v6559_v7 }
0x19d6   :  { %7171 = vmatmul.mubr.bf16.vlgmr.msra.gmra.mxu0 %v18198_v10  ;;  %7212 = vmatmul.mubr.bf16.vlgmr.msra.gmra.mxu1 %v18198_v10 }
0x19d7   :  { %7221 = vmatpush1.bf16.msra.mxu0 %v15381_v57  ;;  %7252 = vmatprep.mubr.bf16.mxu0 %v6561_v31 }
0x19d8   :  { %7222 = vmatprep.subr.bf16.mxu0 %v15386_v3  ;;  %7414 = vmatprep.mubr.bf16.mxu1 %v18975_v40 }
0x19db   :  { %7223 = vmatpush1.bf16.msra.mxu0 %v15384_v23  ;;  %v18216_v23 = vld [vmem:[%s18915_s12] ss:$0 sm:$0xff] }
0x19dc   :  { %7224 = vmatprep.subr.bf16.mxu0 %v15389_v11 }
0x19df   :  { %7225 = vmatpush1.bf16.msra.mxu0 %v15387_v4 }
0x19e0   :  { %7226 = vmatprep.subr.bf16.mxu0 %v15392_v12 }
0x19e3   :  { %7227 = vmatpush1.bf16.msra.mxu0 %v15390_v14 }
0x19e4   :  { %7228 = vmatprep.subr.bf16.mxu0 %v15395_v15 }
0x19e7   :  { %7229 = vmatpush1.bf16.msra.mxu0 %v15393_v8 }
0x19e8   :  { %7230 = vmatprep.subr.bf16.mxu0 %v15398_v43 }
0x19eb   :  { %7231 = vmatpush1.bf16.msra.mxu0 %v15396_v62  ;;  %v15429_v62 = vld [vmem:[%s18908_s5 + $0x70] ss:$8 sps:$4 sm:$0xff]  }
0x19ec   :  { %7232 = vmatprep.subr.bf16.mxu0 %v15401_v44  ;;  %v15431_v44 = vld [vmem:[%s18908_s5 + $0x74] ss:$8 sps:$4 sm:$0xff]  }
0x19ed   :  { %7382 = vmatprep.subr.bf16.mxu1 %v15431_v44 }
0x19ee   :  { %7383 = vmatpush1.bf16.msra.mxu1 %v15429_v62 }
0x19ef   :  { %7233 = vmatpush1.bf16.msra.mxu0 %v15399_v35  ;;  %v15434_v35 = vld [vmem:[%s18908_s5 + $0x64] ss:$8 sps:$4 sm:$0xff]  }
0x19f0   :  { %7234 = vmatprep.subr.bf16.mxu0 %v15404_v36  ;;  %v15432_v36 = vld [vmem:[%s18908_s5 + $0x60] ss:$8 sps:$4 sm:$0xff]   ;;  %7384 = vmatprep.subr.bf16.mxu1 %v15434_v35 }
0x19f1   :  { %v15453_v35 = vld [vmem:[#allocation10 + $0xe0] ss:$16 sps:$4 sm:$0xff]  }
0x19f2   :  { %7385 = vmatpush1.bf16.msra.mxu1 %v15432_v36  ;;  %v15455_v36 = vld [vmem:[#allocation10 + $0xe4] ss:$16 sps:$4 sm:$0xff]  }
0x19f3   :  { %7235 = vmatpush1.bf16.msra.mxu0 %v15402_v30  ;;  %v15437_v30 = vld [vmem:[%s18908_s5 + $0x54] ss:$8 sps:$4 sm:$0xff]  }
0x19f4   :  { %7236 = vmatprep.subr.bf16.mxu0 %v15407_v34  ;;  %v15435_v34 = vld [vmem:[%s18908_s5 + $0x50] ss:$8 sps:$4 sm:$0xff]   ;;  %7386 = vmatprep.subr.bf16.mxu1 %v15437_v30 }
0x19f5   :  { %v15456_v30 = vld [vmem:[#allocation10 + $0xe8] ss:$16 sps:$4 sm:$0xff]  }
0x19f6   :  { %7387 = vmatpush1.bf16.msra.mxu1 %v15435_v34  ;;  %v15458_v34 = vld [vmem:[#allocation10 + $0xec] ss:$16 sps:$4 sm:$0xff]  }
0x19f7   :  { %7237 = vmatpush2.bf16.msra.mxu0 %v15405_v61  ;;  %v15440_v61 = vld [vmem:[%s18908_s5 + $0x44] ss:$8 sps:$4 sm:$0xff]  }
0x19f8   :  { %7238 = vmatprep.subr.bf16.mxu0 %v15410_v38  ;;  %v15438_v38 = vld [vmem:[%s18908_s5 + $0x40] ss:$8 sps:$4 sm:$0xff]   ;;  %7388 = vmatprep.subr.bf16.mxu1 %v15440_v61  ;;  %v15464_v61 = vld [vmem:[#allocation10 + $0xcc] ss:$16 sps:$4 sm:$0xff]  }
0x19fa   :  { %7389 = vmatpush1.bf16.msra.mxu1 %v15438_v38  ;;  %v15459_v38 = vld [vmem:[#allocation10 + $0xc0] ss:$16 sps:$4 sm:$0xff]  }
0x19fb   :  { %7239 = vmatpush2.bf16.msra.mxu0 %v15408_v49  ;;  %v15443_v49 = vld [vmem:[%s18908_s5 + $0x34] ss:$8 sps:$4 sm:$0xff]  }
0x19fc   :  { %7240 = vmatprep.subr.bf16.mxu0 %v15413_v16  ;;  %v15441_v16 = vld [vmem:[%s18908_s5 + $0x30] ss:$8 sps:$4 sm:$0xff]   ;;  %7390 = vmatprep.subr.bf16.mxu1 %v15443_v49 }
0x19fd   :  { %v15462_v49 = vld [vmem:[#allocation10 + $0xc8] ss:$16 sps:$4 sm:$0xff]  }
0x19fe   :  { %7391 = vmatpush1.bf16.msra.mxu1 %v15441_v16 }
0x19ff   :  { %7241 = vmatpush2.bf16.msra.mxu0 %v15411_v5  ;;  %v15446_v5 = vld [vmem:[%s18908_s5 + $0x24] ss:$8 sps:$4 sm:$0xff]  }
0x1a00   :  { %7242 = vmatprep.subr.bf16.mxu0 %v15416_v21  ;;  %v15444_v21 = vld [vmem:[%s18908_s5 + $0x20] ss:$8 sps:$4 sm:$0xff]   ;;  %7392 = vmatprep.subr.bf16.mxu1 %v15446_v5 }
0x1a02   :  { %7393 = vmatpush1.bf16.msra.mxu1 %v15444_v21  ;;  %v15465_v21 = vld [vmem:[#allocation10 + $0xa0] ss:$16 sps:$4 sm:$0xff]  }
0x1a03   :  { %7243 = vmatpush2.bf16.msra.mxu0 %v15414_v53  ;;  %v15449_v53 = vld [vmem:[%s18908_s5 + $0x14] ss:$8 sps:$4 sm:$0xff]  }
0x1a04   :  { %7244 = vmatprep.subr.bf16.mxu0 %v15419_v48  ;;  %v15447_v48 = vld [vmem:[%s18908_s5 + $0x10] ss:$8 sps:$4 sm:$0xff]   ;;  %7394 = vmatprep.subr.bf16.mxu1 %v15449_v53  ;;  %v15467_v53 = vld [vmem:[#allocation10 + $0xa4] ss:$16 sps:$4 sm:$0xff]  }
0x1a06   :  { %7395 = vmatpush1.bf16.msra.mxu1 %v15447_v48  ;;  %v15468_v48 = vld [vmem:[#allocation10 + $0xa8] ss:$16 sps:$4 sm:$0xff]  }
0x1a07   :  { %7245 = vmatpush2.bf16.msra.mxu0 %v15417_v19 }
0x1a08   :  { %7246 = vmatprep.subr.bf16.mxu0 %v15422_v26 }
0x1a0b   :  { %7247 = vmatpush2.bf16.msra.mxu0 %v15420_v1 }
0x1a0c   :  { %7248 = vmatprep.subr.bf16.mxu0 %v15425_v28 }
0x1a0f   :  { %7249 = vmatpush2.bf16.msra.mxu0 %v15423_v33  ;;  %v15452_v33 = vld [vmem:[%s18908_s5 + $0x4] ss:$8 sps:$4 sm:$0xff]  }
0x1a10   :  { %7250 = vmatprep.subr.bf16.mxu0 %v15428_v18  ;;  %v15450_v18 = vld [vmem:[%s18908_s5] ss:$8 sps:$4 sm:$0xff]   ;;  %7396 = vmatprep.subr.bf16.mxu1 %v15452_v33 }
0x1a11   :  { %7397 = vmatpush1.bf16.msra.mxu1 %v15450_v18  ;;  %v15474_v33 = vld [vmem:[#allocation10 + $0x88] ss:$16 sps:$4 sm:$0xff]   ;;  %v15479_v18 = vld [vmem:[#allocation10 + $0x64] ss:$16 sps:$4 sm:$0xff]  }
0x1a12   :  { %7685 = vmatprep.subr.bf16.mxu1 %v15455_v36  ;;  %v15503_v36 = vld [vmem:[#allocation12 + $0x154] ss:$24 sps:$4 sm:$0xff]  }
0x1a13   :  { %7251 = vmatpush2.bf16.msra.mxu0 %v15426_v59 }
0x1a14   :  { %7726 = vmatprep.subr.bf16.mxu0 %v15458_v34 }
0x1a16   :  { %7253 = vmatmul.mubr.bf16.vlgmr.msra.gmra.mxu0 %v18198_v10 }
0x1a17   :  { %7758 = vmatprep.mubr.bf16.mxu0 %v18975_v40  ;;  %7727 = vmatpush1.bf16.msra.mxu0 %v15456_v30  ;;  %v15506_v30 = vld [vmem:[#allocation12 + $0x15c] ss:$24 sps:$4 sm:$0xff]  }
0x1a18   :  { %7728 = vmatprep.subr.bf16.mxu0 %v15464_v61 }
0x1a1b   :  { %7729 = vmatpush1.bf16.msra.mxu0 %v15462_v49 }
0x1a96   :  { %v18205_v39 = vpop.f32.mrf.mxu0  ;;  %v18207_v60 = vpop.f32.mrf.mxu1 }
0x1a98   :  { %v18209_v63 = vpop.f32.mrf.mxu0  ;;  %v18211_v31 = vpop.f32.mrf.mxu1 }
0x1a9a   :  { %v7176_v52 = vpop.f32.mrf.mxu0  ;;  %v7217_v6 = vpop.f32.mrf.mxu1 }
0x1a9c   :  { %v7177_v7 = vpop.f32.mrf.mxu0  ;;  %v7218_v57 = vpop.f32.mrf.mxu1 }
0x1ad6   :  { %v7254_v3 = vpop.f32.mrf.mxu0 }
0x1ad7   :  { %v7261_v10 = vadd.f32 %v18216_v23, %v7254_v3 }
0x1ad8   :  { %v7256_v11 = vpop.f32.mrf.mxu0 }
0x1ad9   :  { %7263 = vst [vmem:[#allocation13 + $0x10] sm:$0xff] %v7261_v10  ;;  %7264 = vmax.xlane.f32.xlu1 %v7261_v10 }
0x1ada   :  { %v7258_v4 = vpop.f32.mrf.mxu0 }
0x1adc   :  { %v7259_v12 = vpop.f32.mrf.mxu0 }
0x1b62   :  { %v7265_v14 = vpop.xlane.xlu1 %7264 }
0x1b63   :  { %vm7266_vm12 = vcmp.ge.f32.partialorder %v7261_v10, %v7265_v14 }
0x1b64   :  { %v7267_v15 = vsel %vm7266_vm12, %v19001_v51, 128 }
0x1b65   :  { %v7269_v8 = vshra.s32 %v7267_v15, 16  ;;  %v7268_v19 = vand.u32 65535, %v7267_v15 }
0x1b67   :  { %v7271_v43 = vcvt.s32.f32 %v7269_v8  ;;  %v7270_v1 = vcvt.s32.f32 %v7268_v19  ;;  %v15470_v19 = vld [vmem:[#allocation10 + $0xac] ss:$16 sps:$4 sm:$0xff]  }
0x1b68   :  { %7730 = vmatprep.subr.bf16.mxu0 %v15470_v19 }
0x1b69   :  { %7272 = vmin.xlane.f32.xlu0 %v7271_v43  ;;  %7731 = vmatpush1.bf16.msra.mxu0 %v15468_v48 }
0x1bf2   :  { %v7273_v26 = vpop.xlane.xlu0 %7272 }
0x1bf3   :  { %vm7274_vm13 = vcmp.eq.f32.partialorder %v7271_v43, %v7273_v26  ;;  %v7279_v59 = vcvt.f32.s32 %v7273_v26  ;;  %v15473_v26 = vld [vmem:[#allocation10 + $0x84] ss:$16 sps:$4 sm:$0xff]  }
0x1bf4   :  { %v7275_v28 = vsel %vm7274_vm13, %v7270_v1, inf  ;;  %v15476_v1 = vld [vmem:[#allocation10 + $0x8c] ss:$16 sps:$4 sm:$0xff]  }
0x1bf5   :  { %7276 = vmin.xlane.f32.xlu0 %v7275_v28  ;;  %v7280_v6 = vshll.u32 %v7279_v59, 16  ;;  %v15471_v28 = vld [vmem:[#allocation10 + $0x80] ss:$16 sps:$4 sm:$0xff]   ;;  %7732 = vmatprep.subr.bf16.mxu0 %v15476_v1  ;;  %v15482_v59 = vld [vmem:[#allocation10 + $0x6c] ss:$16 sps:$4 sm:$0xff]  }
0x1bf6   :  { %7733 = vmatpush1.bf16.msra.mxu0 %v15474_v33 }
0x1bf7   :  { %7734 = vmatprep.subr.bf16.mxu0 %v15482_v59 }
0x1c7e   :  { %v7277_v52 = vpop.xlane.xlu0 %7276 }
0x1c7f   :  { %v7278_v7 = vcvt.f32.s32 %v7277_v52  ;;  %v15477_v52 = vld [vmem:[#allocation10 + $0x60] ss:$16 sps:$4 sm:$0xff]  }
0x1c81   :  { %v7281_v57 = vadd.s32 %v7280_v6, %v7278_v7  ;;  %v15480_v6 = vld [vmem:[#allocation10 + $0x68] ss:$16 sps:$4 sm:$0xff]   ;;  %v15485_v7 = vld [vmem:[#allocation10 + $0x44] ss:$16 sps:$4 sm:$0xff]  }
0x1c82   :  { %7735 = vmatpush1.bf16.msra.mxu0 %v15480_v6 }
0x1c83   :  { %vm7282_vm14 = vcmp.eq.s32.totalorder %v19001_v51, %v7281_v57  ;;  %v15488_v57 = vld [vmem:[#allocation10 + $0x4c] ss:$16 sps:$4 sm:$0xff]  }
0x1c84   :  { %vm13823_vm15 = vmpackc.low %vm7282_vm14, %vm7282_vm14  ;;  %7736 = vmatprep.subr.bf16.mxu0 %v15488_v57 }
0x1c85   :  { %13824 = vmatmul.mubr.msk.bf16.vlgmr.msra.gmra.mxu1 %vm13823_vm15, %v19002_v47 }
0x1c86   :  { %7717 = vmatprep.mubr.bf16.mxu1 %v18975_v40  ;;  %7686 = vmatpush1.bf16.msra.mxu1 %v15453_v35  ;;  %v15498_v35 = vld [vmem:[#allocation10 + $0x8] ss:$16 sps:$4 sm:$0xff]  }
0x1d45   :  { %v7416_v3 = vpop.f32.mrf.mxu1 }
0x1d46   :  { %v7423_v10 = vadd.f32 %v7416_v3, %v7256_v11  ;;  %v15483_v3 = vld [vmem:[#allocation10 + $0x40] ss:$16 sps:$4 sm:$0xff]  }
0x1d47   :  { %v18271_v4 = vpop.f32.mrf.mxu1 }
0x1d48   :  { %v7424_v12 = vadd.f32 %v18149_v13, %v7423_v10  ;;  %v15461_v13 = vld [vmem:[#allocation10 + $0xc4] ss:$16 sps:$4 sm:$0xff]   ;;  %v15486_v10 = vld [vmem:[#allocation10 + $0x48] ss:$16 sps:$4 sm:$0xff]  }
0x1d49   :  { %v7420_v14 = vpop.f32.mrf.mxu1  ;;  %7687 = vmatprep.subr.bf16.mxu1 %v15461_v13  ;;  %7737 = vmatpush1.bf16.msra.mxu0 %v15486_v10  ;;  %v15501_v10 = vld [vmem:[#allocation12 + $0x150] ss:$24 sps:$4 sm:$0xff]  }
0x1d4a   :  { %7425 = vmax.xlane.f32.xlu1 %v7424_v12  ;;  %7688 = vmatpush1.bf16.msra.mxu1 %v15459_v38  ;;  %v15494_v14 = vld [vmem:[#allocation10 + $0x2c] ss:$16 sps:$4 sm:$0xff]  }
0x1d4b   :  { %v7421_v15 = vpop.f32.mrf.mxu1  ;;  %7689 = vmatprep.subr.bf16.mxu1 %v15467_v53  ;;  %7738 = vmatprep.subr.bf16.mxu0 %v15494_v14 }
0x1d4c   :  { %v15489_v15 = vld [vmem:[#allocation10 + $0x20] ss:$16 sps:$4 sm:$0xff]  }
0x1d4e   :  { %7690 = vmatpush1.bf16.msra.mxu1 %v15465_v21 }
0x1d4f   :  { %7691 = vmatprep.subr.bf16.mxu1 %v15473_v26 }
0x1d52   :  { %7692 = vmatpush1.bf16.msra.mxu1 %v15471_v28 }
0x1d53   :  { %7693 = vmatprep.subr.bf16.mxu1 %v15479_v18 }
0x1d56   :  { %7694 = vmatpush1.bf16.msra.mxu1 %v15477_v52 }
0x1d57   :  { %7695 = vmatprep.subr.bf16.mxu1 %v15485_v7 }
0x1d5a   :  { %7696 = vmatpush1.bf16.msra.mxu1 %v15483_v3 }
0x1dd3   :  { %v7426_v8 = vpop.xlane.xlu1 %7425 }
0x1dd4   :  { %v7427_v43 = vsub.f32 %v7424_v12, %v7426_v8  ;;  %v15491_v12 = vld [vmem:[#allocation10 + $0x24] ss:$16 sps:$4 sm:$0xff]   ;;  %v15492_v8 = vld [vmem:[#allocation10 + $0x28] ss:$16 sps:$4 sm:$0xff]  }
0x1dd5   :  { %7697 = vmatprep.subr.bf16.mxu1 %v15491_v12  ;;  %7739 = vmatpush1.bf16.msra.mxu0 %v15492_v8  ;;  %v15504_v12 = vld [vmem:[#allocation12 + $0x158] ss:$24 sps:$4 sm:$0xff]  }
0x1dd6   :  { %v7428_v62 = vmul.f32 1.442695, %v7427_v43  ;;  %v15497_v43 = vld [vmem:[#allocation10 + $0x4] ss:$16 sps:$4 sm:$0xff]   ;;  %7698 = vmatpush1.bf16.msra.mxu1 %v15489_v15  ;;  %v15507_v8 = vld [vmem:[#allocation12 + $0x120] ss:$24 sps:$4 sm:$0xff]  }
0x1dd7   :  { %7699 = vmatprep.subr.bf16.mxu1 %v15497_v43  ;;  %v15509_v15 = vld [vmem:[#allocation12 + $0x124] ss:$24 sps:$4 sm:$0xff]  }
0x1dd8   :  { %16553 = vpow2.f32 %v7428_v62  ;;  %v15500_v62 = vld [vmem:[#allocation10 + $0xc] ss:$16 sps:$4 sm:$0xff]  }
0x1dd9   :  { %7740 = vmatprep.subr.bf16.mxu0 %v15500_v62  ;;  %v15512_v43 = vld [vmem:[#allocation12 + $0x12c] ss:$24 sps:$4 sm:$0xff]   ;;  %v15510_v62 = vld [vmem:[#allocation12 + $0x128] ss:$24 sps:$4 sm:$0xff]  }
0x1dda   :  { %7741 = vmatpush1.bf16.msra.mxu0 %v15498_v35  ;;  %v15513_v35 = vld [vmem:[#allocation12 + $0xf0] ss:$24 sps:$4 sm:$0xff]  }
0x1ddb   :  { %8414 = vmatprep.subr.bf16.mxu0 %v15506_v30  ;;  %v15516_v30 = vld [vmem:[#allocation12 + $0xf8] ss:$24 sps:$4 sm:$0xff]  }
0x1de5   :  { %v16554_v44 = vpop.eup %16553 }
0x1de6   :  { %7430 = vadd.xlane.f32.xlu0 %v16554_v44 }
0x1e6f   :  { %v7431_v11 = vpop.xlane.xlu0 %7430 }
0x1e70   :  { %16555 = vrcp.f32 %v7431_v11  ;;  %v7434_v11 = vadd.f32 %v18173_v54, %v18271_v4 }
0x1e7d   :  { %v16556_v16 = vpop.eup %16555 }
0x1e7e   :  { %v7433_v5 = vmul.f32 %v16556_v16, %v16554_v44  ;;  %v15495_v44 = vld [vmem:[#allocation10] ss:$16 sps:$4 sm:$0xff]  }
0x1e7f   :  { %7700 = vmatpush1.bf16.msra.mxu1 %v15495_v44  ;;  %v15515_v44 = vld [vmem:[#allocation12 + $0xf4] ss:$24 sps:$4 sm:$0xff]  }
0x1e80   :  { %7445 = vperm.xlu0 %14617, %v7433_v5   ;;  %7438 = vperm.xlu1 %14624, %v7433_v5  }
0x1e81   :  { %8373 = vmatprep.subr.bf16.mxu1 %v15503_v36  ;;  %v15518_v36 = vld [vmem:[#allocation12 + $0xfc] ss:$24 sps:$4 sm:$0xff]  }
0x1e84   :  { %14627 = vset.pattern.permute.xlu0 %v19019_v55  ;;  %14625 = vset.pattern.permute.xlu1 %v19016_v29 }
0x1e85   :  { %7466 = vperm.xlu0 %14627, %v7433_v5   ;;  %7452 = vperm.xlu1 %14625, %v7433_v5  }
0x1e89   :  { %14630 = vset.pattern.permute.xlu0 %v19022_v2  ;;  %14626 = vset.pattern.permute.xlu1 %v19018_v9 }
0x1e8a   :  { %7487 = vperm.xlu0 %14630, %v7433_v5   ;;  %7459 = vperm.xlu1 %14626, %v7433_v5  }
0x1e8e   :  { %14628 = vset.pattern.permute.xlu1 %v19020_v22  ;;  %14631 = vset.pattern.permute.xlu0 %v18975_v40 }
0x1e8f   :  { %7473 = vperm.xlu1 %14628, %v7433_v5  }
0x1e93   :  { %14629 = vset.pattern.permute.xlu1 %v19021_v41 }
0x1e94   :  { %7480 = vperm.xlu1 %14629, %v7433_v5  }
0x1e98   :  { %14632 = vset.pattern.permute.xlu1 %v19017_v17 }
0x1efb   :  { %v7439_v34 = vpop.permute.xlu1 %7438  ;;  %v7446_v61 = vpop.permute.xlu0 %7445 }
0x1efc   :  { %v7441_v13 = vmul.f32 %v7439_v34, %v17840_v0  ;;  %v7448_v49 = vmul.f32 %v7446_v61, %v17844_v25  ;;  %v15521_v34 = vld [vmem:[#allocation12 + $0xc4] ss:$24 sps:$4 sm:$0xff]   ;;  %v15522_v61 = vld [vmem:[#allocation12 + $0xc8] ss:$24 sps:$4 sm:$0xff]  }
0x1efe   :  { %v7442_v38 = vadd.f32 %v7441_v13, %v7434_v11  ;;  %v15519_v11 = vld [vmem:[#allocation12 + $0xc0] ss:$24 sps:$4 sm:$0xff]   ;;  %v15524_v13 = vld [vmem:[#allocation12 + $0xcc] ss:$24 sps:$4 sm:$0xff]  }
0x1f00   :  { %v7453_v16 = vpop.permute.xlu1 %7452  ;;  %v7449_v5 = vadd.f32 %v7448_v49, %v7442_v38  ;;  %v7467_v26 = vpop.permute.xlu0 %7466  ;;  %v15527_v38 = vld [vmem:[#allocation12 + $0x94] ss:$24 sps:$4 sm:$0xff]   ;;  %v15525_v49 = vld [vmem:[#allocation12 + $0x90] ss:$24 sps:$4 sm:$0xff]  }
0x1f01   :  { %v7455_v21 = vmul.f32 %v17838_v50, %v7453_v16  ;;  %v7469_v28 = vmul.f32 %v7467_v26, %v17850_v32  ;;  %v15530_v16 = vld [vmem:[#allocation12 + $0x9c] ss:$24 sps:$4 sm:$0xff]  }
0x1f02   :  { %v15539_v26 = vld [vmem:[#allocation12 + $0x34] ss:$24 sps:$4 sm:$0xff]  }
0x1f03   :  { %v7456_v48 = vadd.f32 %v7455_v21, %v7449_v5  ;;  %v15528_v5 = vld [vmem:[#allocation12 + $0x98] ss:$24 sps:$4 sm:$0xff]   ;;  %v15533_v21 = vld [vmem:[#allocation12 + $0x64] ss:$24 sps:$4 sm:$0xff]  }
0x1f05   :  { %v7460_v53 = vpop.permute.xlu1 %7459  ;;  %v7488_v18 = vpop.permute.xlu0 %7487 }
0x1f06   :  { %v7462_v19 = vmul.f32 %v17842_v37, %v7460_v53  ;;  %v7490_v7 = vmul.f32 %v17854_v42, %v7488_v18  ;;  %v15531_v53 = vld [vmem:[#allocation12 + $0x60] ss:$24 sps:$4 sm:$0xff]   ;;  %v15548_v18 = vld [vmem:[#allocation12 + $0xc] ss:$24 sps:$4 sm:$0xff]  }
0x1f08   :  { %v7463_v1 = vadd.f32 %v7462_v19, %v7456_v48  ;;  %v15536_v48 = vld [vmem:[#allocation12 + $0x6c] ss:$24 sps:$4 sm:$0xff]   ;;  %v15534_v19 = vld [vmem:[#allocation12 + $0x68] ss:$24 sps:$4 sm:$0xff]  }
0x1f0a   :  { %v7474_v33 = vpop.permute.xlu1 %7473  ;;  %v7470_v54 = vadd.f32 %v7469_v28, %v7463_v1  ;;  %v15537_v1 = vld [vmem:[#allocation12 + $0x30] ss:$24 sps:$4 sm:$0xff]   ;;  %v15542_v28 = vld [vmem:[#allocation12 + $0x3c] ss:$24 sps:$4 sm:$0xff]  }
0x1f0b   :  { %v7476_v4 = vmul.f32 %v7474_v33, %v17856_v27  ;;  %v15540_v33 = vld [vmem:[#allocation12 + $0x38] ss:$24 sps:$4 sm:$0xff]  }
0x1f0d   :  { %v7477_v52 = vadd.f32 %v7476_v4, %v7470_v54  ;;  %v15545_v54 = vld [vmem:[#allocation12 + $0x4] ss:$24 sps:$4 sm:$0xff]   ;;  %v15543_v4 = vld [vmem:[#allocation12] ss:$24 sps:$4 sm:$0xff]  }
0x1f0f   :  { %v7481_v59 = vpop.permute.xlu1 %7480 }
0x1f10   :  { %v7483_v6 = vmul.f32 %v17846_v45, %v7481_v59  ;;  %v15546_v59 = vld [vmem:[#allocation12 + $0x8] ss:$24 sps:$4 sm:$0xff]  }
0x1f12   :  { %v7484_v57 = vadd.f32 %v7483_v6, %v7477_v52  ;;  %v15549_v52 = vld [vmem:[#allocation12 + $0x2d0] ss:$24 sps:$4 sm:$0xff]   ;;  %v15551_v6 = vld [vmem:[#allocation12 + $0x2d4] ss:$24 sps:$4 sm:$0xff]  }
0x1f14   :  { %v7491_v3 = vadd.f32 %v7490_v7, %v7484_v57  ;;  %v15552_v7 = vld [vmem:[#allocation12 + $0x2d8] ss:$24 sps:$4 sm:$0xff]   ;;  %v15554_v57 = vld [vmem:[#allocation12 + $0x2dc] ss:$24 sps:$4 sm:$0xff]  }
0x1f16   :  { %v7492_v14 = vpack.c.bf16 %v7491_v3, %v7491_v3  ;;  %v15557_v3 = vld [vmem:[#allocation12 + $0x2a4] ss:$24 sps:$4 sm:$0xff]  }
0x1f18   :  { %7718 = vmatmul.mubr.bf16.vlgmr.msra.gmra.mxu1 %v7492_v14  ;;  %7759 = vmatmul.mubr.bf16.vlgmr.msra.gmra.mxu0 %v7492_v14  ;;  %v15558_v14 = vld [vmem:[#allocation12 + $0x2a8] ss:$24 sps:$4 sm:$0xff]  }
0x1f19   :  { %8374 = vmatpush1.bf16.msra.mxu1 %v15501_v10  ;;  %8415 = vmatpush1.bf16.msra.mxu0 %v15504_v12  ;;  %v15560_v10 = vld [vmem:[#allocation12 + $0x2ac] ss:$24 sps:$4 sm:$0xff]   ;;  %v15555_v12 = vld [vmem:[#allocation12 + $0x2a0] ss:$24 sps:$4 sm:$0xff]  }
0x1f1a   :  { %8375 = vmatprep.subr.bf16.mxu1 %v15509_v15  ;;  %8416 = vmatprep.subr.bf16.mxu0 %v15512_v43  ;;  %v15563_v15 = vld [vmem:[#allocation12 + $0x274] ss:$24 sps:$4 sm:$0xff]   ;;  %v15561_v43 = vld [vmem:[#allocation12 + $0x270] ss:$24 sps:$4 sm:$0xff]  }
0x1f1d   :  { %8376 = vmatpush1.bf16.msra.mxu1 %v15507_v8  ;;  %8417 = vmatpush1.bf16.msra.mxu0 %v15510_v62  ;;  %v15566_v8 = vld [vmem:[#allocation12 + $0x27c] ss:$24 sps:$4 sm:$0xff]   ;;  %v15564_v62 = vld [vmem:[#allocation12 + $0x278] ss:$24 sps:$4 sm:$0xff]  }
0x1f1e   :  { %8377 = vmatprep.subr.bf16.mxu1 %v15515_v44  ;;  %8418 = vmatprep.subr.bf16.mxu0 %v15518_v36  ;;  %v15569_v44 = vld [vmem:[#allocation12 + $0x244] ss:$24 sps:$4 sm:$0xff]   ;;  %v15567_v36 = vld [vmem:[#allocation12 + $0x240] ss:$24 sps:$4 sm:$0xff]  }
0x1f21   :  { %8378 = vmatpush1.bf16.msra.mxu1 %v15513_v35  ;;  %8419 = vmatpush1.bf16.msra.mxu0 %v15516_v30  ;;  %v15572_v35 = vld [vmem:[#allocation12 + $0x24c] ss:$24 sps:$4 sm:$0xff]   ;;  %v15570_v30 = vld [vmem:[#allocation12 + $0x248] ss:$24 sps:$4 sm:$0xff]  }
0x1f22   :  { %8379 = vmatprep.subr.bf16.mxu1 %v15521_v34  ;;  %8420 = vmatprep.subr.bf16.mxu0 %v15524_v13  ;;  %v15575_v34 = vld [vmem:[#allocation12 + $0x214] ss:$24 sps:$4 sm:$0xff]  }
0x1f23   :  { %v15578_v13 = vld [vmem:[#allocation12 + $0x21c] ss:$24 sps:$4 sm:$0xff]  }
0x1f25   :  { %8380 = vmatpush1.bf16.msra.mxu1 %v15519_v11  ;;  %8421 = vmatpush1.bf16.msra.mxu0 %v15522_v61  ;;  %v15573_v11 = vld [vmem:[#allocation12 + $0x210] ss:$24 sps:$4 sm:$0xff]  }
0x1f26   :  { %8381 = vmatprep.subr.bf16.mxu1 %v15527_v38  ;;  %8422 = vmatprep.subr.bf16.mxu0 %v15530_v16  ;;  %v15576_v61 = vld [vmem:[#allocation12 + $0x218] ss:$24 sps:$4 sm:$0xff]   ;;  %v15581_v38 = vld [vmem:[#allocation12 + $0x1e4] ss:$24 sps:$4 sm:$0xff]  }
0x1f27   :  { %v15584_v16 = vld [vmem:[#allocation12 + $0x1ec] ss:$24 sps:$4 sm:$0xff]  }
0x1f29   :  { %8382 = vmatpush1.bf16.msra.mxu1 %v15525_v49  ;;  %8423 = vmatpush1.bf16.msra.mxu0 %v15528_v5  ;;  %v15579_v49 = vld [vmem:[#allocation12 + $0x1e0] ss:$24 sps:$4 sm:$0xff]  }
0x1f2a   :  { %8383 = vmatprep.subr.bf16.mxu1 %v15533_v21  ;;  %8424 = vmatprep.subr.bf16.mxu0 %v15536_v48  ;;  %v15582_v5 = vld [vmem:[#allocation12 + $0x1e8] ss:$24 sps:$4 sm:$0xff]   ;;  %v15587_v21 = vld [vmem:[#allocation12 + $0x1b4] ss:$24 sps:$4 sm:$0xff]  }
0x1f2b   :  { %v15585_v48 = vld [vmem:[#allocation12 + $0x1b0] ss:$24 sps:$4 sm:$0xff]  }
0x1f2d   :  { %8384 = vmatpush1.bf16.msra.mxu1 %v15531_v53  ;;  %8425 = vmatpush1.bf16.msra.mxu0 %v15534_v19  ;;  %v15590_v53 = vld [vmem:[#allocation12 + $0x1bc] ss:$24 sps:$4 sm:$0xff]   ;;  %v15588_v19 = vld [vmem:[#allocation12 + $0x1b8] ss:$24 sps:$4 sm:$0xff]  }
0x1f2e   :  { %8385 = vmatprep.subr.bf16.mxu1 %v15539_v26  ;;  %8426 = vmatprep.subr.bf16.mxu0 %v15542_v28  ;;  %v15593_v26 = vld [vmem:[#allocation12 + $0x184] ss:$24 sps:$4 sm:$0xff]   ;;  %v15591_v28 = vld [vmem:[#allocation12 + $0x180] ss:$24 sps:$4 sm:$0xff]  }
0x1f31   :  { %8386 = vmatpush1.bf16.msra.mxu1 %v15537_v1  ;;  %8427 = vmatpush1.bf16.msra.mxu0 %v15540_v33  ;;  %v15596_v1 = vld [vmem:[#allocation12 + $0x18c] ss:$24 sps:$4 sm:$0xff]   ;;  %v15594_v33 = vld [vmem:[#allocation12 + $0x188] ss:$24 sps:$4 sm:$0xff]  }
0x1f32   :  { %8387 = vmatprep.subr.bf16.mxu1 %v15545_v54  ;;  %8428 = vmatprep.subr.bf16.mxu0 %v15548_v18  ;;  %v15599_v54 = vld [vmem:[#allocation12 + $0x164] ss:$24 sps:$4 sm:$0xff]  }
0x1f35   :  { %8388 = vmatpush1.bf16.msra.mxu1 %v15543_v4  ;;  %8429 = vmatpush1.bf16.msra.mxu0 %v15546_v59 }
0x1f36   :  { %8389 = vmatprep.subr.bf16.mxu1 %v15551_v6  ;;  %8430 = vmatprep.subr.bf16.mxu0 %v15554_v57 }
0x1f39   :  { %8390 = vmatpush2.bf16.msra.mxu1 %v15549_v52  ;;  %8431 = vmatpush2.bf16.msra.mxu0 %v15552_v7 }
0x1f3a   :  { %8391 = vmatprep.subr.bf16.mxu1 %v15557_v3  ;;  %8432 = vmatprep.subr.bf16.mxu0 %v15560_v10 }
0x1f3d   :  { %8392 = vmatpush2.bf16.msra.mxu1 %v15555_v12  ;;  %8433 = vmatpush2.bf16.msra.mxu0 %v15558_v14 }
0x1f3e   :  { %8393 = vmatprep.subr.bf16.mxu1 %v15563_v15  ;;  %8434 = vmatprep.subr.bf16.mxu0 %v15566_v8 }
0x1f41   :  { %8394 = vmatpush2.bf16.msra.mxu1 %v15561_v43  ;;  %8435 = vmatpush2.bf16.msra.mxu0 %v15564_v62 }
0x1f42   :  { %8395 = vmatprep.subr.bf16.mxu1 %v15569_v44  ;;  %8436 = vmatprep.subr.bf16.mxu0 %v15572_v35 }
0x1f45   :  { %8396 = vmatpush2.bf16.msra.mxu1 %v15567_v36  ;;  %8437 = vmatpush2.bf16.msra.mxu0 %v15570_v30 }
0x1f46   :  { %8397 = vmatprep.subr.bf16.mxu1 %v15575_v34  ;;  %8438 = vmatprep.subr.bf16.mxu0 %v15578_v13 }
0x1f49   :  { %8398 = vmatpush2.bf16.msra.mxu1 %v15573_v11  ;;  %8439 = vmatpush2.bf16.msra.mxu0 %v15576_v61 }
0x1f4a   :  { %8399 = vmatprep.subr.bf16.mxu1 %v15581_v38  ;;  %8440 = vmatprep.subr.bf16.mxu0 %v15584_v16 }
0x1f4d   :  { %8400 = vmatpush2.bf16.msra.mxu1 %v15579_v49  ;;  %8441 = vmatpush2.bf16.msra.mxu0 %v15582_v5 }
0x1f4e   :  { %8401 = vmatprep.subr.bf16.mxu1 %v15587_v21  ;;  %8442 = vmatprep.subr.bf16.mxu0 %v15590_v53 }
0x1f51   :  { %8402 = vmatpush2.bf16.msra.mxu1 %v15585_v48  ;;  %8443 = vmatpush2.bf16.msra.mxu0 %v15588_v19 }
0x1f52   :  { %8403 = vmatprep.subr.bf16.mxu1 %v15593_v26  ;;  %8444 = vmatprep.subr.bf16.mxu0 %v15596_v1  ;;  %v15597_v26 = vld [vmem:[#allocation12 + $0x160] ss:$24 sps:$4 sm:$0xff]  }
0x1f55   :  { %8404 = vmatpush2.bf16.msra.mxu1 %v15591_v28  ;;  %8445 = vmatpush2.bf16.msra.mxu0 %v15594_v33  ;;  %v15602_v28 = vld [vmem:[#allocation12 + $0x134] ss:$24 sps:$4 sm:$0xff]   ;;  %v15605_v33 = vld [vmem:[#allocation12 + $0x104] ss:$24 sps:$4 sm:$0xff]  }
0x1f56   :  { %8455 = vmatprep.subr.bf16.mxu1 %v15599_v54  ;;  %v15603_v54 = vld [vmem:[#allocation12 + $0x100] ss:$24 sps:$4 sm:$0xff]  }
0x1fd8   :  { %v7719_v4 = vpop.f32.mrf.mxu1  ;;  %v7760_v18 = vpop.f32.mrf.mxu0 }
0x1fd9   :  { %v7720_v59 = vadd.f32 %v7719_v4, %v18205_v39  ;;  %v7761_v44 = vadd.f32 %v7760_v18, %v18207_v60  ;;  %v15608_v4 = vld [vmem:[#allocation12 + $0xd4] ss:$24 sps:$4 sm:$0xff]   ;;  %v15606_v18 = vld [vmem:[#allocation12 + $0xd0] ss:$24 sps:$4 sm:$0xff]  }
0x1fda   :  { %v7721_v52 = vpop.f32.mrf.mxu1  ;;  %v7762_v6 = vpop.f32.mrf.mxu0 }
0x1fdb   :  { %v7767_v7 = vadd.f32 %v7720_v59, %v17931_v56  ;;  %v7722_v57 = vadd.f32 %v7721_v52, %v18209_v63  ;;  %v7763_v62 = vadd.f32 %v7762_v6, %v18211_v31  ;;  %v7769_v63 = vadd.f32 %v7761_v44, %v17950_v24  ;;  %v15611_v59 = vld [vmem:[#allocation12 + $0xa4] ss:$24 sps:$4 sm:$0xff]   ;;  %v15609_v52 = vld [vmem:[#allocation12 + $0xa0] ss:$24 sps:$4 sm:$0xff]   ;;  %v15614_v6 = vld [vmem:[#allocation12 + $0x74] ss:$24 sps:$4 sm:$0xff]  }
0x1fdc   :  { %v7723_v3 = vpop.f32.mrf.mxu1  ;;  %v7764_v10 = vpop.f32.mrf.mxu0  ;;  %v15632_v44 = vld [vmem:[#allocation12 + $0x254] ss:$24 sps:$4 sm:$0xff]  }
0x1fdd   :  { %v13857_v12 = vmul.f32 -1.442695, %v7767_v7  ;;  %v7768_v14 = vadd.f32 %v7722_v57, %v17936_v46  ;;  %v7770_v39 = vadd.f32 %v7763_v62, %v17944_v20  ;;  %v15612_v7 = vld [vmem:[#allocation12 + $0x70] ss:$24 sps:$4 sm:$0xff]   ;;  %v15617_v57 = vld [vmem:[#allocation12 + $0x44] ss:$24 sps:$4 sm:$0xff]  }
0x1fde   :  { %v7724_v15 = vpop.f32.mrf.mxu1  ;;  %v7765_v8 = vpop.f32.mrf.mxu0  ;;  %v15615_v3 = vld [vmem:[#allocation12 + $0x40] ss:$24 sps:$4 sm:$0xff]   ;;  %v15620_v10 = vld [vmem:[#allocation12 + $0x14] ss:$24 sps:$4 sm:$0xff]   ;;  %v15629_v62 = vld [vmem:[#allocation12 + $0x284] ss:$24 sps:$4 sm:$0xff]  }
0x1fdf   :  { %16557 = vpow2.f32 %v13857_v12  ;;  %v13858_v43 = vmul.f32 -1.442695, %v7768_v14  ;;  %v13859_v35 = vmul.f32 -1.442695, %v7770_v39  ;;  %v15618_v12 = vld [vmem:[#allocation12 + $0x10] ss:$24 sps:$4 sm:$0xff]  }
0x1fe0   :  { %v15623_v14 = vld [vmem:[#allocation12 + $0x2e4] ss:$24 sps:$4 sm:$0xff]   ;;  %v15621_v15 = vld [vmem:[#allocation12 + $0x2e0] ss:$24 sps:$4 sm:$0xff]   ;;  %v15626_v8 = vld [vmem:[#allocation12 + $0x2b4] ss:$24 sps:$4 sm:$0xff]  }
0x1fe1   :  { %16559 = vpow2.f32 %v13858_v43  ;;  %v15624_v43 = vld [vmem:[#allocation12 + $0x2b0] ss:$24 sps:$4 sm:$0xff]   ;;  %v15627_v39 = vld [vmem:[#allocation12 + $0x280] ss:$24 sps:$4 sm:$0xff]  }
0x1fe2   :  { %16561 = vpow2.f32 %v13859_v35  ;;  %v15630_v35 = vld [vmem:[#allocation12 + $0x250] ss:$24 sps:$4 sm:$0xff]  }
0x1fec   :  { %v16558_v36 = vpop.eup %16557 }
0x1fed   :  { %v7774_v30 = vadd.f32 1.0, %v16558_v36  ;;  %v15635_v36 = vld [vmem:[#allocation12 + $0x224] ss:$24 sps:$4 sm:$0xff]  }
0x1fee   :  { %v16560_v34 = vpop.eup %16559 }
0x1fef   :  { %16563 = vrcp.f32 %v7774_v30  ;;  %v7780_v11 = vadd.f32 1.0, %v16560_v34  ;;  %v16562_v13 = vpop.eup %16561  ;;  %v15638_v30 = vld [vmem:[#allocation12 + $0x1f4] ss:$24 sps:$4 sm:$0xff]   ;;  %v15636_v34 = vld [vmem:[#allocation12 + $0x1f0] ss:$24 sps:$4 sm:$0xff]  }
0x1ff0   :  { %16565 = vtanh.f32 %v7769_v63  ;;  %v7787_v31 = vadd.f32 1.0, %v16562_v13  ;;  %v15633_v63 = vld [vmem:[#allocation12 + $0x220] ss:$24 sps:$4 sm:$0xff]  }
0x1ff1   :  { %16567 = vrcp.f32 %v7780_v11  ;;  %v15641_v11 = vld [vmem:[#allocation12 + $0x1c4] ss:$24 sps:$4 sm:$0xff]   ;;  %v15639_v13 = vld [vmem:[#allocation12 + $0x1c0] ss:$24 sps:$4 sm:$0xff]  }
0x1ff2   :  { %16569 = vrcp.f32 %v7787_v31 }
0x1ffc   :  { %v16564_v61 = vpop.eup %16563 }
0x1ffd   :  { %v16566_v38 = vpop.eup %16565 }
0x1ffe   :  { %v16568_v49 = vpop.eup %16567  ;;  %v7791_v5 = vmul.f32 %v16566_v38, %v16564_v61  ;;  %v15644_v61 = vld [vmem:[#allocation12 + $0x194] ss:$24 sps:$4 sm:$0xff]   ;;  %v15642_v38 = vld [vmem:[#allocation12 + $0x190] ss:$24 sps:$4 sm:$0xff]  }
0x1fff   :  { %v7790_v16 = vmul.f32 %v16568_v49, %v18193_v58  ;;  %v16570_v53 = vpop.eup %16569  ;;  %v15600_v58 = vld [vmem:[#allocation12 + $0x130] ss:$24 sps:$4 sm:$0xff]  }
0x2001   :  { %v18301_v60 = vadd.f32 %v7791_v5, %v7790_v16 }
0x2003   :  { %16571 = vtanh.f32 %v18301_v60  ;;  %v7796_v21 = vpack.c.bf16 %v18301_v60, %v18301_v60 }
0x2005   :  { %8405 = vmatprep.mubr.bf16.mxu1 %v7796_v21  ;;  %8446 = vmatprep.mubr.bf16.mxu0 %v7796_v21 }
0x2010   :  { %v16572_v48 = vpop.eup %16571 }
0x2011   :  { %v7794_v19 = vmul.f32 %v16572_v48, %v16570_v53 }
0x2013   :  { %v18306_v1 = vpack.c.bf16 %v7794_v19, %v7794_v19 }
0x2015   :  { %8406 = vmatmul.mubr.bf16.vlgmr.msra.gmra.mxu1 %v18306_v1  ;;  %8447 = vmatmul.mubr.bf16.vlgmr.msra.gmra.mxu0 %v18306_v1 }
0x2016   :  { %8456 = vmatpush1.bf16.msra.mxu1 %v15597_v26  ;;  %8487 = vmatprep.mubr.bf16.mxu1 %v7796_v21 }
0x2017   :  { %8457 = vmatprep.subr.bf16.mxu1 %v15602_v28  ;;  %8649 = vmatprep.mubr.bf16.mxu0 %v18975_v40 }
0x201a   :  { %8458 = vmatpush1.bf16.msra.mxu1 %v15600_v58 }
0x201b   :  { %8459 = vmatprep.subr.bf16.mxu1 %v15605_v33 }
0x201e   :  { %8460 = vmatpush1.bf16.msra.mxu1 %v15603_v54 }
0x201f   :  { %8461 = vmatprep.subr.bf16.mxu1 %v15608_v4 }
0x2022   :  { %8462 = vmatpush1.bf16.msra.mxu1 %v15606_v18 }
0x2023   :  { %8463 = vmatprep.subr.bf16.mxu1 %v15611_v59 }
0x2026   :  { %8464 = vmatpush1.bf16.msra.mxu1 %v15609_v52  ;;  %v15645_v52 = vld [vmem:[%s18908_s5 + $0x70] ss:$8 sps:$4 sm:$0xff]  }
0x2027   :  { %8465 = vmatprep.subr.bf16.mxu1 %v15614_v6  ;;  %v15650_v6 = vld [vmem:[%s18908_s5 + $0x64] ss:$8 sps:$4 sm:$0xff]  }
0x202a   :  { %8466 = vmatpush1.bf16.msra.mxu1 %v15612_v7  ;;  %v15648_v7 = vld [vmem:[%s18908_s5 + $0x60] ss:$8 sps:$4 sm:$0xff]  }
0x202b   :  { %8467 = vmatprep.subr.bf16.mxu1 %v15617_v57  ;;  %v15653_v57 = vld [vmem:[%s18908_s5 + $0x54] ss:$8 sps:$4 sm:$0xff]  }
0x202e   :  { %8468 = vmatpush1.bf16.msra.mxu1 %v15615_v3  ;;  %v15651_v3 = vld [vmem:[%s18908_s5 + $0x50] ss:$8 sps:$4 sm:$0xff]  }
0x202f   :  { %8469 = vmatprep.subr.bf16.mxu1 %v15620_v10  ;;  %v15656_v10 = vld [vmem:[%s18908_s5 + $0x44] ss:$8 sps:$4 sm:$0xff]  }
0x2032   :  { %8470 = vmatpush1.bf16.msra.mxu1 %v15618_v12  ;;  %v15654_v12 = vld [vmem:[%s18908_s5 + $0x40] ss:$8 sps:$4 sm:$0xff]  }
0x2033   :  { %8471 = vmatprep.subr.bf16.mxu1 %v15623_v14  ;;  %v15659_v14 = vld [vmem:[%s18908_s5 + $0x34] ss:$8 sps:$4 sm:$0xff]  }
0x2036   :  { %8472 = vmatpush2.bf16.msra.mxu1 %v15621_v15  ;;  %v15657_v15 = vld [vmem:[%s18908_s5 + $0x30] ss:$8 sps:$4 sm:$0xff]  }
0x2037   :  { %8473 = vmatprep.subr.bf16.mxu1 %v15626_v8  ;;  %v15662_v8 = vld [vmem:[%s18908_s5 + $0x24] ss:$8 sps:$4 sm:$0xff]  }
0x203a   :  { %8474 = vmatpush2.bf16.msra.mxu1 %v15624_v43  ;;  %v15660_v43 = vld [vmem:[%s18908_s5 + $0x20] ss:$8 sps:$4 sm:$0xff]  }
0x203b   :  { %8475 = vmatprep.subr.bf16.mxu1 %v15629_v62  ;;  %v15665_v62 = vld [vmem:[%s18908_s5 + $0x14] ss:$8 sps:$4 sm:$0xff]  }
0x203e   :  { %8476 = vmatpush2.bf16.msra.mxu1 %v15627_v39  ;;  %v15663_v39 = vld [vmem:[%s18908_s5 + $0x10] ss:$8 sps:$4 sm:$0xff]  }
0x203f   :  { %8477 = vmatprep.subr.bf16.mxu1 %v15632_v44 }
0x2042   :  { %8478 = vmatpush2.bf16.msra.mxu1 %v15630_v35 }
0x2043   :  { %8479 = vmatprep.subr.bf16.mxu1 %v15635_v36 }
0x2046   :  { %8480 = vmatpush2.bf16.msra.mxu1 %v15633_v63 }
0x2047   :  { %8481 = vmatprep.subr.bf16.mxu1 %v15638_v30  ;;  %v15668_v30 = vld [vmem:[%s18908_s5 + $0x4] ss:$8 sps:$4 sm:$0xff]  }
0x204a   :  { %8482 = vmatpush2.bf16.msra.mxu1 %v15636_v34  ;;  %v15666_v34 = vld [vmem:[%s18908_s5] ss:$8 sps:$4 sm:$0xff]  }
0x204b   :  { %8483 = vmatprep.subr.bf16.mxu1 %v15641_v11 }
0x204e   :  { %8484 = vmatpush2.bf16.msra.mxu1 %v15639_v13 }
0x204f   :  { %8485 = vmatprep.subr.bf16.mxu1 %v15644_v61 }
0x2052   :  { %8486 = vmatpush2.bf16.msra.mxu1 %v15642_v38 }
0x2055   :  { %8488 = vmatmul.mubr.bf16.vlgmr.msra.gmra.mxu1 %v18306_v1 }
0x2056   :  { %8993 = vmatprep.mubr.bf16.mxu1 %v18975_v40 }
0x20d5   :  { %v18313_v49 = vpop.f32.mrf.mxu1  ;;  %v18315_v31 = vpop.f32.mrf.mxu0 }
0x20d7   :  { %v18317_v16 = vpop.f32.mrf.mxu1  ;;  %v18319_v5 = vpop.f32.mrf.mxu0 }
0x20d9   :  { %v8411_v21 = vpop.f32.mrf.mxu1  ;;  %v8452_v53 = vpop.f32.mrf.mxu0 }
0x20db   :  { %v8412_v48 = vpop.f32.mrf.mxu1  ;;  %v8453_v19 = vpop.f32.mrf.mxu0 }
0x2115   :  { %v8489_v26 = vpop.f32.mrf.mxu1 }
0x2116   :  { %v8496_v28 = vadd.f32 %v18216_v23, %v8489_v26  ;;  %v15647_v23 = vld [vmem:[%s18908_s5 + $0x74] ss:$8 sps:$4 sm:$0xff]   ;;  %v18379_v26 = vld [vmem:[%s18909_s6] ss:$0 sm:$0xff] }
0x2117   :  { %v8491_v58 = vpop.f32.mrf.mxu1  ;;  %8617 = vmatprep.subr.bf16.mxu0 %v15647_v23 }
0x2118   :  { %8498 = vst [vmem:[#allocation13 + $0x18] sm:$0xff] %v8496_v28  ;;  %8499 = vmax.xlane.f32.xlu1 %v8496_v28  ;;  %8618 = vmatpush1.bf16.msra.mxu0 %v15645_v52 }
0x2119   :  { %v8493_v1 = vpop.f32.mrf.mxu1  ;;  %8619 = vmatprep.subr.bf16.mxu0 %v15650_v6  ;;  %v15669_v6 = vld [vmem:[#allocation10 + $0xe0] ss:$16 sps:$4 sm:$0xff]  }
0x211b   :  { %v8494_v33 = vpop.f32.mrf.mxu1 }
0x211c   :  { %8620 = vmatpush1.bf16.msra.mxu0 %v15648_v7  ;;  %v15671_v7 = vld [vmem:[#allocation10 + $0xe4] ss:$16 sps:$4 sm:$0xff]  }
0x211d   :  { %8621 = vmatprep.subr.bf16.mxu0 %v15653_v57  ;;  %v15672_v57 = vld [vmem:[#allocation10 + $0xe8] ss:$16 sps:$4 sm:$0xff]  }
0x2120   :  { %8622 = vmatpush1.bf16.msra.mxu0 %v15651_v3  ;;  %v15674_v3 = vld [vmem:[#allocation10 + $0xec] ss:$16 sps:$4 sm:$0xff]  }
0x2121   :  { %8623 = vmatprep.subr.bf16.mxu0 %v15656_v10  ;;  %8961 = vmatprep.subr.bf16.mxu1 %v15674_v3  ;;  %v15677_v10 = vld [vmem:[#allocation10 + $0xc4] ss:$16 sps:$4 sm:$0xff]  }
0x2122   :  { %8962 = vmatpush1.bf16.msra.mxu1 %v15672_v57 }
0x2124   :  { %8624 = vmatpush1.bf16.msra.mxu0 %v15654_v12  ;;  %v15680_v12 = vld [vmem:[#allocation10 + $0xcc] ss:$16 sps:$4 sm:$0xff]  }
0x2125   :  { %8625 = vmatprep.subr.bf16.mxu0 %v15659_v14  ;;  %v15675_v14 = vld [vmem:[#allocation10 + $0xc0] ss:$16 sps:$4 sm:$0xff]   ;;  %8963 = vmatprep.subr.bf16.mxu1 %v15680_v12 }
0x2126   :  { %v18404_v12 = vld [vmem:[%s18911_s8] ss:$0 sm:$0xff] }
0x2128   :  { %8626 = vmatpush1.bf16.msra.mxu0 %v15657_v15  ;;  %v15678_v15 = vld [vmem:[#allocation10 + $0xc8] ss:$16 sps:$4 sm:$0xff]  }
0x2129   :  { %8627 = vmatprep.subr.bf16.mxu0 %v15662_v8  ;;  %8964 = vmatpush1.bf16.msra.mxu1 %v15678_v15  ;;  %v15683_v8 = vld [vmem:[#allocation10 + $0xa4] ss:$16 sps:$4 sm:$0xff]  }
0x212c   :  { %8628 = vmatpush1.bf16.msra.mxu0 %v15660_v43  ;;  %v15686_v43 = vld [vmem:[#allocation10 + $0xac] ss:$16 sps:$4 sm:$0xff]  }
0x212d   :  { %8629 = vmatprep.subr.bf16.mxu0 %v15665_v62  ;;  %v15681_v62 = vld [vmem:[#allocation10 + $0xa0] ss:$16 sps:$4 sm:$0xff]   ;;  %8965 = vmatprep.subr.bf16.mxu1 %v15686_v43 }
0x2130   :  { %8630 = vmatpush1.bf16.msra.mxu0 %v15663_v39  ;;  %v15684_v39 = vld [vmem:[#allocation10 + $0xa8] ss:$16 sps:$4 sm:$0xff]  }
0x2131   :  { %8631 = vmatprep.subr.bf16.mxu0 %v15668_v30  ;;  %8966 = vmatpush1.bf16.msra.mxu1 %v15684_v39  ;;  %v15695_v30 = vld [vmem:[#allocation10 + $0x64] ss:$16 sps:$4 sm:$0xff]  }
0x2134   :  { %8632 = vmatpush1.bf16.msra.mxu0 %v15666_v34  ;;  %v15698_v34 = vld [vmem:[#allocation10 + $0x6c] ss:$16 sps:$4 sm:$0xff]  }
0x2135   :  { %8920 = vmatprep.subr.bf16.mxu0 %v15671_v7 }
0x21a1   :  { %v8500_v54 = vpop.xlane.xlu1 %8499 }
0x21a2   :  { %vm8501_vm0 = vcmp.ge.f32.partialorder %v8496_v28, %v8500_v54 }
0x21a3   :  { %v8502_v4 = vsel %vm8501_vm0, %v19001_v51, 128 }
0x21a4   :  { %v8504_v18 = vshra.s32 %v8502_v4, 16  ;;  %v8503_v44 = vand.u32 65535, %v8502_v4 }
0x21a6   :  { %v8506_v59 = vcvt.s32.f32 %v8504_v18  ;;  %v8505_v36 = vcvt.s32.f32 %v8503_v44  ;;  %v15689_v44 = vld [vmem:[#allocation10 + $0x84] ss:$16 sps:$4 sm:$0xff]  }
0x21a8   :  { %8507 = vmin.xlane.f32.xlu0 %v8506_v59 }
0x2231   :  { %v8508_v35 = vpop.xlane.xlu0 %8507 }
0x2232   :  { %vm8509_vm1 = vcmp.eq.f32.partialorder %v8506_v59, %v8508_v35  ;;  %v8514_v11 = vcvt.f32.s32 %v8508_v35  ;;  %v15692_v35 = vld [vmem:[#allocation10 + $0x8c] ss:$16 sps:$4 sm:$0xff]  }
0x2233   :  { %v8510_v63 = vsel %vm8509_vm1, %v8505_v36, inf  ;;  %v15687_v36 = vld [vmem:[#allocation10 + $0x80] ss:$16 sps:$4 sm:$0xff]   ;;  %8967 = vmatprep.subr.bf16.mxu1 %v15692_v35 }
0x2234   :  { %8511 = vmin.xlane.f32.xlu1 %v8510_v63  ;;  %v8515_v61 = vshll.u32 %v8514_v11, 16  ;;  %v15690_v63 = vld [vmem:[#allocation10 + $0x88] ss:$16 sps:$4 sm:$0xff]   ;;  %v15693_v11 = vld [vmem:[#allocation10 + $0x60] ss:$16 sps:$4 sm:$0xff]  }
0x2235   :  { %8968 = vmatpush1.bf16.msra.mxu1 %v15690_v63 }
0x2236   :  { %8969 = vmatprep.subr.bf16.mxu1 %v15698_v34 }
0x22bd   :  { %v8512_v13 = vpop.xlane.xlu1 %8511 }
0x22be   :  { %v8513_v38 = vcvt.f32.s32 %v8512_v13  ;;  %v15696_v13 = vld [vmem:[#allocation10 + $0x68] ss:$16 sps:$4 sm:$0xff]  }
0x22bf   :  { %8970 = vmatpush1.bf16.msra.mxu1 %v15696_v13 }
0x22c0   :  { %v8516_v21 = vadd.s32 %v8515_v61, %v8513_v38  ;;  %v15699_v61 = vld [vmem:[#allocation10 + $0x40] ss:$16 sps:$4 sm:$0xff]   ;;  %v15701_v38 = vld [vmem:[#allocation10 + $0x44] ss:$16 sps:$4 sm:$0xff]  }
0x22c2   :  { %vm8517_vm2 = vcmp.eq.s32.totalorder %v19001_v51, %v8516_v21  ;;  %v15702_v21 = vld [vmem:[#allocation10 + $0x48] ss:$16 sps:$4 sm:$0xff]  }
0x22c3   :  { %vm13973_vm3 = vmpackc.low %vm8517_vm2, %vm8517_vm2 }
0x22c4   :  { %13974 = vmatmul.mubr.msk.bf16.vlgmr.msra.gmra.mxu0 %vm13973_vm3, %v19002_v47 }
0x22c5   :  { %8952 = vmatprep.mubr.bf16.mxu0 %v18975_v40  ;;  %8921 = vmatpush1.bf16.msra.mxu0 %v15669_v6 }
0x22c6   :  { %8922 = vmatprep.subr.bf16.mxu0 %v15677_v10 }
0x22c9   :  { %8923 = vmatpush1.bf16.msra.mxu0 %v15675_v14 }
0x22ca   :  { %8924 = vmatprep.subr.bf16.mxu0 %v15683_v8 }
0x22cd   :  { %8925 = vmatpush1.bf16.msra.mxu0 %v15681_v62 }
0x22ce   :  { %8926 = vmatprep.subr.bf16.mxu0 %v15689_v44 }
0x22d1   :  { %8927 = vmatpush1.bf16.msra.mxu0 %v15687_v36 }
0x22d2   :  { %8928 = vmatprep.subr.bf16.mxu0 %v15695_v30 }
0x22d5   :  { %8929 = vmatpush1.bf16.msra.mxu0 %v15693_v11 }
0x22d6   :  { %8930 = vmatprep.subr.bf16.mxu0 %v15701_v38 }
0x22d9   :  { %8931 = vmatpush1.bf16.msra.mxu0 %v15699_v61 }
0x2384   :  { %v8651_v53 = vpop.f32.mrf.mxu0 }
0x2385   :  { %v8658_v48 = vadd.f32 %v8651_v53, %v8491_v58  ;;  %v15704_v53 = vld [vmem:[#allocation10 + $0x4c] ss:$16 sps:$4 sm:$0xff]  }
0x2386   :  { %v18374_v19 = vpop.f32.mrf.mxu0  ;;  %8971 = vmatprep.subr.bf16.mxu1 %v15704_v53 }
0x2387   :  { %v8659_v28 = vadd.f32 %v18379_v26, %v8658_v48  ;;  %v15707_v48 = vld [vmem:[#allocation10 + $0x24] ss:$16 sps:$4 sm:$0xff]   ;;  %8972 = vmatpush1.bf16.msra.mxu1 %v15702_v21 }
0x2388   :  { %v8655_v1 = vpop.f32.mrf.mxu0  ;;  %8932 = vmatprep.subr.bf16.mxu0 %v15707_v48  ;;  %v15717_v48 = vld [vmem:[#allocation12 + $0x150] ss:$24 sps:$4 sm:$0xff]  }
0x2389   :  { %8660 = vmax.xlane.f32.xlu0 %v8659_v28  ;;  %v15705_v1 = vld [vmem:[#allocation10 + $0x20] ss:$16 sps:$4 sm:$0xff]  }
0x238a   :  { %v8656_v33 = vpop.f32.mrf.mxu0  ;;  %8933 = vmatpush1.bf16.msra.mxu0 %v15705_v1 }
0x238b   :  { %v15708_v33 = vld [vmem:[#allocation10 + $0x28] ss:$16 sps:$4 sm:$0xff]  }
0x2412   :  { %v8661_v54 = vpop.xlane.xlu0 %8660 }
0x2413   :  { %v8662_v4 = vsub.f32 %v8659_v28, %v8661_v54  ;;  %v15710_v28 = vld [vmem:[#allocation10 + $0x2c] ss:$16 sps:$4 sm:$0xff]   ;;  %v15713_v54 = vld [vmem:[#allocation10 + $0x4] ss:$16 sps:$4 sm:$0xff]  }
0x2414   :  { %8973 = vmatprep.subr.bf16.mxu1 %v15710_v28  ;;  %8934 = vmatprep.subr.bf16.mxu0 %v15713_v54  ;;  %v15720_v28 = vld [vmem:[#allocation12 + $0x158] ss:$24 sps:$4 sm:$0xff]  }
0x2415   :  { %v8663_v18 = vmul.f32 1.442695, %v8662_v4  ;;  %v15716_v4 = vld [vmem:[#allocation10 + $0xc] ss:$16 sps:$4 sm:$0xff]   ;;  %8974 = vmatpush1.bf16.msra.mxu1 %v15708_v33  ;;  %v15723_v54 = vld [vmem:[#allocation12 + $0x120] ss:$24 sps:$4 sm:$0xff]  }
0x2416   :  { %8975 = vmatprep.subr.bf16.mxu1 %v15716_v4  ;;  %v15725_v33 = vld [vmem:[#allocation12 + $0x124] ss:$24 sps:$4 sm:$0xff]  }
0x2417   :  { %16573 = vpow2.f32 %v8663_v18  ;;  %v15711_v18 = vld [vmem:[#allocation10] ss:$16 sps:$4 sm:$0xff]   ;;  %v15728_v4 = vld [vmem:[#allocation12 + $0x12c] ss:$24 sps:$4 sm:$0xff]  }
0x2418   :  { %8935 = vmatpush1.bf16.msra.mxu0 %v15711_v18  ;;  %v15726_v18 = vld [vmem:[#allocation12 + $0x128] ss:$24 sps:$4 sm:$0xff]  }
0x2424   :  { %v16574_v59 = vpop.eup %16573 }
0x2425   :  { %8665 = vadd.xlane.f32.xlu1 %v16574_v59 }
0x24ae   :  { %v8666_v52 = vpop.xlane.xlu1 %8665 }
0x24af   :  { %16575 = vrcp.f32 %v8666_v52  ;;  %v15719_v52 = vld [vmem:[#allocation12 + $0x154] ss:$24 sps:$4 sm:$0xff]  }
0x24b0   :  { %9608 = vmatprep.subr.bf16.mxu0 %v15719_v52  ;;  %v15729_v52 = vld [vmem:[#allocation12 + $0xf0] ss:$24 sps:$4 sm:$0xff]  }
0x24bc   :  { %v16576_v58 = vpop.eup %16575 }
0x24bd   :  { %v18382_v23 = vmul.f32 %v16576_v58, %v16574_v59  ;;  %v15714_v59 = vld [vmem:[#allocation10 + $0x8] ss:$16 sps:$4 sm:$0xff]   ;;  %v15722_v58 = vld [vmem:[#allocation12 + $0x15c] ss:$24 sps:$4 sm:$0xff]  }
0x24be   :  { %8976 = vmatpush1.bf16.msra.mxu1 %v15714_v59  ;;  %v15731_v59 = vld [vmem:[#allocation12 + $0xf4] ss:$24 sps:$4 sm:$0xff]  }
0x24bf   :  { %8680 = vperm.xlu1 %14632, %v18382_v23   ;;  %8673 = vperm.xlu0 %14631, %v18382_v23  }
0x24c0   :  { %9649 = vmatprep.subr.bf16.mxu1 %v15722_v58  ;;  %v15734_v58 = vld [vmem:[#allocation12 + $0xfc] ss:$24 sps:$4 sm:$0xff]  }
0x24c3   :  { %14633 = vset.pattern.permute.xlu1 %v19016_v29  ;;  %14640 = vset.pattern.permute.xlu0 %v19017_v17 }
0x24c4   :  { %8687 = vperm.xlu1 %14633, %v18382_v23  }
0x24c8   :  { %14634 = vset.pattern.permute.xlu1 %v19018_v9 }
0x24c9   :  { %8694 = vperm.xlu1 %14634, %v18382_v23  }
0x24cd   :  { %14635 = vset.pattern.permute.xlu1 %v19019_v55 }
0x24ce   :  { %8701 = vperm.xlu1 %14635, %v18382_v23  }
0x24d2   :  { %14636 = vset.pattern.permute.xlu1 %v19020_v22 }
0x24d3   :  { %8708 = vperm.xlu1 %14636, %v18382_v23  }
0x24d7   :  { %14637 = vset.pattern.permute.xlu1 %v19021_v41 }
0x24d8   :  { %8715 = vperm.xlu1 %14637, %v18382_v23  }
0x24dc   :  { %14638 = vset.pattern.permute.xlu1 %v19022_v2 }
0x24dd   :  { %8722 = vperm.xlu1 %14638, %v18382_v23   ;;  %v8669_v23 = vadd.f32 %v18404_v12, %v18374_v19 }
0x24e1   :  { %14639 = vset.pattern.permute.xlu1 %v18975_v40 }
0x253a   :  { %v8681_v6 = vpop.permute.xlu1 %8680  ;;  %v8674_v57 = vpop.permute.xlu0 %8673 }
0x253b   :  { %v8676_v10 = vmul.f32 %v8674_v57, %v17840_v0  ;;  %v8683_v8 = vmul.f32 %v8681_v6, %v17844_v25  ;;  %v15732_v6 = vld [vmem:[#allocation12 + $0xf8] ss:$24 sps:$4 sm:$0xff]  }
0x253c   :  { %v15735_v57 = vld [vmem:[#allocation12 + $0xc0] ss:$24 sps:$4 sm:$0xff]  }
0x253d   :  { %v8677_v14 = vadd.f32 %v8676_v10, %v8669_v23  ;;  %v15738_v10 = vld [vmem:[#allocation12 + $0xc8] ss:$24 sps:$4 sm:$0xff]   ;;  %v15743_v23 = vld [vmem:[#allocation12 + $0x94] ss:$24 sps:$4 sm:$0xff]  }
0x253f   :  { %v8688_v7 = vpop.permute.xlu1 %8687  ;;  %v8684_v43 = vadd.f32 %v8683_v8, %v8677_v14  ;;  %v15741_v14 = vld [vmem:[#allocation12 + $0x90] ss:$24 sps:$4 sm:$0xff]  }
0x2540   :  { %v8690_v62 = vmul.f32 %v17838_v50, %v8688_v7  ;;  %v15737_v7 = vld [vmem:[#allocation12 + $0xc4] ss:$24 sps:$4 sm:$0xff]   ;;  %v15744_v8 = vld [vmem:[#allocation12 + $0x98] ss:$24 sps:$4 sm:$0xff]  }
0x2542   :  { %v8691_v35 = vadd.f32 %v8690_v62, %v8684_v43  ;;  %v15749_v43 = vld [vmem:[#allocation12 + $0x64] ss:$24 sps:$4 sm:$0xff]   ;;  %v15747_v62 = vld [vmem:[#allocation12 + $0x60] ss:$24 sps:$4 sm:$0xff]  }
0x2544   :  { %v8695_v3 = vpop.permute.xlu1 %8694 }
0x2545   :  { %v8697_v44 = vmul.f32 %v17842_v37, %v8695_v3  ;;  %v15740_v3 = vld [vmem:[#allocation12 + $0xcc] ss:$24 sps:$4 sm:$0xff]  }
0x2547   :  { %v8698_v63 = vadd.f32 %v8697_v44, %v8691_v35  ;;  %v15750_v44 = vld [vmem:[#allocation12 + $0x68] ss:$24 sps:$4 sm:$0xff]   ;;  %v15755_v35 = vld [vmem:[#allocation12 + $0x34] ss:$24 sps:$4 sm:$0xff]  }
0x2549   :  { %v8702_v15 = vpop.permute.xlu1 %8701 }
0x254a   :  { %v8704_v36 = vmul.f32 %v8702_v15, %v17850_v32  ;;  %v15746_v15 = vld [vmem:[#allocation12 + $0x9c] ss:$24 sps:$4 sm:$0xff]  }
0x254c   :  { %v8705_v11 = vadd.f32 %v8704_v36, %v8698_v63  ;;  %v15753_v36 = vld [vmem:[#allocation12 + $0x30] ss:$24 sps:$4 sm:$0xff]   ;;  %v15758_v63 = vld [vmem:[#allocation12 + $0x3c] ss:$24 sps:$4 sm:$0xff]  }
0x254e   :  { %v8709_v39 = vpop.permute.xlu1 %8708 }
0x254f   :  { %v8711_v30 = vmul.f32 %v8709_v39, %v17856_v27  ;;  %v15752_v39 = vld [vmem:[#allocation12 + $0x6c] ss:$24 sps:$4 sm:$0xff]  }
0x2551   :  { %v8712_v13 = vadd.f32 %v8711_v30, %v8705_v11  ;;  %v15756_v30 = vld [vmem:[#allocation12 + $0x38] ss:$24 sps:$4 sm:$0xff]  }
0x2552   :  { %v15759_v11 = vld [vmem:[#allocation12] ss:$24 sps:$4 sm:$0xff]  }
0x2553   :  { %v8716_v34 = vpop.permute.xlu1 %8715 }
0x2554   :  { %v8718_v19 = vmul.f32 %v17846_v45, %v8716_v34  ;;  %v15761_v34 = vld [vmem:[#allocation12 + $0x4] ss:$24 sps:$4 sm:$0xff]  }
0x2556   :  { %v8719_v38 = vadd.f32 %v8718_v19, %v8712_v13  ;;  %v15764_v19 = vld [vmem:[#allocation12 + $0xc] ss:$24 sps:$4 sm:$0xff]   ;;  %v15762_v13 = vld [vmem:[#allocation12 + $0x8] ss:$24 sps:$4 sm:$0xff]  }
0x2558   :  { %v8723_v61 = vpop.permute.xlu1 %8722 }
0x2559   :  { %v8725_v21 = vmul.f32 %v17854_v42, %v8723_v61  ;;  %v15765_v61 = vld [vmem:[#allocation12 + $0x2d0] ss:$24 sps:$4 sm:$0xff]  }
0x255b   :  { %v8726_v53 = vadd.f32 %v8725_v21, %v8719_v38  ;;  %v15767_v38 = vld [vmem:[#allocation12 + $0x2d4] ss:$24 sps:$4 sm:$0xff]   ;;  %v15768_v21 = vld [vmem:[#allocation12 + $0x2d8] ss:$24 sps:$4 sm:$0xff]  }
0x255d   :  { %v8727_v1 = vpack.c.bf16 %v8726_v53, %v8726_v53  ;;  %v15770_v53 = vld [vmem:[#allocation12 + $0x2dc] ss:$24 sps:$4 sm:$0xff]  }
0x255f   :  { %8953 = vmatmul.mubr.bf16.vlgmr.msra.gmra.mxu0 %v8727_v1  ;;  %8994 = vmatmul.mubr.bf16.vlgmr.msra.gmra.mxu1 %v8727_v1  ;;  %v15771_v1 = vld [vmem:[#allocation12 + $0x2a0] ss:$24 sps:$4 sm:$0xff]  }
0x2560   :  { %9609 = vmatpush1.bf16.msra.mxu0 %v15717_v48  ;;  %9650 = vmatpush1.bf16.msra.mxu1 %v15720_v28  ;;  %v15773_v48 = vld [vmem:[#allocation12 + $0x2a4] ss:$24 sps:$4 sm:$0xff]  }
0x2561   :  { %9610 = vmatprep.subr.bf16.mxu0 %v15725_v33  ;;  %9651 = vmatprep.subr.bf16.mxu1 %v15728_v4  ;;  %v15776_v28 = vld [vmem:[#allocation12 + $0x2ac] ss:$24 sps:$4 sm:$0xff]   ;;  %v15774_v33 = vld [vmem:[#allocation12 + $0x2a8] ss:$24 sps:$4 sm:$0xff]   ;;  %v15782_v4 = vld [vmem:[#allocation12 + $0x27c] ss:$24 sps:$4 sm:$0xff]  }
0x2564   :  { %9611 = vmatpush1.bf16.msra.mxu0 %v15723_v54  ;;  %9652 = vmatpush1.bf16.msra.mxu1 %v15726_v18  ;;  %v15779_v54 = vld [vmem:[#allocation12 + $0x274] ss:$24 sps:$4 sm:$0xff]   ;;  %v15777_v18 = vld [vmem:[#allocation12 + $0x270] ss:$24 sps:$4 sm:$0xff]  }
0x2565   :  { %9612 = vmatprep.subr.bf16.mxu0 %v15731_v59  ;;  %9653 = vmatprep.subr.bf16.mxu1 %v15734_v58  ;;  %v15780_v59 = vld [vmem:[#allocation12 + $0x278] ss:$24 sps:$4 sm:$0xff]   ;;  %v15788_v58 = vld [vmem:[#allocation12 + $0x24c] ss:$24 sps:$4 sm:$0xff]  }
0x2568   :  { %9613 = vmatpush1.bf16.msra.mxu0 %v15729_v52  ;;  %9654 = vmatpush1.bf16.msra.mxu1 %v15732_v6  ;;  %v15785_v52 = vld [vmem:[#allocation12 + $0x244] ss:$24 sps:$4 sm:$0xff]   ;;  %v15783_v6 = vld [vmem:[#allocation12 + $0x240] ss:$24 sps:$4 sm:$0xff]  }
0x2569   :  { %9614 = vmatprep.subr.bf16.mxu0 %v15737_v7  ;;  %9655 = vmatprep.subr.bf16.mxu1 %v15740_v3  ;;  %v15786_v7 = vld [vmem:[#allocation12 + $0x248] ss:$24 sps:$4 sm:$0xff]  }
0x256a   :  { %v15789_v3 = vld [vmem:[#allocation12 + $0x210] ss:$24 sps:$4 sm:$0xff]  }
0x256c   :  { %9615 = vmatpush1.bf16.msra.mxu0 %v15735_v57  ;;  %9656 = vmatpush1.bf16.msra.mxu1 %v15738_v10  ;;  %v15791_v57 = vld [vmem:[#allocation12 + $0x214] ss:$24 sps:$4 sm:$0xff]  }
0x256d   :  { %9616 = vmatprep.subr.bf16.mxu0 %v15743_v23  ;;  %9657 = vmatprep.subr.bf16.mxu1 %v15746_v15  ;;  %v15794_v10 = vld [vmem:[#allocation12 + $0x21c] ss:$24 sps:$4 sm:$0xff]   ;;  %v15792_v23 = vld [vmem:[#allocation12 + $0x218] ss:$24 sps:$4 sm:$0xff]  }
0x256e   :  { %v15795_v15 = vld [vmem:[#allocation12 + $0x1e0] ss:$24 sps:$4 sm:$0xff]  }
0x2570   :  { %9617 = vmatpush1.bf16.msra.mxu0 %v15741_v14  ;;  %9658 = vmatpush1.bf16.msra.mxu1 %v15744_v8  ;;  %v15797_v14 = vld [vmem:[#allocation12 + $0x1e4] ss:$24 sps:$4 sm:$0xff]  }
0x2571   :  { %9618 = vmatprep.subr.bf16.mxu0 %v15749_v43  ;;  %9659 = vmatprep.subr.bf16.mxu1 %v15752_v39  ;;  %v15800_v8 = vld [vmem:[#allocation12 + $0x1ec] ss:$24 sps:$4 sm:$0xff]   ;;  %v15798_v43 = vld [vmem:[#allocation12 + $0x1e8] ss:$24 sps:$4 sm:$0xff]   ;;  %v15806_v39 = vld [vmem:[#allocation12 + $0x1bc] ss:$24 sps:$4 sm:$0xff]  }
0x2574   :  { %9619 = vmatpush1.bf16.msra.mxu0 %v15747_v62  ;;  %9660 = vmatpush1.bf16.msra.mxu1 %v15750_v44  ;;  %v15803_v62 = vld [vmem:[#allocation12 + $0x1b4] ss:$24 sps:$4 sm:$0xff]   ;;  %v15801_v44 = vld [vmem:[#allocation12 + $0x1b0] ss:$24 sps:$4 sm:$0xff]  }
0x2575   :  { %9620 = vmatprep.subr.bf16.mxu0 %v15755_v35  ;;  %9661 = vmatprep.subr.bf16.mxu1 %v15758_v63  ;;  %v15804_v35 = vld [vmem:[#allocation12 + $0x1b8] ss:$24 sps:$4 sm:$0xff]   ;;  %v15812_v63 = vld [vmem:[#allocation12 + $0x18c] ss:$24 sps:$4 sm:$0xff]  }
0x2578   :  { %9621 = vmatpush1.bf16.msra.mxu0 %v15753_v36  ;;  %9662 = vmatpush1.bf16.msra.mxu1 %v15756_v30  ;;  %v15809_v36 = vld [vmem:[#allocation12 + $0x184] ss:$24 sps:$4 sm:$0xff]   ;;  %v15807_v30 = vld [vmem:[#allocation12 + $0x180] ss:$24 sps:$4 sm:$0xff]  }
0x2579   :  { %9622 = vmatprep.subr.bf16.mxu0 %v15761_v34  ;;  %9663 = vmatprep.subr.bf16.mxu1 %v15764_v19  ;;  %v15810_v34 = vld [vmem:[#allocation12 + $0x188] ss:$24 sps:$4 sm:$0xff]  }
0x257c   :  { %9623 = vmatpush1.bf16.msra.mxu0 %v15759_v11  ;;  %9664 = vmatpush1.bf16.msra.mxu1 %v15762_v13  ;;  %v15815_v11 = vld [vmem:[#allocation12 + $0x164] ss:$24 sps:$4 sm:$0xff]  }
0x257d   :  { %9624 = vmatprep.subr.bf16.mxu0 %v15767_v38  ;;  %9665 = vmatprep.subr.bf16.mxu1 %v15770_v53 }
0x2580   :  { %9625 = vmatpush2.bf16.msra.mxu0 %v15765_v61  ;;  %9666 = vmatpush2.bf16.msra.mxu1 %v15768_v21 }
0x2581   :  { %9626 = vmatprep.subr.bf16.mxu0 %v15773_v48  ;;  %9667 = vmatprep.subr.bf16.mxu1 %v15776_v28 }
0x2584   :  { %9627 = vmatpush2.bf16.msra.mxu0 %v15771_v1  ;;  %9668 = vmatpush2.bf16.msra.mxu1 %v15774_v33 }
0x2585   :  { %9628 = vmatprep.subr.bf16.mxu0 %v15779_v54  ;;  %9669 = vmatprep.subr.bf16.mxu1 %v15782_v4 }
0x2588   :  { %9629 = vmatpush2.bf16.msra.mxu0 %v15777_v18  ;;  %9670 = vmatpush2.bf16.msra.mxu1 %v15780_v59 }
0x2589   :  { %9630 = vmatprep.subr.bf16.mxu0 %v15785_v52  ;;  %9671 = vmatprep.subr.bf16.mxu1 %v15788_v58 }
0x258c   :  { %9631 = vmatpush2.bf16.msra.mxu0 %v15783_v6  ;;  %9672 = vmatpush2.bf16.msra.mxu1 %v15786_v7 }
0x258d   :  { %9632 = vmatprep.subr.bf16.mxu0 %v15791_v57  ;;  %9673 = vmatprep.subr.bf16.mxu1 %v15794_v10 }
0x2590   :  { %9633 = vmatpush2.bf16.msra.mxu0 %v15789_v3  ;;  %9674 = vmatpush2.bf16.msra.mxu1 %v15792_v23 }
0x2591   :  { %9634 = vmatprep.subr.bf16.mxu0 %v15797_v14  ;;  %9675 = vmatprep.subr.bf16.mxu1 %v15800_v8 }
0x2594   :  { %9635 = vmatpush2.bf16.msra.mxu0 %v15795_v15  ;;  %9676 = vmatpush2.bf16.msra.mxu1 %v15798_v43 }
0x2595   :  { %9636 = vmatprep.subr.bf16.mxu0 %v15803_v62  ;;  %9677 = vmatprep.subr.bf16.mxu1 %v15806_v39 }
0x2598   :  { %9637 = vmatpush2.bf16.msra.mxu0 %v15801_v44  ;;  %9678 = vmatpush2.bf16.msra.mxu1 %v15804_v35 }
0x2599   :  { %9638 = vmatprep.subr.bf16.mxu0 %v15809_v36  ;;  %9679 = vmatprep.subr.bf16.mxu1 %v15812_v63  ;;  %v15813_v63 = vld [vmem:[#allocation12 + $0x160] ss:$24 sps:$4 sm:$0xff]  }
0x259c   :  { %9639 = vmatpush2.bf16.msra.mxu0 %v15807_v30  ;;  %9680 = vmatpush2.bf16.msra.mxu1 %v15810_v34  ;;  %v15818_v34 = vld [vmem:[#allocation12 + $0x134] ss:$24 sps:$4 sm:$0xff]  }
0x259d   :  { %9690 = vmatprep.subr.bf16.mxu0 %v15815_v11  ;;  %v15821_v11 = vld [vmem:[#allocation12 + $0x104] ss:$24 sps:$4 sm:$0xff]  }
0x261f   :  { %v8954_v19 = vpop.f32.mrf.mxu0  ;;  %v8995_v13 = vpop.f32.mrf.mxu1 }
0x2620   :  { %v8955_v61 = vadd.f32 %v8954_v19, %v18313_v49  ;;  %v8996_v58 = vadd.f32 %v8995_v13, %v18315_v31  ;;  %v15819_v19 = vld [vmem:[#allocation12 + $0x100] ss:$24 sps:$4 sm:$0xff]   ;;  %v15824_v13 = vld [vmem:[#allocation12 + $0xd4] ss:$24 sps:$4 sm:$0xff]  }
0x2621   :  { %v8956_v38 = vpop.f32.mrf.mxu0  ;;  %v8997_v21 = vpop.f32.mrf.mxu1 }
0x2622   :  { %v9002_v53 = vadd.f32 %v8955_v61, %v17931_v56  ;;  %v8957_v48 = vadd.f32 %v8956_v38, %v18317_v16  ;;  %v8998_v52 = vadd.f32 %v8997_v21, %v18319_v5  ;;  %v9004_v16 = vadd.f32 %v8996_v58, %v17950_v24  ;;  %v15822_v61 = vld [vmem:[#allocation12 + $0xd0] ss:$24 sps:$4 sm:$0xff]   ;;  %v15827_v38 = vld [vmem:[#allocation12 + $0xa4] ss:$24 sps:$4 sm:$0xff]   ;;  %v15825_v21 = vld [vmem:[#allocation12 + $0xa0] ss:$24 sps:$4 sm:$0xff]  }
0x2623   :  { %v8958_v28 = vpop.f32.mrf.mxu0  ;;  %v8999_v1 = vpop.f32.mrf.mxu1  ;;  %v15843_v58 = vld [vmem:[#allocation12 + $0x280] ss:$24 sps:$4 sm:$0xff]  }
0x2624   :  { %v14007_v33 = vmul.f32 -1.442695, %v9002_v53  ;;  %v9003_v54 = vadd.f32 %v8957_v48, %v17936_v46  ;;  %v9005_v49 = vadd.f32 %v8998_v52, %v17944_v20  ;;  %v15830_v53 = vld [vmem:[#allocation12 + $0x74] ss:$24 sps:$4 sm:$0xff]   ;;  %v15828_v48 = vld [vmem:[#allocation12 + $0x70] ss:$24 sps:$4 sm:$0xff]  }
0x2625   :  { %v8959_v4 = vpop.f32.mrf.mxu0  ;;  %v9000_v18 = vpop.f32.mrf.mxu1  ;;  %v15833_v28 = vld [vmem:[#allocation12 + $0x44] ss:$24 sps:$4 sm:$0xff]   ;;  %v15831_v1 = vld [vmem:[#allocation12 + $0x40] ss:$24 sps:$4 sm:$0xff]   ;;  %v15840_v52 = vld [vmem:[#allocation12 + $0x2b0] ss:$24 sps:$4 sm:$0xff]  }
0x2626   :  { %16577 = vpow2.f32 %v14007_v33  ;;  %v14008_v59 = vmul.f32 -1.442695, %v9003_v54  ;;  %v14009_v6 = vmul.f32 -1.442695, %v9005_v49  ;;  %v15836_v33 = vld [vmem:[#allocation12 + $0x14] ss:$24 sps:$4 sm:$0xff]  }
0x2627   :  { %v15834_v54 = vld [vmem:[#allocation12 + $0x10] ss:$24 sps:$4 sm:$0xff]   ;;  %v15839_v4 = vld [vmem:[#allocation12 + $0x2e4] ss:$24 sps:$4 sm:$0xff]   ;;  %v15837_v18 = vld [vmem:[#allocation12 + $0x2e0] ss:$24 sps:$4 sm:$0xff]  }
0x2628   :  { %16579 = vpow2.f32 %v14008_v59  ;;  %v15842_v59 = vld [vmem:[#allocation12 + $0x2b4] ss:$24 sps:$4 sm:$0xff]   ;;  %v15845_v49 = vld [vmem:[#allocation12 + $0x284] ss:$24 sps:$4 sm:$0xff]  }
0x2629   :  { %16581 = vpow2.f32 %v14009_v6  ;;  %v15848_v6 = vld [vmem:[#allocation12 + $0x254] ss:$24 sps:$4 sm:$0xff]  }
0x2633   :  { %v16578_v7 = vpop.eup %16577 }
0x2634   :  { %v9009_v57 = vadd.f32 1.0, %v16578_v7  ;;  %v15846_v7 = vld [vmem:[#allocation12 + $0x250] ss:$24 sps:$4 sm:$0xff]  }
0x2635   :  { %v16580_v3 = vpop.eup %16579 }
0x2636   :  { %16583 = vrcp.f32 %v9009_v57  ;;  %v9015_v10 = vadd.f32 1.0, %v16580_v3  ;;  %v16582_v23 = vpop.eup %16581  ;;  %v15849_v57 = vld [vmem:[#allocation12 + $0x220] ss:$24 sps:$4 sm:$0xff]   ;;  %v15854_v3 = vld [vmem:[#allocation12 + $0x1f4] ss:$24 sps:$4 sm:$0xff]  }
0x2637   :  { %16585 = vtanh.f32 %v9004_v16  ;;  %v9022_v5 = vadd.f32 1.0, %v16582_v23  ;;  %v15851_v16 = vld [vmem:[#allocation12 + $0x224] ss:$24 sps:$4 sm:$0xff]  }
0x2638   :  { %16587 = vrcp.f32 %v9015_v10  ;;  %v15852_v10 = vld [vmem:[#allocation12 + $0x1f0] ss:$24 sps:$4 sm:$0xff]   ;;  %v15857_v23 = vld [vmem:[#allocation12 + $0x1c4] ss:$24 sps:$4 sm:$0xff]  }
0x2639   :  { %16589 = vrcp.f32 %v9022_v5 }
0x2643   :  { %v16584_v14 = vpop.eup %16583 }
0x2644   :  { %v16586_v15 = vpop.eup %16585 }
0x2645   :  { %v16588_v8 = vpop.eup %16587  ;;  %v9026_v62 = vmul.f32 %v16586_v15, %v16584_v14  ;;  %v15855_v14 = vld [vmem:[#allocation12 + $0x1c0] ss:$24 sps:$4 sm:$0xff]   ;;  %v15860_v15 = vld [vmem:[#allocation12 + $0x194] ss:$24 sps:$4 sm:$0xff]  }
0x2646   :  { %v9025_v43 = vmul.f32 %v16588_v8, %v18301_v60  ;;  %v16590_v44 = vpop.eup %16589  ;;  %v15816_v60 = vld [vmem:[#allocation12 + $0x130] ss:$24 sps:$4 sm:$0xff]  }
0x2647   :  { %v15858_v8 = vld [vmem:[#allocation12 + $0x190] ss:$24 sps:$4 sm:$0xff]  }
0x2648   :  { %v18424_v31 = vadd.f32 %v9026_v62, %v9025_v43 }
0x264a   :  { %16591 = vtanh.f32 %v18424_v31  ;;  %v9031_v39 = vpack.c.bf16 %v18424_v31, %v18424_v31 }
0x264c   :  { %9640 = vmatprep.mubr.bf16.mxu0 %v9031_v39  ;;  %9681 = vmatprep.mubr.bf16.mxu1 %v9031_v39 }
0x2657   :  { %v16592_v35 = vpop.eup %16591 }
0x2658   :  { %v9029_v36 = vmul.f32 %v16592_v35, %v16590_v44 }
0x265a   :  { %v18429_v30 = vpack.c.bf16 %v9029_v36, %v9029_v36 }
0x265c   :  { %9641 = vmatmul.mubr.bf16.vlgmr.msra.gmra.mxu0 %v18429_v30  ;;  %9682 = vmatmul.mubr.bf16.vlgmr.msra.gmra.mxu1 %v18429_v30 }
0x265d   :  { %9691 = vmatpush1.bf16.msra.mxu0 %v15813_v63  ;;  %9722 = vmatprep.mubr.bf16.mxu0 %v9031_v39 }
0x265e   :  { %9692 = vmatprep.subr.bf16.mxu0 %v15818_v34  ;;  %9884 = vmatprep.mubr.bf16.mxu1 %v18975_v40 }
0x2661   :  { %9693 = vmatpush1.bf16.msra.mxu0 %v15816_v60  ;;  %v18447_v60 = vld [vmem:[%s18915_s12] ss:$0 sm:$0xff] }
0x2662   :  { %9694 = vmatprep.subr.bf16.mxu0 %v15821_v11 }
0x2665   :  { %9695 = vmatpush1.bf16.msra.mxu0 %v15819_v19 }
0x2666   :  { %9696 = vmatprep.subr.bf16.mxu0 %v15824_v13 }
0x2669   :  { %9697 = vmatpush1.bf16.msra.mxu0 %v15822_v61 }
0x266a   :  { %9698 = vmatprep.subr.bf16.mxu0 %v15827_v38 }
0x266d   :  { %9699 = vmatpush1.bf16.msra.mxu0 %v15825_v21 }
0x266e   :  { %9700 = vmatprep.subr.bf16.mxu0 %v15830_v53 }
0x2671   :  { %9701 = vmatpush1.bf16.msra.mxu0 %v15828_v48  ;;  %v15861_v48 = vld [vmem:[%s18908_s5 + $0x70] ss:$8 sps:$4 sm:$0xff]  }
0x2672   :  { %9702 = vmatprep.subr.bf16.mxu0 %v15833_v28  ;;  %v15863_v28 = vld [vmem:[%s18908_s5 + $0x74] ss:$8 sps:$4 sm:$0xff]  }
0x2673   :  { %9852 = vmatprep.subr.bf16.mxu1 %v15863_v28 }
0x2674   :  { %9853 = vmatpush1.bf16.msra.mxu1 %v15861_v48 }
0x2675   :  { %9703 = vmatpush1.bf16.msra.mxu0 %v15831_v1  ;;  %v15866_v1 = vld [vmem:[%s18908_s5 + $0x64] ss:$8 sps:$4 sm:$0xff]  }
0x2676   :  { %9704 = vmatprep.subr.bf16.mxu0 %v15836_v33  ;;  %v15864_v33 = vld [vmem:[%s18908_s5 + $0x60] ss:$8 sps:$4 sm:$0xff]   ;;  %9854 = vmatprep.subr.bf16.mxu1 %v15866_v1 }
0x2678   :  { %9855 = vmatpush1.bf16.msra.mxu1 %v15864_v33 }
0x2679   :  { %9705 = vmatpush1.bf16.msra.mxu0 %v15834_v54  ;;  %v15869_v54 = vld [vmem:[%s18908_s5 + $0x54] ss:$8 sps:$4 sm:$0xff]  }
0x267a   :  { %9706 = vmatprep.subr.bf16.mxu0 %v15839_v4  ;;  %v15867_v4 = vld [vmem:[%s18908_s5 + $0x50] ss:$8 sps:$4 sm:$0xff]   ;;  %9856 = vmatprep.subr.bf16.mxu1 %v15869_v54 }
0x267c   :  { %9857 = vmatpush1.bf16.msra.mxu1 %v15867_v4  ;;  %v15885_v4 = vld [vmem:[#allocation10 + $0xe0] ss:$16 sps:$4 sm:$0xff]  }
0x267d   :  { %9707 = vmatpush2.bf16.msra.mxu0 %v15837_v18  ;;  %v15872_v18 = vld [vmem:[%s18908_s5 + $0x44] ss:$8 sps:$4 sm:$0xff]  }
0x267e   :  { %9708 = vmatprep.subr.bf16.mxu0 %v15842_v59  ;;  %v15870_v59 = vld [vmem:[%s18908_s5 + $0x40] ss:$8 sps:$4 sm:$0xff]   ;;  %9858 = vmatprep.subr.bf16.mxu1 %v15872_v18 }
0x267f   :  { %v15888_v18 = vld [vmem:[#allocation10 + $0xe8] ss:$16 sps:$4 sm:$0xff]  }
0x2680   :  { %9859 = vmatpush1.bf16.msra.mxu1 %v15870_v59  ;;  %v15890_v59 = vld [vmem:[#allocation10 + $0xec] ss:$16 sps:$4 sm:$0xff]  }
0x2681   :  { %9709 = vmatpush2.bf16.msra.mxu0 %v15840_v52  ;;  %v15875_v52 = vld [vmem:[%s18908_s5 + $0x34] ss:$8 sps:$4 sm:$0xff]  }
0x2682   :  { %9710 = vmatprep.subr.bf16.mxu0 %v15845_v49  ;;  %v15873_v49 = vld [vmem:[%s18908_s5 + $0x30] ss:$8 sps:$4 sm:$0xff]   ;;  %9860 = vmatprep.subr.bf16.mxu1 %v15875_v52  ;;  %v15896_v52 = vld [vmem:[#allocation10 + $0xcc] ss:$16 sps:$4 sm:$0xff]  }
0x2684   :  { %9861 = vmatpush1.bf16.msra.mxu1 %v15873_v49  ;;  %v15891_v49 = vld [vmem:[#allocation10 + $0xc0] ss:$16 sps:$4 sm:$0xff]  }
0x2685   :  { %9711 = vmatpush2.bf16.msra.mxu0 %v15843_v58  ;;  %v15878_v58 = vld [vmem:[%s18908_s5 + $0x24] ss:$8 sps:$4 sm:$0xff]  }
0x2686   :  { %9712 = vmatprep.subr.bf16.mxu0 %v15848_v6  ;;  %v15876_v6 = vld [vmem:[%s18908_s5 + $0x20] ss:$8 sps:$4 sm:$0xff]   ;;  %9862 = vmatprep.subr.bf16.mxu1 %v15878_v58 }
0x2687   :  { %v15894_v58 = vld [vmem:[#allocation10 + $0xc8] ss:$16 sps:$4 sm:$0xff]  }
0x2688   :  { %9863 = vmatpush1.bf16.msra.mxu1 %v15876_v6  ;;  %v15899_v6 = vld [vmem:[#allocation10 + $0xa4] ss:$16 sps:$4 sm:$0xff]  }
0x2689   :  { %9713 = vmatpush2.bf16.msra.mxu0 %v15846_v7  ;;  %v15881_v7 = vld [vmem:[%s18908_s5 + $0x14] ss:$8 sps:$4 sm:$0xff]  }
0x268a   :  { %9714 = vmatprep.subr.bf16.mxu0 %v15851_v16  ;;  %v15879_v16 = vld [vmem:[%s18908_s5 + $0x10] ss:$8 sps:$4 sm:$0xff]   ;;  %9864 = vmatprep.subr.bf16.mxu1 %v15881_v7  ;;  %v15902_v7 = vld [vmem:[#allocation10 + $0xac] ss:$16 sps:$4 sm:$0xff]  }
0x268c   :  { %9865 = vmatpush1.bf16.msra.mxu1 %v15879_v16  ;;  %v15897_v16 = vld [vmem:[#allocation10 + $0xa0] ss:$16 sps:$4 sm:$0xff]  }
0x268d   :  { %9715 = vmatpush2.bf16.msra.mxu0 %v15849_v57 }
0x268e   :  { %9716 = vmatprep.subr.bf16.mxu0 %v15854_v3 }
0x2691   :  { %9717 = vmatpush2.bf16.msra.mxu0 %v15852_v10 }
0x2692   :  { %9718 = vmatprep.subr.bf16.mxu0 %v15857_v23 }
0x2695   :  { %9719 = vmatpush2.bf16.msra.mxu0 %v15855_v14  ;;  %v15884_v14 = vld [vmem:[%s18908_s5 + $0x4] ss:$8 sps:$4 sm:$0xff]  }
0x2696   :  { %9720 = vmatprep.subr.bf16.mxu0 %v15860_v15  ;;  %v15882_v15 = vld [vmem:[%s18908_s5] ss:$8 sps:$4 sm:$0xff]   ;;  %9866 = vmatprep.subr.bf16.mxu1 %v15884_v14 }
0x2697   :  { %9867 = vmatpush1.bf16.msra.mxu1 %v15882_v15  ;;  %v15906_v14 = vld [vmem:[#allocation10 + $0x88] ss:$16 sps:$4 sm:$0xff]   ;;  %v15911_v15 = vld [vmem:[#allocation10 + $0x64] ss:$16 sps:$4 sm:$0xff]  }
0x2699   :  { %9721 = vmatpush2.bf16.msra.mxu0 %v15858_v8 }
0x269a   :  { %10196 = vmatprep.subr.bf16.mxu0 %v15890_v59 }
0x269c   :  { %9723 = vmatmul.mubr.bf16.vlgmr.msra.gmra.mxu0 %v18429_v30 }
0x269d   :  { %10228 = vmatprep.mubr.bf16.mxu0 %v18975_v40  ;;  %10197 = vmatpush1.bf16.msra.mxu0 %v15888_v18 }
0x269e   :  { %10198 = vmatprep.subr.bf16.mxu0 %v15896_v52 }
0x26a1   :  { %10199 = vmatpush1.bf16.msra.mxu0 %v15894_v58 }
0x26a2   :  { %10200 = vmatprep.subr.bf16.mxu0 %v15902_v7 }
0x271c   :  { %v18436_v5 = vpop.f32.mrf.mxu0  ;;  %v18438_v43 = vpop.f32.mrf.mxu1 }
0x271e   :  { %v18440_v62 = vpop.f32.mrf.mxu0  ;;  %v18442_v39 = vpop.f32.mrf.mxu1 }
0x2720   :  { %v9646_v44 = vpop.f32.mrf.mxu0  ;;  %v9687_v35 = vpop.f32.mrf.mxu1 }
0x2722   :  { %v9647_v36 = vpop.f32.mrf.mxu0  ;;  %v9688_v63 = vpop.f32.mrf.mxu1 }
0x275c   :  { %v9724_v34 = vpop.f32.mrf.mxu0 }
0x275d   :  { %v9731_v30 = vadd.f32 %v18447_v60, %v9724_v34 }
0x275e   :  { %v9726_v11 = vpop.f32.mrf.mxu0 }
0x275f   :  { %9733 = vst [vmem:[#allocation13 + $0x20] sm:$0xff] %v9731_v30  ;;  %9734 = vmax.xlane.f32.xlu1 %v9731_v30 }
0x2760   :  { %v9728_v19 = vpop.f32.mrf.mxu0 }
0x2762   :  { %v9729_v13 = vpop.f32.mrf.mxu0 }
0x27e8   :  { %v9735_v61 = vpop.xlane.xlu1 %9734 }
0x27e9   :  { %vm9736_vm4 = vcmp.ge.f32.partialorder %v9731_v30, %v9735_v61 }
0x27ea   :  { %v9737_v38 = vsel %vm9736_vm4, %v19001_v51, 128 }
0x27eb   :  { %v9739_v21 = vshra.s32 %v9737_v38, 16  ;;  %v9738_v57 = vand.u32 65535, %v9737_v38 }
0x27ed   :  { %v9741_v53 = vcvt.s32.f32 %v9739_v21  ;;  %v9740_v10 = vcvt.s32.f32 %v9738_v57  ;;  %v15900_v57 = vld [vmem:[#allocation10 + $0xa8] ss:$16 sps:$4 sm:$0xff]  }
0x27ee   :  { %10201 = vmatpush1.bf16.msra.mxu0 %v15900_v57 }
0x27ef   :  { %9742 = vmin.xlane.f32.xlu0 %v9741_v53 }
0x2878   :  { %v9743_v3 = vpop.xlane.xlu0 %9742 }
0x2879   :  { %vm9744_vm5 = vcmp.eq.f32.partialorder %v9741_v53, %v9743_v3  ;;  %v9749_v8 = vcvt.f32.s32 %v9743_v3  ;;  %v15905_v3 = vld [vmem:[#allocation10 + $0x84] ss:$16 sps:$4 sm:$0xff]  }
0x287a   :  { %v9745_v23 = vsel %vm9744_vm5, %v9740_v10, inf  ;;  %v15908_v10 = vld [vmem:[#allocation10 + $0x8c] ss:$16 sps:$4 sm:$0xff]  }
0x287b   :  { %9746 = vmin.xlane.f32.xlu0 %v9745_v23  ;;  %v9750_v35 = vshll.u32 %v9749_v8, 16  ;;  %v15903_v23 = vld [vmem:[#allocation10 + $0x80] ss:$16 sps:$4 sm:$0xff]   ;;  %10202 = vmatprep.subr.bf16.mxu0 %v15908_v10  ;;  %v15914_v8 = vld [vmem:[#allocation10 + $0x6c] ss:$16 sps:$4 sm:$0xff]  }
0x287c   :  { %10203 = vmatpush1.bf16.msra.mxu0 %v15906_v14 }
0x287d   :  { %10204 = vmatprep.subr.bf16.mxu0 %v15914_v8 }
0x2904   :  { %v9747_v44 = vpop.xlane.xlu0 %9746 }
0x2905   :  { %v9748_v36 = vcvt.f32.s32 %v9747_v44  ;;  %v15909_v44 = vld [vmem:[#allocation10 + $0x60] ss:$16 sps:$4 sm:$0xff]  }
0x2907   :  { %v9751_v63 = vadd.s32 %v9750_v35, %v9748_v36  ;;  %v15912_v35 = vld [vmem:[#allocation10 + $0x68] ss:$16 sps:$4 sm:$0xff]   ;;  %v15915_v36 = vld [vmem:[#allocation10 + $0x40] ss:$16 sps:$4 sm:$0xff]  }
0x2908   :  { %10205 = vmatpush1.bf16.msra.mxu0 %v15912_v35 }
0x2909   :  { %vm9752_vm6 = vcmp.eq.s32.totalorder %v19001_v51, %v9751_v63  ;;  %v15917_v63 = vld [vmem:[#allocation10 + $0x44] ss:$16 sps:$4 sm:$0xff]  }
0x290a   :  { %vm14123_vm7 = vmpackc.low %vm9752_vm6, %vm9752_vm6 }
0x290b   :  { %14124 = vmatmul.mubr.msk.bf16.vlgmr.msra.gmra.mxu1 %vm14123_vm7, %v19002_v47 }
0x290c   :  { %10187 = vmatprep.mubr.bf16.mxu1 %v18975_v40 }
0x29cb   :  { %v9886_v34 = vpop.f32.mrf.mxu1 }
0x29cc   :  { %v9893_v30 = vadd.f32 %v9886_v34, %v9726_v11  ;;  %v15887_v11 = vld [vmem:[#allocation10 + $0xe4] ss:$16 sps:$4 sm:$0xff]   ;;  %v15918_v34 = vld [vmem:[#allocation10 + $0x48] ss:$16 sps:$4 sm:$0xff]  }
0x29cd   :  { %v18502_v19 = vpop.f32.mrf.mxu1  ;;  %10155 = vmatprep.subr.bf16.mxu1 %v15887_v11 }
0x29ce   :  { %v9894_v13 = vadd.f32 %v18379_v26, %v9893_v30  ;;  %10156 = vmatpush1.bf16.msra.mxu1 %v15885_v4  ;;  %v15893_v26 = vld [vmem:[#allocation10 + $0xc4] ss:$16 sps:$4 sm:$0xff]   ;;  %v15920_v30 = vld [vmem:[#allocation10 + $0x4c] ss:$16 sps:$4 sm:$0xff]   ;;  %v9904_v52 = vadd.f32 %v18404_v12, %v18502_v19 }
0x29cf   :  { %v9890_v61 = vpop.f32.mrf.mxu1  ;;  %10157 = vmatprep.subr.bf16.mxu1 %v15893_v26  ;;  %10206 = vmatprep.subr.bf16.mxu0 %v15920_v30  ;;  %v15938_v4 = vld [vmem:[#allocation12 + $0x15c] ss:$24 sps:$4 sm:$0xff]   ;;  %v15933_v30 = vld [vmem:[#allocation12 + $0x150] ss:$24 sps:$4 sm:$0xff]  }
0x29d0   :  { %9895 = vmax.xlane.f32.xlu1 %v9894_v13  ;;  %v15926_v61 = vld [vmem:[#allocation10 + $0x2c] ss:$16 sps:$4 sm:$0xff]   ;;  %10207 = vmatpush1.bf16.msra.mxu0 %v15918_v34 }
0x29d1   :  { %v9891_v38 = vpop.f32.mrf.mxu1  ;;  %10208 = vmatprep.subr.bf16.mxu0 %v15926_v61 }
0x29d2   :  { %10158 = vmatpush1.bf16.msra.mxu1 %v15891_v49  ;;  %v15921_v38 = vld [vmem:[#allocation10 + $0x20] ss:$16 sps:$4 sm:$0xff]  }
0x29d3   :  { %10159 = vmatprep.subr.bf16.mxu1 %v15899_v6 }
0x29d6   :  { %10160 = vmatpush1.bf16.msra.mxu1 %v15897_v16 }
0x29d7   :  { %10161 = vmatprep.subr.bf16.mxu1 %v15905_v3 }
0x29da   :  { %10162 = vmatpush1.bf16.msra.mxu1 %v15903_v23 }
0x29db   :  { %10163 = vmatprep.subr.bf16.mxu1 %v15911_v15 }
0x29de   :  { %10164 = vmatpush1.bf16.msra.mxu1 %v15909_v44 }
0x29df   :  { %10165 = vmatprep.subr.bf16.mxu1 %v15917_v63 }
0x29e2   :  { %10166 = vmatpush1.bf16.msra.mxu1 %v15915_v36 }
0x2a59   :  { %v9896_v21 = vpop.xlane.xlu1 %9895 }
0x2a5a   :  { %v9897_v53 = vsub.f32 %v9894_v13, %v9896_v21  ;;  %v15923_v13 = vld [vmem:[#allocation10 + $0x24] ss:$16 sps:$4 sm:$0xff]   ;;  %v15924_v21 = vld [vmem:[#allocation10 + $0x28] ss:$16 sps:$4 sm:$0xff]  }
0x2a5b   :  { %10167 = vmatprep.subr.bf16.mxu1 %v15923_v13  ;;  %10209 = vmatpush1.bf16.msra.mxu0 %v15924_v21  ;;  %v15936_v13 = vld [vmem:[#allocation12 + $0x158] ss:$24 sps:$4 sm:$0xff]  }
0x2a5c   :  { %v9898_v48 = vmul.f32 1.442695, %v9897_v53  ;;  %10168 = vmatpush1.bf16.msra.mxu1 %v15921_v38  ;;  %v15929_v53 = vld [vmem:[#allocation10 + $0x4] ss:$16 sps:$4 sm:$0xff]   ;;  %v15939_v21 = vld [vmem:[#allocation12 + $0x120] ss:$24 sps:$4 sm:$0xff]  }
0x2a5d   :  { %10169 = vmatprep.subr.bf16.mxu1 %v15929_v53  ;;  %v15941_v38 = vld [vmem:[#allocation12 + $0x124] ss:$24 sps:$4 sm:$0xff]  }
0x2a5e   :  { %16593 = vpow2.f32 %v9898_v48  ;;  %v15932_v48 = vld [vmem:[#allocation10 + $0xc] ss:$16 sps:$4 sm:$0xff]  }
0x2a5f   :  { %10210 = vmatprep.subr.bf16.mxu0 %v15932_v48  ;;  %v15944_v53 = vld [vmem:[#allocation12 + $0x12c] ss:$24 sps:$4 sm:$0xff]   ;;  %v15942_v48 = vld [vmem:[#allocation12 + $0x128] ss:$24 sps:$4 sm:$0xff]  }
0x2a6b   :  { %v16594_v28 = vpop.eup %16593 }
0x2a6c   :  { %9900 = vadd.xlane.f32.xlu0 %v16594_v28 }
0x2af5   :  { %v9901_v1 = vpop.xlane.xlu0 %9900 }
0x2af6   :  { %16595 = vrcp.f32 %v9901_v1  ;;  %v15930_v1 = vld [vmem:[#allocation10 + $0x8] ss:$16 sps:$4 sm:$0xff]  }
0x2af7   :  { %10211 = vmatpush1.bf16.msra.mxu0 %v15930_v1  ;;  %v15945_v1 = vld [vmem:[#allocation12 + $0xf0] ss:$24 sps:$4 sm:$0xff]  }
0x2af8   :  { %10884 = vmatprep.subr.bf16.mxu0 %v15938_v4  ;;  %v15948_v4 = vld [vmem:[#allocation12 + $0xf8] ss:$24 sps:$4 sm:$0xff]  }
0x2b03   :  { %v16596_v33 = vpop.eup %16595 }
0x2b04   :  { %v18505_v54 = vmul.f32 %v16596_v33, %v16594_v28  ;;  %v15927_v28 = vld [vmem:[#allocation10] ss:$16 sps:$4 sm:$0xff]   ;;  %v15935_v33 = vld [vmem:[#allocation12 + $0x154] ss:$24 sps:$4 sm:$0xff]  }
0x2b05   :  { %10170 = vmatpush1.bf16.msra.mxu1 %v15927_v28  ;;  %v15947_v28 = vld [vmem:[#allocation12 + $0xf4] ss:$24 sps:$4 sm:$0xff]  }
0x2b06   :  { %9915 = vperm.xlu0 %14640, %v18505_v54   ;;  %9908 = vperm.xlu1 %14639, %v18505_v54  }
0x2b07   :  { %10843 = vmatprep.subr.bf16.mxu1 %v15935_v33  ;;  %v15950_v33 = vld [vmem:[#allocation12 + $0xfc] ss:$24 sps:$4 sm:$0xff]  }
0x2b0a   :  { %14641 = vset.pattern.permute.xlu1 %v19016_v29 }
0x2b0b   :  { %9922 = vperm.xlu1 %14641, %v18505_v54  }
0x2b0f   :  { %14642 = vset.pattern.permute.xlu1 %v19018_v9 }
0x2b10   :  { %9929 = vperm.xlu1 %14642, %v18505_v54  }
0x2b14   :  { %14643 = vset.pattern.permute.xlu1 %v19019_v55 }
0x2b15   :  { %9936 = vperm.xlu1 %14643, %v18505_v54  }
0x2b19   :  { %14644 = vset.pattern.permute.xlu1 %v19020_v22 }
0x2b1a   :  { %9943 = vperm.xlu1 %14644, %v18505_v54  }
0x2b1e   :  { %14645 = vset.pattern.permute.xlu1 %v19021_v41 }
0x2b1f   :  { %9950 = vperm.xlu1 %14645, %v18505_v54  }
0x2b23   :  { %14646 = vset.pattern.permute.xlu1 %v19022_v2 }
0x2b24   :  { %9957 = vperm.xlu1 %14646, %v18505_v54  }
0x2b28   :  { %14647 = vset.pattern.permute.xlu1 %v18975_v40 }
0x2b81   :  { %v9909_v11 = vpop.permute.xlu1 %9908  ;;  %v9916_v49 = vpop.permute.xlu0 %9915 }
0x2b82   :  { %v9911_v26 = vmul.f32 %v9909_v11, %v17840_v0  ;;  %v9918_v54 = vmul.f32 %v9916_v49, %v17844_v25  ;;  %v15953_v11 = vld [vmem:[#allocation12 + $0xc4] ss:$24 sps:$4 sm:$0xff]   ;;  %v15957_v49 = vld [vmem:[#allocation12 + $0x90] ss:$24 sps:$4 sm:$0xff]  }
0x2b84   :  { %v9912_v58 = vadd.f32 %v9911_v26, %v9904_v52  ;;  %v15954_v26 = vld [vmem:[#allocation12 + $0xc8] ss:$24 sps:$4 sm:$0xff]   ;;  %v15959_v52 = vld [vmem:[#allocation12 + $0x94] ss:$24 sps:$4 sm:$0xff]  }
0x2b86   :  { %v9923_v18 = vpop.permute.xlu1 %9922  ;;  %v9919_v7 = vadd.f32 %v9918_v54, %v9912_v58  ;;  %v15962_v58 = vld [vmem:[#allocation12 + $0x9c] ss:$24 sps:$4 sm:$0xff]  }
0x2b87   :  { %v9925_v16 = vmul.f32 %v17838_v50, %v9923_v18  ;;  %v15951_v18 = vld [vmem:[#allocation12 + $0xc0] ss:$24 sps:$4 sm:$0xff]   ;;  %v15965_v54 = vld [vmem:[#allocation12 + $0x64] ss:$24 sps:$4 sm:$0xff]  }
0x2b89   :  { %v9926_v10 = vadd.f32 %v9925_v16, %v9919_v7  ;;  %v15963_v7 = vld [vmem:[#allocation12 + $0x60] ss:$24 sps:$4 sm:$0xff]   ;;  %v15968_v16 = vld [vmem:[#allocation12 + $0x6c] ss:$24 sps:$4 sm:$0xff]  }
0x2b8b   :  { %v9930_v59 = vpop.permute.xlu1 %9929 }
0x2b8c   :  { %v9932_v3 = vmul.f32 %v17842_v37, %v9930_v59  ;;  %v15956_v59 = vld [vmem:[#allocation12 + $0xcc] ss:$24 sps:$4 sm:$0xff]  }
0x2b8e   :  { %v9933_v14 = vadd.f32 %v9932_v3, %v9926_v10  ;;  %v15971_v3 = vld [vmem:[#allocation12 + $0x34] ss:$24 sps:$4 sm:$0xff]   ;;  %v15969_v10 = vld [vmem:[#allocation12 + $0x30] ss:$24 sps:$4 sm:$0xff]  }
0x2b90   :  { %v9937_v6 = vpop.permute.xlu1 %9936 }
0x2b91   :  { %v9939_v23 = vmul.f32 %v9937_v6, %v17850_v32  ;;  %v15960_v6 = vld [vmem:[#allocation12 + $0x98] ss:$24 sps:$4 sm:$0xff]  }
0x2b93   :  { %v9940_v44 = vadd.f32 %v9939_v23, %v9933_v14  ;;  %v15974_v23 = vld [vmem:[#allocation12 + $0x3c] ss:$24 sps:$4 sm:$0xff]   ;;  %v15972_v14 = vld [vmem:[#allocation12 + $0x38] ss:$24 sps:$4 sm:$0xff]  }
0x2b95   :  { %v9944_v57 = vpop.permute.xlu1 %9943 }
0x2b96   :  { %v9946_v15 = vmul.f32 %v9944_v57, %v17856_v27  ;;  %v15966_v57 = vld [vmem:[#allocation12 + $0x68] ss:$24 sps:$4 sm:$0xff]  }
0x2b98   :  { %v9947_v19 = vadd.f32 %v9946_v15, %v9940_v44  ;;  %v15977_v15 = vld [vmem:[#allocation12 + $0x4] ss:$24 sps:$4 sm:$0xff]  }
0x2b99   :  { %v15980_v44 = vld [vmem:[#allocation12 + $0xc] ss:$24 sps:$4 sm:$0xff]  }
0x2b9a   :  { %v9951_v8 = vpop.permute.xlu1 %9950 }
0x2b9b   :  { %v9953_v12 = vmul.f32 %v17846_v45, %v9951_v8  ;;  %v15975_v8 = vld [vmem:[#allocation12] ss:$24 sps:$4 sm:$0xff]  }
0x2b9d   :  { %v9954_v36 = vadd.f32 %v9953_v12, %v9947_v19  ;;  %v15978_v12 = vld [vmem:[#allocation12 + $0x8] ss:$24 sps:$4 sm:$0xff]  }
0x2b9e   :  { %v15981_v19 = vld [vmem:[#allocation12 + $0x2d0] ss:$24 sps:$4 sm:$0xff]  }
0x2b9f   :  { %v9958_v35 = vpop.permute.xlu1 %9957 }
0x2ba0   :  { %v9960_v63 = vmul.f32 %v17854_v42, %v9958_v35  ;;  %v15983_v35 = vld [vmem:[#allocation12 + $0x2d4] ss:$24 sps:$4 sm:$0xff]  }
0x2ba2   :  { %v9961_v34 = vadd.f32 %v9960_v63, %v9954_v36  ;;  %v15984_v36 = vld [vmem:[#allocation12 + $0x2d8] ss:$24 sps:$4 sm:$0xff]   ;;  %v15986_v63 = vld [vmem:[#allocation12 + $0x2dc] ss:$24 sps:$4 sm:$0xff]  }
0x2ba4   :  { %v9962_v61 = vpack.c.bf16 %v9961_v34, %v9961_v34  ;;  %v15989_v34 = vld [vmem:[#allocation12 + $0x2a4] ss:$24 sps:$4 sm:$0xff]  }
0x2ba6   :  { %10188 = vmatmul.mubr.bf16.vlgmr.msra.gmra.mxu1 %v9962_v61  ;;  %10229 = vmatmul.mubr.bf16.vlgmr.msra.gmra.mxu0 %v9962_v61  ;;  %v15990_v61 = vld [vmem:[#allocation12 + $0x2a8] ss:$24 sps:$4 sm:$0xff]  }
0x2ba7   :  { %10844 = vmatpush1.bf16.msra.mxu1 %v15933_v30  ;;  %10885 = vmatpush1.bf16.msra.mxu0 %v15936_v13  ;;  %v15992_v30 = vld [vmem:[#allocation12 + $0x2ac] ss:$24 sps:$4 sm:$0xff]   ;;  %v15987_v13 = vld [vmem:[#allocation12 + $0x2a0] ss:$24 sps:$4 sm:$0xff]  }
0x2ba8   :  { %10845 = vmatprep.subr.bf16.mxu1 %v15941_v38  ;;  %10886 = vmatprep.subr.bf16.mxu0 %v15944_v53  ;;  %v15995_v38 = vld [vmem:[#allocation12 + $0x274] ss:$24 sps:$4 sm:$0xff]   ;;  %v15993_v53 = vld [vmem:[#allocation12 + $0x270] ss:$24 sps:$4 sm:$0xff]  }
0x2bab   :  { %10846 = vmatpush1.bf16.msra.mxu1 %v15939_v21  ;;  %10887 = vmatpush1.bf16.msra.mxu0 %v15942_v48  ;;  %v15998_v21 = vld [vmem:[#allocation12 + $0x27c] ss:$24 sps:$4 sm:$0xff]   ;;  %v15996_v48 = vld [vmem:[#allocation12 + $0x278] ss:$24 sps:$4 sm:$0xff]  }
0x2bac   :  { %10847 = vmatprep.subr.bf16.mxu1 %v15947_v28  ;;  %10888 = vmatprep.subr.bf16.mxu0 %v15950_v33  ;;  %v16001_v28 = vld [vmem:[#allocation12 + $0x244] ss:$24 sps:$4 sm:$0xff]   ;;  %v15999_v33 = vld [vmem:[#allocation12 + $0x240] ss:$24 sps:$4 sm:$0xff]  }
0x2baf   :  { %10848 = vmatpush1.bf16.msra.mxu1 %v15945_v1  ;;  %10889 = vmatpush1.bf16.msra.mxu0 %v15948_v4  ;;  %v16004_v1 = vld [vmem:[#allocation12 + $0x24c] ss:$24 sps:$4 sm:$0xff]   ;;  %v16002_v4 = vld [vmem:[#allocation12 + $0x248] ss:$24 sps:$4 sm:$0xff]  }
0x2bb0   :  { %10849 = vmatprep.subr.bf16.mxu1 %v15953_v11  ;;  %10890 = vmatprep.subr.bf16.mxu0 %v15956_v59  ;;  %v16007_v11 = vld [vmem:[#allocation12 + $0x214] ss:$24 sps:$4 sm:$0xff]  }
0x2bb1   :  { %v16010_v59 = vld [vmem:[#allocation12 + $0x21c] ss:$24 sps:$4 sm:$0xff]  }
0x2bb3   :  { %10850 = vmatpush1.bf16.msra.mxu1 %v15951_v18  ;;  %10891 = vmatpush1.bf16.msra.mxu0 %v15954_v26  ;;  %v16005_v18 = vld [vmem:[#allocation12 + $0x210] ss:$24 sps:$4 sm:$0xff]  }
0x2bb4   :  { %10851 = vmatprep.subr.bf16.mxu1 %v15959_v52  ;;  %10892 = vmatprep.subr.bf16.mxu0 %v15962_v58  ;;  %v16008_v26 = vld [vmem:[#allocation12 + $0x218] ss:$24 sps:$4 sm:$0xff]   ;;  %v16013_v52 = vld [vmem:[#allocation12 + $0x1e4] ss:$24 sps:$4 sm:$0xff]  }
0x2bb5   :  { %v16016_v58 = vld [vmem:[#allocation12 + $0x1ec] ss:$24 sps:$4 sm:$0xff]  }
0x2bb7   :  { %10852 = vmatpush1.bf16.msra.mxu1 %v15957_v49  ;;  %10893 = vmatpush1.bf16.msra.mxu0 %v15960_v6  ;;  %v16011_v49 = vld [vmem:[#allocation12 + $0x1e0] ss:$24 sps:$4 sm:$0xff]  }
0x2bb8   :  { %10853 = vmatprep.subr.bf16.mxu1 %v15965_v54  ;;  %10894 = vmatprep.subr.bf16.mxu0 %v15968_v16  ;;  %v16014_v6 = vld [vmem:[#allocation12 + $0x1e8] ss:$24 sps:$4 sm:$0xff]   ;;  %v16019_v54 = vld [vmem:[#allocation12 + $0x1b4] ss:$24 sps:$4 sm:$0xff]  }
0x2bb9   :  { %v16017_v16 = vld [vmem:[#allocation12 + $0x1b0] ss:$24 sps:$4 sm:$0xff]  }
0x2bbb   :  { %10854 = vmatpush1.bf16.msra.mxu1 %v15963_v7  ;;  %10895 = vmatpush1.bf16.msra.mxu0 %v15966_v57  ;;  %v16022_v7 = vld [vmem:[#allocation12 + $0x1bc] ss:$24 sps:$4 sm:$0xff]   ;;  %v16020_v57 = vld [vmem:[#allocation12 + $0x1b8] ss:$24 sps:$4 sm:$0xff]  }
0x2bbc   :  { %10855 = vmatprep.subr.bf16.mxu1 %v15971_v3  ;;  %10896 = vmatprep.subr.bf16.mxu0 %v15974_v23  ;;  %v16025_v3 = vld [vmem:[#allocation12 + $0x184] ss:$24 sps:$4 sm:$0xff]   ;;  %v16023_v23 = vld [vmem:[#allocation12 + $0x180] ss:$24 sps:$4 sm:$0xff]  }
0x2bbf   :  { %10856 = vmatpush1.bf16.msra.mxu1 %v15969_v10  ;;  %10897 = vmatpush1.bf16.msra.mxu0 %v15972_v14  ;;  %v16028_v10 = vld [vmem:[#allocation12 + $0x18c] ss:$24 sps:$4 sm:$0xff]   ;;  %v16026_v14 = vld [vmem:[#allocation12 + $0x188] ss:$24 sps:$4 sm:$0xff]  }
0x2bc0   :  { %10857 = vmatprep.subr.bf16.mxu1 %v15977_v15  ;;  %10898 = vmatprep.subr.bf16.mxu0 %v15980_v44  ;;  %v16031_v15 = vld [vmem:[#allocation12 + $0x164] ss:$24 sps:$4 sm:$0xff]  }
0x2bc3   :  { %10858 = vmatpush1.bf16.msra.mxu1 %v15975_v8  ;;  %10899 = vmatpush1.bf16.msra.mxu0 %v15978_v12 }
0x2bc4   :  { %10859 = vmatprep.subr.bf16.mxu1 %v15983_v35  ;;  %10900 = vmatprep.subr.bf16.mxu0 %v15986_v63 }
0x2bc7   :  { %10860 = vmatpush2.bf16.msra.mxu1 %v15981_v19  ;;  %10901 = vmatpush2.bf16.msra.mxu0 %v15984_v36 }
0x2bc8   :  { %10861 = vmatprep.subr.bf16.mxu1 %v15989_v34  ;;  %10902 = vmatprep.subr.bf16.mxu0 %v15992_v30 }
0x2bcb   :  { %10862 = vmatpush2.bf16.msra.mxu1 %v15987_v13  ;;  %10903 = vmatpush2.bf16.msra.mxu0 %v15990_v61 }
0x2bcc   :  { %10863 = vmatprep.subr.bf16.mxu1 %v15995_v38  ;;  %10904 = vmatprep.subr.bf16.mxu0 %v15998_v21 }
0x2bcf   :  { %10864 = vmatpush2.bf16.msra.mxu1 %v15993_v53  ;;  %10905 = vmatpush2.bf16.msra.mxu0 %v15996_v48 }
0x2bd0   :  { %10865 = vmatprep.subr.bf16.mxu1 %v16001_v28  ;;  %10906 = vmatprep.subr.bf16.mxu0 %v16004_v1 }
0x2bd3   :  { %10866 = vmatpush2.bf16.msra.mxu1 %v15999_v33  ;;  %10907 = vmatpush2.bf16.msra.mxu0 %v16002_v4 }
0x2bd4   :  { %10867 = vmatprep.subr.bf16.mxu1 %v16007_v11  ;;  %10908 = vmatprep.subr.bf16.mxu0 %v16010_v59 }
0x2bd7   :  { %10868 = vmatpush2.bf16.msra.mxu1 %v16005_v18  ;;  %10909 = vmatpush2.bf16.msra.mxu0 %v16008_v26 }
0x2bd8   :  { %10869 = vmatprep.subr.bf16.mxu1 %v16013_v52  ;;  %10910 = vmatprep.subr.bf16.mxu0 %v16016_v58 }
0x2bdb   :  { %10870 = vmatpush2.bf16.msra.mxu1 %v16011_v49  ;;  %10911 = vmatpush2.bf16.msra.mxu0 %v16014_v6 }
0x2bdc   :  { %10871 = vmatprep.subr.bf16.mxu1 %v16019_v54  ;;  %10912 = vmatprep.subr.bf16.mxu0 %v16022_v7 }
0x2bdf   :  { %10872 = vmatpush2.bf16.msra.mxu1 %v16017_v16  ;;  %10913 = vmatpush2.bf16.msra.mxu0 %v16020_v57 }
0x2be0   :  { %10873 = vmatprep.subr.bf16.mxu1 %v16025_v3  ;;  %10914 = vmatprep.subr.bf16.mxu0 %v16028_v10  ;;  %v16029_v3 = vld [vmem:[#allocation12 + $0x160] ss:$24 sps:$4 sm:$0xff]  }
0x2be3   :  { %10874 = vmatpush2.bf16.msra.mxu1 %v16023_v23  ;;  %10915 = vmatpush2.bf16.msra.mxu0 %v16026_v14  ;;  %v16034_v23 = vld [vmem:[#allocation12 + $0x134] ss:$24 sps:$4 sm:$0xff]   ;;  %v16037_v14 = vld [vmem:[#allocation12 + $0x104] ss:$24 sps:$4 sm:$0xff]  }
0x2be4   :  { %10925 = vmatprep.subr.bf16.mxu1 %v16031_v15  ;;  %v16035_v15 = vld [vmem:[#allocation12 + $0x100] ss:$24 sps:$4 sm:$0xff]  }
0x2c66   :  { %v10189_v8 = vpop.f32.mrf.mxu1  ;;  %v10230_v44 = vpop.f32.mrf.mxu0 }
0x2c67   :  { %v10190_v12 = vadd.f32 %v10189_v8, %v18436_v5  ;;  %v10231_v28 = vadd.f32 %v10230_v44, %v18438_v43  ;;  %v16040_v8 = vld [vmem:[#allocation12 + $0xd4] ss:$24 sps:$4 sm:$0xff]   ;;  %v16038_v44 = vld [vmem:[#allocation12 + $0xd0] ss:$24 sps:$4 sm:$0xff]  }
0x2c68   :  { %v10191_v19 = vpop.f32.mrf.mxu1  ;;  %v10232_v35 = vpop.f32.mrf.mxu0 }
0x2c69   :  { %v10237_v36 = vadd.f32 %v10190_v12, %v17931_v56  ;;  %v10192_v63 = vadd.f32 %v10191_v19, %v18440_v62  ;;  %v10233_v48 = vadd.f32 %v10232_v35, %v18442_v39  ;;  %v10239_v62 = vadd.f32 %v10231_v28, %v17950_v24  ;;  %v16043_v12 = vld [vmem:[#allocation12 + $0xa4] ss:$24 sps:$4 sm:$0xff]   ;;  %v16041_v19 = vld [vmem:[#allocation12 + $0xa0] ss:$24 sps:$4 sm:$0xff]   ;;  %v16046_v35 = vld [vmem:[#allocation12 + $0x74] ss:$24 sps:$4 sm:$0xff]  }
0x2c6a   :  { %v10193_v34 = vpop.f32.mrf.mxu1  ;;  %v10234_v30 = vpop.f32.mrf.mxu0  ;;  %v16064_v28 = vld [vmem:[#allocation12 + $0x254] ss:$24 sps:$4 sm:$0xff]  }
0x2c6b   :  { %v14157_v13 = vmul.f32 -1.442695, %v10237_v36  ;;  %v10238_v61 = vadd.f32 %v10192_v63, %v17936_v46  ;;  %v10240_v5 = vadd.f32 %v10233_v48, %v17944_v20  ;;  %v16044_v36 = vld [vmem:[#allocation12 + $0x70] ss:$24 sps:$4 sm:$0xff]   ;;  %v16049_v63 = vld [vmem:[#allocation12 + $0x44] ss:$24 sps:$4 sm:$0xff]  }
0x2c6c   :  { %v10194_v38 = vpop.f32.mrf.mxu1  ;;  %v10235_v21 = vpop.f32.mrf.mxu0  ;;  %v16047_v34 = vld [vmem:[#allocation12 + $0x40] ss:$24 sps:$4 sm:$0xff]   ;;  %v16052_v30 = vld [vmem:[#allocation12 + $0x14] ss:$24 sps:$4 sm:$0xff]   ;;  %v16061_v48 = vld [vmem:[#allocation12 + $0x284] ss:$24 sps:$4 sm:$0xff]  }
0x2c6d   :  { %16597 = vpow2.f32 %v14157_v13  ;;  %v14158_v53 = vmul.f32 -1.442695, %v10238_v61  ;;  %v14159_v1 = vmul.f32 -1.442695, %v10240_v5  ;;  %v16050_v13 = vld [vmem:[#allocation12 + $0x10] ss:$24 sps:$4 sm:$0xff]  }
0x2c6e   :  { %v16055_v61 = vld [vmem:[#allocation12 + $0x2e4] ss:$24 sps:$4 sm:$0xff]   ;;  %v16053_v38 = vld [vmem:[#allocation12 + $0x2e0] ss:$24 sps:$4 sm:$0xff]   ;;  %v16058_v21 = vld [vmem:[#allocation12 + $0x2b4] ss:$24 sps:$4 sm:$0xff]  }
0x2c6f   :  { %16599 = vpow2.f32 %v14158_v53  ;;  %v16056_v53 = vld [vmem:[#allocation12 + $0x2b0] ss:$24 sps:$4 sm:$0xff]   ;;  %v16059_v5 = vld [vmem:[#allocation12 + $0x280] ss:$24 sps:$4 sm:$0xff]  }
0x2c70   :  { %16601 = vpow2.f32 %v14159_v1  ;;  %v16062_v1 = vld [vmem:[#allocation12 + $0x250] ss:$24 sps:$4 sm:$0xff]  }
0x2c7a   :  { %v16598_v33 = vpop.eup %16597 }
0x2c7b   :  { %v10244_v4 = vadd.f32 1.0, %v16598_v33  ;;  %v16067_v33 = vld [vmem:[#allocation12 + $0x224] ss:$24 sps:$4 sm:$0xff]  }
0x2c7c   :  { %v16600_v11 = vpop.eup %16599 }
0x2c7d   :  { %16603 = vrcp.f32 %v10244_v4  ;;  %v10250_v18 = vadd.f32 1.0, %v16600_v11  ;;  %v16602_v59 = vpop.eup %16601  ;;  %v16070_v4 = vld [vmem:[#allocation12 + $0x1f4] ss:$24 sps:$4 sm:$0xff]   ;;  %v16068_v11 = vld [vmem:[#allocation12 + $0x1f0] ss:$24 sps:$4 sm:$0xff]  }
0x2c7e   :  { %16605 = vtanh.f32 %v10239_v62  ;;  %v10257_v39 = vadd.f32 1.0, %v16602_v59  ;;  %v16065_v62 = vld [vmem:[#allocation12 + $0x220] ss:$24 sps:$4 sm:$0xff]  }
0x2c7f   :  { %16607 = vrcp.f32 %v10250_v18  ;;  %v16073_v18 = vld [vmem:[#allocation12 + $0x1c4] ss:$24 sps:$4 sm:$0xff]   ;;  %v16071_v59 = vld [vmem:[#allocation12 + $0x1c0] ss:$24 sps:$4 sm:$0xff]  }
0x2c80   :  { %16609 = vrcp.f32 %v10257_v39 }
0x2c8a   :  { %v16604_v26 = vpop.eup %16603 }
0x2c8b   :  { %v16606_v52 = vpop.eup %16605 }
0x2c8c   :  { %v16608_v49 = vpop.eup %16607  ;;  %v10261_v6 = vmul.f32 %v16606_v52, %v16604_v26  ;;  %v16076_v26 = vld [vmem:[#allocation12 + $0x194] ss:$24 sps:$4 sm:$0xff]   ;;  %v16074_v52 = vld [vmem:[#allocation12 + $0x190] ss:$24 sps:$4 sm:$0xff]  }
0x2c8d   :  { %v10260_v58 = vmul.f32 %v16608_v49, %v18424_v31  ;;  %v16610_v7 = vpop.eup %16609  ;;  %v16032_v31 = vld [vmem:[#allocation12 + $0x130] ss:$24 sps:$4 sm:$0xff]  }
0x2c8f   :  { %v18541_v43 = vadd.f32 %v10261_v6, %v10260_v58 }
0x2c91   :  { %16611 = vtanh.f32 %v18541_v43  ;;  %v10266_v54 = vpack.c.bf16 %v18541_v43, %v18541_v43 }
0x2c93   :  { %10875 = vmatprep.mubr.bf16.mxu1 %v10266_v54  ;;  %10916 = vmatprep.mubr.bf16.mxu0 %v10266_v54 }
0x2c9e   :  { %v16612_v16 = vpop.eup %16611 }
0x2c9f   :  { %v10264_v57 = vmul.f32 %v16612_v16, %v16610_v7 }
0x2ca1   :  { %v18546_v10 = vpack.c.bf16 %v10264_v57, %v10264_v57 }
0x2ca3   :  { %10876 = vmatmul.mubr.bf16.vlgmr.msra.gmra.mxu1 %v18546_v10  ;;  %10917 = vmatmul.mubr.bf16.vlgmr.msra.gmra.mxu0 %v18546_v10 }
0x2ca4   :  { %10926 = vmatpush1.bf16.msra.mxu1 %v16029_v3  ;;  %10957 = vmatprep.mubr.bf16.mxu1 %v10266_v54 }
0x2ca5   :  { %10927 = vmatprep.subr.bf16.mxu1 %v16034_v23  ;;  %11119 = vmatprep.mubr.bf16.mxu0 %v18975_v40 }
0x2ca8   :  { %10928 = vmatpush1.bf16.msra.mxu1 %v16032_v31 }
0x2ca9   :  { %10929 = vmatprep.subr.bf16.mxu1 %v16037_v14 }
0x2cac   :  { %10930 = vmatpush1.bf16.msra.mxu1 %v16035_v15 }
0x2cad   :  { %10931 = vmatprep.subr.bf16.mxu1 %v16040_v8 }
0x2cb0   :  { %10932 = vmatpush1.bf16.msra.mxu1 %v16038_v44 }
0x2cb1   :  { %10933 = vmatprep.subr.bf16.mxu1 %v16043_v12 }
0x2cb4   :  { %10934 = vmatpush1.bf16.msra.mxu1 %v16041_v19  ;;  %v16077_v19 = vld [vmem:[%s18908_s5 + $0x70] ss:$8 sps:$4 sm:$0xff]  }
0x2cb5   :  { %10935 = vmatprep.subr.bf16.mxu1 %v16046_v35  ;;  %v16082_v35 = vld [vmem:[%s18908_s5 + $0x64] ss:$8 sps:$4 sm:$0xff]  }
0x2cb8   :  { %10936 = vmatpush1.bf16.msra.mxu1 %v16044_v36  ;;  %v16080_v36 = vld [vmem:[%s18908_s5 + $0x60] ss:$8 sps:$4 sm:$0xff]  }
0x2cb9   :  { %10937 = vmatprep.subr.bf16.mxu1 %v16049_v63  ;;  %v16085_v63 = vld [vmem:[%s18908_s5 + $0x54] ss:$8 sps:$4 sm:$0xff]  }
0x2cbc   :  { %10938 = vmatpush1.bf16.msra.mxu1 %v16047_v34  ;;  %v16083_v34 = vld [vmem:[%s18908_s5 + $0x50] ss:$8 sps:$4 sm:$0xff]  }
0x2cbd   :  { %10939 = vmatprep.subr.bf16.mxu1 %v16052_v30  ;;  %v16088_v30 = vld [vmem:[%s18908_s5 + $0x44] ss:$8 sps:$4 sm:$0xff]  }
0x2cc0   :  { %10940 = vmatpush1.bf16.msra.mxu1 %v16050_v13  ;;  %v16086_v13 = vld [vmem:[%s18908_s5 + $0x40] ss:$8 sps:$4 sm:$0xff]  }
0x2cc1   :  { %10941 = vmatprep.subr.bf16.mxu1 %v16055_v61  ;;  %v16091_v61 = vld [vmem:[%s18908_s5 + $0x34] ss:$8 sps:$4 sm:$0xff]  }
0x2cc4   :  { %10942 = vmatpush2.bf16.msra.mxu1 %v16053_v38  ;;  %v16089_v38 = vld [vmem:[%s18908_s5 + $0x30] ss:$8 sps:$4 sm:$0xff]  }
0x2cc5   :  { %10943 = vmatprep.subr.bf16.mxu1 %v16058_v21  ;;  %v16094_v21 = vld [vmem:[%s18908_s5 + $0x24] ss:$8 sps:$4 sm:$0xff]  }
0x2cc8   :  { %10944 = vmatpush2.bf16.msra.mxu1 %v16056_v53  ;;  %v16092_v53 = vld [vmem:[%s18908_s5 + $0x20] ss:$8 sps:$4 sm:$0xff]  }
0x2cc9   :  { %10945 = vmatprep.subr.bf16.mxu1 %v16061_v48  ;;  %v16097_v48 = vld [vmem:[%s18908_s5 + $0x14] ss:$8 sps:$4 sm:$0xff]  }
0x2ccc   :  { %10946 = vmatpush2.bf16.msra.mxu1 %v16059_v5  ;;  %v16095_v5 = vld [vmem:[%s18908_s5 + $0x10] ss:$8 sps:$4 sm:$0xff]  }
0x2ccd   :  { %10947 = vmatprep.subr.bf16.mxu1 %v16064_v28 }
0x2cd0   :  { %10948 = vmatpush2.bf16.msra.mxu1 %v16062_v1 }
0x2cd1   :  { %10949 = vmatprep.subr.bf16.mxu1 %v16067_v33 }
0x2cd4   :  { %10950 = vmatpush2.bf16.msra.mxu1 %v16065_v62 }
0x2cd5   :  { %10951 = vmatprep.subr.bf16.mxu1 %v16070_v4  ;;  %v16100_v4 = vld [vmem:[%s18908_s5 + $0x4] ss:$8 sps:$4 sm:$0xff]  }
0x2cd8   :  { %10952 = vmatpush2.bf16.msra.mxu1 %v16068_v11  ;;  %v16098_v11 = vld [vmem:[%s18908_s5] ss:$8 sps:$4 sm:$0xff]  }
0x2cd9   :  { %10953 = vmatprep.subr.bf16.mxu1 %v16073_v18 }
0x2cdc   :  { %10954 = vmatpush2.bf16.msra.mxu1 %v16071_v59 }
0x2cdd   :  { %10955 = vmatprep.subr.bf16.mxu1 %v16076_v26 }
0x2ce0   :  { %10956 = vmatpush2.bf16.msra.mxu1 %v16074_v52 }
0x2ce3   :  { %10958 = vmatmul.mubr.bf16.vlgmr.msra.gmra.mxu1 %v18546_v10 }
0x2ce4   :  { %11463 = vmatprep.mubr.bf16.mxu1 %v18975_v40 }
0x2d63   :  { %v18553_v49 = vpop.f32.mrf.mxu1  ;;  %v18555_v39 = vpop.f32.mrf.mxu0 }
0x2d65   :  { %v18557_v58 = vpop.f32.mrf.mxu1  ;;  %v18559_v6 = vpop.f32.mrf.mxu0 }
0x2d67   :  { %v10881_v54 = vpop.f32.mrf.mxu1  ;;  %v10922_v7 = vpop.f32.mrf.mxu0 }
0x2d69   :  { %v10882_v16 = vpop.f32.mrf.mxu1  ;;  %v10923_v57 = vpop.f32.mrf.mxu0 }
0x2da3   :  { %v10959_v3 = vpop.f32.mrf.mxu1 }
0x2da4   :  { %v10966_v23 = vadd.f32 %v18447_v60, %v10959_v3  ;;  %v16079_v60 = vld [vmem:[%s18908_s5 + $0x74] ss:$8 sps:$4 sm:$0xff]   ;;  %v18619_v3 = vld [vmem:[%s18909_s6] ss:$0 sm:$0xff] }
0x2da5   :  { %v10961_v31 = vpop.f32.mrf.mxu1  ;;  %11087 = vmatprep.subr.bf16.mxu0 %v16079_v60  ;;  %v16104_v60 = vld [vmem:[#allocation10 + $0xe8] ss:$16 sps:$4 sm:$0xff]  }
0x2da6   :  { %10968 = vst [vmem:[#allocation13 + $0x28] sm:$0xff] %v10966_v23  ;;  %10969 = vmax.xlane.f32.xlu1 %v10966_v23  ;;  %11088 = vmatpush1.bf16.msra.mxu0 %v16077_v19  ;;  %v16101_v19 = vld [vmem:[#allocation10 + $0xe0] ss:$16 sps:$4 sm:$0xff]  }
0x2da7   :  { %v10963_v10 = vpop.f32.mrf.mxu1  ;;  %11089 = vmatprep.subr.bf16.mxu0 %v16082_v35  ;;  %v16106_v35 = vld [vmem:[#allocation10 + $0xec] ss:$16 sps:$4 sm:$0xff]  }
0x2da8   :  { %11431 = vmatprep.subr.bf16.mxu1 %v16106_v35  ;;  %v18633_v35 = vld [vmem:[%s18911_s8] ss:$0 sm:$0xff] }
0x2da9   :  { %v10964_v14 = vpop.f32.mrf.mxu1  ;;  %11432 = vmatpush1.bf16.msra.mxu1 %v16104_v60 }
0x2daa   :  { %11090 = vmatpush1.bf16.msra.mxu0 %v16080_v36 }
0x2dab   :  { %11091 = vmatprep.subr.bf16.mxu0 %v16085_v63  ;;  %v16109_v63 = vld [vmem:[#allocation10 + $0xc4] ss:$16 sps:$4 sm:$0xff]  }
0x2dae   :  { %11092 = vmatpush1.bf16.msra.mxu0 %v16083_v34  ;;  %v16112_v34 = vld [vmem:[#allocation10 + $0xcc] ss:$16 sps:$4 sm:$0xff]  }
0x2daf   :  { %11093 = vmatprep.subr.bf16.mxu0 %v16088_v30  ;;  %v16107_v30 = vld [vmem:[#allocation10 + $0xc0] ss:$16 sps:$4 sm:$0xff]   ;;  %11433 = vmatprep.subr.bf16.mxu1 %v16112_v34 }
0x2db2   :  { %11094 = vmatpush1.bf16.msra.mxu0 %v16086_v13  ;;  %v16110_v13 = vld [vmem:[#allocation10 + $0xc8] ss:$16 sps:$4 sm:$0xff]  }
0x2db3   :  { %11095 = vmatprep.subr.bf16.mxu0 %v16091_v61  ;;  %11434 = vmatpush1.bf16.msra.mxu1 %v16110_v13 }
0x2db6   :  { %11096 = vmatpush1.bf16.msra.mxu0 %v16089_v38 }
0x2db7   :  { %11097 = vmatprep.subr.bf16.mxu0 %v16094_v21  ;;  %v16113_v21 = vld [vmem:[#allocation10 + $0xa0] ss:$16 sps:$4 sm:$0xff]  }
0x2dba   :  { %11098 = vmatpush1.bf16.msra.mxu0 %v16092_v53  ;;  %v16115_v53 = vld [vmem:[#allocation10 + $0xa4] ss:$16 sps:$4 sm:$0xff]  }
0x2dbb   :  { %11099 = vmatprep.subr.bf16.mxu0 %v16097_v48  ;;  %v16116_v48 = vld [vmem:[#allocation10 + $0xa8] ss:$16 sps:$4 sm:$0xff]  }
0x2dbe   :  { %11100 = vmatpush1.bf16.msra.mxu0 %v16095_v5  ;;  %v16118_v5 = vld [vmem:[#allocation10 + $0xac] ss:$16 sps:$4 sm:$0xff]  }
0x2dbf   :  { %11101 = vmatprep.subr.bf16.mxu0 %v16100_v4  ;;  %11435 = vmatprep.subr.bf16.mxu1 %v16118_v5  ;;  %v16127_v4 = vld [vmem:[#allocation10 + $0x64] ss:$16 sps:$4 sm:$0xff]  }
0x2dc0   :  { %11436 = vmatpush1.bf16.msra.mxu1 %v16116_v48 }
0x2dc2   :  { %11102 = vmatpush1.bf16.msra.mxu0 %v16098_v11  ;;  %v16130_v11 = vld [vmem:[#allocation10 + $0x6c] ss:$16 sps:$4 sm:$0xff]  }
0x2e2f   :  { %v10970_v15 = vpop.xlane.xlu1 %10969 }
0x2e30   :  { %vm10971_vm8 = vcmp.ge.f32.partialorder %v10966_v23, %v10970_v15 }
0x2e31   :  { %v10972_v8 = vsel %vm10971_vm8, %v19001_v51, 128 }
0x2e32   :  { %v10974_v44 = vshra.s32 %v10972_v8, 16  ;;  %v10973_v28 = vand.u32 65535, %v10972_v8 }
0x2e34   :  { %v10976_v12 = vcvt.s32.f32 %v10974_v44  ;;  %v10975_v33 = vcvt.s32.f32 %v10973_v28  ;;  %v16121_v28 = vld [vmem:[#allocation10 + $0x84] ss:$16 sps:$4 sm:$0xff]  }
0x2e36   :  { %10977 = vmin.xlane.f32.xlu0 %v10976_v12 }
0x2ebf   :  { %v10978_v1 = vpop.xlane.xlu0 %10977 }
0x2ec0   :  { %vm10979_vm9 = vcmp.eq.f32.partialorder %v10976_v12, %v10978_v1  ;;  %v10984_v18 = vcvt.f32.s32 %v10978_v1  ;;  %v16124_v1 = vld [vmem:[#allocation10 + $0x8c] ss:$16 sps:$4 sm:$0xff]  }
0x2ec1   :  { %v10980_v62 = vsel %vm10979_vm9, %v10975_v33, inf  ;;  %v16119_v33 = vld [vmem:[#allocation10 + $0x80] ss:$16 sps:$4 sm:$0xff]   ;;  %11437 = vmatprep.subr.bf16.mxu1 %v16124_v1 }
0x2ec2   :  { %10981 = vmin.xlane.f32.xlu0 %v10980_v62  ;;  %v10985_v26 = vshll.u32 %v10984_v18, 16  ;;  %v16122_v62 = vld [vmem:[#allocation10 + $0x88] ss:$16 sps:$4 sm:$0xff]   ;;  %v16125_v18 = vld [vmem:[#allocation10 + $0x60] ss:$16 sps:$4 sm:$0xff]  }
0x2ec3   :  { %11438 = vmatpush1.bf16.msra.mxu1 %v16122_v62 }
0x2ec4   :  { %11439 = vmatprep.subr.bf16.mxu1 %v16130_v11 }
0x2f4b   :  { %v10982_v59 = vpop.xlane.xlu0 %10981 }
0x2f4c   :  { %v10983_v52 = vcvt.f32.s32 %v10982_v59  ;;  %v16128_v59 = vld [vmem:[#allocation10 + $0x68] ss:$16 sps:$4 sm:$0xff]  }
0x2f4d   :  { %11440 = vmatpush1.bf16.msra.mxu1 %v16128_v59 }
0x2f4e   :  { %v10986_v54 = vadd.s32 %v10985_v26, %v10983_v52  ;;  %v16133_v26 = vld [vmem:[#allocation10 + $0x44] ss:$16 sps:$4 sm:$0xff]   ;;  %v16136_v52 = vld [vmem:[#allocation10 + $0x4c] ss:$16 sps:$4 sm:$0xff]  }
0x2f4f   :  { %11441 = vmatprep.subr.bf16.mxu1 %v16136_v52 }
0x2f50   :  { %vm10987_vm10 = vcmp.eq.s32.totalorder %v19001_v51, %v10986_v54  ;;  %v16131_v54 = vld [vmem:[#allocation10 + $0x40] ss:$16 sps:$4 sm:$0xff]  }
0x2f51   :  { %vm14273_vm11 = vmpackc.low %vm10987_vm10, %vm10987_vm10 }
0x2f52   :  { %14274 = vmatmul.mubr.msk.bf16.vlgmr.msra.gmra.mxu0 %vm14273_vm11, %v19002_v47 }
0x2f53   :  { %11422 = vmatprep.mubr.bf16.mxu0 %v18975_v40 }
0x3012   :  { %v11121_v7 = vpop.f32.mrf.mxu0 }
0x3013   :  { %v11128_v16 = vadd.f32 %v11121_v7, %v10961_v31  ;;  %v16103_v31 = vld [vmem:[#allocation10 + $0xe4] ss:$16 sps:$4 sm:$0xff]   ;;  %v16134_v7 = vld [vmem:[#allocation10 + $0x48] ss:$16 sps:$4 sm:$0xff]  }
0x3014   :  { %v18614_v57 = vpop.f32.mrf.mxu0  ;;  %11390 = vmatprep.subr.bf16.mxu0 %v16103_v31  ;;  %11442 = vmatpush1.bf16.msra.mxu1 %v16134_v7  ;;  %v16154_v31 = vld [vmem:[#allocation12 + $0x15c] ss:$24 sps:$4 sm:$0xff]   ;;  %v16149_v7 = vld [vmem:[#allocation12 + $0x150] ss:$24 sps:$4 sm:$0xff]  }
0x3015   :  { %v11129_v23 = vadd.f32 %v18619_v3, %v11128_v16  ;;  %11391 = vmatpush1.bf16.msra.mxu0 %v16101_v19  ;;  %v16139_v16 = vld [vmem:[#allocation10 + $0x24] ss:$16 sps:$4 sm:$0xff]  }
0x3016   :  { %v11125_v10 = vpop.f32.mrf.mxu0  ;;  %11392 = vmatprep.subr.bf16.mxu0 %v16109_v63  ;;  %v16151_v19 = vld [vmem:[#allocation12 + $0x154] ss:$24 sps:$4 sm:$0xff]  }
0x3017   :  { %11130 = vmax.xlane.f32.xlu1 %v11129_v23  ;;  %v16137_v10 = vld [vmem:[#allocation10 + $0x20] ss:$16 sps:$4 sm:$0xff]  }
0x3018   :  { %v11126_v14 = vpop.f32.mrf.mxu0 }
0x3019   :  { %11393 = vmatpush1.bf16.msra.mxu0 %v16107_v30  ;;  %v16140_v14 = vld [vmem:[#allocation10 + $0x28] ss:$16 sps:$4 sm:$0xff]  }
0x301a   :  { %11394 = vmatprep.subr.bf16.mxu0 %v16115_v53 }
0x301d   :  { %11395 = vmatpush1.bf16.msra.mxu0 %v16113_v21 }
0x301e   :  { %11396 = vmatprep.subr.bf16.mxu0 %v16121_v28 }
0x3021   :  { %11397 = vmatpush1.bf16.msra.mxu0 %v16119_v33 }
0x3022   :  { %11398 = vmatprep.subr.bf16.mxu0 %v16127_v4 }
0x3025   :  { %11399 = vmatpush1.bf16.msra.mxu0 %v16125_v18 }
0x3026   :  { %11400 = vmatprep.subr.bf16.mxu0 %v16133_v26 }
0x3029   :  { %11401 = vmatpush1.bf16.msra.mxu0 %v16131_v54 }
0x302a   :  { %11402 = vmatprep.subr.bf16.mxu0 %v16139_v16  ;;  %v16152_v16 = vld [vmem:[#allocation12 + $0x158] ss:$24 sps:$4 sm:$0xff]  }
0x302d   :  { %11403 = vmatpush1.bf16.msra.mxu0 %v16137_v10  ;;  %v16157_v10 = vld [vmem:[#allocation12 + $0x124] ss:$24 sps:$4 sm:$0xff]  }
0x30a0   :  { %v11131_v15 = vpop.xlane.xlu1 %11130 }
0x30a1   :  { %v11132_v8 = vsub.f32 %v11129_v23, %v11131_v15  ;;  %v16142_v23 = vld [vmem:[#allocation10 + $0x2c] ss:$16 sps:$4 sm:$0xff]   ;;  %v16145_v15 = vld [vmem:[#allocation10 + $0x4] ss:$16 sps:$4 sm:$0xff]  }
0x30a2   :  { %11443 = vmatprep.subr.bf16.mxu1 %v16142_v23  ;;  %11404 = vmatprep.subr.bf16.mxu0 %v16145_v15  ;;  %v16160_v15 = vld [vmem:[#allocation12 + $0x12c] ss:$24 sps:$4 sm:$0xff]  }
0x30a3   :  { %v11133_v44 = vmul.f32 1.442695, %v11132_v8  ;;  %v16148_v8 = vld [vmem:[#allocation10 + $0xc] ss:$16 sps:$4 sm:$0xff]   ;;  %11444 = vmatpush1.bf16.msra.mxu1 %v16140_v14  ;;  %v16155_v14 = vld [vmem:[#allocation12 + $0x120] ss:$24 sps:$4 sm:$0xff]  }
0x30a4   :  { %11445 = vmatprep.subr.bf16.mxu1 %v16148_v8  ;;  %v16158_v8 = vld [vmem:[#allocation12 + $0x128] ss:$24 sps:$4 sm:$0xff]  }
0x30a5   :  { %16613 = vpow2.f32 %v11133_v44  ;;  %v16143_v44 = vld [vmem:[#allocation10] ss:$16 sps:$4 sm:$0xff]  }
0x30a6   :  { %11405 = vmatpush1.bf16.msra.mxu0 %v16143_v44  ;;  %v16163_v44 = vld [vmem:[#allocation12 + $0xf4] ss:$24 sps:$4 sm:$0xff]  }
0x30a7   :  { %12078 = vmatprep.subr.bf16.mxu0 %v16151_v19  ;;  %v16166_v19 = vld [vmem:[#allocation12 + $0xfc] ss:$24 sps:$4 sm:$0xff]  }
0x30b2   :  { %v16614_v12 = vpop.eup %16613 }
0x30b3   :  { %11135 = vadd.xlane.f32.xlu0 %v16614_v12 }
0x313c   :  { %v11136_v36 = vpop.xlane.xlu0 %11135 }
0x313d   :  { %16615 = vrcp.f32 %v11136_v36  ;;  %v11139_v36 = vadd.f32 %v18633_v35, %v18614_v57 }
0x314a   :  { %v16616_v61 = vpop.eup %16615 }
0x314b   :  { %v11138_v38 = vmul.f32 %v16616_v61, %v16614_v12  ;;  %v16146_v12 = vld [vmem:[#allocation10 + $0x8] ss:$16 sps:$4 sm:$0xff]  }
0x314c   :  { %11446 = vmatpush1.bf16.msra.mxu1 %v16146_v12  ;;  %v16161_v12 = vld [vmem:[#allocation12 + $0xf0] ss:$24 sps:$4 sm:$0xff]  }
0x314d   :  { %11150 = vperm.xlu0 %14640, %v11138_v38   ;;  %11143 = vperm.xlu1 %14647, %v11138_v38  }
0x314e   :  { %12119 = vmatprep.subr.bf16.mxu1 %v16154_v31  ;;  %v16164_v31 = vld [vmem:[#allocation12 + $0xf8] ss:$24 sps:$4 sm:$0xff]  }
0x3151   :  { %14650 = vset.pattern.permute.xlu0 %v19019_v55  ;;  %14648 = vset.pattern.permute.xlu1 %v19016_v29 }
0x3152   :  { %11171 = vperm.xlu0 %14650, %v11138_v38   ;;  %11157 = vperm.xlu1 %14648, %v11138_v38  }
0x3156   :  { %14653 = vset.pattern.permute.xlu0 %v19022_v2  ;;  %14649 = vset.pattern.permute.xlu1 %v19018_v9 }
0x3157   :  { %11192 = vperm.xlu0 %14653, %v11138_v38   ;;  %11164 = vperm.xlu1 %14649, %v11138_v38  }
0x315b   :  { %14651 = vset.pattern.permute.xlu1 %v19020_v22  ;;  %14654 = vset.pattern.permute.xlu0 %v18975_v40 }
0x315c   :  { %11178 = vperm.xlu1 %14651, %v11138_v38  }
0x3160   :  { %14652 = vset.pattern.permute.xlu1 %v19021_v41 }
0x3161   :  { %11185 = vperm.xlu1 %14652, %v11138_v38  }
0x3165   :  { %14655 = vset.pattern.permute.xlu1 %v19017_v17 }
0x31c8   :  { %v11144_v60 = vpop.permute.xlu1 %11143  ;;  %v11151_v34 = vpop.permute.xlu0 %11150 }
0x31c9   :  { %v11146_v63 = vmul.f32 %v11144_v60, %v17840_v0  ;;  %v11153_v13 = vmul.f32 %v11151_v34, %v17844_v25  ;;  %v16169_v60 = vld [vmem:[#allocation12 + $0xc4] ss:$24 sps:$4 sm:$0xff]   ;;  %v16170_v34 = vld [vmem:[#allocation12 + $0xc8] ss:$24 sps:$4 sm:$0xff]  }
0x31cb   :  { %v11147_v30 = vadd.f32 %v11146_v63, %v11139_v36  ;;  %v16167_v36 = vld [vmem:[#allocation12 + $0xc0] ss:$24 sps:$4 sm:$0xff]   ;;  %v16172_v63 = vld [vmem:[#allocation12 + $0xcc] ss:$24 sps:$4 sm:$0xff]  }
0x31cd   :  { %v11158_v61 = vpop.permute.xlu1 %11157  ;;  %v11154_v17 = vadd.f32 %v11153_v13, %v11147_v30  ;;  %v11172_v5 = vpop.permute.xlu0 %11171  ;;  %v16175_v30 = vld [vmem:[#allocation12 + $0x94] ss:$24 sps:$4 sm:$0xff]   ;;  %v16173_v13 = vld [vmem:[#allocation12 + $0x90] ss:$24 sps:$4 sm:$0xff]  }
0x31ce   :  { %v11160_v38 = vmul.f32 %v17838_v50, %v11158_v61  ;;  %v11174_v1 = vmul.f32 %v11172_v5, %v17850_v32  ;;  %v16178_v61 = vld [vmem:[#allocation12 + $0x9c] ss:$24 sps:$4 sm:$0xff]  }
0x31cf   :  { %v16187_v5 = vld [vmem:[#allocation12 + $0x34] ss:$24 sps:$4 sm:$0xff]  }
0x31d0   :  { %v11161_v53 = vadd.f32 %v11160_v38, %v11154_v17  ;;  %v16176_v17 = vld [vmem:[#allocation12 + $0x98] ss:$24 sps:$4 sm:$0xff]   ;;  %v16181_v38 = vld [vmem:[#allocation12 + $0x64] ss:$24 sps:$4 sm:$0xff]  }
0x31d2   :  { %v11165_v21 = vpop.permute.xlu1 %11164  ;;  %v11193_v4 = vpop.permute.xlu0 %11192 }
0x31d3   :  { %v11167_v48 = vmul.f32 %v17842_v37, %v11165_v21  ;;  %v11195_v26 = vmul.f32 %v17854_v42, %v11193_v4  ;;  %v16179_v21 = vld [vmem:[#allocation12 + $0x60] ss:$24 sps:$4 sm:$0xff]   ;;  %v16196_v4 = vld [vmem:[#allocation12 + $0xc] ss:$24 sps:$4 sm:$0xff]  }
0x31d5   :  { %v11168_v28 = vadd.f32 %v11167_v48, %v11161_v53  ;;  %v16184_v53 = vld [vmem:[#allocation12 + $0x6c] ss:$24 sps:$4 sm:$0xff]   ;;  %v16182_v48 = vld [vmem:[#allocation12 + $0x68] ss:$24 sps:$4 sm:$0xff]  }
0x31d7   :  { %v11179_v33 = vpop.permute.xlu1 %11178  ;;  %v11175_v57 = vadd.f32 %v11174_v1, %v11168_v28  ;;  %v16185_v28 = vld [vmem:[#allocation12 + $0x30] ss:$24 sps:$4 sm:$0xff]   ;;  %v16190_v1 = vld [vmem:[#allocation12 + $0x3c] ss:$24 sps:$4 sm:$0xff]  }
0x31d8   :  { %v11181_v62 = vmul.f32 %v11179_v33, %v17856_v27  ;;  %v16188_v33 = vld [vmem:[#allocation12 + $0x38] ss:$24 sps:$4 sm:$0xff]  }
0x31da   :  { %v11182_v18 = vadd.f32 %v11181_v62, %v11175_v57  ;;  %v16193_v57 = vld [vmem:[#allocation12 + $0x4] ss:$24 sps:$4 sm:$0xff]   ;;  %v16191_v62 = vld [vmem:[#allocation12] ss:$24 sps:$4 sm:$0xff]  }
0x31dc   :  { %v11186_v11 = vpop.permute.xlu1 %11185 }
0x31dd   :  { %v11188_v59 = vmul.f32 %v17846_v45, %v11186_v11  ;;  %v16194_v11 = vld [vmem:[#allocation12 + $0x8] ss:$24 sps:$4 sm:$0xff]  }
0x31df   :  { %v11189_v52 = vadd.f32 %v11188_v59, %v11182_v18  ;;  %v16197_v18 = vld [vmem:[#allocation12 + $0x2d0] ss:$24 sps:$4 sm:$0xff]   ;;  %v16199_v59 = vld [vmem:[#allocation12 + $0x2d4] ss:$24 sps:$4 sm:$0xff]  }
0x31e1   :  { %v11196_v54 = vadd.f32 %v11195_v26, %v11189_v52  ;;  %v16200_v26 = vld [vmem:[#allocation12 + $0x2d8] ss:$24 sps:$4 sm:$0xff]   ;;  %v16202_v52 = vld [vmem:[#allocation12 + $0x2dc] ss:$24 sps:$4 sm:$0xff]  }
0x31e3   :  { %v11197_v23 = vpack.c.bf16 %v11196_v54, %v11196_v54  ;;  %v16205_v54 = vld [vmem:[#allocation12 + $0x2a4] ss:$24 sps:$4 sm:$0xff]  }
0x31e5   :  { %11423 = vmatmul.mubr.bf16.vlgmr.msra.gmra.mxu0 %v11197_v23  ;;  %11464 = vmatmul.mubr.bf16.vlgmr.msra.gmra.mxu1 %v11197_v23  ;;  %v16206_v23 = vld [vmem:[#allocation12 + $0x2a8] ss:$24 sps:$4 sm:$0xff]  }
0x31e6   :  { %12079 = vmatpush1.bf16.msra.mxu0 %v16149_v7  ;;  %12120 = vmatpush1.bf16.msra.mxu1 %v16152_v16  ;;  %v16208_v7 = vld [vmem:[#allocation12 + $0x2ac] ss:$24 sps:$4 sm:$0xff]   ;;  %v16203_v16 = vld [vmem:[#allocation12 + $0x2a0] ss:$24 sps:$4 sm:$0xff]  }
0x31e7   :  { %12080 = vmatprep.subr.bf16.mxu0 %v16157_v10  ;;  %12121 = vmatprep.subr.bf16.mxu1 %v16160_v15  ;;  %v16211_v10 = vld [vmem:[#allocation12 + $0x274] ss:$24 sps:$4 sm:$0xff]   ;;  %v16209_v15 = vld [vmem:[#allocation12 + $0x270] ss:$24 sps:$4 sm:$0xff]  }
0x31ea   :  { %12081 = vmatpush1.bf16.msra.mxu0 %v16155_v14  ;;  %12122 = vmatpush1.bf16.msra.mxu1 %v16158_v8  ;;  %v16214_v14 = vld [vmem:[#allocation12 + $0x27c] ss:$24 sps:$4 sm:$0xff]   ;;  %v16212_v8 = vld [vmem:[#allocation12 + $0x278] ss:$24 sps:$4 sm:$0xff]  }
0x31eb   :  { %12082 = vmatprep.subr.bf16.mxu0 %v16163_v44  ;;  %12123 = vmatprep.subr.bf16.mxu1 %v16166_v19  ;;  %v16217_v44 = vld [vmem:[#allocation12 + $0x244] ss:$24 sps:$4 sm:$0xff]   ;;  %v16215_v19 = vld [vmem:[#allocation12 + $0x240] ss:$24 sps:$4 sm:$0xff]  }
0x31ee   :  { %12083 = vmatpush1.bf16.msra.mxu0 %v16161_v12  ;;  %12124 = vmatpush1.bf16.msra.mxu1 %v16164_v31  ;;  %v16220_v12 = vld [vmem:[#allocation12 + $0x24c] ss:$24 sps:$4 sm:$0xff]   ;;  %v16218_v31 = vld [vmem:[#allocation12 + $0x248] ss:$24 sps:$4 sm:$0xff]  }
0x31ef   :  { %12084 = vmatprep.subr.bf16.mxu0 %v16169_v60  ;;  %12125 = vmatprep.subr.bf16.mxu1 %v16172_v63  ;;  %v16223_v60 = vld [vmem:[#allocation12 + $0x214] ss:$24 sps:$4 sm:$0xff]  }
0x31f0   :  { %v16226_v63 = vld [vmem:[#allocation12 + $0x21c] ss:$24 sps:$4 sm:$0xff]  }
0x31f2   :  { %12085 = vmatpush1.bf16.msra.mxu0 %v16167_v36  ;;  %12126 = vmatpush1.bf16.msra.mxu1 %v16170_v34  ;;  %v16221_v36 = vld [vmem:[#allocation12 + $0x210] ss:$24 sps:$4 sm:$0xff]  }
0x31f3   :  { %12086 = vmatprep.subr.bf16.mxu0 %v16175_v30  ;;  %12127 = vmatprep.subr.bf16.mxu1 %v16178_v61  ;;  %v16224_v34 = vld [vmem:[#allocation12 + $0x218] ss:$24 sps:$4 sm:$0xff]   ;;  %v16229_v30 = vld [vmem:[#allocation12 + $0x1e4] ss:$24 sps:$4 sm:$0xff]  }
0x31f4   :  { %v16232_v61 = vld [vmem:[#allocation12 + $0x1ec] ss:$24 sps:$4 sm:$0xff]  }
0x31f6   :  { %12087 = vmatpush1.bf16.msra.mxu0 %v16173_v13  ;;  %12128 = vmatpush1.bf16.msra.mxu1 %v16176_v17  ;;  %v16227_v13 = vld [vmem:[#allocation12 + $0x1e0] ss:$24 sps:$4 sm:$0xff]  }
0x31f7   :  { %12088 = vmatprep.subr.bf16.mxu0 %v16181_v38  ;;  %12129 = vmatprep.subr.bf16.mxu1 %v16184_v53  ;;  %v16230_v17 = vld [vmem:[#allocation12 + $0x1e8] ss:$24 sps:$4 sm:$0xff]   ;;  %v16235_v38 = vld [vmem:[#allocation12 + $0x1b4] ss:$24 sps:$4 sm:$0xff]  }
0x31f8   :  { %v16233_v53 = vld [vmem:[#allocation12 + $0x1b0] ss:$24 sps:$4 sm:$0xff]  }
0x31fa   :  { %12089 = vmatpush1.bf16.msra.mxu0 %v16179_v21  ;;  %12130 = vmatpush1.bf16.msra.mxu1 %v16182_v48  ;;  %v16238_v21 = vld [vmem:[#allocation12 + $0x1bc] ss:$24 sps:$4 sm:$0xff]   ;;  %v16236_v48 = vld [vmem:[#allocation12 + $0x1b8] ss:$24 sps:$4 sm:$0xff]  }
0x31fb   :  { %12090 = vmatprep.subr.bf16.mxu0 %v16187_v5  ;;  %12131 = vmatprep.subr.bf16.mxu1 %v16190_v1  ;;  %v16241_v5 = vld [vmem:[#allocation12 + $0x184] ss:$24 sps:$4 sm:$0xff]   ;;  %v16239_v1 = vld [vmem:[#allocation12 + $0x180] ss:$24 sps:$4 sm:$0xff]  }
0x31fe   :  { %12091 = vmatpush1.bf16.msra.mxu0 %v16185_v28  ;;  %12132 = vmatpush1.bf16.msra.mxu1 %v16188_v33  ;;  %v16244_v28 = vld [vmem:[#allocation12 + $0x18c] ss:$24 sps:$4 sm:$0xff]   ;;  %v16242_v33 = vld [vmem:[#allocation12 + $0x188] ss:$24 sps:$4 sm:$0xff]  }
0x31ff   :  { %12092 = vmatprep.subr.bf16.mxu0 %v16193_v57  ;;  %12133 = vmatprep.subr.bf16.mxu1 %v16196_v4  ;;  %v18645_v57 = vld [vmem:[#allocation12 + $0x164] ss:$24 sps:$4 sm:$0xff]  }
0x3202   :  { %12093 = vmatpush1.bf16.msra.mxu0 %v16191_v62  ;;  %12134 = vmatpush1.bf16.msra.mxu1 %v16194_v11 }
0x3203   :  { %12094 = vmatprep.subr.bf16.mxu0 %v16199_v59  ;;  %12135 = vmatprep.subr.bf16.mxu1 %v16202_v52 }
0x3206   :  { %12095 = vmatpush2.bf16.msra.mxu0 %v16197_v18  ;;  %12136 = vmatpush2.bf16.msra.mxu1 %v16200_v26 }
0x3207   :  { %12096 = vmatprep.subr.bf16.mxu0 %v16205_v54  ;;  %12137 = vmatprep.subr.bf16.mxu1 %v16208_v7 }
0x320a   :  { %12097 = vmatpush2.bf16.msra.mxu0 %v16203_v16  ;;  %12138 = vmatpush2.bf16.msra.mxu1 %v16206_v23 }
0x320b   :  { %12098 = vmatprep.subr.bf16.mxu0 %v16211_v10  ;;  %12139 = vmatprep.subr.bf16.mxu1 %v16214_v14 }
0x320e   :  { %12099 = vmatpush2.bf16.msra.mxu0 %v16209_v15  ;;  %12140 = vmatpush2.bf16.msra.mxu1 %v16212_v8 }
0x320f   :  { %12100 = vmatprep.subr.bf16.mxu0 %v16217_v44  ;;  %12141 = vmatprep.subr.bf16.mxu1 %v16220_v12 }
0x3212   :  { %12101 = vmatpush2.bf16.msra.mxu0 %v16215_v19  ;;  %12142 = vmatpush2.bf16.msra.mxu1 %v16218_v31 }
0x3213   :  { %12102 = vmatprep.subr.bf16.mxu0 %v16223_v60  ;;  %12143 = vmatprep.subr.bf16.mxu1 %v16226_v63 }
0x3216   :  { %12103 = vmatpush2.bf16.msra.mxu0 %v16221_v36  ;;  %12144 = vmatpush2.bf16.msra.mxu1 %v16224_v34 }
0x3217   :  { %12104 = vmatprep.subr.bf16.mxu0 %v16229_v30  ;;  %12145 = vmatprep.subr.bf16.mxu1 %v16232_v61 }
0x321a   :  { %12105 = vmatpush2.bf16.msra.mxu0 %v16227_v13  ;;  %12146 = vmatpush2.bf16.msra.mxu1 %v16230_v17 }
0x321b   :  { %12106 = vmatprep.subr.bf16.mxu0 %v16235_v38  ;;  %12147 = vmatprep.subr.bf16.mxu1 %v16238_v21 }
0x321e   :  { %12107 = vmatpush2.bf16.msra.mxu0 %v16233_v53  ;;  %12148 = vmatpush2.bf16.msra.mxu1 %v16236_v48 }
0x321f   :  { %12108 = vmatprep.subr.bf16.mxu0 %v16241_v5  ;;  %12149 = vmatprep.subr.bf16.mxu1 %v16244_v28  ;;  %v18662_v5 = vld [vmem:[#allocation12 + $0x160] ss:$24 sps:$4 sm:$0xff]  }
0x3222   :  { %12109 = vmatpush2.bf16.msra.mxu0 %v16239_v1  ;;  %12150 = vmatpush2.bf16.msra.mxu1 %v16242_v33  ;;  %v18666_v1 = vld [vmem:[#allocation12 + $0x134] ss:$24 sps:$4 sm:$0xff]   ;;  %v18674_v33 = vld [vmem:[#allocation12 + $0x104] ss:$24 sps:$4 sm:$0xff]  }
0x3223   :  { %12160 = vmatprep.subr.bf16.mxu0 %v18645_v57 }
0x32a5   :  { %v11424_v62 = vpop.f32.mrf.mxu0  ;;  %v11465_v4 = vpop.f32.mrf.mxu1 }
0x32a6   :  { %v11425_v11 = vadd.f32 %v11424_v62, %v18553_v49  ;;  %v11466_v44 = vadd.f32 %v11465_v4, %v18555_v39  ;;  %v18678_v62 = vld [vmem:[#allocation12 + $0x100] ss:$24 sps:$4 sm:$0xff]   ;;  %v18681_v4 = vld [vmem:[#allocation12 + $0xd4] ss:$24 sps:$4 sm:$0xff]  }
0x32a7   :  { %v11426_v18 = vpop.f32.mrf.mxu0  ;;  %v11467_v59 = vpop.f32.mrf.mxu1 }
0x32a8   :  { %v11472_v26 = vadd.f32 %v11425_v11, %v17931_v56  ;;  %v11427_v52 = vadd.f32 %v11426_v18, %v18557_v58  ;;  %v11468_v8 = vadd.f32 %v11467_v59, %v18559_v6  ;;  %v11474_v58 = vadd.f32 %v11466_v44, %v17950_v24  ;;  %v18684_v11 = vld [vmem:[#allocation12 + $0xd0] ss:$24 sps:$4 sm:$0xff]   ;;  %v18687_v18 = vld [vmem:[#allocation12 + $0xa4] ss:$24 sps:$4 sm:$0xff]   ;;  %v18690_v59 = vld [vmem:[#allocation12 + $0xa0] ss:$24 sps:$4 sm:$0xff]  }
0x32a9   :  { %v11428_v54 = vpop.f32.mrf.mxu0  ;;  %v11469_v7 = vpop.f32.mrf.mxu1  ;;  %v18726_v44 = vld [vmem:[#allocation12 + $0x280] ss:$24 sps:$4 sm:$0xff]  }
0x32aa   :  { %v14307_v16 = vmul.f32 -1.442695, %v11472_v26  ;;  %v11473_v23 = vadd.f32 %v11427_v52, %v17936_v46  ;;  %v11475_v49 = vadd.f32 %v11468_v8, %v17944_v20  ;;  %v18693_v26 = vld [vmem:[#allocation12 + $0x74] ss:$24 sps:$4 sm:$0xff]   ;;  %v18696_v52 = vld [vmem:[#allocation12 + $0x70] ss:$24 sps:$4 sm:$0xff]  }
0x32ab   :  { %v11429_v10 = vpop.f32.mrf.mxu0  ;;  %v11470_v14 = vpop.f32.mrf.mxu1  ;;  %v18699_v54 = vld [vmem:[#allocation12 + $0x44] ss:$24 sps:$4 sm:$0xff]   ;;  %v18702_v7 = vld [vmem:[#allocation12 + $0x40] ss:$24 sps:$4 sm:$0xff]   ;;  %v18720_v8 = vld [vmem:[#allocation12 + $0x2b0] ss:$24 sps:$4 sm:$0xff]  }
0x32ac   :  { %16617 = vpow2.f32 %v14307_v16  ;;  %v14308_v15 = vmul.f32 -1.442695, %v11473_v23  ;;  %v14309_v12 = vmul.f32 -1.442695, %v11475_v49  ;;  %v18705_v16 = vld [vmem:[#allocation12 + $0x14] ss:$24 sps:$4 sm:$0xff]  }
0x32ad   :  { %v18708_v23 = vld [vmem:[#allocation12 + $0x10] ss:$24 sps:$4 sm:$0xff]   ;;  %v18711_v10 = vld [vmem:[#allocation12 + $0x2e4] ss:$24 sps:$4 sm:$0xff]   ;;  %v18714_v14 = vld [vmem:[#allocation12 + $0x2e0] ss:$24 sps:$4 sm:$0xff]  }
0x32ae   :  { %16619 = vpow2.f32 %v14308_v15  ;;  %v18717_v15 = vld [vmem:[#allocation12 + $0x2b4] ss:$24 sps:$4 sm:$0xff]   ;;  %v18723_v49 = vld [vmem:[#allocation12 + $0x284] ss:$24 sps:$4 sm:$0xff]   ;;  %v18773_v20 = vld [vmem:[%s18915_s12] ss:$0 sm:$0xff] }
0x32af   :  { %16621 = vpow2.f32 %v14309_v12  ;;  %v18729_v12 = vld [vmem:[#allocation12 + $0x254] ss:$24 sps:$4 sm:$0xff]   ;;  %19029 = vst [vmem:[#allocation34_spill] sm:$0xff] %v18773_v20 }
0x32b9   :  { %v16618_v19 = vpop.eup %16617 }
0x32ba   :  { %v11479_v31 = vadd.f32 1.0, %v16618_v19  ;;  %v18732_v19 = vld [vmem:[#allocation12 + $0x250] ss:$24 sps:$4 sm:$0xff]  }
0x32bb   :  { %v16620_v60 = vpop.eup %16619 }
0x32bc   :  { %16623 = vrcp.f32 %v11479_v31  ;;  %v11485_v36 = vadd.f32 1.0, %v16620_v60  ;;  %v16622_v63 = vpop.eup %16621  ;;  %v18738_v31 = vld [vmem:[#allocation12 + $0x220] ss:$24 sps:$4 sm:$0xff]   ;;  %v18741_v60 = vld [vmem:[#allocation12 + $0x1f4] ss:$24 sps:$4 sm:$0xff]  }
0x32bd   :  { %16625 = vtanh.f32 %v11474_v58  ;;  %v11492_v6 = vadd.f32 1.0, %v16622_v63  ;;  %v18735_v58 = vld [vmem:[#allocation12 + $0x224] ss:$24 sps:$4 sm:$0xff]  }
0x32be   :  { %16627 = vrcp.f32 %v11485_v36  ;;  %v18744_v36 = vld [vmem:[#allocation12 + $0x1f0] ss:$24 sps:$4 sm:$0xff]   ;;  %v18747_v63 = vld [vmem:[#allocation12 + $0x1c4] ss:$24 sps:$4 sm:$0xff]  }
0x32bf   :  { %16629 = vrcp.f32 %v11492_v6 }
0x32c9   :  { %v16624_v34 = vpop.eup %16623 }
0x32ca   :  { %v16626_v30 = vpop.eup %16625 }
0x32cb   :  { %v16628_v13 = vpop.eup %16627  ;;  %v11496_v17 = vmul.f32 %v16626_v30, %v16624_v34  ;;  %v18750_v34 = vld [vmem:[#allocation12 + $0x1c0] ss:$24 sps:$4 sm:$0xff]   ;;  %v18753_v30 = vld [vmem:[#allocation12 + $0x194] ss:$24 sps:$4 sm:$0xff]  }
0x32cc   :  { %v11495_v61 = vmul.f32 %v16628_v13, %v18541_v43  ;;  %v16630_v21 = vpop.eup %16629  ;;  %v18671_v43 = vld [vmem:[#allocation12 + $0x130] ss:$24 sps:$4 sm:$0xff]  }
0x32cd   :  { %v18756_v13 = vld [vmem:[#allocation12 + $0x190] ss:$24 sps:$4 sm:$0xff]  }
0x32ce   :  { %v18657_v39 = vadd.f32 %v11496_v17, %v11495_v61 }
0x32d0   :  { %19024 = vst [vmem:[#allocation28_spill] sm:$0xff] %v18657_v39  ;;  %16631 = vtanh.f32 %v18657_v39  ;;  %v11501_v38 = vpack.c.bf16 %v18657_v39, %v18657_v39 }
0x32d2   :  { %12110 = vmatprep.mubr.bf16.mxu0 %v11501_v38  ;;  %12151 = vmatprep.mubr.bf16.mxu1 %v11501_v38 }
0x32dd   :  { %v16632_v53 = vpop.eup %16631 }
0x32de   :  { %v11499_v48 = vmul.f32 %v16632_v53, %v16630_v21 }
0x32e0   :  { %v18664_v28 = vpack.c.bf16 %v11499_v48, %v11499_v48 }
0x32e2   :  { %12111 = vmatmul.mubr.bf16.vlgmr.msra.gmra.mxu0 %v18664_v28  ;;  %12152 = vmatmul.mubr.bf16.vlgmr.msra.gmra.mxu1 %v18664_v28 }
0x32e3   :  { %12161 = vmatpush1.bf16.msra.mxu0 %v18662_v5  ;;  %12192 = vmatprep.mubr.bf16.mxu0 %v11501_v38 }
0x32e4   :  { %12162 = vmatprep.subr.bf16.mxu0 %v18666_v1  ;;  %12354 = vmatprep.mubr.bf16.mxu1 %v18975_v40 }
0x32e7   :  { %12163 = vmatpush1.bf16.msra.mxu0 %v18671_v43 }
0x32e8   :  { %12164 = vmatprep.subr.bf16.mxu0 %v18674_v33 }
0x32eb   :  { %12165 = vmatpush1.bf16.msra.mxu0 %v18678_v62 }
0x32ec   :  { %12166 = vmatprep.subr.bf16.mxu0 %v18681_v4 }
0x32ef   :  { %12167 = vmatpush1.bf16.msra.mxu0 %v18684_v11 }
0x32f0   :  { %12168 = vmatprep.subr.bf16.mxu0 %v18687_v18 }
0x32f3   :  { %12169 = vmatpush1.bf16.msra.mxu0 %v18690_v59 }
0x32f4   :  { %12170 = vmatprep.subr.bf16.mxu0 %v18693_v26 }
0x32f7   :  { %12171 = vmatpush1.bf16.msra.mxu0 %v18696_v52 }
0x32f8   :  { %12172 = vmatprep.subr.bf16.mxu0 %v18699_v54 }
0x32fb   :  { %12173 = vmatpush1.bf16.msra.mxu0 %v18702_v7 }
0x32fc   :  { %12174 = vmatprep.subr.bf16.mxu0 %v18705_v16 }
0x32ff   :  { %12175 = vmatpush1.bf16.msra.mxu0 %v18708_v23 }
0x3300   :  { %12176 = vmatprep.subr.bf16.mxu0 %v18711_v10 }
0x3303   :  { %12177 = vmatpush2.bf16.msra.mxu0 %v18714_v14 }
0x3304   :  { %12178 = vmatprep.subr.bf16.mxu0 %v18717_v15 }
0x3307   :  { %12179 = vmatpush2.bf16.msra.mxu0 %v18720_v8 }
0x3308   :  { %12180 = vmatprep.subr.bf16.mxu0 %v18723_v49 }
0x330b   :  { %12181 = vmatpush2.bf16.msra.mxu0 %v18726_v44 }
0x330c   :  { %12182 = vmatprep.subr.bf16.mxu0 %v18729_v12 }
0x330f   :  { %12183 = vmatpush2.bf16.msra.mxu0 %v18732_v19 }
0x3310   :  { %12184 = vmatprep.subr.bf16.mxu0 %v18735_v58 }
0x3313   :  { %12185 = vmatpush2.bf16.msra.mxu0 %v18738_v31 }
0x3314   :  { %12186 = vmatprep.subr.bf16.mxu0 %v18741_v60 }
0x3317   :  { %12187 = vmatpush2.bf16.msra.mxu0 %v18744_v36 }
0x3318   :  { %12188 = vmatprep.subr.bf16.mxu0 %v18747_v63 }
0x331b   :  { %12189 = vmatpush2.bf16.msra.mxu0 %v18750_v34 }
0x331c   :  { %12190 = vmatprep.subr.bf16.mxu0 %v18753_v30 }
0x331f   :  { %12191 = vmatpush2.bf16.msra.mxu0 %v18756_v13 }
0x3322   :  { %12193 = vmatmul.mubr.bf16.vlgmr.msra.gmra.mxu0 %v18664_v28 }
0x3323   :  { %12698 = vmatprep.mubr.bf16.mxu0 %v18975_v40 }
0x33a2   :  { %v18762_v6 = vpop.f32.mrf.mxu0  ;;  %v18764_v61 = vpop.f32.mrf.mxu1 }
0x33a3   :  { %19025 = vst [vmem:[#allocation29_spill] sm:$0xff] %v18762_v6  ;;  %19026 = vst [vmem:[#allocation27_spill] sm:$0xff] %v18764_v61 }
0x33a4   :  { %v18766_v17 = vpop.f32.mrf.mxu0  ;;  %v18768_v38 = vpop.f32.mrf.mxu1 }
0x33a5   :  { %19027 = vst [vmem:[#allocation31_spill] sm:$0xff] %v18766_v17  ;;  %19028 = vst [vmem:[#allocation33_spill] sm:$0xff] %v18768_v38 }
0x33a6   :  { %v12116_v21 = vpop.f32.mrf.mxu0  ;;  %v12157_v53 = vpop.f32.mrf.mxu1 }
0x33a8   :  { %v12117_v48 = vpop.f32.mrf.mxu0  ;;  %v12158_v39 = vpop.f32.mrf.mxu1 }
0x33a9   :  { %v16293_v39 = vld [vmem:[%s18908_s5 + $0x70] ss:$8 sps:$4 sm:$0xff]  }
0x33e2   :  { %v12194_v24 = vpop.f32.mrf.mxu0 }
0x33e3   :  { %v12201_v28 = vadd.f32 %v18773_v20, %v12194_v24  ;;  %v16295_v24 = vld [vmem:[%s18908_s5 + $0x74] ss:$8 sps:$4 sm:$0xff]  }
0x33e4   :  { %v12196_v46 = vpop.f32.mrf.mxu0  ;;  %12322 = vmatprep.subr.bf16.mxu1 %v16295_v24  ;;  %v16307_v24 = vld [vmem:[%s18908_s5 + $0x34] ss:$8 sps:$4 sm:$0xff]  }
0x33e5   :  { %12203 = vst [vmem:[#allocation13 + $0x30] sm:$0xff] %v12201_v28  ;;  %12204 = vmax.xlane.f32.xlu1 %v12201_v28  ;;  %12323 = vmatpush1.bf16.msra.mxu1 %v16293_v39  ;;  %v16302_v39 = vld [vmem:[%s18908_s5 + $0x40] ss:$8 sps:$4 sm:$0xff]  }
0x33e6   :  { %v12198_v61 = vpop.f32.mrf.mxu0 }
0x33e7   :  { %v16298_v61 = vld [vmem:[%s18908_s5 + $0x64] ss:$8 sps:$4 sm:$0xff]  }
0x33e8   :  { %v12199_v56 = vpop.f32.mrf.mxu0  ;;  %12324 = vmatprep.subr.bf16.mxu1 %v16298_v61  ;;  %v16305_v61 = vld [vmem:[%s18908_s5 + $0x30] ss:$8 sps:$4 sm:$0xff]  }
0x33e9   :  { %v16296_v56 = vld [vmem:[%s18908_s5 + $0x60] ss:$8 sps:$4 sm:$0xff]  }
0x33ea   :  { %12325 = vmatpush1.bf16.msra.mxu1 %v16296_v56  ;;  %v16310_v56 = vld [vmem:[%s18908_s5 + $0x24] ss:$8 sps:$4 sm:$0xff]  }
0x346e   :  { %v12205_v17 = vpop.xlane.xlu1 %12204 }
0x346f   :  { %vm12206_vm12 = vcmp.ge.f32.partialorder %v12201_v28, %v12205_v17  ;;  %v16301_v17 = vld [vmem:[%s18908_s5 + $0x54] ss:$8 sps:$4 sm:$0xff]   ;;  %v16299_v28 = vld [vmem:[%s18908_s5 + $0x50] ss:$8 sps:$4 sm:$0xff]  }
0x3470   :  { %v12207_v21 = vsel %vm12206_vm12, %v19001_v51, 128  ;;  %12326 = vmatprep.subr.bf16.mxu1 %v16301_v17  ;;  %v16308_v17 = vld [vmem:[%s18908_s5 + $0x20] ss:$8 sps:$4 sm:$0xff]  }
0x3471   :  { %v12209_v53 = vshra.s32 %v12207_v21, 16  ;;  %12327 = vmatpush1.bf16.msra.mxu1 %v16299_v28  ;;  %v16313_v28 = vld [vmem:[%s18908_s5 + $0x14] ss:$8 sps:$4 sm:$0xff]  }
0x3473   :  { %v12211_v48 = vcvt.s32.f32 %v12209_v53  ;;  %v16304_v53 = vld [vmem:[%s18908_s5 + $0x44] ss:$8 sps:$4 sm:$0xff]  }
0x3474   :  { %12328 = vmatprep.subr.bf16.mxu1 %v16304_v53  ;;  %v16311_v53 = vld [vmem:[%s18908_s5 + $0x10] ss:$8 sps:$4 sm:$0xff]  }
0x3475   :  { %12212 = vmin.xlane.f32.xlu0 %v12211_v48  ;;  %12329 = vmatpush1.bf16.msra.mxu1 %v16302_v39  ;;  %v12208_v39 = vand.u32 65535, %v12207_v21 }
0x3476   :  { %12330 = vmatprep.subr.bf16.mxu1 %v16307_v24 }
0x3477   :  { %v12210_v24 = vcvt.s32.f32 %v12208_v39 }
0x3479   :  { %12331 = vmatpush1.bf16.msra.mxu1 %v16305_v61 }
0x347a   :  { %12332 = vmatprep.subr.bf16.mxu1 %v16310_v56  ;;  %v16316_v56 = vld [vmem:[%s18908_s5 + $0x4] ss:$8 sps:$4 sm:$0xff]  }
0x347d   :  { %12333 = vmatpush1.bf16.msra.mxu1 %v16308_v17  ;;  %v16314_v17 = vld [vmem:[%s18908_s5] ss:$8 sps:$4 sm:$0xff]   ;;  %s16820_s5 = smov [#allocation13]  }
0x347e   :  { %12334 = vmatprep.subr.bf16.mxu1 %v16313_v28  ;;  %s12977_s20 = sshll.u32 %s16820_s5, 4  ;;  %s12978_s20 = int_to_ptr.vmem [resolvable:$true] %s12977_s20 }
0x347f   :  { %s16772_s21 = scalar_lea.vmem %s12978_s20, 1024  ;;  %p16777_p12 = scmp.lt.s32.totalorder %s12978_s20, %s12978_s20 }
0x3480   :  { %p16773_p11 = scmp.ne.s32.totalorder %s12978_s20, %s16772_s21  ;;  %p16778_p13 = scmp.lt.s32.totalorder %s16772_s21, %s16772_s21 }
0x3481   :  { %12335 = vmatpush1.bf16.msra.mxu1 %v16311_v53 }
0x3482   :  { %12336 = vmatprep.subr.bf16.mxu1 %v16316_v56  ;;  %p16779_p0 = por %p16778_p13, %p16777_p12 }
0x3484   :  { %p16780_p1 = pnand %p16779_p0, %p16773_p11 }
0x3485   :  { %12337 = vmatpush1.bf16.msra.mxu1 %v16314_v17 }
0x34fe   :  { %v12213_v20 = vpop.xlane.xlu0 %12212 }
0x34ff   :  { %vm12214_vm13 = vcmp.eq.f32.partialorder %v12211_v48, %v12213_v20  ;;  %v12219_v38 = vcvt.f32.s32 %v12213_v20 }
0x3500   :  { %v12215_v61 = vsel %vm12214_vm13, %v12210_v24, inf }
0x3501   :  { %12216 = vmin.xlane.f32.xlu1 %v12215_v61  ;;  %v12220_v28 = vshll.u32 %v12219_v38, 16 }
0x358a   :  { %v12217_v6 = vpop.xlane.xlu1 %12216 }
0x358b   :  { %v12218_v53 = vcvt.f32.s32 %v12217_v6 }
0x358d   :  { %v12221_v21 = vadd.s32 %v12220_v28, %v12218_v53 }
0x358f   :  { %vm12222_vm14 = vcmp.eq.s32.totalorder %v19001_v51, %v12221_v21  ;;  %v16320_v21 = vld [vmem:[#allocation10 + $0xe8] ss:$16 sps:$4 sm:$0xff]  }
0x3590   :  { %vm14423_vm15 = vmpackc.low %vm12222_vm14, %vm12222_vm14 }
0x3591   :  { %14424 = vmatmul.mubr.msk.bf16.vlgmr.msra.gmra.mxu1 %vm14423_vm15, %v19002_v47 }
0x3592   :  { %12657 = vmatprep.mubr.bf16.mxu1 %v18975_v40  ;;  %v16317_v40 = vld [vmem:[#allocation10 + $0xe0] ss:$16 sps:$4 sm:$0xff]  }
0x3651   :  { %v12356_v48 = vpop.f32.mrf.mxu1 }
0x3652   :  { %v12363_v39 = vadd.f32 %v12356_v48, %v12196_v46  ;;  %v16319_v46 = vld [vmem:[#allocation10 + $0xe4] ss:$16 sps:$4 sm:$0xff]   ;;  %v16322_v48 = vld [vmem:[#allocation10 + $0xec] ss:$16 sps:$4 sm:$0xff]  }
0x3653   :  { %v18828_v24 = vpop.f32.mrf.mxu1  ;;  %12625 = vmatprep.subr.bf16.mxu1 %v16319_v46  ;;  %12666 = vmatprep.subr.bf16.mxu0 %v16322_v48  ;;  %v16346_v46 = vld [vmem:[#allocation10 + $0x6c] ss:$16 sps:$4 sm:$0xff]   ;;  %v16347_v48 = vld [vmem:[#allocation10 + $0x40] ss:$16 sps:$4 sm:$0xff]  }
0x3654   :  { %v12364_v61 = vadd.f32 %v18619_v3, %v12363_v39  ;;  %12626 = vmatpush1.bf16.msra.mxu1 %v16317_v40  ;;  %12667 = vmatpush1.bf16.msra.mxu0 %v16320_v21  ;;  %v16325_v3 = vld [vmem:[#allocation10 + $0xc4] ss:$16 sps:$4 sm:$0xff]   ;;  %v16328_v39 = vld [vmem:[#allocation10 + $0xcc] ss:$16 sps:$4 sm:$0xff]   ;;  %v16341_v21 = vld [vmem:[#allocation10 + $0x60] ss:$16 sps:$4 sm:$0xff]  }
0x3655   :  { %v12360_v56 = vpop.f32.mrf.mxu1  ;;  %12627 = vmatprep.subr.bf16.mxu1 %v16325_v3  ;;  %12668 = vmatprep.subr.bf16.mxu0 %v16328_v39  ;;  %v16343_v40 = vld [vmem:[#allocation10 + $0x64] ss:$16 sps:$4 sm:$0xff]   ;;  %v16350_v39 = vld [vmem:[#allocation10 + $0x48] ss:$16 sps:$4 sm:$0xff]  }
0x3656   :  { %12365 = vmax.xlane.f32.xlu0 %v12364_v61  ;;  %v16326_v56 = vld [vmem:[#allocation10 + $0xc8] ss:$16 sps:$4 sm:$0xff]   ;;  %v16349_v3 = vld [vmem:[#allocation10 + $0x44] ss:$16 sps:$4 sm:$0xff]  }
0x3657   :  { %v12361_v20 = vpop.f32.mrf.mxu1 }
0x3658   :  { %12669 = vmatpush1.bf16.msra.mxu0 %v16326_v56  ;;  %v16331_v20 = vld [vmem:[#allocation10 + $0xa4] ss:$16 sps:$4 sm:$0xff]   ;;  %v16358_v56 = vld [vmem:[#allocation10 + $0x2c] ss:$16 sps:$4 sm:$0xff]  }
0x36df   :  { %v12366_v17 = vpop.xlane.xlu0 %12365 }
0x36e0   :  { %v12367_v38 = vsub.f32 %v12364_v61, %v12366_v17  ;;  %v16323_v61 = vld [vmem:[#allocation10 + $0xc0] ss:$16 sps:$4 sm:$0xff]   ;;  %v16334_v17 = vld [vmem:[#allocation10 + $0xac] ss:$16 sps:$4 sm:$0xff]  }
0x36e1   :  { %12628 = vmatpush1.bf16.msra.mxu1 %v16323_v61  ;;  %12670 = vmatprep.subr.bf16.mxu0 %v16334_v17  ;;  %v16352_v61 = vld [vmem:[#allocation10 + $0x4c] ss:$16 sps:$4 sm:$0xff]   ;;  %v16356_v17 = vld [vmem:[#allocation10 + $0x28] ss:$16 sps:$4 sm:$0xff]  }
0x36e2   :  { %v12368_v6 = vmul.f32 1.442695, %v12367_v38  ;;  %v16329_v38 = vld [vmem:[#allocation10 + $0xa0] ss:$16 sps:$4 sm:$0xff]   ;;  %12629 = vmatprep.subr.bf16.mxu1 %v16331_v20 }
0x36e3   :  { %v16353_v20 = vld [vmem:[#allocation10 + $0x20] ss:$16 sps:$4 sm:$0xff]  }
0x36e4   :  { %16633 = vpow2.f32 %v12368_v6  ;;  %v16332_v6 = vld [vmem:[#allocation10 + $0xa8] ss:$16 sps:$4 sm:$0xff]  }
0x36e5   :  { %12630 = vmatpush1.bf16.msra.mxu1 %v16329_v38  ;;  %12671 = vmatpush1.bf16.msra.mxu0 %v16332_v6  ;;  %v16364_v38 = vld [vmem:[#allocation10 + $0xc] ss:$16 sps:$4 sm:$0xff]   ;;  %v16359_v6 = vld [vmem:[#allocation10] ss:$16 sps:$4 sm:$0xff]  }
0x36f1   :  { %v16634_v28 = vpop.eup %16633 }
0x36f2   :  { %12370 = vadd.xlane.f32.xlu1 %v16634_v28 }
0x377b   :  { %v12371_v51 = vpop.xlane.xlu1 %12370 }
0x377c   :  { %16635 = vrcp.f32 %v12371_v51  ;;  %v16335_v51 = vld [vmem:[#allocation10 + $0x80] ss:$16 sps:$4 sm:$0xff]  }
0x3789   :  { %v16636_v47 = vpop.eup %16635 }
0x378a   :  { %v18831_v53 = vmul.f32 %v16636_v47, %v16634_v28  ;;  %v16340_v28 = vld [vmem:[#allocation10 + $0x8c] ss:$16 sps:$4 sm:$0xff]   ;;  %v16338_v47 = vld [vmem:[#allocation10 + $0x88] ss:$16 sps:$4 sm:$0xff]  }
0x378b   :  { %12672 = vmatprep.subr.bf16.mxu0 %v16340_v28 }
0x378c   :  { %12385 = vperm.xlu1 %14655, %v18831_v53   ;;  %12378 = vperm.xlu0 %14654, %v18831_v53  }
0x378d   :  { %12673 = vmatpush1.bf16.msra.mxu0 %v16338_v47 }
0x378e   :  { %12674 = vmatprep.subr.bf16.mxu0 %v16346_v46  ;;  %v12374_v46 = vadd.f32 %v18633_v35, %v18828_v24 }
0x3790   :  { %14656 = vset.pattern.permute.xlu1 %v19016_v29  ;;  %14662 = vset.pattern.permute.xlu0 %v19022_v2  ;;  %v16337_v29 = vld [vmem:[#allocation10 + $0x84] ss:$16 sps:$4 sm:$0xff]  }
0x3791   :  { %12392 = vperm.xlu1 %14656, %v18831_v53   ;;  %12631 = vmatprep.subr.bf16.mxu1 %v16337_v29  ;;  %v16362_v29 = vld [vmem:[#allocation10 + $0x8] ss:$16 sps:$4 sm:$0xff]  }
0x3792   :  { %12632 = vmatpush1.bf16.msra.mxu1 %v16335_v51 }
0x3793   :  { %12633 = vmatprep.subr.bf16.mxu1 %v16343_v40 }
0x3795   :  { %14657 = vset.pattern.permute.xlu1 %v19018_v9  ;;  %v16344_v9 = vld [vmem:[#allocation10 + $0x68] ss:$16 sps:$4 sm:$0xff]  }
0x3796   :  { %12399 = vperm.xlu1 %14657, %v18831_v53   ;;  %12634 = vmatpush1.bf16.msra.mxu1 %v16341_v21 }
0x3797   :  { %12675 = vmatpush1.bf16.msra.mxu0 %v16344_v9  ;;  %12635 = vmatprep.subr.bf16.mxu1 %v16349_v3 }
0x3798   :  { %12676 = vmatprep.subr.bf16.mxu0 %v16352_v61 }
0x379a   :  { %14658 = vset.pattern.permute.xlu1 %v19019_v55  ;;  %12636 = vmatpush1.bf16.msra.mxu1 %v16347_v48  ;;  %v16355_v55 = vld [vmem:[#allocation10 + $0x24] ss:$16 sps:$4 sm:$0xff]  }
0x379b   :  { %12406 = vperm.xlu1 %14658, %v18831_v53   ;;  %12677 = vmatpush1.bf16.msra.mxu0 %v16350_v39 }
0x379c   :  { %12637 = vmatprep.subr.bf16.mxu1 %v16355_v55  ;;  %12678 = vmatprep.subr.bf16.mxu0 %v16358_v56 }
0x379e   :  { %12638 = vmatpush1.bf16.msra.mxu1 %v16353_v20 }
0x379f   :  { %14659 = vset.pattern.permute.xlu1 %v19020_v22  ;;  %v16361_v22 = vld [vmem:[#allocation10 + $0x4] ss:$16 sps:$4 sm:$0xff]   ;;  %12679 = vmatpush1.bf16.msra.mxu0 %v16356_v17 }
0x37a0   :  { %12413 = vperm.xlu1 %14659, %v18831_v53   ;;  %12639 = vmatprep.subr.bf16.mxu1 %v16361_v22 }
0x37a1   :  { %12680 = vmatprep.subr.bf16.mxu0 %v16364_v38 }
0x37a2   :  { %12640 = vmatpush1.bf16.msra.mxu1 %v16359_v6  ;;  %v19038_v6 = vld [vmem:[#allocation28_spill] sm:$0xff] }
0x37a3   :  { %12681 = vmatpush1.bf16.msra.mxu0 %v16362_v29  ;;  %12929 = vmatprep.subr.bf16.mxu1 %v18645_v57 }
0x37a4   :  { %14660 = vset.pattern.permute.xlu1 %v19021_v41 }
0x37a5   :  { %12420 = vperm.xlu1 %14660, %v18831_v53  }
0x37a9   :  { %14661 = vset.pattern.permute.xlu1 %v19022_v2 }
0x37aa   :  { %12427 = vperm.xlu1 %14661, %v18831_v53  }
0x3807   :  { %v12386_v41 = vpop.permute.xlu1 %12385  ;;  %v12379_v51 = vpop.permute.xlu0 %12378 }
0x3808   :  { %v12381_v40 = vmul.f32 %v12379_v51, %v17840_v0  ;;  %v12388_v48 = vmul.f32 %v12386_v41, %v17844_v25 }
0x380a   :  { %v12382_v21 = vadd.f32 %v12381_v40, %v12374_v46 }
0x380c   :  { %v12393_v28 = vpop.permute.xlu1 %12392  ;;  %v12389_v2 = vadd.f32 %v12388_v48, %v12382_v21  ;;  %v19039_v48 = vld [vmem:[#allocation34_spill] sm:$0xff] }
0x380d   :  { %v12395_v53 = vmul.f32 %v17838_v50, %v12393_v28 }
0x380f   :  { %v12396_v57 = vadd.f32 %v12395_v53, %v12389_v2 }
0x3811   :  { %v12400_v47 = vpop.permute.xlu1 %12399 }
0x3812   :  { %v12402_v39 = vmul.f32 %v17842_v37, %v12400_v47 }
0x3814   :  { %v12403_v55 = vadd.f32 %v12402_v39, %v12396_v57 }
0x3816   :  { %v12407_v9 = vpop.permute.xlu1 %12406 }
0x3817   :  { %v12409_v61 = vmul.f32 %v12407_v9, %v17850_v32  ;;  %v19030_v32 = vld [vmem:[#allocation29_spill] sm:$0xff] }
0x3819   :  { %v12410_v20 = vadd.f32 %v12409_v61, %v12403_v55 }
0x381b   :  { %v12414_v3 = vpop.permute.xlu1 %12413 }
0x381c   :  { %v12416_v56 = vmul.f32 %v12414_v3, %v17856_v27 }
0x381e   :  { %v12417_v24 = vadd.f32 %v12416_v56, %v12410_v20 }
0x3820   :  { %v12421_v0 = vpop.permute.xlu1 %12420 }
0x3821   :  { %v12423_v35 = vmul.f32 %v17846_v45, %v12421_v0 }
0x3823   :  { %v12424_v22 = vadd.f32 %v12423_v35, %v12417_v24 }
0x3825   :  { %v12428_v17 = vpop.permute.xlu1 %12427 }
0x3826   :  { %v12430_v25 = vmul.f32 %v17854_v42, %v12428_v17 }
0x3828   :  { %v12431_v38 = vadd.f32 %v12430_v25, %v12424_v22 }
0x382a   :  { %v12432_v50 = vpack.c.bf16 %v12431_v38, %v12431_v38 }
0x382c   :  { %12658 = vmatmul.mubr.bf16.vlgmr.msra.gmra.mxu1 %v12432_v50  ;;  %12699 = vmatmul.mubr.bf16.vlgmr.msra.gmra.mxu0 %v12432_v50 }
0x382d   :  { %12930 = vmatpush1.bf16.msra.mxu1 %v18662_v5 }
0x382e   :  { %12931 = vmatprep.subr.bf16.mxu1 %v18666_v1  ;;  %v19031_v1 = vld [vmem:[#allocation24_spill] sm:$0xff] }
0x3831   :  { %12932 = vmatpush1.bf16.msra.mxu1 %v18671_v43 }
0x3832   :  { %12933 = vmatprep.subr.bf16.mxu1 %v18674_v33  ;;  %v19032_v33 = vld [vmem:[#allocation31_spill] sm:$0xff] }
0x3835   :  { %12934 = vmatpush1.bf16.msra.mxu1 %v18678_v62 }
0x3836   :  { %12935 = vmatprep.subr.bf16.mxu1 %v18681_v4 }
0x3839   :  { %12936 = vmatpush1.bf16.msra.mxu1 %v18684_v11 }
0x383a   :  { %12937 = vmatprep.subr.bf16.mxu1 %v18687_v18 }
0x383d   :  { %12938 = vmatpush1.bf16.msra.mxu1 %v18690_v59  ;;  %v19033_v59 = vld [vmem:[#allocation25_spill] sm:$0xff] }
0x383e   :  { %12939 = vmatprep.subr.bf16.mxu1 %v18693_v26 }
0x3841   :  { %12940 = vmatpush1.bf16.msra.mxu1 %v18696_v52 }
0x3842   :  { %12941 = vmatprep.subr.bf16.mxu1 %v18699_v54 }
0x3845   :  { %12942 = vmatpush1.bf16.msra.mxu1 %v18702_v7 }
0x3846   :  { %12943 = vmatprep.subr.bf16.mxu1 %v18705_v16  ;;  %v19034_v16 = vld [vmem:[#allocation33_spill] sm:$0xff] }
0x3849   :  { %12944 = vmatpush1.bf16.msra.mxu1 %v18708_v23 }
0x384a   :  { %12945 = vmatprep.subr.bf16.mxu1 %v18711_v10  ;;  %v19035_v10 = vld [vmem:[#allocation23_spill] sm:$0xff] }
0x384d   :  { %12946 = vmatpush2.bf16.msra.mxu1 %v18714_v14 }
0x384e   :  { %12947 = vmatprep.subr.bf16.mxu1 %v18717_v15  ;;  %v19036_v15 = vld [vmem:[#allocation27_spill] sm:$0xff] }
0x3851   :  { %12948 = vmatpush2.bf16.msra.mxu1 %v18720_v8 }
0x3852   :  { %12949 = vmatprep.subr.bf16.mxu1 %v18723_v49 }
0x3855   :  { %12950 = vmatpush2.bf16.msra.mxu1 %v18726_v44 }
0x3856   :  { %12951 = vmatprep.subr.bf16.mxu1 %v18729_v12  ;;  %v19037_v12 = vld [vmem:[#allocation26_spill] sm:$0xff] }
0x3859   :  { %12952 = vmatpush2.bf16.msra.mxu1 %v18732_v19 }
0x385a   :  { %12953 = vmatprep.subr.bf16.mxu1 %v18735_v58 }
0x385d   :  { %12954 = vmatpush2.bf16.msra.mxu1 %v18738_v31 }
0x385e   :  { %12955 = vmatprep.subr.bf16.mxu1 %v18741_v60 }
0x3861   :  { %12956 = vmatpush2.bf16.msra.mxu1 %v18744_v36 }
0x3862   :  { %12957 = vmatprep.subr.bf16.mxu1 %v18747_v63 }
0x3865   :  { %12958 = vmatpush2.bf16.msra.mxu1 %v18750_v34 }
0x3866   :  { %12959 = vmatprep.subr.bf16.mxu1 %v18753_v30 }
0x3869   :  { %12960 = vmatpush2.bf16.msra.mxu1 %v18756_v13 }
0x38ec   :  { %v12659_v37 = vpop.f32.mrf.mxu1  ;;  %v12700_v45 = vpop.f32.mrf.mxu0 }
0x38ed   :  { %v12660_v42 = vadd.f32 %v12659_v37, %v19030_v32  ;;  %v12701_v8 = vadd.f32 %v12700_v45, %v19036_v15 }
0x38ee   :  { %v12661_v27 = vpop.f32.mrf.mxu1  ;;  %v12702_v5 = vpop.f32.mrf.mxu0 }
0x38ef   :  { %v12707_v43 = vadd.f32 %v12660_v42, %v19031_v1  ;;  %v12662_v62 = vadd.f32 %v12661_v27, %v19032_v33  ;;  %v12703_v23 = vadd.f32 %v12702_v5, %v19034_v16  ;;  %v12709_v19 = vadd.f32 %v12701_v8, %v19037_v12 }
0x38f0   :  { %v12663_v4 = vpop.f32.mrf.mxu1  ;;  %v12704_v11 = vpop.f32.mrf.mxu0 }
0x38f1   :  { %v14457_v18 = vmul.f32 -1.442695, %v12707_v43  ;;  %v12708_v26 = vadd.f32 %v12662_v62, %v19033_v59  ;;  %v12710_v14 = vadd.f32 %v12703_v23, %v19035_v10 }
0x38f2   :  { %v12664_v52 = vpop.f32.mrf.mxu1  ;;  %v12705_v54 = vpop.f32.mrf.mxu0 }
0x38f3   :  { %16637 = vpow2.f32 %v14457_v18  ;;  %v14458_v7 = vmul.f32 -1.442695, %v12708_v26  ;;  %v14459_v49 = vmul.f32 -1.442695, %v12710_v14 }
0x38f5   :  { %16639 = vpow2.f32 %v14458_v7 }
0x38f6   :  { %16641 = vpow2.f32 %v14459_v49 }
0x3900   :  { %v16638_v44 = vpop.eup %16637 }
0x3901   :  { %v12714_v58 = vadd.f32 1.0, %v16638_v44 }
0x3902   :  { %v16640_v31 = vpop.eup %16639 }
0x3903   :  { %16643 = vrcp.f32 %v12714_v58  ;;  %v12720_v60 = vadd.f32 1.0, %v16640_v31  ;;  %v16642_v36 = vpop.eup %16641 }
0x3904   :  { %16645 = vtanh.f32 %v12709_v19  ;;  %v12727_v13 = vadd.f32 1.0, %v16642_v36 }
0x3905   :  { %16647 = vrcp.f32 %v12720_v60 }
0x3906   :  { %16649 = vrcp.f32 %v12727_v13 }
0x3910   :  { %v16644_v63 = vpop.eup %16643 }
0x3911   :  { %v16646_v34 = vpop.eup %16645 }
0x3912   :  { %v16648_v30 = vpop.eup %16647  ;;  %v12731_v41 = vmul.f32 %v16646_v34, %v16644_v63 }
0x3913   :  { %v12730_v29 = vmul.f32 %v16648_v30, %v19038_v6  ;;  %v16650_v47 = vpop.eup %16649 }
0x3915   :  { %v12732_v28 = vadd.f32 %v12731_v41, %v12730_v29 }
0x3917   :  { %16651 = vtanh.f32 %v12732_v28  ;;  %v12736_v51 = vpack.c.bf16 %v12732_v28, %v12732_v28 }
0x3919   :  { %12961 = vmatprep.mubr.bf16.mxu1 %v12736_v51 }
0x3924   :  { %v16652_v40 = vpop.eup %16651 }
0x3925   :  { %v12734_v46 = vmul.f32 %v16652_v40, %v16650_v47 }
0x3927   :  { %v12735_v21 = vpack.c.bf16 %v12734_v46, %v12734_v46 }
0x3929   :  { %12962 = vmatmul.mubr.bf16.vlgmr.msra.gmra.mxu1 %v12735_v21 }
0x39e9   :  { %v12963_v9 = vpop.f32.mrf.mxu1 }
0x39ea   :  { %v12969_v2 = vadd.f32 %v19039_v48, %v12963_v9 }
0x39eb   :  { %v12965_v53 = vpop.f32.mrf.mxu1 }
0x39ec   :  { %12971 = vst [vmem:[#allocation13 + $0x38] sm:$0xff] %v12969_v2 }
0x39ed   :  { %v12966_v3 = vpop.f32.mrf.mxu1 }
0x39ee   :  { %16783 = shalt.err (!%p16780_p1)
}
0x39ef   :  { %s16821_s11 = smov 128   ;;  %s16822_s22 = smov 8   ;;  %v12967_v39 = vpop.f32.mrf.mxu1 }
0x39f0   :  { %12983 = dma.vmem_to_hbm [thread:$0]  %s12978_s20, 1024, %s18916_s13, [#allocation6], %s16821_s11, %s16821_s11, %s16822_s22  }
0x39f1   :  { %16798 = dma.done.wait [#allocation6], 1024  }
0x39f2   :  { %16799 = vsyncadd [#allocation6], 4294966272 }
0x39f3   :  { %12987 = vsyncpa [#allocation5], 1 }
0x39f4   :  { %12988 = vsyncpa [#allocation8], 1 }
0x39f5   :  { %12989 = vsyncpa [#allocation11], 1 }
0x39f6   :  { %12990 = vsyncpa [#allocation6], 1 }

</bundles_post_ra>
